<compile_context>
chip_gen: v6e
topology: v6e:2x2x1
jax: 0.10.0
libtpu: 0.0.40
codegen_flags: <defaults>
</compile_context>

<pallas_src>
import functools

import jax
import jax.numpy as jnp
import numpy as np
from jax.experimental import pallas as pl
from jax.experimental.pallas import tpu as pltpu


def _convt_leaky_kernel(x_ref, w_ref, b_ref, o_ref, pad_ref, *, K,
                        negative_slope):
    """One grid step == one batch element.

    x_ref:   [C_in, H, W]        unpadded NCHW input of this batch (VMEM)
    w_ref:   [C_in*C_out*K*K]    flat PyTorch ConvTranspose2d weight (SMEM)
    b_ref:   [C_out]             bias (SMEM)
    o_ref:   [C_out, HO, WO]     full NCHW output of this batch (VMEM)
    pad_ref: [C_in, HP, WP]      zero-bordered full-conv canvas (VMEM scratch)
    """
    CIN, H, W = x_ref.shape
    COUT, HO, WO = o_ref.shape

    # Fused zero-padding: zero the (tiny, ~6 KB) canvas every step (safe under
    # "parallel" megacore sharding), then place the input at offset (K-1, K-1).
    pad_ref[...] = jnp.zeros_like(pad_ref)
    for ci in range(CIN):
        pad_ref[ci, K - 1:K - 1 + H, K - 1:K - 1 + W] = (
            x_ref[ci].astype(jnp.float32))

    # Bias-initialized f32 accumulators (folds the epilogue bias add away).
    accs = [jnp.full((HO, WO), b_ref[co], jnp.float32) for co in range(COUT)]

    # VPU broadcast-FMA sweep: C_in*C_out*K*K = 288 scalar taps against
    # lane-dense [HO, WO] windows loaded straight from VMEM (the (kh, kw)
    # offset is absorbed by the vld, not in-register lane shifts).
    for ci in range(CIN):
        for kh in range(K):
            for kw in range(K):
                win = pad_ref[ci, kh:kh + HO, kw:kw + WO]     # [HO, WO]
                # ConvTranspose == full conv with spatially flipped taps:
                # weight element (ci, co, K-1-kh, K-1-kw) of the flat buffer.
                for co in range(COUT):
                    idx = ((ci * COUT + co) * K + (K - 1 - kh)) * K + (K - 1 - kw)
                    accs[co] = accs[co] + w_ref[idx] * win

    # Fused LeakyReLU: where(x > 0, x, x * negative_slope).
    for co in range(COUT):
        a = accs[co]
        o_ref[co] = jnp.where(a > 0, a, a * negative_slope).astype(o_ref.dtype)


@functools.partial(jax.jit, static_argnames=("negative_slope",))
def conv_transpose_leaky_relu(x, weight, bias, negative_slope=0.01):
    """x: [N, C_in, H, W] (NCHW); weight: [C_in, C_out, K, K] (PyTorch
    ConvTranspose2d layout); bias: [C_out].  stride=1, padding=0."""
    N, CIN, H, W = x.shape
    wcin, COUT, K, K2 = weight.shape
    assert wcin == CIN and K == K2
    HO, WO = H + K - 1, W + K - 1          # stride=1, padding=0
    HP, WP = HO + K - 1, WO + K - 1        # full-convolution canvas

    kernel = functools.partial(_convt_leaky_kernel, K=K,
                               negative_slope=negative_slope)

    return pl.pallas_call(
        kernel,
        out_shape=jax.ShapeDtypeStruct((N, COUT, HO, WO), x.dtype),
        grid=(N,),
        in_specs=[
            # One batch element per step; last two block dims equal the full
            # array dims, satisfying the (8,128) rule.
            pl.BlockSpec((None, CIN, H, W), lambda n: (n, 0, 0, 0)),
            pl.BlockSpec(memory_space=pltpu.MemorySpace.SMEM),   # flat weights
            pl.BlockSpec(memory_space=pltpu.MemorySpace.SMEM),   # bias
        ],
        out_specs=pl.BlockSpec((None, COUT, HO, WO), lambda n: (n, 0, 0, 0)),
        scratch_shapes=[pltpu.VMEM((CIN, HP, WP), jnp.float32)],
        compiler_params=pltpu.CompilerParams(
            dimension_semantics=("parallel",)),
    )(x, weight.reshape(-1), bias)


def _reference_numpy(x, w, b, negative_slope):
    """Direct scatter-form ConvTranspose2d + leaky relu (numpy, NCHW)."""
    N, Cin, H, W = x.shape
    _, Cout, K, _ = w.shape
    HO, WO = H + K - 1, W + K - 1
    y = np.zeros((N, Cout, HO, WO), np.float64)
    for n in range(N):
        for ci in range(Cin):
            for co in range(Cout):
                for ih in range(H):
                    for iw in range(W):
                        y[n, co, ih:ih + K, iw:iw + K] += x[n, ci, ih, iw] * w[ci, co]
    y += b.reshape(1, Cout, 1, 1)
    return np.where(y > 0, y, y * negative_slope)


if __name__ == "__main__":
    # Module hyper-parameters (not given in __init__; chosen small & explicit).
    N, C_IN, H, W = 2, 4, 16, 16
    C_OUT, K = 8, 3
    NEG_SLOPE = 0.01

    key = jax.random.PRNGKey(0)
    kx, kw, kb = jax.random.split(key, 3)
    x = jax.random.normal(kx, (N, C_IN, H, W), dtype=jnp.float32)
    # ConvTranspose2d weight layout: [C_in, C_out, K, K]
    weight = jax.random.normal(kw, (C_IN, C_OUT, K, K), dtype=jnp.float32) * 0.1
    bias = jax.random.normal(kb, (C_OUT,), dtype=jnp.float32) * 0.1

    out = conv_transpose_leaky_relu(x, weight, bias, negative_slope=NEG_SLOPE)
    out = jax.block_until_ready(out)

    ref = _reference_numpy(np.asarray(x, np.float64),
                           np.asarray(weight, np.float64),
                           np.asarray(bias, np.float64), NEG_SLOPE)
    np.testing.assert_allclose(np.asarray(out), ref, rtol=1e-4, atol=1e-4)
    print("KERNEL_OK")
</pallas_src>

<mosaic_0001>
module attributes {stable_mosaic.version = 11 : i64} {
  func.func @_convt_leaky_kernel(%arg0: i32, %arg1: memref<1x4x16x16xf32, #tpu.memory_space<vmem>>, %arg2: memref<288xf32, #tpu.memory_space<smem>>, %arg3: memref<8xf32, #tpu.memory_space<smem>>, %arg4: memref<1x8x18x18xf32, #tpu.memory_space<vmem>>, %arg5: memref<4x20x20xf32, #tpu.memory_space<vmem>>) attributes {dimension_semantics = [#tpu.dimension_semantics<parallel>], iteration_bounds = array<i64: 2>, scalar_prefetch = 0 : i64, scratch_operands = 1 : i64, tpu.core_type = #tpu.core_type<tc>, window_params = [{transform_indices = @transform_0, window_bounds = array<i64: 1, 4, 16, 16>}, {transform_indices = @transform_1, window_bounds = array<i64: 288>}, {transform_indices = @transform_2, window_bounds = array<i64: 8>}, {transform_indices = @transform_3, window_bounds = array<i64: 1, 8, 18, 18>}]} {
    %cst = arith.constant 0.000000e+00 : f32
    %0 = vector.broadcast %cst : f32 to vector<4x20x20xf32>
    %c0 = arith.constant 0 : index
    %c0_0 = arith.constant 0 : index
    %c0_1 = arith.constant 0 : index
    %1 = vector.load %arg5[%c0, %c0_0, %c0_1] : memref<4x20x20xf32, #tpu.memory_space<vmem>>, vector<4x20x20xf32>
    tpu.vector_store %arg5[%c0, %c0_0, %c0_1], %0 {strides = array<i32>} : memref<4x20x20xf32, #tpu.memory_space<vmem>>, vector<4x20x20xf32>,
    %c0_2 = arith.constant 0 : index
    %c0_3 = arith.constant 0 : index
    %c0_4 = arith.constant 0 : index
    %c0_5 = arith.constant 0 : index
    %2 = vector.load %arg1[%c0_2, %c0_3, %c0_4, %c0_5] : memref<1x4x16x16xf32, #tpu.memory_space<vmem>>, vector<1x1x16x16xf32>
    %3 = vector.shape_cast %2 : vector<1x1x16x16xf32> to vector<16x16xf32>
    %c0_6 = arith.constant 0 : index
    %c2 = arith.constant 2 : index
    %c2_7 = arith.constant 2 : index
    %4 = vector.load %arg5[%c0_6, %c2, %c2_7] : memref<4x20x20xf32, #tpu.memory_space<vmem>>, vector<1x16x16xf32>
    %5 = vector.shape_cast %4 : vector<1x16x16xf32> to vector<16x16xf32>
    %6 = vector.shape_cast %3 : vector<16x16xf32> to vector<1x16x16xf32>
    tpu.vector_store %arg5[%c0_6, %c2, %c2_7], %6 {strides = array<i32>} : memref<4x20x20xf32, #tpu.memory_space<vmem>>, vector<1x16x16xf32>,
    %c0_8 = arith.constant 0 : index
    %c1 = arith.constant 1 : index
    %c0_9 = arith.constant 0 : index
    %c0_10 = arith.constant 0 : index
    %7 = vector.load %arg1[%c0_8, %c1, %c0_9, %c0_10] : memref<1x4x16x16xf32, #tpu.memory_space<vmem>>, vector<1x1x16x16xf32>
    %8 = vector.shape_cast %7 : vector<1x1x16x16xf32> to vector<16x16xf32>
    %c1_11 = arith.constant 1 : index
    %c2_12 = arith.constant 2 : index
    %c2_13 = arith.constant 2 : index
    %9 = vector.load %arg5[%c1_11, %c2_12, %c2_13] : memref<4x20x20xf32, #tpu.memory_space<vmem>>, vector<1x16x16xf32>
    %10 = vector.shape_cast %9 : vector<1x16x16xf32> to vector<16x16xf32>
    %11 = vector.shape_cast %8 : vector<16x16xf32> to vector<1x16x16xf32>
    tpu.vector_store %arg5[%c1_11, %c2_12, %c2_13], %11 {strides = array<i32>} : memref<4x20x20xf32, #tpu.memory_space<vmem>>, vector<1x16x16xf32>,
    %c0_14 = arith.constant 0 : index
    %c2_15 = arith.constant 2 : index
    %c0_16 = arith.constant 0 : index
    %c0_17 = arith.constant 0 : index
    %12 = vector.load %arg1[%c0_14, %c2_15, %c0_16, %c0_17] : memref<1x4x16x16xf32, #tpu.memory_space<vmem>>, vector<1x1x16x16xf32>
    %13 = vector.shape_cast %12 : vector<1x1x16x16xf32> to vector<16x16xf32>
    %c2_18 = arith.constant 2 : index
    %c2_19 = arith.constant 2 : index
    %c2_20 = arith.constant 2 : index
    %14 = vector.load %arg5[%c2_18, %c2_19, %c2_20] : memref<4x20x20xf32, #tpu.memory_space<vmem>>, vector<1x16x16xf32>
    %15 = vector.shape_cast %14 : vector<1x16x16xf32> to vector<16x16xf32>
    %16 = vector.shape_cast %13 : vector<16x16xf32> to vector<1x16x16xf32>
    tpu.vector_store %arg5[%c2_18, %c2_19, %c2_20], %16 {strides = array<i32>} : memref<4x20x20xf32, #tpu.memory_space<vmem>>, vector<1x16x16xf32>,
    %c0_21 = arith.constant 0 : index
    %c3 = arith.constant 3 : index
    %c0_22 = arith.constant 0 : index
    %c0_23 = arith.constant 0 : index
    %17 = vector.load %arg1[%c0_21, %c3, %c0_22, %c0_23] : memref<1x4x16x16xf32, #tpu.memory_space<vmem>>, vector<1x1x16x16xf32>
    %18 = vector.shape_cast %17 : vector<1x1x16x16xf32> to vector<16x16xf32>
    %c3_24 = arith.constant 3 : index
    %c2_25 = arith.constant 2 : index
    %c2_26 = arith.constant 2 : index
    %19 = vector.load %arg5[%c3_24, %c2_25, %c2_26] : memref<4x20x20xf32, #tpu.memory_space<vmem>>, vector<1x16x16xf32>
    %20 = vector.shape_cast %19 : vector<1x16x16xf32> to vector<16x16xf32>
    %21 = vector.shape_cast %18 : vector<16x16xf32> to vector<1x16x16xf32>
    tpu.vector_store %arg5[%c3_24, %c2_25, %c2_26], %21 {strides = array<i32>} : memref<4x20x20xf32, #tpu.memory_space<vmem>>, vector<1x16x16xf32>,
    %c0_27 = arith.constant 0 : index
    %22 = memref.load %arg3[%c0_27] : memref<8xf32, #tpu.memory_space<smem>>
    %23 = vector.broadcast %22 : f32 to vector<18x18xf32>
    %c1_28 = arith.constant 1 : index
    %24 = memref.load %arg3[%c1_28] : memref<8xf32, #tpu.memory_space<smem>>
    %25 = vector.broadcast %24 : f32 to vector<18x18xf32>
    %c2_29 = arith.constant 2 : index
    %26 = memref.load %arg3[%c2_29] : memref<8xf32, #tpu.memory_space<smem>>
    %27 = vector.broadcast %26 : f32 to vector<18x18xf32>
    %c3_30 = arith.constant 3 : index
    %28 = memref.load %arg3[%c3_30] : memref<8xf32, #tpu.memory_space<smem>>
    %29 = vector.broadcast %28 : f32 to vector<18x18xf32>
    %c4 = arith.constant 4 : index
    %30 = memref.load %arg3[%c4] : memref<8xf32, #tpu.memory_space<smem>>
    %31 = vector.broadcast %30 : f32 to vector<18x18xf32>
    %c5 = arith.constant 5 : index
    %32 = memref.load %arg3[%c5] : memref<8xf32, #tpu.memory_space<smem>>
    %33 = vector.broadcast %32 : f32 to vector<18x18xf32>
    %c6 = arith.constant 6 : index
    %34 = memref.load %arg3[%c6] : memref<8xf32, #tpu.memory_space<smem>>
    %35 = vector.broadcast %34 : f32 to vector<18x18xf32>
    %c7 = arith.constant 7 : index
    %36 = memref.load %arg3[%c7] : memref<8xf32, #tpu.memory_space<smem>>
    %37 = vector.broadcast %36 : f32 to vector<18x18xf32>
    %c0_31 = arith.constant 0 : index
    %c0_32 = arith.constant 0 : index
    %c0_33 = arith.constant 0 : index
    %38 = vector.load %arg5[%c0_31, %c0_32, %c0_33] : memref<4x20x20xf32, #tpu.memory_space<vmem>>, vector<1x18x18xf32>
    %39 = vector.shape_cast %38 : vector<1x18x18xf32> to vector<18x18xf32>
    %c8 = arith.constant 8 : index
    %40 = memref.load %arg2[%c8] : memref<288xf32, #tpu.memory_space<smem>>
    %41 = vector.broadcast %40 : f32 to vector<18x18xf32>
    %42 = arith.mulf %41, %39 : vector<18x18xf32>
    %43 = arith.addf %23, %42 : vector<18x18xf32>
    %c17 = arith.constant 17 : index
    %44 = memref.load %arg2[%c17] : memref<288xf32, #tpu.memory_space<smem>>
    %45 = vector.broadcast %44 : f32 to vector<18x18xf32>
    %46 = arith.mulf %45, %39 : vector<18x18xf32>
    %47 = arith.addf %25, %46 : vector<18x18xf32>
    %c26 = arith.constant 26 : index
    %48 = memref.load %arg2[%c26] : memref<288xf32, #tpu.memory_space<smem>>
    %49 = vector.broadcast %48 : f32 to vector<18x18xf32>
    %50 = arith.mulf %49, %39 : vector<18x18xf32>
    %51 = arith.addf %27, %50 : vector<18x18xf32>
    %c35 = arith.constant 35 : index
    %52 = memref.load %arg2[%c35] : memref<288xf32, #tpu.memory_space<smem>>
    %53 = vector.broadcast %52 : f32 to vector<18x18xf32>
    %54 = arith.mulf %53, %39 : vector<18x18xf32>
    %55 = arith.addf %29, %54 : vector<18x18xf32>
    %c44 = arith.constant 44 : index
    %56 = memref.load %arg2[%c44] : memref<288xf32, #tpu.memory_space<smem>>
    %57 = vector.broadcast %56 : f32 to vector<18x18xf32>
    %58 = arith.mulf %57, %39 : vector<18x18xf32>
    %59 = arith.addf %31, %58 : vector<18x18xf32>
    %c53 = arith.constant 53 : index
    %60 = memref.load %arg2[%c53] : memref<288xf32, #tpu.memory_space<smem>>
    %61 = vector.broadcast %60 : f32 to vector<18x18xf32>
    %62 = arith.mulf %61, %39 : vector<18x18xf32>
    %63 = arith.addf %33, %62 : vector<18x18xf32>
    %c62 = arith.constant 62 : index
    %64 = memref.load %arg2[%c62] : memref<288xf32, #tpu.memory_space<smem>>
    %65 = vector.broadcast %64 : f32 to vector<18x18xf32>
    %66 = arith.mulf %65, %39 : vector<18x18xf32>
    %67 = arith.addf %35, %66 : vector<18x18xf32>
    %c71 = arith.constant 71 : index
    %68 = memref.load %arg2[%c71] : memref<288xf32, #tpu.memory_space<smem>>
    %69 = vector.broadcast %68 : f32 to vector<18x18xf32>
    %70 = arith.mulf %69, %39 : vector<18x18xf32>
    %71 = arith.addf %37, %70 : vector<18x18xf32>
    %c0_34 = arith.constant 0 : index
    %c0_35 = arith.constant 0 : index
    %c1_36 = arith.constant 1 : index
    %72 = vector.load %arg5[%c0_34, %c0_35, %c1_36] : memref<4x20x20xf32, #tpu.memory_space<vmem>>, vector<1x18x18xf32>
    %73 = vector.shape_cast %72 : vector<1x18x18xf32> to vector<18x18xf32>
    %c7_37 = arith.constant 7 : index
    %74 = memref.load %arg2[%c7_37] : memref<288xf32, #tpu.memory_space<smem>>
    %75 = vector.broadcast %74 : f32 to vector<18x18xf32>
    %76 = arith.mulf %75, %73 : vector<18x18xf32>
    %77 = arith.addf %43, %76 : vector<18x18xf32>
    %c16 = arith.constant 16 : index
    %78 = memref.load %arg2[%c16] : memref<288xf32, #tpu.memory_space<smem>>
    %79 = vector.broadcast %78 : f32 to vector<18x18xf32>
    %80 = arith.mulf %79, %73 : vector<18x18xf32>
    %81 = arith.addf %47, %80 : vector<18x18xf32>
    %c25 = arith.constant 25 : index
    %82 = memref.load %arg2[%c25] : memref<288xf32, #tpu.memory_space<smem>>
    %83 = vector.broadcast %82 : f32 to vector<18x18xf32>
    %84 = arith.mulf %83, %73 : vector<18x18xf32>
    %85 = arith.addf %51, %84 : vector<18x18xf32>
    %c34 = arith.constant 34 : index
    %86 = memref.load %arg2[%c34] : memref<288xf32, #tpu.memory_space<smem>>
    %87 = vector.broadcast %86 : f32 to vector<18x18xf32>
    %88 = arith.mulf %87, %73 : vector<18x18xf32>
    %89 = arith.addf %55, %88 : vector<18x18xf32>
    %c43 = arith.constant 43 : index
    %90 = memref.load %arg2[%c43] : memref<288xf32, #tpu.memory_space<smem>>
    %91 = vector.broadcast %90 : f32 to vector<18x18xf32>
    %92 = arith.mulf %91, %73 : vector<18x18xf32>
    %93 = arith.addf %59, %92 : vector<18x18xf32>
    %c52 = arith.constant 52 : index
    %94 = memref.load %arg2[%c52] : memref<288xf32, #tpu.memory_space<smem>>
    %95 = vector.broadcast %94 : f32 to vector<18x18xf32>
    %96 = arith.mulf %95, %73 : vector<18x18xf32>
    %97 = arith.addf %63, %96 : vector<18x18xf32>
    %c61 = arith.constant 61 : index
    %98 = memref.load %arg2[%c61] : memref<288xf32, #tpu.memory_space<smem>>
    %99 = vector.broadcast %98 : f32 to vector<18x18xf32>
    %100 = arith.mulf %99, %73 : vector<18x18xf32>
    %101 = arith.addf %67, %100 : vector<18x18xf32>
    %c70 = arith.constant 70 : index
    %102 = memref.load %arg2[%c70] : memref<288xf32, #tpu.memory_space<smem>>
    %103 = vector.broadcast %102 : f32 to vector<18x18xf32>
    %104 = arith.mulf %103, %73 : vector<18x18xf32>
    %105 = arith.addf %71, %104 : vector<18x18xf32>
    %c0_38 = arith.constant 0 : index
    %c0_39 = arith.constant 0 : index
    %c2_40 = arith.constant 2 : index
    %106 = vector.load %arg5[%c0_38, %c0_39, %c2_40] : memref<4x20x20xf32, #tpu.memory_space<vmem>>, vector<1x18x18xf32>
    %107 = vector.shape_cast %106 : vector<1x18x18xf32> to vector<18x18xf32>
    %c6_41 = arith.constant 6 : index
    %108 = memref.load %arg2[%c6_41] : memref<288xf32, #tpu.memory_space<smem>>
    %109 = vector.broadcast %108 : f32 to vector<18x18xf32>
    %110 = arith.mulf %109, %107 : vector<18x18xf32>
    %111 = arith.addf %77, %110 : vector<18x18xf32>
    %c15 = arith.constant 15 : index
    %112 = memref.load %arg2[%c15] : memref<288xf32, #tpu.memory_space<smem>>
    %113 = vector.broadcast %112 : f32 to vector<18x18xf32>
    %114 = arith.mulf %113, %107 : vector<18x18xf32>
    %115 = arith.addf %81, %114 : vector<18x18xf32>
    %c24 = arith.constant 24 : index
    %116 = memref.load %arg2[%c24] : memref<288xf32, #tpu.memory_space<smem>>
    %117 = vector.broadcast %116 : f32 to vector<18x18xf32>
    %118 = arith.mulf %117, %107 : vector<18x18xf32>
    %119 = arith.addf %85, %118 : vector<18x18xf32>
    %c33 = arith.constant 33 : index
    %120 = memref.load %arg2[%c33] : memref<288xf32, #tpu.memory_space<smem>>
    %121 = vector.broadcast %120 : f32 to vector<18x18xf32>
    %122 = arith.mulf %121, %107 : vector<18x18xf32>
    %123 = arith.addf %89, %122 : vector<18x18xf32>
    %c42 = arith.constant 42 : index
    %124 = memref.load %arg2[%c42] : memref<288xf32, #tpu.memory_space<smem>>
    %125 = vector.broadcast %124 : f32 to vector<18x18xf32>
    %126 = arith.mulf %125, %107 : vector<18x18xf32>
    %127 = arith.addf %93, %126 : vector<18x18xf32>
    %c51 = arith.constant 51 : index
    %128 = memref.load %arg2[%c51] : memref<288xf32, #tpu.memory_space<smem>>
    %129 = vector.broadcast %128 : f32 to vector<18x18xf32>
    %130 = arith.mulf %129, %107 : vector<18x18xf32>
    %131 = arith.addf %97, %130 : vector<18x18xf32>
    %c60 = arith.constant 60 : index
    %132 = memref.load %arg2[%c60] : memref<288xf32, #tpu.memory_space<smem>>
    %133 = vector.broadcast %132 : f32 to vector<18x18xf32>
    %134 = arith.mulf %133, %107 : vector<18x18xf32>
    %135 = arith.addf %101, %134 : vector<18x18xf32>
    %c69 = arith.constant 69 : index
    %136 = memref.load %arg2[%c69] : memref<288xf32, #tpu.memory_space<smem>>
    %137 = vector.broadcast %136 : f32 to vector<18x18xf32>
    %138 = arith.mulf %137, %107 : vector<18x18xf32>
    %139 = arith.addf %105, %138 : vector<18x18xf32>
    %c0_42 = arith.constant 0 : index
    %c1_43 = arith.constant 1 : index
    %c0_44 = arith.constant 0 : index
    %140 = vector.load %arg5[%c0_42, %c1_43, %c0_44] : memref<4x20x20xf32, #tpu.memory_space<vmem>>, vector<1x18x18xf32>
    %141 = vector.shape_cast %140 : vector<1x18x18xf32> to vector<18x18xf32>
    %c5_45 = arith.constant 5 : index
    %142 = memref.load %arg2[%c5_45] : memref<288xf32, #tpu.memory_space<smem>>
    %143 = vector.broadcast %142 : f32 to vector<18x18xf32>
    %144 = arith.mulf %143, %141 : vector<18x18xf32>
    %145 = arith.addf %111, %144 : vector<18x18xf32>
    %c14 = arith.constant 14 : index
    %146 = memref.load %arg2[%c14] : memref<288xf32, #tpu.memory_space<smem>>
    %147 = vector.broadcast %146 : f32 to vector<18x18xf32>
    %148 = arith.mulf %147, %141 : vector<18x18xf32>
    %149 = arith.addf %115, %148 : vector<18x18xf32>
    %c23 = arith.constant 23 : index
    %150 = memref.load %arg2[%c23] : memref<288xf32, #tpu.memory_space<smem>>
    %151 = vector.broadcast %150 : f32 to vector<18x18xf32>
    %152 = arith.mulf %151, %141 : vector<18x18xf32>
    %153 = arith.addf %119, %152 : vector<18x18xf32>
    %c32 = arith.constant 32 : index
    %154 = memref.load %arg2[%c32] : memref<288xf32, #tpu.memory_space<smem>>
    %155 = vector.broadcast %154 : f32 to vector<18x18xf32>
    %156 = arith.mulf %155, %141 : vector<18x18xf32>
    %157 = arith.addf %123, %156 : vector<18x18xf32>
    %c41 = arith.constant 41 : index
    %158 = memref.load %arg2[%c41] : memref<288xf32, #tpu.memory_space<smem>>
    %159 = vector.broadcast %158 : f32 to vector<18x18xf32>
    %160 = arith.mulf %159, %141 : vector<18x18xf32>
    %161 = arith.addf %127, %160 : vector<18x18xf32>
    %c50 = arith.constant 50 : index
    %162 = memref.load %arg2[%c50] : memref<288xf32, #tpu.memory_space<smem>>
    %163 = vector.broadcast %162 : f32 to vector<18x18xf32>
    %164 = arith.mulf %163, %141 : vector<18x18xf32>
    %165 = arith.addf %131, %164 : vector<18x18xf32>
    %c59 = arith.constant 59 : index
    %166 = memref.load %arg2[%c59] : memref<288xf32, #tpu.memory_space<smem>>
    %167 = vector.broadcast %166 : f32 to vector<18x18xf32>
    %168 = arith.mulf %167, %141 : vector<18x18xf32>
    %169 = arith.addf %135, %168 : vector<18x18xf32>
    %c68 = arith.constant 68 : index
    %170 = memref.load %arg2[%c68] : memref<288xf32, #tpu.memory_space<smem>>
    %171 = vector.broadcast %170 : f32 to vector<18x18xf32>
    %172 = arith.mulf %171, %141 : vector<18x18xf32>
    %173 = arith.addf %139, %172 : vector<18x18xf32>
    %c0_46 = arith.constant 0 : index
    %c1_47 = arith.constant 1 : index
    %c1_48 = arith.constant 1 : index
    %174 = vector.load %arg5[%c0_46, %c1_47, %c1_48] : memref<4x20x20xf32, #tpu.memory_space<vmem>>, vector<1x18x18xf32>
    %175 = vector.shape_cast %174 : vector<1x18x18xf32> to vector<18x18xf32>
    %c4_49 = arith.constant 4 : index
    %176 = memref.load %arg2[%c4_49] : memref<288xf32, #tpu.memory_space<smem>>
    %177 = vector.broadcast %176 : f32 to vector<18x18xf32>
    %178 = arith.mulf %177, %175 : vector<18x18xf32>
    %179 = arith.addf %145, %178 : vector<18x18xf32>
    %c13 = arith.constant 13 : index
    %180 = memref.load %arg2[%c13] : memref<288xf32, #tpu.memory_space<smem>>
    %181 = vector.broadcast %180 : f32 to vector<18x18xf32>
    %182 = arith.mulf %181, %175 : vector<18x18xf32>
    %183 = arith.addf %149, %182 : vector<18x18xf32>
    %c22 = arith.constant 22 : index
    %184 = memref.load %arg2[%c22] : memref<288xf32, #tpu.memory_space<smem>>
    %185 = vector.broadcast %184 : f32 to vector<18x18xf32>
    %186 = arith.mulf %185, %175 : vector<18x18xf32>
    %187 = arith.addf %153, %186 : vector<18x18xf32>
    %c31 = arith.constant 31 : index
    %188 = memref.load %arg2[%c31] : memref<288xf32, #tpu.memory_space<smem>>
    %189 = vector.broadcast %188 : f32 to vector<18x18xf32>
    %190 = arith.mulf %189, %175 : vector<18x18xf32>
    %191 = arith.addf %157, %190 : vector<18x18xf32>
    %c40 = arith.constant 40 : index
    %192 = memref.load %arg2[%c40] : memref<288xf32, #tpu.memory_space<smem>>
    %193 = vector.broadcast %192 : f32 to vector<18x18xf32>
    %194 = arith.mulf %193, %175 : vector<18x18xf32>
    %195 = arith.addf %161, %194 : vector<18x18xf32>
    %c49 = arith.constant 49 : index
    %196 = memref.load %arg2[%c49] : memref<288xf32, #tpu.memory_space<smem>>
    %197 = vector.broadcast %196 : f32 to vector<18x18xf32>
    %198 = arith.mulf %197, %175 : vector<18x18xf32>
    %199 = arith.addf %165, %198 : vector<18x18xf32>
    %c58 = arith.constant 58 : index
    %200 = memref.load %arg2[%c58] : memref<288xf32, #tpu.memory_space<smem>>
    %201 = vector.broadcast %200 : f32 to vector<18x18xf32>
    %202 = arith.mulf %201, %175 : vector<18x18xf32>
    %203 = arith.addf %169, %202 : vector<18x18xf32>
    %c67 = arith.constant 67 : index
    %204 = memref.load %arg2[%c67] : memref<288xf32, #tpu.memory_space<smem>>
    %205 = vector.broadcast %204 : f32 to vector<18x18xf32>
    %206 = arith.mulf %205, %175 : vector<18x18xf32>
    %207 = arith.addf %173, %206 : vector<18x18xf32>
    %c0_50 = arith.constant 0 : index
    %c1_51 = arith.constant 1 : index
    %c2_52 = arith.constant 2 : index
    %208 = vector.load %arg5[%c0_50, %c1_51, %c2_52] : memref<4x20x20xf32, #tpu.memory_space<vmem>>, vector<1x18x18xf32>
    %209 = vector.shape_cast %208 : vector<1x18x18xf32> to vector<18x18xf32>
    %c3_53 = arith.constant 3 : index
    %210 = memref.load %arg2[%c3_53] : memref<288xf32, #tpu.memory_space<smem>>
    %211 = vector.broadcast %210 : f32 to vector<18x18xf32>
    %212 = arith.mulf %211, %209 : vector<18x18xf32>
    %213 = arith.addf %179, %212 : vector<18x18xf32>
    %c12 = arith.constant 12 : index
    %214 = memref.load %arg2[%c12] : memref<288xf32, #tpu.memory_space<smem>>
    %215 = vector.broadcast %214 : f32 to vector<18x18xf32>
    %216 = arith.mulf %215, %209 : vector<18x18xf32>
    %217 = arith.addf %183, %216 : vector<18x18xf32>
    %c21 = arith.constant 21 : index
    %218 = memref.load %arg2[%c21] : memref<288xf32, #tpu.memory_space<smem>>
    %219 = vector.broadcast %218 : f32 to vector<18x18xf32>
    %220 = arith.mulf %219, %209 : vector<18x18xf32>
    %221 = arith.addf %187, %220 : vector<18x18xf32>
    %c30 = arith.constant 30 : index
    %222 = memref.load %arg2[%c30] : memref<288xf32, #tpu.memory_space<smem>>
    %223 = vector.broadcast %222 : f32 to vector<18x18xf32>
    %224 = arith.mulf %223, %209 : vector<18x18xf32>
    %225 = arith.addf %191, %224 : vector<18x18xf32>
    %c39 = arith.constant 39 : index
    %226 = memref.load %arg2[%c39] : memref<288xf32, #tpu.memory_space<smem>>
    %227 = vector.broadcast %226 : f32 to vector<18x18xf32>
    %228 = arith.mulf %227, %209 : vector<18x18xf32>
    %229 = arith.addf %195, %228 : vector<18x18xf32>
    %c48 = arith.constant 48 : index
    %230 = memref.load %arg2[%c48] : memref<288xf32, #tpu.memory_space<smem>>
    %231 = vector.broadcast %230 : f32 to vector<18x18xf32>
    %232 = arith.mulf %231, %209 : vector<18x18xf32>
    %233 = arith.addf %199, %232 : vector<18x18xf32>
    %c57 = arith.constant 57 : index
    %234 = memref.load %arg2[%c57] : memref<288xf32, #tpu.memory_space<smem>>
    %235 = vector.broadcast %234 : f32 to vector<18x18xf32>
    %236 = arith.mulf %235, %209 : vector<18x18xf32>
    %237 = arith.addf %203, %236 : vector<18x18xf32>
    %c66 = arith.constant 66 : index
    %238 = memref.load %arg2[%c66] : memref<288xf32, #tpu.memory_space<smem>>
    %239 = vector.broadcast %238 : f32 to vector<18x18xf32>
    %240 = arith.mulf %239, %209 : vector<18x18xf32>
    %241 = arith.addf %207, %240 : vector<18x18xf32>
    %c0_54 = arith.constant 0 : index
    %c2_55 = arith.constant 2 : index
    %c0_56 = arith.constant 0 : index
    %242 = vector.load %arg5[%c0_54, %c2_55, %c0_56] : memref<4x20x20xf32, #tpu.memory_space<vmem>>, vector<1x18x18xf32>
    %243 = vector.shape_cast %242 : vector<1x18x18xf32> to vector<18x18xf32>
    %c2_57 = arith.constant 2 : index
    %244 = memref.load %arg2[%c2_57] : memref<288xf32, #tpu.memory_space<smem>>
    %245 = vector.broadcast %244 : f32 to vector<18x18xf32>
    %246 = arith.mulf %245, %243 : vector<18x18xf32>
    %247 = arith.addf %213, %246 : vector<18x18xf32>
    %c11 = arith.constant 11 : index
    %248 = memref.load %arg2[%c11] : memref<288xf32, #tpu.memory_space<smem>>
    %249 = vector.broadcast %248 : f32 to vector<18x18xf32>
    %250 = arith.mulf %249, %243 : vector<18x18xf32>
    %251 = arith.addf %217, %250 : vector<18x18xf32>
    %c20 = arith.constant 20 : index
    %252 = memref.load %arg2[%c20] : memref<288xf32, #tpu.memory_space<smem>>
    %253 = vector.broadcast %252 : f32 to vector<18x18xf32>
    %254 = arith.mulf %253, %243 : vector<18x18xf32>
    %255 = arith.addf %221, %254 : vector<18x18xf32>
    %c29 = arith.constant 29 : index
    %256 = memref.load %arg2[%c29] : memref<288xf32, #tpu.memory_space<smem>>
    %257 = vector.broadcast %256 : f32 to vector<18x18xf32>
    %258 = arith.mulf %257, %243 : vector<18x18xf32>
    %259 = arith.addf %225, %258 : vector<18x18xf32>
    %c38 = arith.constant 38 : index
    %260 = memref.load %arg2[%c38] : memref<288xf32, #tpu.memory_space<smem>>
    %261 = vector.broadcast %260 : f32 to vector<18x18xf32>
    %262 = arith.mulf %261, %243 : vector<18x18xf32>
    %263 = arith.addf %229, %262 : vector<18x18xf32>
    %c47 = arith.constant 47 : index
    %264 = memref.load %arg2[%c47] : memref<288xf32, #tpu.memory_space<smem>>
    %265 = vector.broadcast %264 : f32 to vector<18x18xf32>
    %266 = arith.mulf %265, %243 : vector<18x18xf32>
    %267 = arith.addf %233, %266 : vector<18x18xf32>
    %c56 = arith.constant 56 : index
    %268 = memref.load %arg2[%c56] : memref<288xf32, #tpu.memory_space<smem>>
    %269 = vector.broadcast %268 : f32 to vector<18x18xf32>
    %270 = arith.mulf %269, %243 : vector<18x18xf32>
    %271 = arith.addf %237, %270 : vector<18x18xf32>
    %c65 = arith.constant 65 : index
    %272 = memref.load %arg2[%c65] : memref<288xf32, #tpu.memory_space<smem>>
    %273 = vector.broadcast %272 : f32 to vector<18x18xf32>
    %274 = arith.mulf %273, %243 : vector<18x18xf32>
    %275 = arith.addf %241, %274 : vector<18x18xf32>
    %c0_58 = arith.constant 0 : index
    %c2_59 = arith.constant 2 : index
    %c1_60 = arith.constant 1 : index
    %276 = vector.load %arg5[%c0_58, %c2_59, %c1_60] : memref<4x20x20xf32, #tpu.memory_space<vmem>>, vector<1x18x18xf32>
    %277 = vector.shape_cast %276 : vector<1x18x18xf32> to vector<18x18xf32>
    %c1_61 = arith.constant 1 : index
    %278 = memref.load %arg2[%c1_61] : memref<288xf32, #tpu.memory_space<smem>>
    %279 = vector.broadcast %278 : f32 to vector<18x18xf32>
    %280 = arith.mulf %279, %277 : vector<18x18xf32>
    %281 = arith.addf %247, %280 : vector<18x18xf32>
    %c10 = arith.constant 10 : index
    %282 = memref.load %arg2[%c10] : memref<288xf32, #tpu.memory_space<smem>>
    %283 = vector.broadcast %282 : f32 to vector<18x18xf32>
    %284 = arith.mulf %283, %277 : vector<18x18xf32>
    %285 = arith.addf %251, %284 : vector<18x18xf32>
    %c19 = arith.constant 19 : index
    %286 = memref.load %arg2[%c19] : memref<288xf32, #tpu.memory_space<smem>>
    %287 = vector.broadcast %286 : f32 to vector<18x18xf32>
    %288 = arith.mulf %287, %277 : vector<18x18xf32>
    %289 = arith.addf %255, %288 : vector<18x18xf32>
    %c28 = arith.constant 28 : index
    %290 = memref.load %arg2[%c28] : memref<288xf32, #tpu.memory_space<smem>>
    %291 = vector.broadcast %290 : f32 to vector<18x18xf32>
    %292 = arith.mulf %291, %277 : vector<18x18xf32>
    %293 = arith.addf %259, %292 : vector<18x18xf32>
    %c37 = arith.constant 37 : index
    %294 = memref.load %arg2[%c37] : memref<288xf32, #tpu.memory_space<smem>>
    %295 = vector.broadcast %294 : f32 to vector<18x18xf32>
    %296 = arith.mulf %295, %277 : vector<18x18xf32>
    %297 = arith.addf %263, %296 : vector<18x18xf32>
    %c46 = arith.constant 46 : index
    %298 = memref.load %arg2[%c46] : memref<288xf32, #tpu.memory_space<smem>>
    %299 = vector.broadcast %298 : f32 to vector<18x18xf32>
    %300 = arith.mulf %299, %277 : vector<18x18xf32>
    %301 = arith.addf %267, %300 : vector<18x18xf32>
    %c55 = arith.constant 55 : index
    %302 = memref.load %arg2[%c55] : memref<288xf32, #tpu.memory_space<smem>>
    %303 = vector.broadcast %302 : f32 to vector<18x18xf32>
    %304 = arith.mulf %303, %277 : vector<18x18xf32>
    %305 = arith.addf %271, %304 : vector<18x18xf32>
    %c64 = arith.constant 64 : index
    %306 = memref.load %arg2[%c64] : memref<288xf32, #tpu.memory_space<smem>>
    %307 = vector.broadcast %306 : f32 to vector<18x18xf32>
    %308 = arith.mulf %307, %277 : vector<18x18xf32>
    %309 = arith.addf %275, %308 : vector<18x18xf32>
    %c0_62 = arith.constant 0 : index
    %c2_63 = arith.constant 2 : index
    %c2_64 = arith.constant 2 : index
    %310 = vector.load %arg5[%c0_62, %c2_63, %c2_64] : memref<4x20x20xf32, #tpu.memory_space<vmem>>, vector<1x18x18xf32>
    %311 = vector.shape_cast %310 : vector<1x18x18xf32> to vector<18x18xf32>
    %c0_65 = arith.constant 0 : index
    %312 = memref.load %arg2[%c0_65] : memref<288xf32, #tpu.memory_space<smem>>
    %313 = vector.broadcast %312 : f32 to vector<18x18xf32>
    %314 = arith.mulf %313, %311 : vector<18x18xf32>
    %315 = arith.addf %281, %314 : vector<18x18xf32>
    %c9 = arith.constant 9 : index
    %316 = memref.load %arg2[%c9] : memref<288xf32, #tpu.memory_space<smem>>
    %317 = vector.broadcast %316 : f32 to vector<18x18xf32>
    %318 = arith.mulf %317, %311 : vector<18x18xf32>
    %319 = arith.addf %285, %318 : vector<18x18xf32>
    %c18 = arith.constant 18 : index
    %320 = memref.load %arg2[%c18] : memref<288xf32, #tpu.memory_space<smem>>
    %321 = vector.broadcast %320 : f32 to vector<18x18xf32>
    %322 = arith.mulf %321, %311 : vector<18x18xf32>
    %323 = arith.addf %289, %322 : vector<18x18xf32>
    %c27 = arith.constant 27 : index
    %324 = memref.load %arg2[%c27] : memref<288xf32, #tpu.memory_space<smem>>
    %325 = vector.broadcast %324 : f32 to vector<18x18xf32>
    %326 = arith.mulf %325, %311 : vector<18x18xf32>
    %327 = arith.addf %293, %326 : vector<18x18xf32>
    %c36 = arith.constant 36 : index
    %328 = memref.load %arg2[%c36] : memref<288xf32, #tpu.memory_space<smem>>
    %329 = vector.broadcast %328 : f32 to vector<18x18xf32>
    %330 = arith.mulf %329, %311 : vector<18x18xf32>
    %331 = arith.addf %297, %330 : vector<18x18xf32>
    %c45 = arith.constant 45 : index
    %332 = memref.load %arg2[%c45] : memref<288xf32, #tpu.memory_space<smem>>
    %333 = vector.broadcast %332 : f32 to vector<18x18xf32>
    %334 = arith.mulf %333, %311 : vector<18x18xf32>
    %335 = arith.addf %301, %334 : vector<18x18xf32>
    %c54 = arith.constant 54 : index
    %336 = memref.load %arg2[%c54] : memref<288xf32, #tpu.memory_space<smem>>
    %337 = vector.broadcast %336 : f32 to vector<18x18xf32>
    %338 = arith.mulf %337, %311 : vector<18x18xf32>
    %339 = arith.addf %305, %338 : vector<18x18xf32>
    %c63 = arith.constant 63 : index
    %340 = memref.load %arg2[%c63] : memref<288xf32, #tpu.memory_space<smem>>
    %341 = vector.broadcast %340 : f32 to vector<18x18xf32>
    %342 = arith.mulf %341, %311 : vector<18x18xf32>
    %343 = arith.addf %309, %342 : vector<18x18xf32>
    %c1_66 = arith.constant 1 : index
    %c0_67 = arith.constant 0 : index
    %c0_68 = arith.constant 0 : index
    %344 = vector.load %arg5[%c1_66, %c0_67, %c0_68] : memref<4x20x20xf32, #tpu.memory_space<vmem>>, vector<1x18x18xf32>
    %345 = vector.shape_cast %344 : vector<1x18x18xf32> to vector<18x18xf32>
    %c80 = arith.constant 80 : index
    %346 = memref.load %arg2[%c80] : memref<288xf32, #tpu.memory_space<smem>>
    %347 = vector.broadcast %346 : f32 to vector<18x18xf32>
    %348 = arith.mulf %347, %345 : vector<18x18xf32>
    %349 = arith.addf %315, %348 : vector<18x18xf32>
    %c89 = arith.constant 89 : index
    %350 = memref.load %arg2[%c89] : memref<288xf32, #tpu.memory_space<smem>>
    %351 = vector.broadcast %350 : f32 to vector<18x18xf32>
    %352 = arith.mulf %351, %345 : vector<18x18xf32>
    %353 = arith.addf %319, %352 : vector<18x18xf32>
    %c98 = arith.constant 98 : index
    %354 = memref.load %arg2[%c98] : memref<288xf32, #tpu.memory_space<smem>>
    %355 = vector.broadcast %354 : f32 to vector<18x18xf32>
    %356 = arith.mulf %355, %345 : vector<18x18xf32>
    %357 = arith.addf %323, %356 : vector<18x18xf32>
    %c107 = arith.constant 107 : index
    %358 = memref.load %arg2[%c107] : memref<288xf32, #tpu.memory_space<smem>>
    %359 = vector.broadcast %358 : f32 to vector<18x18xf32>
    %360 = arith.mulf %359, %345 : vector<18x18xf32>
    %361 = arith.addf %327, %360 : vector<18x18xf32>
    %c116 = arith.constant 116 : index
    %362 = memref.load %arg2[%c116] : memref<288xf32, #tpu.memory_space<smem>>
    %363 = vector.broadcast %362 : f32 to vector<18x18xf32>
    %364 = arith.mulf %363, %345 : vector<18x18xf32>
    %365 = arith.addf %331, %364 : vector<18x18xf32>
    %c125 = arith.constant 125 : index
    %366 = memref.load %arg2[%c125] : memref<288xf32, #tpu.memory_space<smem>>
    %367 = vector.broadcast %366 : f32 to vector<18x18xf32>
    %368 = arith.mulf %367, %345 : vector<18x18xf32>
    %369 = arith.addf %335, %368 : vector<18x18xf32>
    %c134 = arith.constant 134 : index
    %370 = memref.load %arg2[%c134] : memref<288xf32, #tpu.memory_space<smem>>
    %371 = vector.broadcast %370 : f32 to vector<18x18xf32>
    %372 = arith.mulf %371, %345 : vector<18x18xf32>
    %373 = arith.addf %339, %372 : vector<18x18xf32>
    %c143 = arith.constant 143 : index
    %374 = memref.load %arg2[%c143] : memref<288xf32, #tpu.memory_space<smem>>
    %375 = vector.broadcast %374 : f32 to vector<18x18xf32>
    %376 = arith.mulf %375, %345 : vector<18x18xf32>
    %377 = arith.addf %343, %376 : vector<18x18xf32>
    %c1_69 = arith.constant 1 : index
    %c0_70 = arith.constant 0 : index
    %c1_71 = arith.constant 1 : index
    %378 = vector.load %arg5[%c1_69, %c0_70, %c1_71] : memref<4x20x20xf32, #tpu.memory_space<vmem>>, vector<1x18x18xf32>
    %379 = vector.shape_cast %378 : vector<1x18x18xf32> to vector<18x18xf32>
    %c79 = arith.constant 79 : index
    %380 = memref.load %arg2[%c79] : memref<288xf32, #tpu.memory_space<smem>>
    %381 = vector.broadcast %380 : f32 to vector<18x18xf32>
    %382 = arith.mulf %381, %379 : vector<18x18xf32>
    %383 = arith.addf %349, %382 : vector<18x18xf32>
    %c88 = arith.constant 88 : index
    %384 = memref.load %arg2[%c88] : memref<288xf32, #tpu.memory_space<smem>>
    %385 = vector.broadcast %384 : f32 to vector<18x18xf32>
    %386 = arith.mulf %385, %379 : vector<18x18xf32>
    %387 = arith.addf %353, %386 : vector<18x18xf32>
    %c97 = arith.constant 97 : index
    %388 = memref.load %arg2[%c97] : memref<288xf32, #tpu.memory_space<smem>>
    %389 = vector.broadcast %388 : f32 to vector<18x18xf32>
    %390 = arith.mulf %389, %379 : vector<18x18xf32>
    %391 = arith.addf %357, %390 : vector<18x18xf32>
    %c106 = arith.constant 106 : index
    %392 = memref.load %arg2[%c106] : memref<288xf32, #tpu.memory_space<smem>>
    %393 = vector.broadcast %392 : f32 to vector<18x18xf32>
    %394 = arith.mulf %393, %379 : vector<18x18xf32>
    %395 = arith.addf %361, %394 : vector<18x18xf32>
    %c115 = arith.constant 115 : index
    %396 = memref.load %arg2[%c115] : memref<288xf32, #tpu.memory_space<smem>>
    %397 = vector.broadcast %396 : f32 to vector<18x18xf32>
    %398 = arith.mulf %397, %379 : vector<18x18xf32>
    %399 = arith.addf %365, %398 : vector<18x18xf32>
    %c124 = arith.constant 124 : index
    %400 = memref.load %arg2[%c124] : memref<288xf32, #tpu.memory_space<smem>>
    %401 = vector.broadcast %400 : f32 to vector<18x18xf32>
    %402 = arith.mulf %401, %379 : vector<18x18xf32>
    %403 = arith.addf %369, %402 : vector<18x18xf32>
    %c133 = arith.constant 133 : index
    %404 = memref.load %arg2[%c133] : memref<288xf32, #tpu.memory_space<smem>>
    %405 = vector.broadcast %404 : f32 to vector<18x18xf32>
    %406 = arith.mulf %405, %379 : vector<18x18xf32>
    %407 = arith.addf %373, %406 : vector<18x18xf32>
    %c142 = arith.constant 142 : index
    %408 = memref.load %arg2[%c142] : memref<288xf32, #tpu.memory_space<smem>>
    %409 = vector.broadcast %408 : f32 to vector<18x18xf32>
    %410 = arith.mulf %409, %379 : vector<18x18xf32>
    %411 = arith.addf %377, %410 : vector<18x18xf32>
    %c1_72 = arith.constant 1 : index
    %c0_73 = arith.constant 0 : index
    %c2_74 = arith.constant 2 : index
    %412 = vector.load %arg5[%c1_72, %c0_73, %c2_74] : memref<4x20x20xf32, #tpu.memory_space<vmem>>, vector<1x18x18xf32>
    %413 = vector.shape_cast %412 : vector<1x18x18xf32> to vector<18x18xf32>
    %c78 = arith.constant 78 : index
    %414 = memref.load %arg2[%c78] : memref<288xf32, #tpu.memory_space<smem>>
    %415 = vector.broadcast %414 : f32 to vector<18x18xf32>
    %416 = arith.mulf %415, %413 : vector<18x18xf32>
    %417 = arith.addf %383, %416 : vector<18x18xf32>
    %c87 = arith.constant 87 : index
    %418 = memref.load %arg2[%c87] : memref<288xf32, #tpu.memory_space<smem>>
    %419 = vector.broadcast %418 : f32 to vector<18x18xf32>
    %420 = arith.mulf %419, %413 : vector<18x18xf32>
    %421 = arith.addf %387, %420 : vector<18x18xf32>
    %c96 = arith.constant 96 : index
    %422 = memref.load %arg2[%c96] : memref<288xf32, #tpu.memory_space<smem>>
    %423 = vector.broadcast %422 : f32 to vector<18x18xf32>
    %424 = arith.mulf %423, %413 : vector<18x18xf32>
    %425 = arith.addf %391, %424 : vector<18x18xf32>
    %c105 = arith.constant 105 : index
    %426 = memref.load %arg2[%c105] : memref<288xf32, #tpu.memory_space<smem>>
    %427 = vector.broadcast %426 : f32 to vector<18x18xf32>
    %428 = arith.mulf %427, %413 : vector<18x18xf32>
    %429 = arith.addf %395, %428 : vector<18x18xf32>
    %c114 = arith.constant 114 : index
    %430 = memref.load %arg2[%c114] : memref<288xf32, #tpu.memory_space<smem>>
    %431 = vector.broadcast %430 : f32 to vector<18x18xf32>
    %432 = arith.mulf %431, %413 : vector<18x18xf32>
    %433 = arith.addf %399, %432 : vector<18x18xf32>
    %c123 = arith.constant 123 : index
    %434 = memref.load %arg2[%c123] : memref<288xf32, #tpu.memory_space<smem>>
    %435 = vector.broadcast %434 : f32 to vector<18x18xf32>
    %436 = arith.mulf %435, %413 : vector<18x18xf32>
    %437 = arith.addf %403, %436 : vector<18x18xf32>
    %c132 = arith.constant 132 : index
    %438 = memref.load %arg2[%c132] : memref<288xf32, #tpu.memory_space<smem>>
    %439 = vector.broadcast %438 : f32 to vector<18x18xf32>
    %440 = arith.mulf %439, %413 : vector<18x18xf32>
    %441 = arith.addf %407, %440 : vector<18x18xf32>
    %c141 = arith.constant 141 : index
    %442 = memref.load %arg2[%c141] : memref<288xf32, #tpu.memory_space<smem>>
    %443 = vector.broadcast %442 : f32 to vector<18x18xf32>
    %444 = arith.mulf %443, %413 : vector<18x18xf32>
    %445 = arith.addf %411, %444 : vector<18x18xf32>
    %c1_75 = arith.constant 1 : index
    %c1_76 = arith.constant 1 : index
    %c0_77 = arith.constant 0 : index
    %446 = vector.load %arg5[%c1_75, %c1_76, %c0_77] : memref<4x20x20xf32, #tpu.memory_space<vmem>>, vector<1x18x18xf32>
    %447 = vector.shape_cast %446 : vector<1x18x18xf32> to vector<18x18xf32>
    %c77 = arith.constant 77 : index
    %448 = memref.load %arg2[%c77] : memref<288xf32, #tpu.memory_space<smem>>
    %449 = vector.broadcast %448 : f32 to vector<18x18xf32>
    %450 = arith.mulf %449, %447 : vector<18x18xf32>
    %451 = arith.addf %417, %450 : vector<18x18xf32>
    %c86 = arith.constant 86 : index
    %452 = memref.load %arg2[%c86] : memref<288xf32, #tpu.memory_space<smem>>
    %453 = vector.broadcast %452 : f32 to vector<18x18xf32>
    %454 = arith.mulf %453, %447 : vector<18x18xf32>
    %455 = arith.addf %421, %454 : vector<18x18xf32>
    %c95 = arith.constant 95 : index
    %456 = memref.load %arg2[%c95] : memref<288xf32, #tpu.memory_space<smem>>
    %457 = vector.broadcast %456 : f32 to vector<18x18xf32>
    %458 = arith.mulf %457, %447 : vector<18x18xf32>
    %459 = arith.addf %425, %458 : vector<18x18xf32>
    %c104 = arith.constant 104 : index
    %460 = memref.load %arg2[%c104] : memref<288xf32, #tpu.memory_space<smem>>
    %461 = vector.broadcast %460 : f32 to vector<18x18xf32>
    %462 = arith.mulf %461, %447 : vector<18x18xf32>
    %463 = arith.addf %429, %462 : vector<18x18xf32>
    %c113 = arith.constant 113 : index
    %464 = memref.load %arg2[%c113] : memref<288xf32, #tpu.memory_space<smem>>
    %465 = vector.broadcast %464 : f32 to vector<18x18xf32>
    %466 = arith.mulf %465, %447 : vector<18x18xf32>
    %467 = arith.addf %433, %466 : vector<18x18xf32>
    %c122 = arith.constant 122 : index
    %468 = memref.load %arg2[%c122] : memref<288xf32, #tpu.memory_space<smem>>
    %469 = vector.broadcast %468 : f32 to vector<18x18xf32>
    %470 = arith.mulf %469, %447 : vector<18x18xf32>
    %471 = arith.addf %437, %470 : vector<18x18xf32>
    %c131 = arith.constant 131 : index
    %472 = memref.load %arg2[%c131] : memref<288xf32, #tpu.memory_space<smem>>
    %473 = vector.broadcast %472 : f32 to vector<18x18xf32>
    %474 = arith.mulf %473, %447 : vector<18x18xf32>
    %475 = arith.addf %441, %474 : vector<18x18xf32>
    %c140 = arith.constant 140 : index
    %476 = memref.load %arg2[%c140] : memref<288xf32, #tpu.memory_space<smem>>
    %477 = vector.broadcast %476 : f32 to vector<18x18xf32>
    %478 = arith.mulf %477, %447 : vector<18x18xf32>
    %479 = arith.addf %445, %478 : vector<18x18xf32>
    %c1_78 = arith.constant 1 : index
    %c1_79 = arith.constant 1 : index
    %c1_80 = arith.constant 1 : index
    %480 = vector.load %arg5[%c1_78, %c1_79, %c1_80] : memref<4x20x20xf32, #tpu.memory_space<vmem>>, vector<1x18x18xf32>
    %481 = vector.shape_cast %480 : vector<1x18x18xf32> to vector<18x18xf32>
    %c76 = arith.constant 76 : index
    %482 = memref.load %arg2[%c76] : memref<288xf32, #tpu.memory_space<smem>>
    %483 = vector.broadcast %482 : f32 to vector<18x18xf32>
    %484 = arith.mulf %483, %481 : vector<18x18xf32>
    %485 = arith.addf %451, %484 : vector<18x18xf32>
    %c85 = arith.constant 85 : index
    %486 = memref.load %arg2[%c85] : memref<288xf32, #tpu.memory_space<smem>>
    %487 = vector.broadcast %486 : f32 to vector<18x18xf32>
    %488 = arith.mulf %487, %481 : vector<18x18xf32>
    %489 = arith.addf %455, %488 : vector<18x18xf32>
    %c94 = arith.constant 94 : index
    %490 = memref.load %arg2[%c94] : memref<288xf32, #tpu.memory_space<smem>>
    %491 = vector.broadcast %490 : f32 to vector<18x18xf32>
    %492 = arith.mulf %491, %481 : vector<18x18xf32>
    %493 = arith.addf %459, %492 : vector<18x18xf32>
    %c103 = arith.constant 103 : index
    %494 = memref.load %arg2[%c103] : memref<288xf32, #tpu.memory_space<smem>>
    %495 = vector.broadcast %494 : f32 to vector<18x18xf32>
    %496 = arith.mulf %495, %481 : vector<18x18xf32>
    %497 = arith.addf %463, %496 : vector<18x18xf32>
    %c112 = arith.constant 112 : index
    %498 = memref.load %arg2[%c112] : memref<288xf32, #tpu.memory_space<smem>>
    %499 = vector.broadcast %498 : f32 to vector<18x18xf32>
    %500 = arith.mulf %499, %481 : vector<18x18xf32>
    %501 = arith.addf %467, %500 : vector<18x18xf32>
    %c121 = arith.constant 121 : index
    %502 = memref.load %arg2[%c121] : memref<288xf32, #tpu.memory_space<smem>>
    %503 = vector.broadcast %502 : f32 to vector<18x18xf32>
    %504 = arith.mulf %503, %481 : vector<18x18xf32>
    %505 = arith.addf %471, %504 : vector<18x18xf32>
    %c130 = arith.constant 130 : index
    %506 = memref.load %arg2[%c130] : memref<288xf32, #tpu.memory_space<smem>>
    %507 = vector.broadcast %506 : f32 to vector<18x18xf32>
    %508 = arith.mulf %507, %481 : vector<18x18xf32>
    %509 = arith.addf %475, %508 : vector<18x18xf32>
    %c139 = arith.constant 139 : index
    %510 = memref.load %arg2[%c139] : memref<288xf32, #tpu.memory_space<smem>>
    %511 = vector.broadcast %510 : f32 to vector<18x18xf32>
    %512 = arith.mulf %511, %481 : vector<18x18xf32>
    %513 = arith.addf %479, %512 : vector<18x18xf32>
    %c1_81 = arith.constant 1 : index
    %c1_82 = arith.constant 1 : index
    %c2_83 = arith.constant 2 : index
    %514 = vector.load %arg5[%c1_81, %c1_82, %c2_83] : memref<4x20x20xf32, #tpu.memory_space<vmem>>, vector<1x18x18xf32>
    %515 = vector.shape_cast %514 : vector<1x18x18xf32> to vector<18x18xf32>
    %c75 = arith.constant 75 : index
    %516 = memref.load %arg2[%c75] : memref<288xf32, #tpu.memory_space<smem>>
    %517 = vector.broadcast %516 : f32 to vector<18x18xf32>
    %518 = arith.mulf %517, %515 : vector<18x18xf32>
    %519 = arith.addf %485, %518 : vector<18x18xf32>
    %c84 = arith.constant 84 : index
    %520 = memref.load %arg2[%c84] : memref<288xf32, #tpu.memory_space<smem>>
    %521 = vector.broadcast %520 : f32 to vector<18x18xf32>
    %522 = arith.mulf %521, %515 : vector<18x18xf32>
    %523 = arith.addf %489, %522 : vector<18x18xf32>
    %c93 = arith.constant 93 : index
    %524 = memref.load %arg2[%c93] : memref<288xf32, #tpu.memory_space<smem>>
    %525 = vector.broadcast %524 : f32 to vector<18x18xf32>
    %526 = arith.mulf %525, %515 : vector<18x18xf32>
    %527 = arith.addf %493, %526 : vector<18x18xf32>
    %c102 = arith.constant 102 : index
    %528 = memref.load %arg2[%c102] : memref<288xf32, #tpu.memory_space<smem>>
    %529 = vector.broadcast %528 : f32 to vector<18x18xf32>
    %530 = arith.mulf %529, %515 : vector<18x18xf32>
    %531 = arith.addf %497, %530 : vector<18x18xf32>
    %c111 = arith.constant 111 : index
    %532 = memref.load %arg2[%c111] : memref<288xf32, #tpu.memory_space<smem>>
    %533 = vector.broadcast %532 : f32 to vector<18x18xf32>
    %534 = arith.mulf %533, %515 : vector<18x18xf32>
    %535 = arith.addf %501, %534 : vector<18x18xf32>
    %c120 = arith.constant 120 : index
    %536 = memref.load %arg2[%c120] : memref<288xf32, #tpu.memory_space<smem>>
    %537 = vector.broadcast %536 : f32 to vector<18x18xf32>
    %538 = arith.mulf %537, %515 : vector<18x18xf32>
    %539 = arith.addf %505, %538 : vector<18x18xf32>
    %c129 = arith.constant 129 : index
    %540 = memref.load %arg2[%c129] : memref<288xf32, #tpu.memory_space<smem>>
    %541 = vector.broadcast %540 : f32 to vector<18x18xf32>
    %542 = arith.mulf %541, %515 : vector<18x18xf32>
    %543 = arith.addf %509, %542 : vector<18x18xf32>
    %c138 = arith.constant 138 : index
    %544 = memref.load %arg2[%c138] : memref<288xf32, #tpu.memory_space<smem>>
    %545 = vector.broadcast %544 : f32 to vector<18x18xf32>
    %546 = arith.mulf %545, %515 : vector<18x18xf32>
    %547 = arith.addf %513, %546 : vector<18x18xf32>
    %c1_84 = arith.constant 1 : index
    %c2_85 = arith.constant 2 : index
    %c0_86 = arith.constant 0 : index
    %548 = vector.load %arg5[%c1_84, %c2_85, %c0_86] : memref<4x20x20xf32, #tpu.memory_space<vmem>>, vector<1x18x18xf32>
    %549 = vector.shape_cast %548 : vector<1x18x18xf32> to vector<18x18xf32>
    %c74 = arith.constant 74 : index
    %550 = memref.load %arg2[%c74] : memref<288xf32, #tpu.memory_space<smem>>
    %551 = vector.broadcast %550 : f32 to vector<18x18xf32>
    %552 = arith.mulf %551, %549 : vector<18x18xf32>
    %553 = arith.addf %519, %552 : vector<18x18xf32>
    %c83 = arith.constant 83 : index
    %554 = memref.load %arg2[%c83] : memref<288xf32, #tpu.memory_space<smem>>
    %555 = vector.broadcast %554 : f32 to vector<18x18xf32>
    %556 = arith.mulf %555, %549 : vector<18x18xf32>
    %557 = arith.addf %523, %556 : vector<18x18xf32>
    %c92 = arith.constant 92 : index
    %558 = memref.load %arg2[%c92] : memref<288xf32, #tpu.memory_space<smem>>
    %559 = vector.broadcast %558 : f32 to vector<18x18xf32>
    %560 = arith.mulf %559, %549 : vector<18x18xf32>
    %561 = arith.addf %527, %560 : vector<18x18xf32>
    %c101 = arith.constant 101 : index
    %562 = memref.load %arg2[%c101] : memref<288xf32, #tpu.memory_space<smem>>
    %563 = vector.broadcast %562 : f32 to vector<18x18xf32>
    %564 = arith.mulf %563, %549 : vector<18x18xf32>
    %565 = arith.addf %531, %564 : vector<18x18xf32>
    %c110 = arith.constant 110 : index
    %566 = memref.load %arg2[%c110] : memref<288xf32, #tpu.memory_space<smem>>
    %567 = vector.broadcast %566 : f32 to vector<18x18xf32>
    %568 = arith.mulf %567, %549 : vector<18x18xf32>
    %569 = arith.addf %535, %568 : vector<18x18xf32>
    %c119 = arith.constant 119 : index
    %570 = memref.load %arg2[%c119] : memref<288xf32, #tpu.memory_space<smem>>
    %571 = vector.broadcast %570 : f32 to vector<18x18xf32>
    %572 = arith.mulf %571, %549 : vector<18x18xf32>
    %573 = arith.addf %539, %572 : vector<18x18xf32>
    %c128 = arith.constant 128 : index
    %574 = memref.load %arg2[%c128] : memref<288xf32, #tpu.memory_space<smem>>
    %575 = vector.broadcast %574 : f32 to vector<18x18xf32>
    %576 = arith.mulf %575, %549 : vector<18x18xf32>
    %577 = arith.addf %543, %576 : vector<18x18xf32>
    %c137 = arith.constant 137 : index
    %578 = memref.load %arg2[%c137] : memref<288xf32, #tpu.memory_space<smem>>
    %579 = vector.broadcast %578 : f32 to vector<18x18xf32>
    %580 = arith.mulf %579, %549 : vector<18x18xf32>
    %581 = arith.addf %547, %580 : vector<18x18xf32>
    %c1_87 = arith.constant 1 : index
    %c2_88 = arith.constant 2 : index
    %c1_89 = arith.constant 1 : index
    %582 = vector.load %arg5[%c1_87, %c2_88, %c1_89] : memref<4x20x20xf32, #tpu.memory_space<vmem>>, vector<1x18x18xf32>
    %583 = vector.shape_cast %582 : vector<1x18x18xf32> to vector<18x18xf32>
    %c73 = arith.constant 73 : index
    %584 = memref.load %arg2[%c73] : memref<288xf32, #tpu.memory_space<smem>>
    %585 = vector.broadcast %584 : f32 to vector<18x18xf32>
    %586 = arith.mulf %585, %583 : vector<18x18xf32>
    %587 = arith.addf %553, %586 : vector<18x18xf32>
    %c82 = arith.constant 82 : index
    %588 = memref.load %arg2[%c82] : memref<288xf32, #tpu.memory_space<smem>>
    %589 = vector.broadcast %588 : f32 to vector<18x18xf32>
    %590 = arith.mulf %589, %583 : vector<18x18xf32>
    %591 = arith.addf %557, %590 : vector<18x18xf32>
    %c91 = arith.constant 91 : index
    %592 = memref.load %arg2[%c91] : memref<288xf32, #tpu.memory_space<smem>>
    %593 = vector.broadcast %592 : f32 to vector<18x18xf32>
    %594 = arith.mulf %593, %583 : vector<18x18xf32>
    %595 = arith.addf %561, %594 : vector<18x18xf32>
    %c100 = arith.constant 100 : index
    %596 = memref.load %arg2[%c100] : memref<288xf32, #tpu.memory_space<smem>>
    %597 = vector.broadcast %596 : f32 to vector<18x18xf32>
    %598 = arith.mulf %597, %583 : vector<18x18xf32>
    %599 = arith.addf %565, %598 : vector<18x18xf32>
    %c109 = arith.constant 109 : index
    %600 = memref.load %arg2[%c109] : memref<288xf32, #tpu.memory_space<smem>>
    %601 = vector.broadcast %600 : f32 to vector<18x18xf32>
    %602 = arith.mulf %601, %583 : vector<18x18xf32>
    %603 = arith.addf %569, %602 : vector<18x18xf32>
    %c118 = arith.constant 118 : index
    %604 = memref.load %arg2[%c118] : memref<288xf32, #tpu.memory_space<smem>>
    %605 = vector.broadcast %604 : f32 to vector<18x18xf32>
    %606 = arith.mulf %605, %583 : vector<18x18xf32>
    %607 = arith.addf %573, %606 : vector<18x18xf32>
    %c127 = arith.constant 127 : index
    %608 = memref.load %arg2[%c127] : memref<288xf32, #tpu.memory_space<smem>>
    %609 = vector.broadcast %608 : f32 to vector<18x18xf32>
    %610 = arith.mulf %609, %583 : vector<18x18xf32>
    %611 = arith.addf %577, %610 : vector<18x18xf32>
    %c136 = arith.constant 136 : index
    %612 = memref.load %arg2[%c136] : memref<288xf32, #tpu.memory_space<smem>>
    %613 = vector.broadcast %612 : f32 to vector<18x18xf32>
    %614 = arith.mulf %613, %583 : vector<18x18xf32>
    %615 = arith.addf %581, %614 : vector<18x18xf32>
    %c1_90 = arith.constant 1 : index
    %c2_91 = arith.constant 2 : index
    %c2_92 = arith.constant 2 : index
    %616 = vector.load %arg5[%c1_90, %c2_91, %c2_92] : memref<4x20x20xf32, #tpu.memory_space<vmem>>, vector<1x18x18xf32>
    %617 = vector.shape_cast %616 : vector<1x18x18xf32> to vector<18x18xf32>
    %c72 = arith.constant 72 : index
    %618 = memref.load %arg2[%c72] : memref<288xf32, #tpu.memory_space<smem>>
    %619 = vector.broadcast %618 : f32 to vector<18x18xf32>
    %620 = arith.mulf %619, %617 : vector<18x18xf32>
    %621 = arith.addf %587, %620 : vector<18x18xf32>
    %c81 = arith.constant 81 : index
    %622 = memref.load %arg2[%c81] : memref<288xf32, #tpu.memory_space<smem>>
    %623 = vector.broadcast %622 : f32 to vector<18x18xf32>
    %624 = arith.mulf %623, %617 : vector<18x18xf32>
    %625 = arith.addf %591, %624 : vector<18x18xf32>
    %c90 = arith.constant 90 : index
    %626 = memref.load %arg2[%c90] : memref<288xf32, #tpu.memory_space<smem>>
    %627 = vector.broadcast %626 : f32 to vector<18x18xf32>
    %628 = arith.mulf %627, %617 : vector<18x18xf32>
    %629 = arith.addf %595, %628 : vector<18x18xf32>
    %c99 = arith.constant 99 : index
    %630 = memref.load %arg2[%c99] : memref<288xf32, #tpu.memory_space<smem>>
    %631 = vector.broadcast %630 : f32 to vector<18x18xf32>
    %632 = arith.mulf %631, %617 : vector<18x18xf32>
    %633 = arith.addf %599, %632 : vector<18x18xf32>
    %c108 = arith.constant 108 : index
    %634 = memref.load %arg2[%c108] : memref<288xf32, #tpu.memory_space<smem>>
    %635 = vector.broadcast %634 : f32 to vector<18x18xf32>
    %636 = arith.mulf %635, %617 : vector<18x18xf32>
    %637 = arith.addf %603, %636 : vector<18x18xf32>
    %c117 = arith.constant 117 : index
    %638 = memref.load %arg2[%c117] : memref<288xf32, #tpu.memory_space<smem>>
    %639 = vector.broadcast %638 : f32 to vector<18x18xf32>
    %640 = arith.mulf %639, %617 : vector<18x18xf32>
    %641 = arith.addf %607, %640 : vector<18x18xf32>
    %c126 = arith.constant 126 : index
    %642 = memref.load %arg2[%c126] : memref<288xf32, #tpu.memory_space<smem>>
    %643 = vector.broadcast %642 : f32 to vector<18x18xf32>
    %644 = arith.mulf %643, %617 : vector<18x18xf32>
    %645 = arith.addf %611, %644 : vector<18x18xf32>
    %c135 = arith.constant 135 : index
    %646 = memref.load %arg2[%c135] : memref<288xf32, #tpu.memory_space<smem>>
    %647 = vector.broadcast %646 : f32 to vector<18x18xf32>
    %648 = arith.mulf %647, %617 : vector<18x18xf32>
    %649 = arith.addf %615, %648 : vector<18x18xf32>
    %c2_93 = arith.constant 2 : index
    %c0_94 = arith.constant 0 : index
    %c0_95 = arith.constant 0 : index
    %650 = vector.load %arg5[%c2_93, %c0_94, %c0_95] : memref<4x20x20xf32, #tpu.memory_space<vmem>>, vector<1x18x18xf32>
    %651 = vector.shape_cast %650 : vector<1x18x18xf32> to vector<18x18xf32>
    %c152 = arith.constant 152 : index
    %652 = memref.load %arg2[%c152] : memref<288xf32, #tpu.memory_space<smem>>
    %653 = vector.broadcast %652 : f32 to vector<18x18xf32>
    %654 = arith.mulf %653, %651 : vector<18x18xf32>
    %655 = arith.addf %621, %654 : vector<18x18xf32>
    %c161 = arith.constant 161 : index
    %656 = memref.load %arg2[%c161] : memref<288xf32, #tpu.memory_space<smem>>
    %657 = vector.broadcast %656 : f32 to vector<18x18xf32>
    %658 = arith.mulf %657, %651 : vector<18x18xf32>
    %659 = arith.addf %625, %658 : vector<18x18xf32>
    %c170 = arith.constant 170 : index
    %660 = memref.load %arg2[%c170] : memref<288xf32, #tpu.memory_space<smem>>
    %661 = vector.broadcast %660 : f32 to vector<18x18xf32>
    %662 = arith.mulf %661, %651 : vector<18x18xf32>
    %663 = arith.addf %629, %662 : vector<18x18xf32>
    %c179 = arith.constant 179 : index
    %664 = memref.load %arg2[%c179] : memref<288xf32, #tpu.memory_space<smem>>
    %665 = vector.broadcast %664 : f32 to vector<18x18xf32>
    %666 = arith.mulf %665, %651 : vector<18x18xf32>
    %667 = arith.addf %633, %666 : vector<18x18xf32>
    %c188 = arith.constant 188 : index
    %668 = memref.load %arg2[%c188] : memref<288xf32, #tpu.memory_space<smem>>
    %669 = vector.broadcast %668 : f32 to vector<18x18xf32>
    %670 = arith.mulf %669, %651 : vector<18x18xf32>
    %671 = arith.addf %637, %670 : vector<18x18xf32>
    %c197 = arith.constant 197 : index
    %672 = memref.load %arg2[%c197] : memref<288xf32, #tpu.memory_space<smem>>
    %673 = vector.broadcast %672 : f32 to vector<18x18xf32>
    %674 = arith.mulf %673, %651 : vector<18x18xf32>
    %675 = arith.addf %641, %674 : vector<18x18xf32>
    %c206 = arith.constant 206 : index
    %676 = memref.load %arg2[%c206] : memref<288xf32, #tpu.memory_space<smem>>
    %677 = vector.broadcast %676 : f32 to vector<18x18xf32>
    %678 = arith.mulf %677, %651 : vector<18x18xf32>
    %679 = arith.addf %645, %678 : vector<18x18xf32>
    %c215 = arith.constant 215 : index
    %680 = memref.load %arg2[%c215] : memref<288xf32, #tpu.memory_space<smem>>
    %681 = vector.broadcast %680 : f32 to vector<18x18xf32>
    %682 = arith.mulf %681, %651 : vector<18x18xf32>
    %683 = arith.addf %649, %682 : vector<18x18xf32>
    %c2_96 = arith.constant 2 : index
    %c0_97 = arith.constant 0 : index
    %c1_98 = arith.constant 1 : index
    %684 = vector.load %arg5[%c2_96, %c0_97, %c1_98] : memref<4x20x20xf32, #tpu.memory_space<vmem>>, vector<1x18x18xf32>
    %685 = vector.shape_cast %684 : vector<1x18x18xf32> to vector<18x18xf32>
    %c151 = arith.constant 151 : index
    %686 = memref.load %arg2[%c151] : memref<288xf32, #tpu.memory_space<smem>>
    %687 = vector.broadcast %686 : f32 to vector<18x18xf32>
    %688 = arith.mulf %687, %685 : vector<18x18xf32>
    %689 = arith.addf %655, %688 : vector<18x18xf32>
    %c160 = arith.constant 160 : index
    %690 = memref.load %arg2[%c160] : memref<288xf32, #tpu.memory_space<smem>>
    %691 = vector.broadcast %690 : f32 to vector<18x18xf32>
    %692 = arith.mulf %691, %685 : vector<18x18xf32>
    %693 = arith.addf %659, %692 : vector<18x18xf32>
    %c169 = arith.constant 169 : index
    %694 = memref.load %arg2[%c169] : memref<288xf32, #tpu.memory_space<smem>>
    %695 = vector.broadcast %694 : f32 to vector<18x18xf32>
    %696 = arith.mulf %695, %685 : vector<18x18xf32>
    %697 = arith.addf %663, %696 : vector<18x18xf32>
    %c178 = arith.constant 178 : index
    %698 = memref.load %arg2[%c178] : memref<288xf32, #tpu.memory_space<smem>>
    %699 = vector.broadcast %698 : f32 to vector<18x18xf32>
    %700 = arith.mulf %699, %685 : vector<18x18xf32>
    %701 = arith.addf %667, %700 : vector<18x18xf32>
    %c187 = arith.constant 187 : index
    %702 = memref.load %arg2[%c187] : memref<288xf32, #tpu.memory_space<smem>>
    %703 = vector.broadcast %702 : f32 to vector<18x18xf32>
    %704 = arith.mulf %703, %685 : vector<18x18xf32>
    %705 = arith.addf %671, %704 : vector<18x18xf32>
    %c196 = arith.constant 196 : index
    %706 = memref.load %arg2[%c196] : memref<288xf32, #tpu.memory_space<smem>>
    %707 = vector.broadcast %706 : f32 to vector<18x18xf32>
    %708 = arith.mulf %707, %685 : vector<18x18xf32>
    %709 = arith.addf %675, %708 : vector<18x18xf32>
    %c205 = arith.constant 205 : index
    %710 = memref.load %arg2[%c205] : memref<288xf32, #tpu.memory_space<smem>>
    %711 = vector.broadcast %710 : f32 to vector<18x18xf32>
    %712 = arith.mulf %711, %685 : vector<18x18xf32>
    %713 = arith.addf %679, %712 : vector<18x18xf32>
    %c214 = arith.constant 214 : index
    %714 = memref.load %arg2[%c214] : memref<288xf32, #tpu.memory_space<smem>>
    %715 = vector.broadcast %714 : f32 to vector<18x18xf32>
    %716 = arith.mulf %715, %685 : vector<18x18xf32>
    %717 = arith.addf %683, %716 : vector<18x18xf32>
    %c2_99 = arith.constant 2 : index
    %c0_100 = arith.constant 0 : index
    %c2_101 = arith.constant 2 : index
    %718 = vector.load %arg5[%c2_99, %c0_100, %c2_101] : memref<4x20x20xf32, #tpu.memory_space<vmem>>, vector<1x18x18xf32>
    %719 = vector.shape_cast %718 : vector<1x18x18xf32> to vector<18x18xf32>
    %c150 = arith.constant 150 : index
    %720 = memref.load %arg2[%c150] : memref<288xf32, #tpu.memory_space<smem>>
    %721 = vector.broadcast %720 : f32 to vector<18x18xf32>
    %722 = arith.mulf %721, %719 : vector<18x18xf32>
    %723 = arith.addf %689, %722 : vector<18x18xf32>
    %c159 = arith.constant 159 : index
    %724 = memref.load %arg2[%c159] : memref<288xf32, #tpu.memory_space<smem>>
    %725 = vector.broadcast %724 : f32 to vector<18x18xf32>
    %726 = arith.mulf %725, %719 : vector<18x18xf32>
    %727 = arith.addf %693, %726 : vector<18x18xf32>
    %c168 = arith.constant 168 : index
    %728 = memref.load %arg2[%c168] : memref<288xf32, #tpu.memory_space<smem>>
    %729 = vector.broadcast %728 : f32 to vector<18x18xf32>
    %730 = arith.mulf %729, %719 : vector<18x18xf32>
    %731 = arith.addf %697, %730 : vector<18x18xf32>
    %c177 = arith.constant 177 : index
    %732 = memref.load %arg2[%c177] : memref<288xf32, #tpu.memory_space<smem>>
    %733 = vector.broadcast %732 : f32 to vector<18x18xf32>
    %734 = arith.mulf %733, %719 : vector<18x18xf32>
    %735 = arith.addf %701, %734 : vector<18x18xf32>
    %c186 = arith.constant 186 : index
    %736 = memref.load %arg2[%c186] : memref<288xf32, #tpu.memory_space<smem>>
    %737 = vector.broadcast %736 : f32 to vector<18x18xf32>
    %738 = arith.mulf %737, %719 : vector<18x18xf32>
    %739 = arith.addf %705, %738 : vector<18x18xf32>
    %c195 = arith.constant 195 : index
    %740 = memref.load %arg2[%c195] : memref<288xf32, #tpu.memory_space<smem>>
    %741 = vector.broadcast %740 : f32 to vector<18x18xf32>
    %742 = arith.mulf %741, %719 : vector<18x18xf32>
    %743 = arith.addf %709, %742 : vector<18x18xf32>
    %c204 = arith.constant 204 : index
    %744 = memref.load %arg2[%c204] : memref<288xf32, #tpu.memory_space<smem>>
    %745 = vector.broadcast %744 : f32 to vector<18x18xf32>
    %746 = arith.mulf %745, %719 : vector<18x18xf32>
    %747 = arith.addf %713, %746 : vector<18x18xf32>
    %c213 = arith.constant 213 : index
    %748 = memref.load %arg2[%c213] : memref<288xf32, #tpu.memory_space<smem>>
    %749 = vector.broadcast %748 : f32 to vector<18x18xf32>
    %750 = arith.mulf %749, %719 : vector<18x18xf32>
    %751 = arith.addf %717, %750 : vector<18x18xf32>
    %c2_102 = arith.constant 2 : index
    %c1_103 = arith.constant 1 : index
    %c0_104 = arith.constant 0 : index
    %752 = vector.load %arg5[%c2_102, %c1_103, %c0_104] : memref<4x20x20xf32, #tpu.memory_space<vmem>>, vector<1x18x18xf32>
    %753 = vector.shape_cast %752 : vector<1x18x18xf32> to vector<18x18xf32>
    %c149 = arith.constant 149 : index
    %754 = memref.load %arg2[%c149] : memref<288xf32, #tpu.memory_space<smem>>
    %755 = vector.broadcast %754 : f32 to vector<18x18xf32>
    %756 = arith.mulf %755, %753 : vector<18x18xf32>
    %757 = arith.addf %723, %756 : vector<18x18xf32>
    %c158 = arith.constant 158 : index
    %758 = memref.load %arg2[%c158] : memref<288xf32, #tpu.memory_space<smem>>
    %759 = vector.broadcast %758 : f32 to vector<18x18xf32>
    %760 = arith.mulf %759, %753 : vector<18x18xf32>
    %761 = arith.addf %727, %760 : vector<18x18xf32>
    %c167 = arith.constant 167 : index
    %762 = memref.load %arg2[%c167] : memref<288xf32, #tpu.memory_space<smem>>
    %763 = vector.broadcast %762 : f32 to vector<18x18xf32>
    %764 = arith.mulf %763, %753 : vector<18x18xf32>
    %765 = arith.addf %731, %764 : vector<18x18xf32>
    %c176 = arith.constant 176 : index
    %766 = memref.load %arg2[%c176] : memref<288xf32, #tpu.memory_space<smem>>
    %767 = vector.broadcast %766 : f32 to vector<18x18xf32>
    %768 = arith.mulf %767, %753 : vector<18x18xf32>
    %769 = arith.addf %735, %768 : vector<18x18xf32>
    %c185 = arith.constant 185 : index
    %770 = memref.load %arg2[%c185] : memref<288xf32, #tpu.memory_space<smem>>
    %771 = vector.broadcast %770 : f32 to vector<18x18xf32>
    %772 = arith.mulf %771, %753 : vector<18x18xf32>
    %773 = arith.addf %739, %772 : vector<18x18xf32>
    %c194 = arith.constant 194 : index
    %774 = memref.load %arg2[%c194] : memref<288xf32, #tpu.memory_space<smem>>
    %775 = vector.broadcast %774 : f32 to vector<18x18xf32>
    %776 = arith.mulf %775, %753 : vector<18x18xf32>
    %777 = arith.addf %743, %776 : vector<18x18xf32>
    %c203 = arith.constant 203 : index
    %778 = memref.load %arg2[%c203] : memref<288xf32, #tpu.memory_space<smem>>
    %779 = vector.broadcast %778 : f32 to vector<18x18xf32>
    %780 = arith.mulf %779, %753 : vector<18x18xf32>
    %781 = arith.addf %747, %780 : vector<18x18xf32>
    %c212 = arith.constant 212 : index
    %782 = memref.load %arg2[%c212] : memref<288xf32, #tpu.memory_space<smem>>
    %783 = vector.broadcast %782 : f32 to vector<18x18xf32>
    %784 = arith.mulf %783, %753 : vector<18x18xf32>
    %785 = arith.addf %751, %784 : vector<18x18xf32>
    %c2_105 = arith.constant 2 : index
    %c1_106 = arith.constant 1 : index
    %c1_107 = arith.constant 1 : index
    %786 = vector.load %arg5[%c2_105, %c1_106, %c1_107] : memref<4x20x20xf32, #tpu.memory_space<vmem>>, vector<1x18x18xf32>
    %787 = vector.shape_cast %786 : vector<1x18x18xf32> to vector<18x18xf32>
    %c148 = arith.constant 148 : index
    %788 = memref.load %arg2[%c148] : memref<288xf32, #tpu.memory_space<smem>>
    %789 = vector.broadcast %788 : f32 to vector<18x18xf32>
    %790 = arith.mulf %789, %787 : vector<18x18xf32>
    %791 = arith.addf %757, %790 : vector<18x18xf32>
    %c157 = arith.constant 157 : index
    %792 = memref.load %arg2[%c157] : memref<288xf32, #tpu.memory_space<smem>>
    %793 = vector.broadcast %792 : f32 to vector<18x18xf32>
    %794 = arith.mulf %793, %787 : vector<18x18xf32>
    %795 = arith.addf %761, %794 : vector<18x18xf32>
    %c166 = arith.constant 166 : index
    %796 = memref.load %arg2[%c166] : memref<288xf32, #tpu.memory_space<smem>>
    %797 = vector.broadcast %796 : f32 to vector<18x18xf32>
    %798 = arith.mulf %797, %787 : vector<18x18xf32>
    %799 = arith.addf %765, %798 : vector<18x18xf32>
    %c175 = arith.constant 175 : index
    %800 = memref.load %arg2[%c175] : memref<288xf32, #tpu.memory_space<smem>>
    %801 = vector.broadcast %800 : f32 to vector<18x18xf32>
    %802 = arith.mulf %801, %787 : vector<18x18xf32>
    %803 = arith.addf %769, %802 : vector<18x18xf32>
    %c184 = arith.constant 184 : index
    %804 = memref.load %arg2[%c184] : memref<288xf32, #tpu.memory_space<smem>>
    %805 = vector.broadcast %804 : f32 to vector<18x18xf32>
    %806 = arith.mulf %805, %787 : vector<18x18xf32>
    %807 = arith.addf %773, %806 : vector<18x18xf32>
    %c193 = arith.constant 193 : index
    %808 = memref.load %arg2[%c193] : memref<288xf32, #tpu.memory_space<smem>>
    %809 = vector.broadcast %808 : f32 to vector<18x18xf32>
    %810 = arith.mulf %809, %787 : vector<18x18xf32>
    %811 = arith.addf %777, %810 : vector<18x18xf32>
    %c202 = arith.constant 202 : index
    %812 = memref.load %arg2[%c202] : memref<288xf32, #tpu.memory_space<smem>>
    %813 = vector.broadcast %812 : f32 to vector<18x18xf32>
    %814 = arith.mulf %813, %787 : vector<18x18xf32>
    %815 = arith.addf %781, %814 : vector<18x18xf32>
    %c211 = arith.constant 211 : index
    %816 = memref.load %arg2[%c211] : memref<288xf32, #tpu.memory_space<smem>>
    %817 = vector.broadcast %816 : f32 to vector<18x18xf32>
    %818 = arith.mulf %817, %787 : vector<18x18xf32>
    %819 = arith.addf %785, %818 : vector<18x18xf32>
    %c2_108 = arith.constant 2 : index
    %c1_109 = arith.constant 1 : index
    %c2_110 = arith.constant 2 : index
    %820 = vector.load %arg5[%c2_108, %c1_109, %c2_110] : memref<4x20x20xf32, #tpu.memory_space<vmem>>, vector<1x18x18xf32>
    %821 = vector.shape_cast %820 : vector<1x18x18xf32> to vector<18x18xf32>
    %c147 = arith.constant 147 : index
    %822 = memref.load %arg2[%c147] : memref<288xf32, #tpu.memory_space<smem>>
    %823 = vector.broadcast %822 : f32 to vector<18x18xf32>
    %824 = arith.mulf %823, %821 : vector<18x18xf32>
    %825 = arith.addf %791, %824 : vector<18x18xf32>
    %c156 = arith.constant 156 : index
    %826 = memref.load %arg2[%c156] : memref<288xf32, #tpu.memory_space<smem>>
    %827 = vector.broadcast %826 : f32 to vector<18x18xf32>
    %828 = arith.mulf %827, %821 : vector<18x18xf32>
    %829 = arith.addf %795, %828 : vector<18x18xf32>
    %c165 = arith.constant 165 : index
    %830 = memref.load %arg2[%c165] : memref<288xf32, #tpu.memory_space<smem>>
    %831 = vector.broadcast %830 : f32 to vector<18x18xf32>
    %832 = arith.mulf %831, %821 : vector<18x18xf32>
    %833 = arith.addf %799, %832 : vector<18x18xf32>
    %c174 = arith.constant 174 : index
    %834 = memref.load %arg2[%c174] : memref<288xf32, #tpu.memory_space<smem>>
    %835 = vector.broadcast %834 : f32 to vector<18x18xf32>
    %836 = arith.mulf %835, %821 : vector<18x18xf32>
    %837 = arith.addf %803, %836 : vector<18x18xf32>
    %c183 = arith.constant 183 : index
    %838 = memref.load %arg2[%c183] : memref<288xf32, #tpu.memory_space<smem>>
    %839 = vector.broadcast %838 : f32 to vector<18x18xf32>
    %840 = arith.mulf %839, %821 : vector<18x18xf32>
    %841 = arith.addf %807, %840 : vector<18x18xf32>
    %c192 = arith.constant 192 : index
    %842 = memref.load %arg2[%c192] : memref<288xf32, #tpu.memory_space<smem>>
    %843 = vector.broadcast %842 : f32 to vector<18x18xf32>
    %844 = arith.mulf %843, %821 : vector<18x18xf32>
    %845 = arith.addf %811, %844 : vector<18x18xf32>
    %c201 = arith.constant 201 : index
    %846 = memref.load %arg2[%c201] : memref<288xf32, #tpu.memory_space<smem>>
    %847 = vector.broadcast %846 : f32 to vector<18x18xf32>
    %848 = arith.mulf %847, %821 : vector<18x18xf32>
    %849 = arith.addf %815, %848 : vector<18x18xf32>
    %c210 = arith.constant 210 : index
    %850 = memref.load %arg2[%c210] : memref<288xf32, #tpu.memory_space<smem>>
    %851 = vector.broadcast %850 : f32 to vector<18x18xf32>
    %852 = arith.mulf %851, %821 : vector<18x18xf32>
    %853 = arith.addf %819, %852 : vector<18x18xf32>
    %c2_111 = arith.constant 2 : index
    %c2_112 = arith.constant 2 : index
    %c0_113 = arith.constant 0 : index
    %854 = vector.load %arg5[%c2_111, %c2_112, %c0_113] : memref<4x20x20xf32, #tpu.memory_space<vmem>>, vector<1x18x18xf32>
    %855 = vector.shape_cast %854 : vector<1x18x18xf32> to vector<18x18xf32>
    %c146 = arith.constant 146 : index
    %856 = memref.load %arg2[%c146] : memref<288xf32, #tpu.memory_space<smem>>
    %857 = vector.broadcast %856 : f32 to vector<18x18xf32>
    %858 = arith.mulf %857, %855 : vector<18x18xf32>
    %859 = arith.addf %825, %858 : vector<18x18xf32>
    %c155 = arith.constant 155 : index
    %860 = memref.load %arg2[%c155] : memref<288xf32, #tpu.memory_space<smem>>
    %861 = vector.broadcast %860 : f32 to vector<18x18xf32>
    %862 = arith.mulf %861, %855 : vector<18x18xf32>
    %863 = arith.addf %829, %862 : vector<18x18xf32>
    %c164 = arith.constant 164 : index
    %864 = memref.load %arg2[%c164] : memref<288xf32, #tpu.memory_space<smem>>
    %865 = vector.broadcast %864 : f32 to vector<18x18xf32>
    %866 = arith.mulf %865, %855 : vector<18x18xf32>
    %867 = arith.addf %833, %866 : vector<18x18xf32>
    %c173 = arith.constant 173 : index
    %868 = memref.load %arg2[%c173] : memref<288xf32, #tpu.memory_space<smem>>
    %869 = vector.broadcast %868 : f32 to vector<18x18xf32>
    %870 = arith.mulf %869, %855 : vector<18x18xf32>
    %871 = arith.addf %837, %870 : vector<18x18xf32>
    %c182 = arith.constant 182 : index
    %872 = memref.load %arg2[%c182] : memref<288xf32, #tpu.memory_space<smem>>
    %873 = vector.broadcast %872 : f32 to vector<18x18xf32>
    %874 = arith.mulf %873, %855 : vector<18x18xf32>
    %875 = arith.addf %841, %874 : vector<18x18xf32>
    %c191 = arith.constant 191 : index
    %876 = memref.load %arg2[%c191] : memref<288xf32, #tpu.memory_space<smem>>
    %877 = vector.broadcast %876 : f32 to vector<18x18xf32>
    %878 = arith.mulf %877, %855 : vector<18x18xf32>
    %879 = arith.addf %845, %878 : vector<18x18xf32>
    %c200 = arith.constant 200 : index
    %880 = memref.load %arg2[%c200] : memref<288xf32, #tpu.memory_space<smem>>
    %881 = vector.broadcast %880 : f32 to vector<18x18xf32>
    %882 = arith.mulf %881, %855 : vector<18x18xf32>
    %883 = arith.addf %849, %882 : vector<18x18xf32>
    %c209 = arith.constant 209 : index
    %884 = memref.load %arg2[%c209] : memref<288xf32, #tpu.memory_space<smem>>
    %885 = vector.broadcast %884 : f32 to vector<18x18xf32>
    %886 = arith.mulf %885, %855 : vector<18x18xf32>
    %887 = arith.addf %853, %886 : vector<18x18xf32>
    %c2_114 = arith.constant 2 : index
    %c2_115 = arith.constant 2 : index
    %c1_116 = arith.constant 1 : index
    %888 = vector.load %arg5[%c2_114, %c2_115, %c1_116] : memref<4x20x20xf32, #tpu.memory_space<vmem>>, vector<1x18x18xf32>
    %889 = vector.shape_cast %888 : vector<1x18x18xf32> to vector<18x18xf32>
    %c145 = arith.constant 145 : index
    %890 = memref.load %arg2[%c145] : memref<288xf32, #tpu.memory_space<smem>>
    %891 = vector.broadcast %890 : f32 to vector<18x18xf32>
    %892 = arith.mulf %891, %889 : vector<18x18xf32>
    %893 = arith.addf %859, %892 : vector<18x18xf32>
    %c154 = arith.constant 154 : index
    %894 = memref.load %arg2[%c154] : memref<288xf32, #tpu.memory_space<smem>>
    %895 = vector.broadcast %894 : f32 to vector<18x18xf32>
    %896 = arith.mulf %895, %889 : vector<18x18xf32>
    %897 = arith.addf %863, %896 : vector<18x18xf32>
    %c163 = arith.constant 163 : index
    %898 = memref.load %arg2[%c163] : memref<288xf32, #tpu.memory_space<smem>>
    %899 = vector.broadcast %898 : f32 to vector<18x18xf32>
    %900 = arith.mulf %899, %889 : vector<18x18xf32>
    %901 = arith.addf %867, %900 : vector<18x18xf32>
    %c172 = arith.constant 172 : index
    %902 = memref.load %arg2[%c172] : memref<288xf32, #tpu.memory_space<smem>>
    %903 = vector.broadcast %902 : f32 to vector<18x18xf32>
    %904 = arith.mulf %903, %889 : vector<18x18xf32>
    %905 = arith.addf %871, %904 : vector<18x18xf32>
    %c181 = arith.constant 181 : index
    %906 = memref.load %arg2[%c181] : memref<288xf32, #tpu.memory_space<smem>>
    %907 = vector.broadcast %906 : f32 to vector<18x18xf32>
    %908 = arith.mulf %907, %889 : vector<18x18xf32>
    %909 = arith.addf %875, %908 : vector<18x18xf32>
    %c190 = arith.constant 190 : index
    %910 = memref.load %arg2[%c190] : memref<288xf32, #tpu.memory_space<smem>>
    %911 = vector.broadcast %910 : f32 to vector<18x18xf32>
    %912 = arith.mulf %911, %889 : vector<18x18xf32>
    %913 = arith.addf %879, %912 : vector<18x18xf32>
    %c199 = arith.constant 199 : index
    %914 = memref.load %arg2[%c199] : memref<288xf32, #tpu.memory_space<smem>>
    %915 = vector.broadcast %914 : f32 to vector<18x18xf32>
    %916 = arith.mulf %915, %889 : vector<18x18xf32>
    %917 = arith.addf %883, %916 : vector<18x18xf32>
    %c208 = arith.constant 208 : index
    %918 = memref.load %arg2[%c208] : memref<288xf32, #tpu.memory_space<smem>>
    %919 = vector.broadcast %918 : f32 to vector<18x18xf32>
    %920 = arith.mulf %919, %889 : vector<18x18xf32>
    %921 = arith.addf %887, %920 : vector<18x18xf32>
    %c2_117 = arith.constant 2 : index
    %c2_118 = arith.constant 2 : index
    %c2_119 = arith.constant 2 : index
    %922 = vector.load %arg5[%c2_117, %c2_118, %c2_119] : memref<4x20x20xf32, #tpu.memory_space<vmem>>, vector<1x18x18xf32>
    %923 = vector.shape_cast %922 : vector<1x18x18xf32> to vector<18x18xf32>
    %c144 = arith.constant 144 : index
    %924 = memref.load %arg2[%c144] : memref<288xf32, #tpu.memory_space<smem>>
    %925 = vector.broadcast %924 : f32 to vector<18x18xf32>
    %926 = arith.mulf %925, %923 : vector<18x18xf32>
    %927 = arith.addf %893, %926 : vector<18x18xf32>
    %c153 = arith.constant 153 : index
    %928 = memref.load %arg2[%c153] : memref<288xf32, #tpu.memory_space<smem>>
    %929 = vector.broadcast %928 : f32 to vector<18x18xf32>
    %930 = arith.mulf %929, %923 : vector<18x18xf32>
    %931 = arith.addf %897, %930 : vector<18x18xf32>
    %c162 = arith.constant 162 : index
    %932 = memref.load %arg2[%c162] : memref<288xf32, #tpu.memory_space<smem>>
    %933 = vector.broadcast %932 : f32 to vector<18x18xf32>
    %934 = arith.mulf %933, %923 : vector<18x18xf32>
    %935 = arith.addf %901, %934 : vector<18x18xf32>
    %c171 = arith.constant 171 : index
    %936 = memref.load %arg2[%c171] : memref<288xf32, #tpu.memory_space<smem>>
    %937 = vector.broadcast %936 : f32 to vector<18x18xf32>
    %938 = arith.mulf %937, %923 : vector<18x18xf32>
    %939 = arith.addf %905, %938 : vector<18x18xf32>
    %c180 = arith.constant 180 : index
    %940 = memref.load %arg2[%c180] : memref<288xf32, #tpu.memory_space<smem>>
    %941 = vector.broadcast %940 : f32 to vector<18x18xf32>
    %942 = arith.mulf %941, %923 : vector<18x18xf32>
    %943 = arith.addf %909, %942 : vector<18x18xf32>
    %c189 = arith.constant 189 : index
    %944 = memref.load %arg2[%c189] : memref<288xf32, #tpu.memory_space<smem>>
    %945 = vector.broadcast %944 : f32 to vector<18x18xf32>
    %946 = arith.mulf %945, %923 : vector<18x18xf32>
    %947 = arith.addf %913, %946 : vector<18x18xf32>
    %c198 = arith.constant 198 : index
    %948 = memref.load %arg2[%c198] : memref<288xf32, #tpu.memory_space<smem>>
    %949 = vector.broadcast %948 : f32 to vector<18x18xf32>
    %950 = arith.mulf %949, %923 : vector<18x18xf32>
    %951 = arith.addf %917, %950 : vector<18x18xf32>
    %c207 = arith.constant 207 : index
    %952 = memref.load %arg2[%c207] : memref<288xf32, #tpu.memory_space<smem>>
    %953 = vector.broadcast %952 : f32 to vector<18x18xf32>
    %954 = arith.mulf %953, %923 : vector<18x18xf32>
    %955 = arith.addf %921, %954 : vector<18x18xf32>
    %c3_120 = arith.constant 3 : index
    %c0_121 = arith.constant 0 : index
    %c0_122 = arith.constant 0 : index
    %956 = vector.load %arg5[%c3_120, %c0_121, %c0_122] : memref<4x20x20xf32, #tpu.memory_space<vmem>>, vector<1x18x18xf32>
    %957 = vector.shape_cast %956 : vector<1x18x18xf32> to vector<18x18xf32>
    %c224 = arith.constant 224 : index
    %958 = memref.load %arg2[%c224] : memref<288xf32, #tpu.memory_space<smem>>
    %959 = vector.broadcast %958 : f32 to vector<18x18xf32>
    %960 = arith.mulf %959, %957 : vector<18x18xf32>
    %961 = arith.addf %927, %960 : vector<18x18xf32>
    %c233 = arith.constant 233 : index
    %962 = memref.load %arg2[%c233] : memref<288xf32, #tpu.memory_space<smem>>
    %963 = vector.broadcast %962 : f32 to vector<18x18xf32>
    %964 = arith.mulf %963, %957 : vector<18x18xf32>
    %965 = arith.addf %931, %964 : vector<18x18xf32>
    %c242 = arith.constant 242 : index
    %966 = memref.load %arg2[%c242] : memref<288xf32, #tpu.memory_space<smem>>
    %967 = vector.broadcast %966 : f32 to vector<18x18xf32>
    %968 = arith.mulf %967, %957 : vector<18x18xf32>
    %969 = arith.addf %935, %968 : vector<18x18xf32>
    %c251 = arith.constant 251 : index
    %970 = memref.load %arg2[%c251] : memref<288xf32, #tpu.memory_space<smem>>
    %971 = vector.broadcast %970 : f32 to vector<18x18xf32>
    %972 = arith.mulf %971, %957 : vector<18x18xf32>
    %973 = arith.addf %939, %972 : vector<18x18xf32>
    %c260 = arith.constant 260 : index
    %974 = memref.load %arg2[%c260] : memref<288xf32, #tpu.memory_space<smem>>
    %975 = vector.broadcast %974 : f32 to vector<18x18xf32>
    %976 = arith.mulf %975, %957 : vector<18x18xf32>
    %977 = arith.addf %943, %976 : vector<18x18xf32>
    %c269 = arith.constant 269 : index
    %978 = memref.load %arg2[%c269] : memref<288xf32, #tpu.memory_space<smem>>
    %979 = vector.broadcast %978 : f32 to vector<18x18xf32>
    %980 = arith.mulf %979, %957 : vector<18x18xf32>
    %981 = arith.addf %947, %980 : vector<18x18xf32>
    %c278 = arith.constant 278 : index
    %982 = memref.load %arg2[%c278] : memref<288xf32, #tpu.memory_space<smem>>
    %983 = vector.broadcast %982 : f32 to vector<18x18xf32>
    %984 = arith.mulf %983, %957 : vector<18x18xf32>
    %985 = arith.addf %951, %984 : vector<18x18xf32>
    %c287 = arith.constant 287 : index
    %986 = memref.load %arg2[%c287] : memref<288xf32, #tpu.memory_space<smem>>
    %987 = vector.broadcast %986 : f32 to vector<18x18xf32>
    %988 = arith.mulf %987, %957 : vector<18x18xf32>
    %989 = arith.addf %955, %988 : vector<18x18xf32>
    %c3_123 = arith.constant 3 : index
    %c0_124 = arith.constant 0 : index
    %c1_125 = arith.constant 1 : index
    %990 = vector.load %arg5[%c3_123, %c0_124, %c1_125] : memref<4x20x20xf32, #tpu.memory_space<vmem>>, vector<1x18x18xf32>
    %991 = vector.shape_cast %990 : vector<1x18x18xf32> to vector<18x18xf32>
    %c223 = arith.constant 223 : index
    %992 = memref.load %arg2[%c223] : memref<288xf32, #tpu.memory_space<smem>>
    %993 = vector.broadcast %992 : f32 to vector<18x18xf32>
    %994 = arith.mulf %993, %991 : vector<18x18xf32>
    %995 = arith.addf %961, %994 : vector<18x18xf32>
    %c232 = arith.constant 232 : index
    %996 = memref.load %arg2[%c232] : memref<288xf32, #tpu.memory_space<smem>>
    %997 = vector.broadcast %996 : f32 to vector<18x18xf32>
    %998 = arith.mulf %997, %991 : vector<18x18xf32>
    %999 = arith.addf %965, %998 : vector<18x18xf32>
    %c241 = arith.constant 241 : index
    %1000 = memref.load %arg2[%c241] : memref<288xf32, #tpu.memory_space<smem>>
    %1001 = vector.broadcast %1000 : f32 to vector<18x18xf32>
    %1002 = arith.mulf %1001, %991 : vector<18x18xf32>
    %1003 = arith.addf %969, %1002 : vector<18x18xf32>
    %c250 = arith.constant 250 : index
    %1004 = memref.load %arg2[%c250] : memref<288xf32, #tpu.memory_space<smem>>
    %1005 = vector.broadcast %1004 : f32 to vector<18x18xf32>
    %1006 = arith.mulf %1005, %991 : vector<18x18xf32>
    %1007 = arith.addf %973, %1006 : vector<18x18xf32>
    %c259 = arith.constant 259 : index
    %1008 = memref.load %arg2[%c259] : memref<288xf32, #tpu.memory_space<smem>>
    %1009 = vector.broadcast %1008 : f32 to vector<18x18xf32>
    %1010 = arith.mulf %1009, %991 : vector<18x18xf32>
    %1011 = arith.addf %977, %1010 : vector<18x18xf32>
    %c268 = arith.constant 268 : index
    %1012 = memref.load %arg2[%c268] : memref<288xf32, #tpu.memory_space<smem>>
    %1013 = vector.broadcast %1012 : f32 to vector<18x18xf32>
    %1014 = arith.mulf %1013, %991 : vector<18x18xf32>
    %1015 = arith.addf %981, %1014 : vector<18x18xf32>
    %c277 = arith.constant 277 : index
    %1016 = memref.load %arg2[%c277] : memref<288xf32, #tpu.memory_space<smem>>
    %1017 = vector.broadcast %1016 : f32 to vector<18x18xf32>
    %1018 = arith.mulf %1017, %991 : vector<18x18xf32>
    %1019 = arith.addf %985, %1018 : vector<18x18xf32>
    %c286 = arith.constant 286 : index
    %1020 = memref.load %arg2[%c286] : memref<288xf32, #tpu.memory_space<smem>>
    %1021 = vector.broadcast %1020 : f32 to vector<18x18xf32>
    %1022 = arith.mulf %1021, %991 : vector<18x18xf32>
    %1023 = arith.addf %989, %1022 : vector<18x18xf32>
    %c3_126 = arith.constant 3 : index
    %c0_127 = arith.constant 0 : index
    %c2_128 = arith.constant 2 : index
    %1024 = vector.load %arg5[%c3_126, %c0_127, %c2_128] : memref<4x20x20xf32, #tpu.memory_space<vmem>>, vector<1x18x18xf32>
    %1025 = vector.shape_cast %1024 : vector<1x18x18xf32> to vector<18x18xf32>
    %c222 = arith.constant 222 : index
    %1026 = memref.load %arg2[%c222] : memref<288xf32, #tpu.memory_space<smem>>
    %1027 = vector.broadcast %1026 : f32 to vector<18x18xf32>
    %1028 = arith.mulf %1027, %1025 : vector<18x18xf32>
    %1029 = arith.addf %995, %1028 : vector<18x18xf32>
    %c231 = arith.constant 231 : index
    %1030 = memref.load %arg2[%c231] : memref<288xf32, #tpu.memory_space<smem>>
    %1031 = vector.broadcast %1030 : f32 to vector<18x18xf32>
    %1032 = arith.mulf %1031, %1025 : vector<18x18xf32>
    %1033 = arith.addf %999, %1032 : vector<18x18xf32>
    %c240 = arith.constant 240 : index
    %1034 = memref.load %arg2[%c240] : memref<288xf32, #tpu.memory_space<smem>>
    %1035 = vector.broadcast %1034 : f32 to vector<18x18xf32>
    %1036 = arith.mulf %1035, %1025 : vector<18x18xf32>
    %1037 = arith.addf %1003, %1036 : vector<18x18xf32>
    %c249 = arith.constant 249 : index
    %1038 = memref.load %arg2[%c249] : memref<288xf32, #tpu.memory_space<smem>>
    %1039 = vector.broadcast %1038 : f32 to vector<18x18xf32>
    %1040 = arith.mulf %1039, %1025 : vector<18x18xf32>
    %1041 = arith.addf %1007, %1040 : vector<18x18xf32>
    %c258 = arith.constant 258 : index
    %1042 = memref.load %arg2[%c258] : memref<288xf32, #tpu.memory_space<smem>>
    %1043 = vector.broadcast %1042 : f32 to vector<18x18xf32>
    %1044 = arith.mulf %1043, %1025 : vector<18x18xf32>
    %1045 = arith.addf %1011, %1044 : vector<18x18xf32>
    %c267 = arith.constant 267 : index
    %1046 = memref.load %arg2[%c267] : memref<288xf32, #tpu.memory_space<smem>>
    %1047 = vector.broadcast %1046 : f32 to vector<18x18xf32>
    %1048 = arith.mulf %1047, %1025 : vector<18x18xf32>
    %1049 = arith.addf %1015, %1048 : vector<18x18xf32>
    %c276 = arith.constant 276 : index
    %1050 = memref.load %arg2[%c276] : memref<288xf32, #tpu.memory_space<smem>>
    %1051 = vector.broadcast %1050 : f32 to vector<18x18xf32>
    %1052 = arith.mulf %1051, %1025 : vector<18x18xf32>
    %1053 = arith.addf %1019, %1052 : vector<18x18xf32>
    %c285 = arith.constant 285 : index
    %1054 = memref.load %arg2[%c285] : memref<288xf32, #tpu.memory_space<smem>>
    %1055 = vector.broadcast %1054 : f32 to vector<18x18xf32>
    %1056 = arith.mulf %1055, %1025 : vector<18x18xf32>
    %1057 = arith.addf %1023, %1056 : vector<18x18xf32>
    %c3_129 = arith.constant 3 : index
    %c1_130 = arith.constant 1 : index
    %c0_131 = arith.constant 0 : index
    %1058 = vector.load %arg5[%c3_129, %c1_130, %c0_131] : memref<4x20x20xf32, #tpu.memory_space<vmem>>, vector<1x18x18xf32>
    %1059 = vector.shape_cast %1058 : vector<1x18x18xf32> to vector<18x18xf32>
    %c221 = arith.constant 221 : index
    %1060 = memref.load %arg2[%c221] : memref<288xf32, #tpu.memory_space<smem>>
    %1061 = vector.broadcast %1060 : f32 to vector<18x18xf32>
    %1062 = arith.mulf %1061, %1059 : vector<18x18xf32>
    %1063 = arith.addf %1029, %1062 : vector<18x18xf32>
    %c230 = arith.constant 230 : index
    %1064 = memref.load %arg2[%c230] : memref<288xf32, #tpu.memory_space<smem>>
    %1065 = vector.broadcast %1064 : f32 to vector<18x18xf32>
    %1066 = arith.mulf %1065, %1059 : vector<18x18xf32>
    %1067 = arith.addf %1033, %1066 : vector<18x18xf32>
    %c239 = arith.constant 239 : index
    %1068 = memref.load %arg2[%c239] : memref<288xf32, #tpu.memory_space<smem>>
    %1069 = vector.broadcast %1068 : f32 to vector<18x18xf32>
    %1070 = arith.mulf %1069, %1059 : vector<18x18xf32>
    %1071 = arith.addf %1037, %1070 : vector<18x18xf32>
    %c248 = arith.constant 248 : index
    %1072 = memref.load %arg2[%c248] : memref<288xf32, #tpu.memory_space<smem>>
    %1073 = vector.broadcast %1072 : f32 to vector<18x18xf32>
    %1074 = arith.mulf %1073, %1059 : vector<18x18xf32>
    %1075 = arith.addf %1041, %1074 : vector<18x18xf32>
    %c257 = arith.constant 257 : index
    %1076 = memref.load %arg2[%c257] : memref<288xf32, #tpu.memory_space<smem>>
    %1077 = vector.broadcast %1076 : f32 to vector<18x18xf32>
    %1078 = arith.mulf %1077, %1059 : vector<18x18xf32>
    %1079 = arith.addf %1045, %1078 : vector<18x18xf32>
    %c266 = arith.constant 266 : index
    %1080 = memref.load %arg2[%c266] : memref<288xf32, #tpu.memory_space<smem>>
    %1081 = vector.broadcast %1080 : f32 to vector<18x18xf32>
    %1082 = arith.mulf %1081, %1059 : vector<18x18xf32>
    %1083 = arith.addf %1049, %1082 : vector<18x18xf32>
    %c275 = arith.constant 275 : index
    %1084 = memref.load %arg2[%c275] : memref<288xf32, #tpu.memory_space<smem>>
    %1085 = vector.broadcast %1084 : f32 to vector<18x18xf32>
    %1086 = arith.mulf %1085, %1059 : vector<18x18xf32>
    %1087 = arith.addf %1053, %1086 : vector<18x18xf32>
    %c284 = arith.constant 284 : index
    %1088 = memref.load %arg2[%c284] : memref<288xf32, #tpu.memory_space<smem>>
    %1089 = vector.broadcast %1088 : f32 to vector<18x18xf32>
    %1090 = arith.mulf %1089, %1059 : vector<18x18xf32>
    %1091 = arith.addf %1057, %1090 : vector<18x18xf32>
    %c3_132 = arith.constant 3 : index
    %c1_133 = arith.constant 1 : index
    %c1_134 = arith.constant 1 : index
    %1092 = vector.load %arg5[%c3_132, %c1_133, %c1_134] : memref<4x20x20xf32, #tpu.memory_space<vmem>>, vector<1x18x18xf32>
    %1093 = vector.shape_cast %1092 : vector<1x18x18xf32> to vector<18x18xf32>
    %c220 = arith.constant 220 : index
    %1094 = memref.load %arg2[%c220] : memref<288xf32, #tpu.memory_space<smem>>
    %1095 = vector.broadcast %1094 : f32 to vector<18x18xf32>
    %1096 = arith.mulf %1095, %1093 : vector<18x18xf32>
    %1097 = arith.addf %1063, %1096 : vector<18x18xf32>
    %c229 = arith.constant 229 : index
    %1098 = memref.load %arg2[%c229] : memref<288xf32, #tpu.memory_space<smem>>
    %1099 = vector.broadcast %1098 : f32 to vector<18x18xf32>
    %1100 = arith.mulf %1099, %1093 : vector<18x18xf32>
    %1101 = arith.addf %1067, %1100 : vector<18x18xf32>
    %c238 = arith.constant 238 : index
    %1102 = memref.load %arg2[%c238] : memref<288xf32, #tpu.memory_space<smem>>
    %1103 = vector.broadcast %1102 : f32 to vector<18x18xf32>
    %1104 = arith.mulf %1103, %1093 : vector<18x18xf32>
    %1105 = arith.addf %1071, %1104 : vector<18x18xf32>
    %c247 = arith.constant 247 : index
    %1106 = memref.load %arg2[%c247] : memref<288xf32, #tpu.memory_space<smem>>
    %1107 = vector.broadcast %1106 : f32 to vector<18x18xf32>
    %1108 = arith.mulf %1107, %1093 : vector<18x18xf32>
    %1109 = arith.addf %1075, %1108 : vector<18x18xf32>
    %c256 = arith.constant 256 : index
    %1110 = memref.load %arg2[%c256] : memref<288xf32, #tpu.memory_space<smem>>
    %1111 = vector.broadcast %1110 : f32 to vector<18x18xf32>
    %1112 = arith.mulf %1111, %1093 : vector<18x18xf32>
    %1113 = arith.addf %1079, %1112 : vector<18x18xf32>
    %c265 = arith.constant 265 : index
    %1114 = memref.load %arg2[%c265] : memref<288xf32, #tpu.memory_space<smem>>
    %1115 = vector.broadcast %1114 : f32 to vector<18x18xf32>
    %1116 = arith.mulf %1115, %1093 : vector<18x18xf32>
    %1117 = arith.addf %1083, %1116 : vector<18x18xf32>
    %c274 = arith.constant 274 : index
    %1118 = memref.load %arg2[%c274] : memref<288xf32, #tpu.memory_space<smem>>
    %1119 = vector.broadcast %1118 : f32 to vector<18x18xf32>
    %1120 = arith.mulf %1119, %1093 : vector<18x18xf32>
    %1121 = arith.addf %1087, %1120 : vector<18x18xf32>
    %c283 = arith.constant 283 : index
    %1122 = memref.load %arg2[%c283] : memref<288xf32, #tpu.memory_space<smem>>
    %1123 = vector.broadcast %1122 : f32 to vector<18x18xf32>
    %1124 = arith.mulf %1123, %1093 : vector<18x18xf32>
    %1125 = arith.addf %1091, %1124 : vector<18x18xf32>
    %c3_135 = arith.constant 3 : index
    %c1_136 = arith.constant 1 : index
    %c2_137 = arith.constant 2 : index
    %1126 = vector.load %arg5[%c3_135, %c1_136, %c2_137] : memref<4x20x20xf32, #tpu.memory_space<vmem>>, vector<1x18x18xf32>
    %1127 = vector.shape_cast %1126 : vector<1x18x18xf32> to vector<18x18xf32>
    %c219 = arith.constant 219 : index
    %1128 = memref.load %arg2[%c219] : memref<288xf32, #tpu.memory_space<smem>>
    %1129 = vector.broadcast %1128 : f32 to vector<18x18xf32>
    %1130 = arith.mulf %1129, %1127 : vector<18x18xf32>
    %1131 = arith.addf %1097, %1130 : vector<18x18xf32>
    %c228 = arith.constant 228 : index
    %1132 = memref.load %arg2[%c228] : memref<288xf32, #tpu.memory_space<smem>>
    %1133 = vector.broadcast %1132 : f32 to vector<18x18xf32>
    %1134 = arith.mulf %1133, %1127 : vector<18x18xf32>
    %1135 = arith.addf %1101, %1134 : vector<18x18xf32>
    %c237 = arith.constant 237 : index
    %1136 = memref.load %arg2[%c237] : memref<288xf32, #tpu.memory_space<smem>>
    %1137 = vector.broadcast %1136 : f32 to vector<18x18xf32>
    %1138 = arith.mulf %1137, %1127 : vector<18x18xf32>
    %1139 = arith.addf %1105, %1138 : vector<18x18xf32>
    %c246 = arith.constant 246 : index
    %1140 = memref.load %arg2[%c246] : memref<288xf32, #tpu.memory_space<smem>>
    %1141 = vector.broadcast %1140 : f32 to vector<18x18xf32>
    %1142 = arith.mulf %1141, %1127 : vector<18x18xf32>
    %1143 = arith.addf %1109, %1142 : vector<18x18xf32>
    %c255 = arith.constant 255 : index
    %1144 = memref.load %arg2[%c255] : memref<288xf32, #tpu.memory_space<smem>>
    %1145 = vector.broadcast %1144 : f32 to vector<18x18xf32>
    %1146 = arith.mulf %1145, %1127 : vector<18x18xf32>
    %1147 = arith.addf %1113, %1146 : vector<18x18xf32>
    %c264 = arith.constant 264 : index
    %1148 = memref.load %arg2[%c264] : memref<288xf32, #tpu.memory_space<smem>>
    %1149 = vector.broadcast %1148 : f32 to vector<18x18xf32>
    %1150 = arith.mulf %1149, %1127 : vector<18x18xf32>
    %1151 = arith.addf %1117, %1150 : vector<18x18xf32>
    %c273 = arith.constant 273 : index
    %1152 = memref.load %arg2[%c273] : memref<288xf32, #tpu.memory_space<smem>>
    %1153 = vector.broadcast %1152 : f32 to vector<18x18xf32>
    %1154 = arith.mulf %1153, %1127 : vector<18x18xf32>
    %1155 = arith.addf %1121, %1154 : vector<18x18xf32>
    %c282 = arith.constant 282 : index
    %1156 = memref.load %arg2[%c282] : memref<288xf32, #tpu.memory_space<smem>>
    %1157 = vector.broadcast %1156 : f32 to vector<18x18xf32>
    %1158 = arith.mulf %1157, %1127 : vector<18x18xf32>
    %1159 = arith.addf %1125, %1158 : vector<18x18xf32>
    %c3_138 = arith.constant 3 : index
    %c2_139 = arith.constant 2 : index
    %c0_140 = arith.constant 0 : index
    %1160 = vector.load %arg5[%c3_138, %c2_139, %c0_140] : memref<4x20x20xf32, #tpu.memory_space<vmem>>, vector<1x18x18xf32>
    %1161 = vector.shape_cast %1160 : vector<1x18x18xf32> to vector<18x18xf32>
    %c218 = arith.constant 218 : index
    %1162 = memref.load %arg2[%c218] : memref<288xf32, #tpu.memory_space<smem>>
    %1163 = vector.broadcast %1162 : f32 to vector<18x18xf32>
    %1164 = arith.mulf %1163, %1161 : vector<18x18xf32>
    %1165 = arith.addf %1131, %1164 : vector<18x18xf32>
    %c227 = arith.constant 227 : index
    %1166 = memref.load %arg2[%c227] : memref<288xf32, #tpu.memory_space<smem>>
    %1167 = vector.broadcast %1166 : f32 to vector<18x18xf32>
    %1168 = arith.mulf %1167, %1161 : vector<18x18xf32>
    %1169 = arith.addf %1135, %1168 : vector<18x18xf32>
    %c236 = arith.constant 236 : index
    %1170 = memref.load %arg2[%c236] : memref<288xf32, #tpu.memory_space<smem>>
    %1171 = vector.broadcast %1170 : f32 to vector<18x18xf32>
    %1172 = arith.mulf %1171, %1161 : vector<18x18xf32>
    %1173 = arith.addf %1139, %1172 : vector<18x18xf32>
    %c245 = arith.constant 245 : index
    %1174 = memref.load %arg2[%c245] : memref<288xf32, #tpu.memory_space<smem>>
    %1175 = vector.broadcast %1174 : f32 to vector<18x18xf32>
    %1176 = arith.mulf %1175, %1161 : vector<18x18xf32>
    %1177 = arith.addf %1143, %1176 : vector<18x18xf32>
    %c254 = arith.constant 254 : index
    %1178 = memref.load %arg2[%c254] : memref<288xf32, #tpu.memory_space<smem>>
    %1179 = vector.broadcast %1178 : f32 to vector<18x18xf32>
    %1180 = arith.mulf %1179, %1161 : vector<18x18xf32>
    %1181 = arith.addf %1147, %1180 : vector<18x18xf32>
    %c263 = arith.constant 263 : index
    %1182 = memref.load %arg2[%c263] : memref<288xf32, #tpu.memory_space<smem>>
    %1183 = vector.broadcast %1182 : f32 to vector<18x18xf32>
    %1184 = arith.mulf %1183, %1161 : vector<18x18xf32>
    %1185 = arith.addf %1151, %1184 : vector<18x18xf32>
    %c272 = arith.constant 272 : index
    %1186 = memref.load %arg2[%c272] : memref<288xf32, #tpu.memory_space<smem>>
    %1187 = vector.broadcast %1186 : f32 to vector<18x18xf32>
    %1188 = arith.mulf %1187, %1161 : vector<18x18xf32>
    %1189 = arith.addf %1155, %1188 : vector<18x18xf32>
    %c281 = arith.constant 281 : index
    %1190 = memref.load %arg2[%c281] : memref<288xf32, #tpu.memory_space<smem>>
    %1191 = vector.broadcast %1190 : f32 to vector<18x18xf32>
    %1192 = arith.mulf %1191, %1161 : vector<18x18xf32>
    %1193 = arith.addf %1159, %1192 : vector<18x18xf32>
    %c3_141 = arith.constant 3 : index
    %c2_142 = arith.constant 2 : index
    %c1_143 = arith.constant 1 : index
    %1194 = vector.load %arg5[%c3_141, %c2_142, %c1_143] : memref<4x20x20xf32, #tpu.memory_space<vmem>>, vector<1x18x18xf32>
    %1195 = vector.shape_cast %1194 : vector<1x18x18xf32> to vector<18x18xf32>
    %c217 = arith.constant 217 : index
    %1196 = memref.load %arg2[%c217] : memref<288xf32, #tpu.memory_space<smem>>
    %1197 = vector.broadcast %1196 : f32 to vector<18x18xf32>
    %1198 = arith.mulf %1197, %1195 : vector<18x18xf32>
    %1199 = arith.addf %1165, %1198 : vector<18x18xf32>
    %c226 = arith.constant 226 : index
    %1200 = memref.load %arg2[%c226] : memref<288xf32, #tpu.memory_space<smem>>
    %1201 = vector.broadcast %1200 : f32 to vector<18x18xf32>
    %1202 = arith.mulf %1201, %1195 : vector<18x18xf32>
    %1203 = arith.addf %1169, %1202 : vector<18x18xf32>
    %c235 = arith.constant 235 : index
    %1204 = memref.load %arg2[%c235] : memref<288xf32, #tpu.memory_space<smem>>
    %1205 = vector.broadcast %1204 : f32 to vector<18x18xf32>
    %1206 = arith.mulf %1205, %1195 : vector<18x18xf32>
    %1207 = arith.addf %1173, %1206 : vector<18x18xf32>
    %c244 = arith.constant 244 : index
    %1208 = memref.load %arg2[%c244] : memref<288xf32, #tpu.memory_space<smem>>
    %1209 = vector.broadcast %1208 : f32 to vector<18x18xf32>
    %1210 = arith.mulf %1209, %1195 : vector<18x18xf32>
    %1211 = arith.addf %1177, %1210 : vector<18x18xf32>
    %c253 = arith.constant 253 : index
    %1212 = memref.load %arg2[%c253] : memref<288xf32, #tpu.memory_space<smem>>
    %1213 = vector.broadcast %1212 : f32 to vector<18x18xf32>
    %1214 = arith.mulf %1213, %1195 : vector<18x18xf32>
    %1215 = arith.addf %1181, %1214 : vector<18x18xf32>
    %c262 = arith.constant 262 : index
    %1216 = memref.load %arg2[%c262] : memref<288xf32, #tpu.memory_space<smem>>
    %1217 = vector.broadcast %1216 : f32 to vector<18x18xf32>
    %1218 = arith.mulf %1217, %1195 : vector<18x18xf32>
    %1219 = arith.addf %1185, %1218 : vector<18x18xf32>
    %c271 = arith.constant 271 : index
    %1220 = memref.load %arg2[%c271] : memref<288xf32, #tpu.memory_space<smem>>
    %1221 = vector.broadcast %1220 : f32 to vector<18x18xf32>
    %1222 = arith.mulf %1221, %1195 : vector<18x18xf32>
    %1223 = arith.addf %1189, %1222 : vector<18x18xf32>
    %c280 = arith.constant 280 : index
    %1224 = memref.load %arg2[%c280] : memref<288xf32, #tpu.memory_space<smem>>
    %1225 = vector.broadcast %1224 : f32 to vector<18x18xf32>
    %1226 = arith.mulf %1225, %1195 : vector<18x18xf32>
    %1227 = arith.addf %1193, %1226 : vector<18x18xf32>
    %c3_144 = arith.constant 3 : index
    %c2_145 = arith.constant 2 : index
    %c2_146 = arith.constant 2 : index
    %1228 = vector.load %arg5[%c3_144, %c2_145, %c2_146] : memref<4x20x20xf32, #tpu.memory_space<vmem>>, vector<1x18x18xf32>
    %1229 = vector.shape_cast %1228 : vector<1x18x18xf32> to vector<18x18xf32>
    %c216 = arith.constant 216 : index
    %1230 = memref.load %arg2[%c216] : memref<288xf32, #tpu.memory_space<smem>>
    %1231 = vector.broadcast %1230 : f32 to vector<18x18xf32>
    %1232 = arith.mulf %1231, %1229 : vector<18x18xf32>
    %1233 = arith.addf %1199, %1232 : vector<18x18xf32>
    %c225 = arith.constant 225 : index
    %1234 = memref.load %arg2[%c225] : memref<288xf32, #tpu.memory_space<smem>>
    %1235 = vector.broadcast %1234 : f32 to vector<18x18xf32>
    %1236 = arith.mulf %1235, %1229 : vector<18x18xf32>
    %1237 = arith.addf %1203, %1236 : vector<18x18xf32>
    %c234 = arith.constant 234 : index
    %1238 = memref.load %arg2[%c234] : memref<288xf32, #tpu.memory_space<smem>>
    %1239 = vector.broadcast %1238 : f32 to vector<18x18xf32>
    %1240 = arith.mulf %1239, %1229 : vector<18x18xf32>
    %1241 = arith.addf %1207, %1240 : vector<18x18xf32>
    %c243 = arith.constant 243 : index
    %1242 = memref.load %arg2[%c243] : memref<288xf32, #tpu.memory_space<smem>>
    %1243 = vector.broadcast %1242 : f32 to vector<18x18xf32>
    %1244 = arith.mulf %1243, %1229 : vector<18x18xf32>
    %1245 = arith.addf %1211, %1244 : vector<18x18xf32>
    %c252 = arith.constant 252 : index
    %1246 = memref.load %arg2[%c252] : memref<288xf32, #tpu.memory_space<smem>>
    %1247 = vector.broadcast %1246 : f32 to vector<18x18xf32>
    %1248 = arith.mulf %1247, %1229 : vector<18x18xf32>
    %1249 = arith.addf %1215, %1248 : vector<18x18xf32>
    %c261 = arith.constant 261 : index
    %1250 = memref.load %arg2[%c261] : memref<288xf32, #tpu.memory_space<smem>>
    %1251 = vector.broadcast %1250 : f32 to vector<18x18xf32>
    %1252 = arith.mulf %1251, %1229 : vector<18x18xf32>
    %1253 = arith.addf %1219, %1252 : vector<18x18xf32>
    %c270 = arith.constant 270 : index
    %1254 = memref.load %arg2[%c270] : memref<288xf32, #tpu.memory_space<smem>>
    %1255 = vector.broadcast %1254 : f32 to vector<18x18xf32>
    %1256 = arith.mulf %1255, %1229 : vector<18x18xf32>
    %1257 = arith.addf %1223, %1256 : vector<18x18xf32>
    %c279 = arith.constant 279 : index
    %1258 = memref.load %arg2[%c279] : memref<288xf32, #tpu.memory_space<smem>>
    %1259 = vector.broadcast %1258 : f32 to vector<18x18xf32>
    %1260 = arith.mulf %1259, %1229 : vector<18x18xf32>
    %1261 = arith.addf %1227, %1260 : vector<18x18xf32>
    %cst_147 = arith.constant 0.000000e+00 : f32
    %1262 = vector.broadcast %cst_147 : f32 to vector<18x18xf32>
    %1263 = arith.cmpf ogt, %1233, %1262 : vector<18x18xf32>
    %cst_148 = arith.constant 0.00999999977 : f32
    %1264 = vector.broadcast %cst_148 : f32 to vector<18x18xf32>
    %1265 = arith.mulf %1233, %1264 : vector<18x18xf32>
    %1266 = arith.select %1263, %1233, %1265 : vector<18x18xi1>, vector<18x18xf32>
    %c0_149 = arith.constant 0 : index
    %c0_150 = arith.constant 0 : index
    %c0_151 = arith.constant 0 : index
    %c0_152 = arith.constant 0 : index
    %1267 = vector.load %arg4[%c0_149, %c0_150, %c0_151, %c0_152] : memref<1x8x18x18xf32, #tpu.memory_space<vmem>>, vector<1x1x18x18xf32>
    %1268 = vector.shape_cast %1267 : vector<1x1x18x18xf32> to vector<18x18xf32>
    %1269 = vector.shape_cast %1266 : vector<18x18xf32> to vector<1x1x18x18xf32>
    tpu.vector_store %arg4[%c0_149, %c0_150, %c0_151, %c0_152], %1269 {strides = array<i32>} : memref<1x8x18x18xf32, #tpu.memory_space<vmem>>, vector<1x1x18x18xf32>,
    %cst_153 = arith.constant 0.000000e+00 : f32
    %1270 = vector.broadcast %cst_153 : f32 to vector<18x18xf32>
    %1271 = arith.cmpf ogt, %1237, %1270 : vector<18x18xf32>
    %cst_154 = arith.constant 0.00999999977 : f32
    %1272 = vector.broadcast %cst_154 : f32 to vector<18x18xf32>
    %1273 = arith.mulf %1237, %1272 : vector<18x18xf32>
    %1274 = arith.select %1271, %1237, %1273 : vector<18x18xi1>, vector<18x18xf32>
    %c0_155 = arith.constant 0 : index
    %c1_156 = arith.constant 1 : index
    %c0_157 = arith.constant 0 : index
    %c0_158 = arith.constant 0 : index
    %1275 = vector.load %arg4[%c0_155, %c1_156, %c0_157, %c0_158] : memref<1x8x18x18xf32, #tpu.memory_space<vmem>>, vector<1x1x18x18xf32>
    %1276 = vector.shape_cast %1275 : vector<1x1x18x18xf32> to vector<18x18xf32>
    %1277 = vector.shape_cast %1274 : vector<18x18xf32> to vector<1x1x18x18xf32>
    tpu.vector_store %arg4[%c0_155, %c1_156, %c0_157, %c0_158], %1277 {strides = array<i32>} : memref<1x8x18x18xf32, #tpu.memory_space<vmem>>, vector<1x1x18x18xf32>,
    %cst_159 = arith.constant 0.000000e+00 : f32
    %1278 = vector.broadcast %cst_159 : f32 to vector<18x18xf32>
    %1279 = arith.cmpf ogt, %1241, %1278 : vector<18x18xf32>
    %cst_160 = arith.constant 0.00999999977 : f32
    %1280 = vector.broadcast %cst_160 : f32 to vector<18x18xf32>
    %1281 = arith.mulf %1241, %1280 : vector<18x18xf32>
    %1282 = arith.select %1279, %1241, %1281 : vector<18x18xi1>, vector<18x18xf32>
    %c0_161 = arith.constant 0 : index
    %c2_162 = arith.constant 2 : index
    %c0_163 = arith.constant 0 : index
    %c0_164 = arith.constant 0 : index
    %1283 = vector.load %arg4[%c0_161, %c2_162, %c0_163, %c0_164] : memref<1x8x18x18xf32, #tpu.memory_space<vmem>>, vector<1x1x18x18xf32>
    %1284 = vector.shape_cast %1283 : vector<1x1x18x18xf32> to vector<18x18xf32>
    %1285 = vector.shape_cast %1282 : vector<18x18xf32> to vector<1x1x18x18xf32>
    tpu.vector_store %arg4[%c0_161, %c2_162, %c0_163, %c0_164], %1285 {strides = array<i32>} : memref<1x8x18x18xf32, #tpu.memory_space<vmem>>, vector<1x1x18x18xf32>,
    %cst_165 = arith.constant 0.000000e+00 : f32
    %1286 = vector.broadcast %cst_165 : f32 to vector<18x18xf32>
    %1287 = arith.cmpf ogt, %1245, %1286 : vector<18x18xf32>
    %cst_166 = arith.constant 0.00999999977 : f32
    %1288 = vector.broadcast %cst_166 : f32 to vector<18x18xf32>
    %1289 = arith.mulf %1245, %1288 : vector<18x18xf32>
    %1290 = arith.select %1287, %1245, %1289 : vector<18x18xi1>, vector<18x18xf32>
    %c0_167 = arith.constant 0 : index
    %c3_168 = arith.constant 3 : index
    %c0_169 = arith.constant 0 : index
    %c0_170 = arith.constant 0 : index
    %1291 = vector.load %arg4[%c0_167, %c3_168, %c0_169, %c0_170] : memref<1x8x18x18xf32, #tpu.memory_space<vmem>>, vector<1x1x18x18xf32>
    %1292 = vector.shape_cast %1291 : vector<1x1x18x18xf32> to vector<18x18xf32>
    %1293 = vector.shape_cast %1290 : vector<18x18xf32> to vector<1x1x18x18xf32>
    tpu.vector_store %arg4[%c0_167, %c3_168, %c0_169, %c0_170], %1293 {strides = array<i32>} : memref<1x8x18x18xf32, #tpu.memory_space<vmem>>, vector<1x1x18x18xf32>,
    %cst_171 = arith.constant 0.000000e+00 : f32
    %1294 = vector.broadcast %cst_171 : f32 to vector<18x18xf32>
    %1295 = arith.cmpf ogt, %1249, %1294 : vector<18x18xf32>
    %cst_172 = arith.constant 0.00999999977 : f32
    %1296 = vector.broadcast %cst_172 : f32 to vector<18x18xf32>
    %1297 = arith.mulf %1249, %1296 : vector<18x18xf32>
    %1298 = arith.select %1295, %1249, %1297 : vector<18x18xi1>, vector<18x18xf32>
    %c0_173 = arith.constant 0 : index
    %c4_174 = arith.constant 4 : index
    %c0_175 = arith.constant 0 : index
    %c0_176 = arith.constant 0 : index
    %1299 = vector.load %arg4[%c0_173, %c4_174, %c0_175, %c0_176] : memref<1x8x18x18xf32, #tpu.memory_space<vmem>>, vector<1x1x18x18xf32>
    %1300 = vector.shape_cast %1299 : vector<1x1x18x18xf32> to vector<18x18xf32>
    %1301 = vector.shape_cast %1298 : vector<18x18xf32> to vector<1x1x18x18xf32>
    tpu.vector_store %arg4[%c0_173, %c4_174, %c0_175, %c0_176], %1301 {strides = array<i32>} : memref<1x8x18x18xf32, #tpu.memory_space<vmem>>, vector<1x1x18x18xf32>,
    %cst_177 = arith.constant 0.000000e+00 : f32
    %1302 = vector.broadcast %cst_177 : f32 to vector<18x18xf32>
    %1303 = arith.cmpf ogt, %1253, %1302 : vector<18x18xf32>
    %cst_178 = arith.constant 0.00999999977 : f32
    %1304 = vector.broadcast %cst_178 : f32 to vector<18x18xf32>
    %1305 = arith.mulf %1253, %1304 : vector<18x18xf32>
    %1306 = arith.select %1303, %1253, %1305 : vector<18x18xi1>, vector<18x18xf32>
    %c0_179 = arith.constant 0 : index
    %c5_180 = arith.constant 5 : index
    %c0_181 = arith.constant 0 : index
    %c0_182 = arith.constant 0 : index
    %1307 = vector.load %arg4[%c0_179, %c5_180, %c0_181, %c0_182] : memref<1x8x18x18xf32, #tpu.memory_space<vmem>>, vector<1x1x18x18xf32>
    %1308 = vector.shape_cast %1307 : vector<1x1x18x18xf32> to vector<18x18xf32>
    %1309 = vector.shape_cast %1306 : vector<18x18xf32> to vector<1x1x18x18xf32>
    tpu.vector_store %arg4[%c0_179, %c5_180, %c0_181, %c0_182], %1309 {strides = array<i32>} : memref<1x8x18x18xf32, #tpu.memory_space<vmem>>, vector<1x1x18x18xf32>,
    %cst_183 = arith.constant 0.000000e+00 : f32
    %1310 = vector.broadcast %cst_183 : f32 to vector<18x18xf32>
    %1311 = arith.cmpf ogt, %1257, %1310 : vector<18x18xf32>
    %cst_184 = arith.constant 0.00999999977 : f32
    %1312 = vector.broadcast %cst_184 : f32 to vector<18x18xf32>
    %1313 = arith.mulf %1257, %1312 : vector<18x18xf32>
    %1314 = arith.select %1311, %1257, %1313 : vector<18x18xi1>, vector<18x18xf32>
    %c0_185 = arith.constant 0 : index
    %c6_186 = arith.constant 6 : index
    %c0_187 = arith.constant 0 : index
    %c0_188 = arith.constant 0 : index
    %1315 = vector.load %arg4[%c0_185, %c6_186, %c0_187, %c0_188] : memref<1x8x18x18xf32, #tpu.memory_space<vmem>>, vector<1x1x18x18xf32>
    %1316 = vector.shape_cast %1315 : vector<1x1x18x18xf32> to vector<18x18xf32>
    %1317 = vector.shape_cast %1314 : vector<18x18xf32> to vector<1x1x18x18xf32>
    tpu.vector_store %arg4[%c0_185, %c6_186, %c0_187, %c0_188], %1317 {strides = array<i32>} : memref<1x8x18x18xf32, #tpu.memory_space<vmem>>, vector<1x1x18x18xf32>,
    %cst_189 = arith.constant 0.000000e+00 : f32
    %1318 = vector.broadcast %cst_189 : f32 to vector<18x18xf32>
    %1319 = arith.cmpf ogt, %1261, %1318 : vector<18x18xf32>
    %cst_190 = arith.constant 0.00999999977 : f32
    %1320 = vector.broadcast %cst_190 : f32 to vector<18x18xf32>
    %1321 = arith.mulf %1261, %1320 : vector<18x18xf32>
    %1322 = arith.select %1319, %1261, %1321 : vector<18x18xi1>, vector<18x18xf32>
    %c0_191 = arith.constant 0 : index
    %c7_192 = arith.constant 7 : index
    %c0_193 = arith.constant 0 : index
    %c0_194 = arith.constant 0 : index
    %1323 = vector.load %arg4[%c0_191, %c7_192, %c0_193, %c0_194] : memref<1x8x18x18xf32, #tpu.memory_space<vmem>>, vector<1x1x18x18xf32>
    %1324 = vector.shape_cast %1323 : vector<1x1x18x18xf32> to vector<18x18xf32>
    %1325 = vector.shape_cast %1322 : vector<18x18xf32> to vector<1x1x18x18xf32>
    tpu.vector_store %arg4[%c0_191, %c7_192, %c0_193, %c0_194], %1325 {strides = array<i32>} : memref<1x8x18x18xf32, #tpu.memory_space<vmem>>, vector<1x1x18x18xf32>,
    return
  }
  func.func @transform_0(%arg0: i32) -> (i32, i32, i32, i32) {
    %c0_i32 = arith.constant 0 : i32
    %c0_i32_0 = arith.constant 0 : i32
    %c0_i32_1 = arith.constant 0 : i32
    %c0_i32_2 = arith.constant 0 : i32
    return %arg0, %c0_i32, %c0_i32_0, %c0_i32_1 : i32, i32, i32, i32
  }
  func.func @transform_1(%arg0: i32) -> i32 {
    %c0_i32 = arith.constant 0 : i32
    %c0_i32_0 = arith.constant 0 : i32
    return %c0_i32 : i32
  }
  func.func @transform_2(%arg0: i32) -> i32 {
    %c0_i32 = arith.constant 0 : i32
    %c0_i32_0 = arith.constant 0 : i32
    return %c0_i32 : i32
  }
  func.func @transform_3(%arg0: i32) -> (i32, i32, i32, i32) {
    %c0_i32 = arith.constant 0 : i32
    %c0_i32_0 = arith.constant 0 : i32
    %c0_i32_1 = arith.constant 0 : i32
    %c0_i32_2 = arith.constant 0 : i32
    return %arg0, %c0_i32, %c0_i32_0, %c0_i32_1 : i32, i32, i32, i32
  }
}

</mosaic_0001>

<bundles_post_ra>
// kernel: conv_transpose_leaky_relu.1
= control target key start
LH: loop header
LB: loop body
LE: loop exit
PB: predicated region body
PF: predicated region fallthrough
CT: control target
= control target key end

     0   :  { %8 = vsyncpa [#allocation4], 0  ;;  %s9389_s0 = inlined_call_operand.vmem [shape: f32[2,4,16,16], index: 0, kind: input, shape index: {}]   ;;  %s9390_s1 = inlined_call_operand.vmem [shape: f32[288], index: 1, kind: input, shape index: {}]   ;;  %s9391_s2 = inlined_call_operand.vmem [shape: f32[8], index: 2, kind: input, shape index: {}]   ;;  %s9392_s3 = inlined_call_operand.vmem [shape: f32[2,8,18,18], index: 3, kind: output, shape index: {}]  }
   0x1   :  { %9 = vsyncpa [#allocation6], 0  ;;  %s5554_s12 = smov 0  }
   0x2 LB: > { %s5560_s13 = sadd.s32 4294967295, %s5526_s12   ;;  %p5111_p0 = scmp.ge.s32.totalorder %s5526_s12, 1  ;;  %s5526_s12 = sphi %s5554_s12, %s15_s12  }
   0x3   : > { %p114_p1 = scmp.lt.s32.totalorder %s5526_s12, 3  ;;  %s127_s16 = sshll.u32 %s9390_s1, 4  ;;  %s128_s16 = int_to_ptr.vmem [resolvable:$true] %s127_s16 }
   0x4   : > { %p9393_p3 = scmp.eq.s32.totalorder %s5560_s13, 0  ;;  %s138_s20 = sshll.u32 %s9391_s2, 4  ;;  %s139_s20 = int_to_ptr.vmem [resolvable:$true] %s138_s20 }
   0x5   : > { %p5567_p2 = pnand %p5111_p0, %p114_p1  ;;  %s5482_s22 = scalar_lea.vmem %s128_s16, 48 }
   0x6   : > { %p5483_p6 = scmp.ne.s32.totalorder %s128_s16, %s5482_s22  ;;  %s5489_s23 = scalar_lea.vmem %s128_s16, 64 }
   0x7   : > { %s9401_s17 = scalar_select %p5567_p2, 1, 0 }
   0x8   : > { %p5454_p4 = pneg %p5567_p2  ;;  %p5490_p10 = scmp.lt.s32.totalorder %s128_s16, %s128_s16 }
   0x9   : > { %p5491_p11 = scmp.lt.s32.totalorder %s5489_s23, %s5482_s22 }
   0xa   : > { %p5579_p5 = pnand %p9393_p3, %p5454_p4 }
   0xb   : > { %p5492_p12 = por %p5491_p11, %p5490_p10 }
   0xc   : > { %p5484_p7 = pneg %p5579_p5 }
   0xe   : > { %p5485_p8 = pnand %p5484_p7, %p5483_p6 }
  0x10   : > { %p5486_p9 = pneg %p5485_p8 }
  0x12   : > { %p5493_p13 = pnand %p5492_p12, %p5486_p9 }
  0x14   : > { %5496 = shalt.err (!%p5493_p13)
}
  0x15   : > { %s5528_s24 = smov [#allocation3]   ;;  %s5497_s25 = scalar_lea.vmem %s139_s20, 16 }
  0x16   : > { %5457 = dma.vmem_to_smem (!%p5579_p5), %s128_s16, 48, %s5528_s24, [#allocation4]  }
  0x17   : > { %p5498_p0 = scmp.ne.s32.totalorder %s139_s20, %s5497_s25  ;;  %p5505_p3 = scmp.lt.s32.totalorder %s139_s20, %s139_s20 }
  0x18   : > { %p5506_p6 = scmp.lt.s32.totalorder %s5497_s25, %s5497_s25 }
  0x19   : > { %p5500_p1 = pnand %p5498_p0, %p5484_p7 }
  0x1a   : > { %p5507_p8 = por %p5506_p6, %p5505_p3 }
  0x1b   : > { %p5501_p4 = pneg %p5500_p1 }
  0x1d   : > { %p5508_p2 = pnand %p5507_p8, %p5501_p4 }
  0x1f   : > { %5511 = shalt.err (!%p5508_p2)
}
  0x20   : > { %s5529_s26 = smov [#allocation5]   ;;  %p9403_p9 = scmp.ne.s32.totalorder %s9401_s17, 0 }
  0x21   : > { %5460 = dma.vmem_to_smem (!%p5579_p5), %s139_s20, 16, %s5529_s26, [#allocation6]  }
  0x22   : > { %159 = sbr.rel (%p9403_p9) target bundleno = 1452 (0x5ac), region = 32 }
  0x27   : > { %p9404_p10 = scmp.eq.s32.totalorder %s5560_s13, 0 }
  0x29   : > { %5517 = dma.done.wait (%p9404_p10), [#allocation4], 48   ;;  %p9405_p11 = pmov %p9404_p10 }
  0x2a   : > { %p9406_p7 = pmov %p9404_p10 }
  0x2b   : > { %5519 = vsyncadd (%p9405_p11), [#allocation4], 4294967248 }
  0x2c   : > { %5521 = dma.done.wait (%p9406_p7), [#allocation6], 16   ;;  %p9407_p3 = pmov %p9406_p7 }
  0x2e   : > { %5523 = vsyncadd (%p9407_p3), [#allocation6], 4294967280 }
  0x2f   : > { %169 = sfence }
  0x30   : > { %p188_p2 = scmp.lt.s32.totalorder %s5560_s13, 1  ;;  %vm198_vm0 = vcmask 162816   ;;  %vm201_vm1 = vcmask 158720   ;;  %v5530_v0 = vmov 0.0   ;;  %s5531_s4 = smov 2   ;;  %vm222_vm2 = vcmask 146448  }
  0x31   : > { %199 = vst.msk [vmem:[#allocation2] sm:$0xff] %vm198_vm0, %v5530_v0  ;;  %200 = vst.msk [vmem:[#allocation2 + $0x8] sm:$0xff] %vm198_vm0, %v5530_v0  ;;  %s5142_s5 = sld [smem:[#allocation3 + $0x7]]  ;;  %s5532_s8 = smov 127   ;;  %vm4936_vm3 = vcmask 146432   ;;  %vm4939_vm5 = vcmask 140288  }
  0x32   : > { %203 = vst.msk [vmem:[#allocation2 + $0x18] sm:$0xff] %vm198_vm0, %v5530_v0  ;;  %204 = vst.msk [vmem:[#allocation2 + $0x20] sm:$0xff] %vm198_vm0, %v5530_v0  ;;  %s9551_s13 = smov (!%p188_p2, %s5560_s13), 1  ;;  %s5143_s6 = sld [smem:[#allocation3 + $0x10]] }
  0x33   : > { %206 = vst.msk [vmem:[#allocation2 + $0x30] sm:$0xff] %vm198_vm0, %v5530_v0  ;;  %207 = vst.msk [vmem:[#allocation2 + $0x38] sm:$0xff] %vm198_vm0, %v5530_v0  ;;  %s5444_s27 = sshll.u32 %s9551_s13, 6  ;;  %s5144_s7 = sld [smem:[#allocation3 + $0x19]] }
  0x34   : > { %209 = vst.msk [vmem:[#allocation2 + $0x48] sm:$0xff] %vm198_vm0, %v5530_v0  ;;  %210 = vst.msk [vmem:[#allocation2 + $0x50] sm:$0xff] %vm198_vm0, %v5530_v0  ;;  %s192_s30 = scalar_lea.vmem %s9389_s0, %s5444_s27  ;;  %s5145_s9 = sld [smem:[#allocation3 + $0x22]] }
  0x35   : > { %202 = vst.msk [vmem:[#allocation2 + $0x10] sm:$0xf] %vm201_vm1, %v5530_v0  ;;  %205 = vst.msk [vmem:[#allocation2 + $0x28] sm:$0xf] %vm201_vm1, %v5530_v0  ;;  %v212_v1 = vld [vmem:[%s192_s30] sm:$0xff]  ;;  %v5121_v2 = vld [vmem:[%s192_s30 + $0x10] sm:$0xff] }
  0x36   : > { %208 = vst.msk [vmem:[#allocation2 + $0x40] sm:$0xf] %vm201_vm1, %v5530_v0  ;;  %211 = vst.msk [vmem:[#allocation2 + $0x58] sm:$0xf] %vm201_vm1, %v5530_v0  ;;  %216 = vrot.lane.b32.xlu0 %v212_v1, %s5531_s4  ;;  %230 = vrot.lane.b32.xlu1 %v5121_v2, %s5531_s4  ;;  %v213_v3 = vld [vmem:[%s192_s30 + $0x8] sm:$0xff]  ;;  %v5122_v4 = vld [vmem:[%s192_s30 + $0x18] sm:$0xff] }
  0x37   : > { %v5123_v5 = vld [vmem:[%s192_s30 + $0x20] sm:$0xff]  ;;  %v5124_v6 = vld [vmem:[%s192_s30 + $0x28] sm:$0xff]  ;;  %v5125_v7 = vld [vmem:[%s192_s30 + $0x30] sm:$0xff]  ;;  %v351_v13 = vstv %s5142_s5  ;;  %s5146_s10 = sld [smem:[#allocation3 + $0x2b]]  ;;  %s5533_s19 = smov 126  }
  0x38   : > { %v5126_v8 = vld [vmem:[%s192_s30 + $0x38] sm:$0xff]  ;;  %v371_v24 = vstv %s5143_s6  ;;  %s5147_s11 = sld [smem:[#allocation3 + $0x34]] }
  0x39   : > { %v391_v27 = vstv %s5144_s7  ;;  %s5148_s14 = sld [smem:[#allocation3 + $0x3d]] }
  0x3a   : > { %218 = vrot.lane.b32.xlu0 %v213_v3, %s5531_s4  ;;  %232 = vrot.lane.b32.xlu1 %v5122_v4, %s5531_s4  ;;  %v411_v32 = vstv %s5145_s9  ;;  %s5149_s15 = sld [smem:[#allocation3 + $0x46]] }
  0x3b   : > { %s5150_s16 = sld [smem:[#allocation3 + $0x6]] }
  0x3c   : > { %s5151_s17 = sld [smem:[#allocation3 + $0xf]] }
  0x3d   : > { %v431_v35 = vstv %s5146_s10  ;;  %s5152_s18 = sld [smem:[#allocation3 + $0x18]] }
  0x3e   : > { %244 = vrot.lane.b32.xlu0 %v5123_v5, %s5531_s4  ;;  %246 = vrot.lane.b32.xlu1 %v5124_v6, %s5531_s4  ;;  %v451_v40 = vstv %s5147_s11  ;;  %s5153_s20 = sld [smem:[#allocation3 + $0x21]] }
  0x3f   : > { %v471_v43 = vstv %s5148_s14  ;;  %s5154_s21 = sld [smem:[#allocation3 + $0x2a]] }
  0x40   : > { %v491_v48 = vstv %s5149_s15  ;;  %s5155_s22 = sld [smem:[#allocation3 + $0x33]] }
  0x41   : > { %v511_v51 = vstv %s5150_s16  ;;  %s5156_s23 = sld [smem:[#allocation3 + $0x3c]] }
  0x42   : > { %258 = vrot.lane.b32.xlu0 %v5125_v7, %s5531_s4  ;;  %260 = vrot.lane.b32.xlu1 %v5126_v8, %s5531_s4  ;;  %v531_v56 = vstv %s5151_s17  ;;  %s5157_s24 = sld [smem:[#allocation3 + $0x45]] }
  0x43   : > { %v551_v59 = vstv %s5152_s18  ;;  %s5166_s25 = sld [smem:[#allocation3 + $0x4]] }
  0x44   : > { %v571_v0 = vstv %s5153_s20  ;;  %s5167_s26 = sld [smem:[#allocation3 + $0xd]] }
  0x45   : > { %v591_v3 = vstv %s5154_s21  ;;  %s5168_s27 = sld [smem:[#allocation3 + $0x16]] }
  0x46   : > { %v611_v8 = vstv %s5155_s22  ;;  %s5169_s28 = sld [smem:[#allocation3 + $0x1f]] }
  0x47   : > { %s5170_s29 = sld [smem:[#allocation3 + $0x28]] }
  0x48   : > { %s5171_s30 = sld [smem:[#allocation3 + $0x31]] }
  0x49   : > { %s5172_s4 = sld [smem:[#allocation3 + $0x3a]] }
  0x4a   : > { %s5173_s5 = sld [smem:[#allocation3 + $0x43]] }
  0x4b   : > { %s5174_s6 = sld [smem:[#allocation3 + $0x3]] }
  0x4c   : > { %s5175_s7 = sld [smem:[#allocation3 + $0xc]] }
  0x4d   : > { %s5803_s9 = sld [smem:[#allocation5]] }
  0x4e   : > { %s5134_s10 = sld [smem:[#allocation3 + $0x8]] }
  0x4f   : > { %s5176_s11 = sld [smem:[#allocation3 + $0x15]] }
  0x50   : > { %s5811_s14 = sld [smem:[#allocation5 + $0x1]] }
  0x51   : > { %s5815_s15 = sld [smem:[#allocation3 + $0x11]] }
  0x52   : > { %s5817_s16 = sld [smem:[#allocation5 + $0x2]] }
  0x53   : > { %s5825_s17 = sld [smem:[#allocation3 + $0x1a]] }
  0x54   : > { %s5827_s18 = sld [smem:[#allocation5 + $0x3]] }
  0x55   : > { %s5831_s20 = sld [smem:[#allocation3 + $0x23]] }
  0x56   : > { %s5833_s21 = sld [smem:[#allocation5 + $0x4]] }
  0x57   : > { %s5177_s22 = sld [smem:[#allocation3 + $0x1e]] }
  0xa8   : > { %v217_v9 = vpop.permute.xlu0 %216  ;;  %v231_v10 = vpop.permute.xlu1 %230 }
  0xa9   : > { %223 = vst.msk [vmem:[#allocation2 + $0x2] sm:$0xff] %vm222_vm2, %v217_v9  ;;  %237 = vst.msk [vmem:[#allocation2 + $0x1a] sm:$0xff] %vm222_vm2, %v231_v10 }
  0xac   : > { %v219_v11 = vpop.permute.xlu0 %218  ;;  %v233_v12 = vpop.permute.xlu1 %232 }
  0xad   : > { %224 = vst.msk [vmem:[#allocation2 + $0xa] sm:$0xff] %vm222_vm2, %v219_v11  ;;  %238 = vst.msk [vmem:[#allocation2 + $0x22] sm:$0xff] %vm222_vm2, %v233_v12  ;;  %v631_v11 = vstv %s5156_s23  ;;  %s5843_s23 = sld [smem:[#allocation3 + $0x5]] }
  0xb0   : > { %v5619_v14 = vld [vmem:[#allocation2] sm:$0xff]  ;;  %v245_v15 = vpop.permute.xlu0 %244  ;;  %v247_v16 = vpop.permute.xlu1 %246 }
  0xb1   : > { %v352_v17 = vmul.f32 %v351_v13, %v5619_v14  ;;  %251 = vst.msk [vmem:[#allocation2 + $0x32] sm:$0xff] %vm222_vm2, %v245_v15  ;;  %252 = vst.msk [vmem:[#allocation2 + $0x3a] sm:$0xff] %vm222_vm2, %v247_v16  ;;  %v372_v26 = vmul.f32 %v371_v24, %v5619_v14  ;;  %v392_v28 = vmul.f32 %v391_v27, %v5619_v14 }
  0xb2   : > { %v412_v34 = vmul.f32 %v411_v32, %v5619_v14  ;;  %v432_v36 = vmul.f32 %v431_v35, %v5619_v14  ;;  %v452_v42 = vmul.f32 %v451_v40, %v5619_v14  ;;  %v472_v44 = vmul.f32 %v471_v43, %v5619_v14 }
  0xb3   : > { %358 = vrot.lane.b32.xlu0 %v352_v17, %s5532_s8  ;;  %v492_v50 = vmul.f32 %v491_v48, %v5619_v14  ;;  %v512_v52 = vmul.f32 %v511_v51, %v5619_v14  ;;  %v532_v58 = vmul.f32 %v531_v56, %v5619_v14  ;;  %v552_v60 = vmul.f32 %v551_v59, %v5619_v14 }
  0xb4   : > { %v5625_v18 = vld [vmem:[#allocation2 + $0x8] sm:$0xff]  ;;  %v5627_v19 = vld [vmem:[#allocation2 + $0x10] sm:$0x3]  ;;  %v259_v20 = vpop.permute.xlu0 %258  ;;  %v261_v21 = vpop.permute.xlu1 %260  ;;  %v572_v2 = vmul.f32 %v571_v0, %v5619_v14  ;;  %v592_v4 = vmul.f32 %v591_v3, %v5619_v14  ;;  %v612_v10 = vmul.f32 %v611_v8, %v5619_v14  ;;  %v632_v12 = vmul.f32 %v631_v11, %v5619_v14 }
  0xb5   : > { %v354_v22 = vmul.f32 %v351_v13, %v5627_v19  ;;  %v353_v23 = vmul.f32 %v351_v13, %v5625_v18  ;;  %265 = vst.msk [vmem:[#allocation2 + $0x4a] sm:$0xff] %vm222_vm2, %v259_v20  ;;  %266 = vst.msk [vmem:[#allocation2 + $0x52] sm:$0xff] %vm222_vm2, %v261_v21  ;;  %v373_v25 = vmul.f32 %v371_v24, %v5625_v18  ;;  %v651_v17 = vstv %s5157_s24  ;;  %s5845_s24 = sld [smem:[#allocation3 + $0x2c]] }
  0xb6   : > { %v374_v29 = vmul.f32 %v371_v24, %v5627_v19  ;;  %v394_v30 = vmul.f32 %v391_v27, %v5627_v19  ;;  %v393_v31 = vmul.f32 %v391_v27, %v5625_v18  ;;  %v413_v33 = vmul.f32 %v411_v32, %v5625_v18  ;;  %v5729_v27 = vld [vmem:[#allocation2 + $0x11] sm:$0x3] }
  0xb7   : > { %362 = vrot.lane.b32.xlu0 %v354_v22, %s5532_s8  ;;  %360 = vrot.lane.b32.xlu1 %v353_v23, %s5532_s8  ;;  %v414_v37 = vmul.f32 %v411_v32, %v5627_v19  ;;  %v434_v38 = vmul.f32 %v431_v35, %v5627_v19  ;;  %v433_v39 = vmul.f32 %v431_v35, %v5625_v18  ;;  %v5721_v22 = vld [vmem:[#allocation2 + $0x1] sm:$0xff]  ;;  %v738_v23 = vstv %s5166_s25  ;;  %s5853_s25 = sld [smem:[#allocation3 + $0x27]] }
  0xb8   : > { %v453_v41 = vmul.f32 %v451_v40, %v5625_v18  ;;  %v454_v45 = vmul.f32 %v451_v40, %v5627_v19  ;;  %v474_v46 = vmul.f32 %v471_v43, %v5627_v19  ;;  %v473_v47 = vmul.f32 %v471_v43, %v5625_v18 }
  0xb9   : > { %v493_v49 = vmul.f32 %v491_v48, %v5625_v18  ;;  %v494_v53 = vmul.f32 %v491_v48, %v5627_v19  ;;  %v514_v54 = vmul.f32 %v511_v51, %v5627_v19  ;;  %v513_v55 = vmul.f32 %v511_v51, %v5625_v18 }
  0xba   : > { %v533_v57 = vmul.f32 %v531_v56, %v5625_v18  ;;  %v534_v61 = vmul.f32 %v531_v56, %v5627_v19  ;;  %v554_v62 = vmul.f32 %v551_v59, %v5627_v19  ;;  %v553_v63 = vmul.f32 %v551_v59, %v5625_v18 }
  0xbb   : > { %380 = vrot.lane.b32.xlu0 %v373_v25, %s5532_s8  ;;  %378 = vrot.lane.b32.xlu1 %v372_v26, %s5532_s8  ;;  %v573_v1 = vmul.f32 %v571_v0, %v5625_v18  ;;  %v574_v5 = vmul.f32 %v571_v0, %v5627_v19  ;;  %v594_v6 = vmul.f32 %v591_v3, %v5627_v19  ;;  %v5727_v26 = vld [vmem:[#allocation2 + $0x9] sm:$0xff]  ;;  %v838_v51 = vstv %s5171_s30  ;;  %s5906_s30 = sld [smem:[#allocation3 + $0x39]] }
  0xbc   : > { %v593_v7 = vmul.f32 %v591_v3, %v5625_v18  ;;  %v613_v9 = vmul.f32 %v611_v8, %v5625_v18  ;;  %v614_v13 = vmul.f32 %v611_v8, %v5627_v19  ;;  %v634_v15 = vmul.f32 %v631_v11, %v5627_v19 }
  0xbd   : > { %v633_v16 = vmul.f32 %v631_v11, %v5625_v18  ;;  %v653_v20 = vmul.f32 %v651_v17, %v5625_v18  ;;  %v652_v21 = vmul.f32 %v651_v17, %v5619_v14  ;;  %v739_v24 = vmul.f32 %v738_v23, %v5721_v22 }
  0xbe   : > { %v654_v25 = vmul.f32 %v651_v17, %v5627_v19  ;;  %v858_v56 = vstv %s5172_s4  ;;  %s5918_s4 = sld [smem:[#allocation3 + $0x17]] }
  0xbf   : > { %398 = vrot.lane.b32.xlu0 %v392_v28, %s5532_s8  ;;  %382 = vrot.lane.b32.xlu1 %v374_v29, %s5532_s8  ;;  %v741_v28 = vmul.f32 %v738_v23, %v5729_v27  ;;  %v740_v29 = vmul.f32 %v738_v23, %v5727_v26  ;;  %v859_v59 = vmul.f32 %v858_v56, %v5721_v22 }
  0xc0   : > { %v860_v0 = vmul.f32 %v858_v56, %v5727_v26 }
  0xc3   : > { %402 = vrot.lane.b32.xlu0 %v394_v30, %s5532_s8  ;;  %400 = vrot.lane.b32.xlu1 %v393_v31, %s5532_s8  ;;  %v758_v30 = vstv %s5167_s26  ;;  %s5856_s26 = sld [smem:[#allocation5 + $0x5]] }
  0xc4   : > { %v760_v31 = vmul.f32 %v758_v30, %v5727_v26  ;;  %v759_v32 = vmul.f32 %v758_v30, %v5721_v22  ;;  %v761_v35 = vmul.f32 %v758_v30, %v5729_v27 }
  0xc7   : > { %420 = vrot.lane.b32.xlu0 %v413_v33, %s5532_s8  ;;  %418 = vrot.lane.b32.xlu1 %v412_v34, %s5532_s8  ;;  %v778_v33 = vstv %s5168_s27  ;;  %s5859_s27 = sld [smem:[#allocation3 + $0x35]] }
  0xc8   : > { %v779_v34 = vmul.f32 %v778_v33, %v5721_v22 }
  0xcb   : > { %438 = vrot.lane.b32.xlu0 %v432_v36, %s5532_s8  ;;  %422 = vrot.lane.b32.xlu1 %v414_v37, %s5532_s8  ;;  %v781_v36 = vmul.f32 %v778_v33, %v5729_v27  ;;  %v780_v37 = vmul.f32 %v778_v33, %v5727_v26  ;;  %v268_v33 = vstv %s5803_s9  ;;  %s5962_s9 = sld [smem:[#allocation3 + $0x20]] }
  0xcf   : > { %442 = vrot.lane.b32.xlu0 %v434_v38, %s5532_s8  ;;  %440 = vrot.lane.b32.xlu1 %v433_v39, %s5532_s8  ;;  %v798_v38 = vstv %s5169_s28  ;;  %s5879_s28 = sld [smem:[#allocation3 + $0x30]] }
  0xd0   : > { %v800_v40 = vmul.f32 %v798_v38, %v5727_v26 }
  0xd3   : > { %460 = vrot.lane.b32.xlu0 %v453_v41, %s5532_s8  ;;  %458 = vrot.lane.b32.xlu1 %v452_v42, %s5532_s8  ;;  %v799_v41 = vmul.f32 %v798_v38, %v5721_v22  ;;  %v818_v42 = vstv %s5170_s29  ;;  %s5888_s29 = sld [smem:[#allocation3 + $0xe]] }
  0xd7   : > { %478 = vrot.lane.b32.xlu0 %v472_v44, %s5532_s8  ;;  %462 = vrot.lane.b32.xlu1 %v454_v45, %s5532_s8  ;;  %v819_v45 = vmul.f32 %v818_v42, %v5721_v22 }
  0xdb   : > { %482 = vrot.lane.b32.xlu0 %v474_v46, %s5532_s8  ;;  %480 = vrot.lane.b32.xlu1 %v473_v47, %s5532_s8  ;;  %v801_v46 = vmul.f32 %v798_v38, %v5729_v27 }
  0xdf   : > { %500 = vrot.lane.b32.xlu0 %v493_v49, %s5532_s8  ;;  %498 = vrot.lane.b32.xlu1 %v492_v50, %s5532_s8  ;;  %v821_v49 = vmul.f32 %v818_v42, %v5729_v27  ;;  %v820_v50 = vmul.f32 %v818_v42, %v5727_v26 }
  0xe3   : > { %518 = vrot.lane.b32.xlu0 %v512_v52, %s5533_s19  ;;  %502 = vrot.lane.b32.xlu1 %v494_v53, %s5532_s8 }
  0xe7   : > { %522 = vrot.lane.b32.xlu0 %v514_v54, %s5533_s19  ;;  %520 = vrot.lane.b32.xlu1 %v513_v55, %s5533_s19  ;;  %v840_v54 = vmul.f32 %v838_v51, %v5727_v26  ;;  %v839_v55 = vmul.f32 %v838_v51, %v5721_v22 }
  0xeb   : > { %540 = vrot.lane.b32.xlu0 %v533_v57, %s5533_s19  ;;  %538 = vrot.lane.b32.xlu1 %v532_v58, %s5533_s19 }
  0xef   : > { %558 = vrot.lane.b32.xlu0 %v552_v60, %s5533_s19  ;;  %542 = vrot.lane.b32.xlu1 %v534_v61, %s5533_s19  ;;  %v841_v60 = vmul.f32 %v838_v51, %v5729_v27 }
  0xf3   : > { %562 = vrot.lane.b32.xlu0 %v554_v62, %s5533_s19  ;;  %560 = vrot.lane.b32.xlu1 %v553_v63, %s5533_s19  ;;  %v861_v63 = vmul.f32 %v858_v56, %v5729_v27 }
  0xf7   : > { %580 = vrot.lane.b32.xlu0 %v573_v1, %s5533_s19  ;;  %578 = vrot.lane.b32.xlu1 %v572_v2, %s5533_s19  ;;  %v878_v1 = vstv %s5173_s5  ;;  %s5929_s5 = sld [smem:[#allocation5 + $0x6]] }
  0xfb   : > { %598 = vrot.lane.b32.xlu0 %v592_v4, %s5533_s19  ;;  %582 = vrot.lane.b32.xlu1 %v574_v5, %s5533_s19  ;;  %v880_v4 = vmul.f32 %v878_v1, %v5727_v26  ;;  %v879_v5 = vmul.f32 %v878_v1, %v5721_v22 }
  0xff   : > { %602 = vrot.lane.b32.xlu0 %v594_v6, %s5533_s19  ;;  %600 = vrot.lane.b32.xlu1 %v593_v7, %s5533_s19  ;;  %v898_v6 = vstv %s5174_s6  ;;  %s5935_s6 = sld [smem:[#allocation3 + $0x3e]] }
 0x103   : > { %620 = vrot.lane.b32.xlu0 %v613_v9, %s5533_s19  ;;  %618 = vrot.lane.b32.xlu1 %v612_v10, %s5533_s19  ;;  %v899_v9 = vmul.f32 %v898_v6, %v5721_v22  ;;  %v881_v10 = vmul.f32 %v878_v1, %v5729_v27 }
 0x107   : > { %638 = vrot.lane.b32.xlu0 %v632_v12, %s5533_s19  ;;  %622 = vrot.lane.b32.xlu1 %v614_v13, %s5533_s19  ;;  %v901_v13 = vmul.f32 %v898_v6, %v5729_v27 }
 0x10b   : > { %642 = vrot.lane.b32.xlu0 %v634_v15, %s5533_s19  ;;  %640 = vrot.lane.b32.xlu1 %v633_v16, %s5533_s19  ;;  %v900_v15 = vmul.f32 %v898_v6, %v5727_v26  ;;  %v918_v16 = vstv %s5175_s7  ;;  %s5951_s7 = sld [smem:[#allocation3 + $0x42]] }
 0x10c   : > { %v919_v23 = vmul.f32 %v918_v16, %v5721_v22 }
 0x10f   : > { %660 = vrot.lane.b32.xlu0 %v653_v20, %s5533_s19  ;;  %658 = vrot.lane.b32.xlu1 %v652_v21, %s5533_s19  ;;  %v920_v21 = vmul.f32 %v918_v16, %v5727_v26 }
 0x113   : > { %745 = vrot.lane.b32.xlu0 %v739_v24, %s5532_s8  ;;  %662 = vrot.lane.b32.xlu1 %v654_v25, %s5533_s19  ;;  %v938_v24 = vstv %s5176_s11  ;;  %v287_v25 = vstv %s5134_s10  ;;  %s5975_s10 = sld [smem:[#allocation3 + $0x1]] }
 0x114   : > { %v939_v30 = vmul.f32 %v938_v24, %v5721_v22  ;;  %v940_v42 = vmul.f32 %v938_v24, %v5727_v26  ;;  %s5990_s11 = sld [smem:[#allocation3 + $0x29]] }
 0x117   : > { %749 = vrot.lane.b32.xlu0 %v741_v28, %s5532_s8  ;;  %747 = vrot.lane.b32.xlu1 %v740_v29, %s5532_s8 }
 0x11b   : > { %767 = vrot.lane.b32.xlu0 %v760_v31, %s5532_s8  ;;  %765 = vrot.lane.b32.xlu1 %v759_v32, %s5532_s8  ;;  %v921_v31 = vmul.f32 %v918_v16, %v5729_v27  ;;  %v288_v32 = vmul.f32 %v287_v25, %v5619_v14 }
 0x11f   : > { %785 = vrot.lane.b32.xlu0 %v779_v34, %s5532_s8  ;;  %769 = vrot.lane.b32.xlu1 %v761_v35, %s5532_s8  ;;  %v5864_v34 = vstv %s5811_s14  ;;  %v295_v35 = vstv %s5815_s15  ;;  %s6003_s14 = sld [smem:[#allocation5 + $0x7]] }
 0x120   : > { %v296_v51 = vmul.f32 %v295_v35, %v5619_v14  ;;  %s6010_s15 = sld [smem:[#allocation3 + $0x47]] }
 0x122   : > { %v299_v16 = vadd.f32 %v296_v51, %v5864_v34 }
 0x123   : > { %789 = vrot.lane.b32.xlu0 %v781_v36, %s5532_s8  ;;  %787 = vrot.lane.b32.xlu1 %v780_v37, %s5532_s8  ;;  %v5868_v36 = vstv %s5817_s16  ;;  %v303_v37 = vstv %s5825_s17  ;;  %s6027_s16 = sld [smem:[#allocation3 + $0xa]] }
 0x124   : > { %s6038_s17 = sld [smem:[#allocation3 + $0x32]] }
 0x125   : > { %v5749_v39 = vpop.permute.xlu0 %358 }
 0x127   : > { %807 = vrot.lane.b32.xlu0 %v800_v40, %s5532_s8  ;;  %805 = vrot.lane.b32.xlu1 %v799_v41, %s5532_s8  ;;  %v941_v41 = vmul.f32 %v938_v24, %v5729_v27 }
 0x129   : > { %v5755_v43 = vpop.permute.xlu1 %360  ;;  %v5757_v44 = vpop.permute.xlu0 %362 }
 0x12b   : > { %825 = vrot.lane.b32.xlu0 %v819_v45, %s5532_s8  ;;  %809 = vrot.lane.b32.xlu1 %v801_v46, %s5532_s8  ;;  %v291_v45 = vadd.f32 %v288_v32, %v268_v33  ;;  %v289_v46 = vmul.f32 %v287_v25, %v5625_v18  ;;  %v298_v32 = vmul.f32 %v295_v35, %v5627_v19 }
 0x12d   : > { %v5763_v47 = vpop.permute.xlu1 %378  ;;  %v5765_v48 = vpop.permute.xlu0 %380  ;;  %v367_v56 = vadd.f32 %v5749_v39, %v291_v45 }
 0x12f   : > { %829 = vrot.lane.b32.xlu0 %v821_v49, %s5532_s8  ;;  %827 = vrot.lane.b32.xlu1 %v820_v50, %s5532_s8  ;;  %v290_v49 = vmul.f32 %v287_v25, %v5627_v19  ;;  %v958_v50 = vstv %s5177_s22  ;;  %s6127_s22 = sld [smem:[#allocation3 + $0x1c]] }
 0x130   : > { %v959_v6 = vmul.f32 %v958_v50, %v5721_v22 }
 0x131   : > { %v5771_v52 = vpop.permute.xlu1 %382  ;;  %v5773_v53 = vpop.permute.xlu0 %398  ;;  %v293_v39 = vadd.f32 %v290_v49, %v268_v33 }
 0x133   : > { %847 = vrot.lane.b32.xlu0 %v840_v54, %s5532_s8  ;;  %845 = vrot.lane.b32.xlu1 %v839_v55, %s5532_s8  ;;  %v5883_v54 = vstv %s5827_s18  ;;  %v674_v55 = vstv %s5843_s23  ;;  %v369_v25 = vadd.f32 %v5757_v44, %v293_v39  ;;  %s6053_s18 = sld [smem:[#allocation3 + $0x13]] }
 0x134   : > { %v676_v49 = vmul.f32 %v674_v55, %v5727_v26  ;;  %v677_v51 = vmul.f32 %v674_v55, %v5729_v27  ;;  %s5194_s23 = sld [smem:[#allocation3 + $0x25]] }
 0x135   : > { %v5779_v57 = vpop.permute.xlu1 %400  ;;  %v5781_v58 = vpop.permute.xlu0 %402 }
 0x137   : > { %865 = vrot.lane.b32.xlu0 %v859_v59, %s5532_s8  ;;  %849 = vrot.lane.b32.xlu1 %v841_v60, %s5532_s8  ;;  %v297_v59 = vmul.f32 %v295_v35, %v5625_v18  ;;  %v5893_v60 = vstv %s5831_s20  ;;  %v305_v35 = vmul.f32 %v303_v37, %v5625_v18  ;;  %s6068_s20 = sld [smem:[#allocation3 + $0x3b]] }
 0x139   : > { %v5787_v61 = vpop.permute.xlu1 %418  ;;  %v5789_v62 = vpop.permute.xlu0 %420 }
 0x13b   : > { %869 = vrot.lane.b32.xlu0 %v861_v63, %s5532_s8  ;;  %867 = vrot.lane.b32.xlu1 %v860_v0, %s5532_s8  ;;  %v5896_v63 = vstv %s5833_s21  ;;  %v5899_v0 = vstv %s5845_s24  ;;  %s6114_s21 = sld [smem:[#allocation3 + $0x44]] }
 0x13c   : > { %s5195_s24 = sld [smem:[#allocation3 + $0x2e]] }
 0x13d   : > { %v5795_v2 = vpop.permute.xlu1 %422  ;;  %v5797_v3 = vpop.permute.xlu0 %438 }
 0x13f   : > { %887 = vrot.lane.b32.xlu0 %v880_v4, %s5532_s8  ;;  %885 = vrot.lane.b32.xlu1 %v879_v5, %s5532_s8  ;;  %v960_v5 = vmul.f32 %v958_v50, %v5727_v26 }
 0x141   : > { %v5805_v7 = vpop.permute.xlu1 %440  ;;  %v5807_v8 = vpop.permute.xlu0 %442 }
 0x143   : > { %905 = vrot.lane.b32.xlu0 %v899_v9, %s5533_s19  ;;  %889 = vrot.lane.b32.xlu1 %v881_v10, %s5532_s8  ;;  %v978_v9 = vstv %s5853_s25  ;;  %v292_v10 = vadd.f32 %v289_v46, %v268_v33  ;;  %v304_v33 = vmul.f32 %v303_v37, %v5619_v14  ;;  %v961_v46 = vmul.f32 %v958_v50, %v5729_v27  ;;  %s5196_s25 = sld [smem:[#allocation3 + $0x37]] }
 0x144   : > { %v979_v45 = vmul.f32 %v978_v9, %v5721_v22  ;;  %v682_v50 = vstv %s5888_s29  ;;  %s5199_s29 = sld [smem:[#allocation3 + $0x12]] }
 0x145   : > { %v5819_v11 = vpop.permute.xlu1 %458  ;;  %v5821_v12 = vpop.permute.xlu0 %460  ;;  %v368_v24 = vadd.f32 %v5755_v43, %v292_v10 }
 0x147   : > { %909 = vrot.lane.b32.xlu0 %v901_v13, %s5533_s19  ;;  %907 = vrot.lane.b32.xlu1 %v900_v15, %s5533_s19  ;;  %v675_v15 = vmul.f32 %v674_v55, %v5721_v22  ;;  %v301_v55 = vadd.f32 %v298_v32, %v5864_v34  ;;  %v1018_v32 = vstv %s5906_s30  ;;  %s5200_s30 = sld [smem:[#allocation3 + $0x1b]] }
 0x149   : > { %v5835_v17 = vpop.permute.xlu1 %462  ;;  %v5837_v20 = vpop.permute.xlu0 %478 }
 0x14b   : > { %927 = vrot.lane.b32.xlu0 %v920_v21, %s5533_s19  ;;  %925 = vrot.lane.b32.xlu1 %v919_v23, %s5533_s19  ;;  %v5911_v21 = vstv %s5856_s26  ;;  %v5914_v23 = vstv %s5859_s27  ;;  %s5197_s26 = sld [smem:[#allocation3 + $0x40]] }
 0x14c   : > { %s1284_s27 = sld [smem:[#allocation3]] }
 0x14d   : > { %v5847_v28 = vpop.permute.xlu1 %480  ;;  %v5849_v29 = vpop.permute.xlu0 %482 }
 0x14f   : > { %945 = vrot.lane.b32.xlu0 %v939_v30, %s5533_s19  ;;  %929 = vrot.lane.b32.xlu1 %v921_v31, %s5533_s19  ;;  %v300_v30 = vadd.f32 %v297_v59, %v5864_v34  ;;  %v998_v59 = vstv %s5879_s28  ;;  %v312_v34 = vmul.f32 %v5893_v60, %v5619_v14  ;;  %s5198_s28 = sld [smem:[#allocation3 + $0x9]] }
 0x151   : > { %v5871_v38 = vpop.permute.xlu1 %498  ;;  %v5873_v40 = vpop.permute.xlu0 %500 }
 0x153   : > { %949 = vrot.lane.b32.xlu0 %v941_v41, %s5533_s19  ;;  %947 = vrot.lane.b32.xlu1 %v940_v42, %s5533_s19 }
 0x155   : > { %v5901_v1 = vpop.permute.xlu1 %502  ;;  %v519_v4 = vpop.permute.xlu0 %518 }
 0x156   : > { %v527_v13 = vadd.f32 %v519_v4, %v367_v56  ;;  %v306_v56 = vmul.f32 %v303_v37, %v5627_v19  ;;  %v387_v4 = vadd.f32 %v5763_v47, %v299_v16  ;;  %v307_v37 = vadd.f32 %v304_v33, %v5868_v36 }
 0x157   : > { %967 = vrot.lane.b32.xlu0 %v960_v5, %s5533_s19  ;;  %965 = vrot.lane.b32.xlu1 %v959_v6, %s5533_s19  ;;  %v388_v5 = vadd.f32 %v5765_v48, %v300_v30  ;;  %v683_v48 = vmul.f32 %v682_v50, %v5721_v22  ;;  %v684_v16 = vmul.f32 %v682_v50, %v5727_v26  ;;  %v690_v33 = vstv %s5918_s4  ;;  %s5182_s4 = sld [smem:[#allocation3 + $0x2]] }
 0x158   : > { %v5923_v31 = vadd.f32 %v675_v15, %v527_v13  ;;  %v981_v15 = vmul.f32 %v978_v9, %v5729_v27  ;;  %v308_v30 = vadd.f32 %v305_v35, %v5868_v36  ;;  %v999_v35 = vmul.f32 %v998_v59, %v5721_v22 }
 0x159   : > { %v521_v41 = vpop.permute.xlu1 %520  ;;  %v523_v42 = vpop.permute.xlu0 %522 }
 0x15a   : > { %v528_v43 = vadd.f32 %v521_v41, %v368_v24  ;;  %v529_v44 = vadd.f32 %v523_v42, %v369_v25  ;;  %v980_v24 = vmul.f32 %v978_v9, %v5727_v26  ;;  %v389_v9 = vadd.f32 %v5771_v52, %v301_v55 }
 0x15b   : > { %985 = vrot.lane.b32.xlu0 %v979_v45, %s5533_s19  ;;  %969 = vrot.lane.b32.xlu1 %v961_v46, %s5533_s19  ;;  %v407_v41 = vadd.f32 %v5773_v53, %v307_v37  ;;  %v309_v46 = vadd.f32 %v306_v56, %v5868_v36  ;;  %v685_v53 = vmul.f32 %v682_v50, %v5729_v27  ;;  %v5983_v56 = vstv %s5929_s5  ;;  %s5201_s5 = sld [smem:[#allocation3 + $0x24]] }
 0x15c   : > { %v5943_v6 = vadd.f32 %v676_v49, %v528_v43  ;;  %v5945_v10 = vadd.f32 %v677_v51, %v529_v44  ;;  %v313_v43 = vmul.f32 %v5893_v60, %v5625_v18  ;;  %v1000_v51 = vmul.f32 %v998_v59, %v5727_v26 }
 0x15d   : > { %v539_v39 = vpop.permute.xlu1 %538  ;;  %v541_v13 = vpop.permute.xlu0 %540  ;;  %v315_v55 = vadd.f32 %v312_v34, %v5883_v54  ;;  %v314_v36 = vmul.f32 %v5893_v60, %v5627_v19  ;;  %v5986_v37 = vstv %s5935_s6  ;;  %v409_v50 = vadd.f32 %v5781_v58, %v309_v46  ;;  %s5183_s6 = sld [smem:[#allocation3 + $0xb]] }
 0x15e   : > { %v547_v25 = vadd.f32 %v539_v39, %v387_v4  ;;  %v548_v47 = vadd.f32 %v541_v13, %v388_v5  ;;  %v691_v5 = vmul.f32 %v690_v33, %v5721_v22  ;;  %v408_v39 = vadd.f32 %v5779_v57, %v308_v30 }
 0x15f   : > { %989 = vrot.lane.b32.xlu0 %v981_v15, %s5533_s19  ;;  %987 = vrot.lane.b32.xlu1 %v980_v24, %s5533_s19  ;;  %v316_v60 = vadd.f32 %v313_v43, %v5883_v54  ;;  %v320_v24 = vmul.f32 %v5899_v0, %v5619_v14  ;;  %v692_v30 = vmul.f32 %v690_v33, %v5727_v26  ;;  %v698_v46 = vstv %s5962_s9  ;;  %s5184_s9 = sld [smem:[#allocation3 + $0x14]] }
 0x160   : > { %v5966_v42 = vadd.f32 %v683_v48, %v547_v25  ;;  %v5968_v45 = vadd.f32 %v684_v16, %v548_v47  ;;  %v1019_v48 = vmul.f32 %v1018_v32, %v5721_v22  ;;  %v1001_v16 = vmul.f32 %v998_v59, %v5729_v27 }
 0x161   : > { %v543_v44 = vpop.permute.xlu1 %542  ;;  %v559_v49 = vpop.permute.xlu0 %558  ;;  %v693_v34 = vmul.f32 %v690_v33, %v5729_v27  ;;  %v1038_v59 = vstv %s5951_s7  ;;  %v427_v43 = vadd.f32 %v5787_v61, %v315_v55  ;;  %v700_v55 = vmul.f32 %v698_v46, %v5727_v26  ;;  %s5202_s7 = sld [smem:[#allocation3 + $0x2d]] }
 0x162   : > { %v549_v52 = vadd.f32 %v543_v44, %v389_v9  ;;  %v567_v4 = vadd.f32 %v559_v49, %v407_v41  ;;  %v317_v9 = vadd.f32 %v314_v36, %v5883_v54  ;;  %v321_v41 = vmul.f32 %v5899_v0, %v5625_v18 }
 0x163   : > { %1007 = vrot.lane.b32.xlu0 %v1000_v51, %s5533_s19  ;;  %1005 = vrot.lane.b32.xlu1 %v999_v35, %s5533_s19  ;;  %v428_v44 = vadd.f32 %v5789_v62, %v316_v60  ;;  %v323_v54 = vadd.f32 %v320_v24, %v5896_v63  ;;  %v322_v51 = vmul.f32 %v5899_v0, %v5627_v19  ;;  %v1125_v0 = vstv %s5975_s10  ;;  %s5203_s10 = sld [smem:[#allocation3 + $0x36]] }
 0x164   : > { %v5994_v13 = vadd.f32 %v685_v53, %v549_v52  ;;  %v5996_v15 = vadd.f32 %v691_v5, %v567_v4  ;;  %v1021_v4 = vmul.f32 %v1018_v32, %v5729_v27  ;;  %v1020_v53 = vmul.f32 %v1018_v32, %v5727_v26 }
 0x165   : > { %v561_v25 = vpop.permute.xlu1 %560  ;;  %v563_v47 = vpop.permute.xlu0 %562  ;;  %v699_v62 = vmul.f32 %v698_v46, %v5721_v22  ;;  %v324_v36 = vadd.f32 %v321_v41, %v5896_v63  ;;  %v429_v32 = vadd.f32 %v5795_v2, %v317_v9  ;;  %v447_v60 = vadd.f32 %v5797_v3, %v323_v54  ;;  %v6051_v2 = vld [vmem:[#allocation2 + $0x2] sm:$0xff] }
 0x166   : > { %v568_v57 = vadd.f32 %v561_v25, %v408_v39  ;;  %v569_v58 = vadd.f32 %v563_v47, %v409_v50  ;;  %v328_v39 = vmul.f32 %v5914_v23, %v5619_v14  ;;  %v706_v50 = vstv %s5990_s11  ;;  %s5185_s11 = sld [smem:[#allocation3 + $0x1d]] }
 0x167   : > { %1025 = vrot.lane.b32.xlu0 %v1019_v48, %s5533_s19  ;;  %1009 = vrot.lane.b32.xlu1 %v1001_v16, %s5533_s19  ;;  %v325_v47 = vadd.f32 %v322_v51, %v5896_v63  ;;  %v329_v48 = vmul.f32 %v5914_v23, %v5625_v18  ;;  %v701_v9 = vmul.f32 %v698_v46, %v5729_v27  ;;  %v6064_v54 = vstv %s6010_s15  ;;  %v6070_v51 = vld [vmem:[#allocation2 + $0x12] sm:$0x3]  ;;  %s5186_s15 = sld [smem:[#allocation3 + $0x26]] }
 0x168   : > { %v6018_v49 = vadd.f32 %v692_v30, %v568_v57  ;;  %v6020_v33 = vadd.f32 %v693_v34, %v569_v58  ;;  %v1039_v58 = vmul.f32 %v1038_v59, %v5721_v22  ;;  %v1040_v30 = vmul.f32 %v1038_v59, %v5727_v26 }
 0x169   : > { %v579_v35 = vpop.permute.xlu1 %578  ;;  %v581_v52 = vpop.permute.xlu0 %580  ;;  %v707_v41 = vmul.f32 %v706_v50, %v5721_v22  ;;  %v331_v63 = vadd.f32 %v328_v39, %v5911_v21  ;;  %v448_v46 = vadd.f32 %v5805_v7, %v324_v36  ;;  %v6083_v7 = vld [vmem:[#allocation2 + $0xa] sm:$0xff]  ;;  %v708_v39 = vmul.f32 %v706_v50, %v5727_v26 }
 0x16a   : > { %v587_v61 = vadd.f32 %v579_v35, %v427_v43  ;;  %v588_v5 = vadd.f32 %v581_v52, %v428_v44  ;;  %v330_v43 = vmul.f32 %v5914_v23, %v5627_v19  ;;  %v6061_v44 = vstv %s6003_s14  ;;  %s5204_s14 = sld [smem:[#allocation3 + $0x3f]] }
 0x16b   : > { %1029 = vrot.lane.b32.xlu0 %v1021_v4, %s5533_s19  ;;  %1027 = vrot.lane.b32.xlu1 %v1020_v53, %s5533_s19  ;;  %v449_v35 = vadd.f32 %v5807_v8, %v325_v47  ;;  %v332_v23 = vadd.f32 %v329_v48, %v5911_v21  ;;  %v336_v53 = vmul.f32 %v5986_v37, %v5619_v14  ;;  %v714_v48 = vstv %s6038_s17  ;;  %s5187_s17 = sld [smem:[#allocation3 + $0x2f]] }
 0x16c   : > { %v6042_v24 = vadd.f32 %v699_v62, %v587_v61  ;;  %v6044_v25 = vadd.f32 %v700_v55, %v588_v5  ;;  %v1041_v62 = vmul.f32 %v1038_v59, %v5729_v27  ;;  %v1126_v55 = vmul.f32 %v1125_v0, %v6051_v2 }
 0x16d   : > { %v583_v16 = vpop.permute.xlu1 %582  ;;  %v599_v57 = vpop.permute.xlu0 %598  ;;  %v1128_v47 = vmul.f32 %v1125_v0, %v6070_v51  ;;  %v1145_v59 = vstv %s6027_s16  ;;  %s6330_s16 = sld [smem:[#allocation3 + $0x4f]] }
 0x16e   : > { %v589_v3 = vadd.f32 %v583_v16, %v429_v32  ;;  %v607_v34 = vadd.f32 %v599_v57, %v447_v60  ;;  %v709_v32 = vmul.f32 %v706_v50, %v5729_v27  ;;  %v337_v60 = vmul.f32 %v5986_v37, %v5625_v18 }
 0x16f   : > { %1045 = vrot.lane.b32.xlu1 %v1039_v58, %s5533_s19  ;;  %1047 = vrot.lane.b32.xlu0 %v1040_v30, %s5533_s19  ;;  %v467_v16 = vadd.f32 %v5819_v11, %v331_v63  ;;  %v468_v57 = vadd.f32 %v5821_v12, %v332_v23  ;;  %v333_v50 = vadd.f32 %v330_v43, %v5911_v21  ;;  %v722_v43 = vstv %s6068_s20  ;;  %s5188_s20 = sld [smem:[#allocation3 + $0x38]] }
 0x170   : > { %v6074_v52 = vadd.f32 %v701_v9, %v589_v3  ;;  %v6076_v4 = vadd.f32 %v707_v41, %v607_v34  ;;  %v339_v3 = vadd.f32 %v336_v53, %v5983_v56  ;;  %v338_v34 = vmul.f32 %v5986_v37, %v5627_v19 }
 0x171   : > { %v601_v61 = vpop.permute.xlu1 %600  ;;  %v603_v5 = vpop.permute.xlu0 %602  ;;  %v715_v12 = vmul.f32 %v714_v48, %v5721_v22  ;;  %v340_v23 = vadd.f32 %v337_v60, %v5983_v56  ;;  %v344_v21 = vmul.f32 %v6064_v54, %v5619_v14  ;;  %v1165_v37 = vstv %s6053_s18  ;;  %s5214_s18 = sld [smem:[#allocation3 + $0x58]] }
 0x172   : > { %v608_v8 = vadd.f32 %v601_v61, %v448_v46  ;;  %v609_v36 = vadd.f32 %v603_v5, %v449_v35  ;;  %v1127_v46 = vmul.f32 %v1125_v0, %v6083_v7  ;;  %v716_v35 = vmul.f32 %v714_v48, %v5727_v26 }
 0x173   : > { %1049 = vrot.lane.b32.xlu1 %v1041_v62, %s5533_s19  ;;  %1132 = vrot.lane.b32.xlu0 %v1126_v55, %s5532_s8  ;;  %v469_v0 = vadd.f32 %v5835_v17, %v333_v50  ;;  %v487_v53 = vadd.f32 %v5837_v20, %v339_v3  ;;  %v341_v62 = vadd.f32 %v338_v34, %v5983_v56 }
 0x174   : > { %v6096_v58 = vadd.f32 %v708_v39, %v608_v8  ;;  %v6098_v30 = vadd.f32 %v709_v32, %v609_v36  ;;  %v345_v14 = vmul.f32 %v6064_v54, %v5625_v18  ;;  %v1146_v36 = vmul.f32 %v1145_v59, %v6051_v2 }
 0x175   : > { %v619_v9 = vpop.permute.xlu1 %618  ;;  %v621_v41 = vpop.permute.xlu0 %620  ;;  %v1147_v39 = vmul.f32 %v1145_v59, %v6083_v7  ;;  %v717_v20 = vmul.f32 %v714_v48, %v5729_v27  ;;  %v723_v60 = vmul.f32 %v722_v43, %v5721_v22  ;;  %v1148_v18 = vmul.f32 %v1145_v59, %v6070_v51 }
 0x176   : > { %v627_v11 = vadd.f32 %v619_v9, %v467_v16  ;;  %v628_v63 = vadd.f32 %v621_v41, %v468_v57  ;;  %v488_v56 = vadd.f32 %v5847_v28, %v340_v23  ;;  %v347_v50 = vadd.f32 %v344_v21, %v6061_v44 }
 0x177   : > { %1134 = vrot.lane.b32.xlu1 %v1127_v46, %s5532_s8  ;;  %1136 = vrot.lane.b32.xlu0 %v1128_v47, %s5532_s8  ;;  %v489_v47 = vadd.f32 %v5849_v29, %v341_v62  ;;  %v348_v48 = vadd.f32 %v345_v14, %v6061_v44  ;;  %v346_v3 = vmul.f32 %v6064_v54, %v5627_v19 }
 0x178   : > { %v6118_v61 = vadd.f32 %v715_v12, %v627_v11  ;;  %v6120_v5 = vadd.f32 %v716_v35, %v628_v63  ;;  %v1166_v59 = vmul.f32 %v1165_v37, %v6051_v2  ;;  %v724_v29 = vmul.f32 %v722_v43, %v5727_v26 }
 0x179   : > { %v623_v55 = vpop.permute.xlu1 %622  ;;  %v639_v8 = vpop.permute.xlu0 %638  ;;  %v725_v46 = vmul.f32 %v722_v43, %v5729_v27  ;;  %v1168_v11 = vmul.f32 %v1165_v37, %v6070_v51  ;;  %v730_v63 = vstv %s6114_s21  ;;  %v507_v19 = vadd.f32 %v5871_v38, %v347_v50  ;;  %s5215_s21 = sld [smem:[#allocation3 + $0x61]] }
 0x17a   : > { %v629_v17 = vadd.f32 %v623_v55, %v469_v0  ;;  %v647_v32 = vadd.f32 %v639_v8, %v487_v53  ;;  %v508_v54 = vadd.f32 %v5873_v40, %v348_v48  ;;  %v349_v23 = vadd.f32 %v346_v3, %v6061_v44 }
 0x17b   : > { %1152 = vrot.lane.b32.xlu1 %v1146_v36, %s5532_s8  ;;  %1154 = vrot.lane.b32.xlu0 %v1147_v39, %s5532_s8  ;;  %v1167_v43 = vmul.f32 %v1165_v37, %v6083_v7  ;;  %v1185_v53 = vstv %s6127_s22  ;;  %v731_v55 = vmul.f32 %v730_v63, %v5721_v22  ;;  %v732_v8 = vmul.f32 %v730_v63, %v5727_v26  ;;  %s5189_s22 = sld [smem:[#allocation3 + $0x41]] }
 0x17c   : > { %v6136_v16 = vadd.f32 %v717_v20, %v629_v17  ;;  %v6138_v57 = vadd.f32 %v723_v60, %v647_v32  ;;  %v509_v38 = vadd.f32 %v5901_v1, %v349_v23  ;;  %v1186_v37 = vmul.f32 %v1185_v53, %v6051_v2 }
 0x17d   : > { %v641_v34 = vpop.permute.xlu1 %640  ;;  %v643_v9 = vpop.permute.xlu0 %642  ;;  %v1187_v17 = vmul.f32 %v1185_v53, %v6083_v7  ;;  %v1205_v32 = vstv %s5194_s23  ;;  %v733_v26 = vmul.f32 %v730_v63, %v5729_v27  ;;  %v1188_v1 = vmul.f32 %v1185_v53, %v6070_v51  ;;  %s5216_s23 = sld [smem:[#allocation3 + $0x6a]] }
 0x17e   : > { %v648_v41 = vadd.f32 %v641_v34, %v488_v56  ;;  %v649_v28 = vadd.f32 %v643_v9, %v489_v47  ;;  %v1206_v56 = vmul.f32 %v1205_v32, %v6051_v2  ;;  %v1208_v27 = vmul.f32 %v1205_v32, %v6070_v51 }
 0x17f   : > { %1156 = vrot.lane.b32.xlu1 %v1148_v18, %s5532_s8  ;;  %1172 = vrot.lane.b32.xlu0 %v1166_v59, %s5532_s8  ;;  %v1207_v48 = vmul.f32 %v1205_v32, %v6083_v7  ;;  %v1225_v3 = vstv %s5195_s24  ;;  %s5217_s24 = sld [smem:[#allocation3 + $0x73]] }
 0x180   : > { %v6153_v12 = vadd.f32 %v724_v29, %v648_v41  ;;  %v6155_v35 = vadd.f32 %v725_v46, %v649_v28  ;;  %v1226_v59 = vmul.f32 %v1225_v3, %v6051_v2  ;;  %v1227_v41 = vmul.f32 %v1225_v3, %v6083_v7 }
 0x181   : > { %v659_v21 = vpop.permute.xlu1 %658  ;;  %v661_v0 = vpop.permute.xlu0 %660  ;;  %v1245_v28 = vstv %s5196_s25  ;;  %v1228_v29 = vmul.f32 %v1225_v3, %v6070_v51  ;;  %s5218_s25 = sld [smem:[#allocation3 + $0x7c]] }
 0x182   : > { %9408 = vst [vmem:[#allocation9_spill] sm:$0xff] %v6155_v35  ;;  %v667_v62 = vadd.f32 %v659_v21, %v507_v19  ;;  %v668_v14 = vadd.f32 %v661_v0, %v508_v54  ;;  %v1246_v63 = vmul.f32 %v1245_v28, %v6051_v2  ;;  %v1248_v19 = vmul.f32 %v1245_v28, %v6070_v51 }
 0x183   : > { %1174 = vrot.lane.b32.xlu1 %v1167_v43, %s5532_s8  ;;  %1176 = vrot.lane.b32.xlu0 %v1168_v11, %s5532_s8  ;;  %v1247_v21 = vmul.f32 %v1245_v28, %v6083_v7  ;;  %v1265_v0 = vstv %s5197_s26  ;;  %s5219_s26 = sld [smem:[#allocation3 + $0x85]] }
 0x184   : > { %v6165_v40 = vadd.f32 %v731_v55, %v667_v62  ;;  %v6167_v44 = vadd.f32 %v732_v8, %v668_v14  ;;  %v1266_v62 = vmul.f32 %v1265_v0, %v6051_v2  ;;  %v1267_v14 = vmul.f32 %v1265_v0, %v6083_v7 }
 0x185   : > { %v663_v36 = vpop.permute.xlu1 %662  ;;  %v6169_v39 = vpop.permute.xlu0 %745  ;;  %v1285_v55 = vstv %s1284_s27  ;;  %v1268_v8 = vmul.f32 %v1265_v0, %v6070_v51  ;;  %s5220_s27 = sld [smem:[#allocation3 + $0x8e]] }
 0x186   : > { %v669_v22 = vadd.f32 %v663_v36, %v509_v38 }
 0x187   : > { %1192 = vrot.lane.b32.xlu1 %v1186_v37, %s5532_s8  ;;  %1194 = vrot.lane.b32.xlu0 %v1187_v17, %s5532_s8  ;;  %v1286_v37 = vmul.f32 %v1285_v55, %v6051_v2  ;;  %v1288_v17 = vmul.f32 %v1285_v55, %v6070_v51 }
 0x188   : > { %v6177_v20 = vadd.f32 %v733_v26, %v669_v22  ;;  %v1287_v26 = vmul.f32 %v1285_v55, %v6083_v7  ;;  %v6266_v55 = vstv %s5182_s4  ;;  %s5224_s4 = sld [smem:[#allocation3 + $0x69]] }
 0x189   : > { %v6179_v60 = vpop.permute.xlu1 %747  ;;  %v6181_v18 = vpop.permute.xlu0 %749 }
 0x18a   : > { %9409 = vst [vmem:[#allocation10_spill] sm:$0xff] %v6177_v20 }
 0x18b   : > { %1196 = vrot.lane.b32.xlu1 %v1188_v1, %s5532_s8  ;;  %1212 = vrot.lane.b32.xlu0 %v1206_v56, %s5532_s8  ;;  %v1305_v1 = vstv %s5198_s28  ;;  %s5221_s28 = sld [smem:[#allocation3 + $0x4e]] }
 0x18c   : > { %v1307_v3 = vmul.f32 %v1305_v1, %v6083_v7 }
 0x18d   : > { %v6187_v47 = vpop.permute.xlu1 %765  ;;  %v6189_v50 = vpop.permute.xlu0 %767 }
 0x18f   : > { %1214 = vrot.lane.b32.xlu1 %v1207_v48, %s5532_s8  ;;  %1216 = vrot.lane.b32.xlu0 %v1208_v27, %s5532_s8  ;;  %v1306_v48 = vmul.f32 %v1305_v1, %v6051_v2 }
 0x191   : > { %v6194_v34 = vpop.permute.xlu1 %769  ;;  %v6196_v9 = vpop.permute.xlu0 %785 }
 0x193   : > { %1232 = vrot.lane.b32.xlu1 %v1226_v59, %s5532_s8  ;;  %1234 = vrot.lane.b32.xlu0 %v1227_v41, %s5532_s8  ;;  %v1325_v59 = vstv %s5199_s29  ;;  %v1308_v41 = vmul.f32 %v1305_v1, %v6070_v51  ;;  %s5222_s29 = sld [smem:[#allocation3 + $0x57]] }
 0x195   : > { %v6203_v46 = vpop.permute.xlu1 %787  ;;  %v6205_v11 = vpop.permute.xlu0 %789 }
 0x197   : > { %1236 = vrot.lane.b32.xlu1 %v1228_v29, %s5532_s8  ;;  %1252 = vrot.lane.b32.xlu0 %v1246_v63, %s5532_s8  ;;  %v1326_v63 = vmul.f32 %v1325_v59, %v6051_v2 }
 0x199   : > { %v6211_v54 = vpop.permute.xlu1 %805  ;;  %v6213_v23 = vpop.permute.xlu0 %807 }
 0x19b   : > { %1254 = vrot.lane.b32.xlu1 %v1247_v21, %s5532_s8  ;;  %1256 = vrot.lane.b32.xlu0 %v1248_v19, %s5532_s8  ;;  %v1328_v19 = vmul.f32 %v1325_v59, %v6070_v51 }
 0x19d   : > { %v6218_v43 = vpop.permute.xlu1 %809  ;;  %v6220_v53 = vpop.permute.xlu0 %825 }
 0x19f   : > { %1272 = vrot.lane.b32.xlu1 %v1266_v62, %s5532_s8  ;;  %1274 = vrot.lane.b32.xlu0 %v1267_v14, %s5532_s8  ;;  %v1327_v62 = vmul.f32 %v1325_v59, %v6083_v7  ;;  %v1345_v14 = vstv %s5200_s30  ;;  %v1062_v59 = vmul.f32 %v6266_v55, %v6051_v2  ;;  %s5223_s30 = sld [smem:[#allocation3 + $0x60]] }
 0x1a0   : > { %v1347_v1 = vmul.f32 %v1345_v14, %v6083_v7 }
 0x1a1   : > { %v6227_v38 = vpop.permute.xlu1 %827  ;;  %v6229_v36 = vpop.permute.xlu0 %829 }
 0x1a3   : > { %1276 = vrot.lane.b32.xlu1 %v1268_v8, %s5532_s8  ;;  %1292 = vrot.lane.b32.xlu0 %v1286_v37, %s5533_s19  ;;  %v754_v8 = vadd.f32 %v6169_v39, %v5923_v31  ;;  %v755_v31 = vadd.f32 %v6179_v60, %v5943_v6  ;;  %v774_v6 = vadd.f32 %v6187_v47, %v5966_v42  ;;  %v6306_v42 = vstv %s5184_s9  ;;  %s6554_s9 = sld [smem:[#allocation3 + $0x7b]] }
 0x1a4   : > { %v775_v60 = vadd.f32 %v6189_v50, %v5968_v45  ;;  %v794_v45 = vadd.f32 %v6196_v9, %v5996_v15 }
 0x1a5   : > { %v6235_v22 = vpop.permute.xlu1 %845  ;;  %v6237_v32 = vpop.permute.xlu0 %847 }
 0x1a7   : > { %1294 = vrot.lane.b32.xlu1 %v1287_v26, %s5533_s19  ;;  %1296 = vrot.lane.b32.xlu0 %v1288_v17, %s5533_s19  ;;  %v1346_v26 = vmul.f32 %v1345_v14, %v6051_v2 }
 0x1a9   : > { %v6242_v56 = vpop.permute.xlu1 %849  ;;  %v6244_v27 = vpop.permute.xlu0 %865 }
 0x1ab   : > { %1312 = vrot.lane.b32.xlu1 %v1306_v48, %s5533_s19  ;;  %1314 = vrot.lane.b32.xlu0 %v1307_v3, %s5533_s19  ;;  %v1365_v3 = vstv %s5201_s5  ;;  %s5205_s5 = sld [smem:[#allocation3 + $0x50]] }
 0x1ad   : > { %v6251_v28 = vpop.permute.xlu1 %867  ;;  %v6253_v29 = vpop.permute.xlu0 %869 }
 0x1ae   : > { %9410 = vst [vmem:[#allocation11_spill] sm:$0xff] %v6253_v29  ;;  %v1532_v29 = vstv %s5214_s18  ;;  %s6667_s18 = sld [smem:[#allocation3 + $0x7d]] }
 0x1af   : > { %1316 = vrot.lane.b32.xlu1 %v1308_v41, %s5533_s19  ;;  %1332 = vrot.lane.b32.xlu0 %v1326_v63, %s5533_s19  ;;  %v1348_v41 = vmul.f32 %v1345_v14, %v6070_v51  ;;  %v1368_v14 = vmul.f32 %v1365_v3, %v6070_v51 }
 0x1b1   : > { %v6259_v21 = vpop.permute.xlu1 %885  ;;  %v6261_v0 = vpop.permute.xlu0 %887 }
 0x1b3   : > { %1334 = vrot.lane.b32.xlu1 %v1327_v62, %s5533_s19  ;;  %1336 = vrot.lane.b32.xlu0 %v1328_v19, %s5533_s19  ;;  %v1366_v62 = vmul.f32 %v1365_v3, %v6051_v2 }
 0x1b5   : > { %v6270_v37 = vpop.permute.xlu1 %889  ;;  %v906_v17 = vpop.permute.xlu0 %905 }
 0x1b6   : > { %9411 = vst [vmem:[#allocation12_spill] sm:$0xff] %v6270_v37  ;;  %v914_v48 = vadd.f32 %v906_v17, %v754_v8  ;;  %v1063_v17 = vmul.f32 %v6266_v55, %v6083_v7 }
 0x1b7   : > { %1352 = vrot.lane.b32.xlu1 %v1346_v26, %s5533_s19  ;;  %1354 = vrot.lane.b32.xlu0 %v1347_v1, %s5533_s19  ;;  %v6291_v26 = vstv %s5183_s6  ;;  %s5225_s6 = sld [smem:[#allocation3 + $0x72]] }
 0x1b8   : > { %v6281_v39 = vadd.f32 %v1062_v59, %v914_v48  ;;  %v1071_v20 = vmul.f32 %v6291_v26, %v6083_v7 }
 0x1b9   : > { %v908_v63 = vpop.permute.xlu1 %907  ;;  %v6283_v19 = vpop.permute.xlu0 %909 }
 0x1ba   : > { %v915_v8 = vadd.f32 %v908_v63, %v755_v31  ;;  %v1367_v31 = vmul.f32 %v1365_v3, %v6083_v7  ;;  %v1385_v63 = vstv %s5202_s7  ;;  %s6547_s7 = sld [smem:[#allocation3 + $0x59]] }
 0x1bb   : > { %1356 = vrot.lane.b32.xlu1 %v1348_v41, %s5533_s19  ;;  %1372 = vrot.lane.b32.xlu0 %v1366_v62, %s5533_s19  ;;  %v1070_v62 = vmul.f32 %v6291_v26, %v6051_v2  ;;  %v1388_v15 = vmul.f32 %v1385_v63, %v6070_v51 }
 0x1bc   : > { %v6297_v1 = vadd.f32 %v1063_v17, %v915_v8  ;;  %v1386_v17 = vmul.f32 %v1385_v63, %v6051_v2 }
 0x1bd   : > { %v926_v48 = vpop.permute.xlu1 %925  ;;  %v928_v59 = vpop.permute.xlu0 %927 }
 0x1be   : > { %v934_v41 = vadd.f32 %v926_v48, %v774_v6  ;;  %v935_v37 = vadd.f32 %v928_v59, %v775_v60  ;;  %v1387_v6 = vmul.f32 %v1385_v63, %v6083_v7  ;;  %v1078_v48 = vmul.f32 %v6306_v42, %v6051_v2 }
 0x1bf   : > { %1374 = vrot.lane.b32.xlu1 %v1367_v31, %s5533_s19  ;;  %1376 = vrot.lane.b32.xlu0 %v1368_v14, %s5533_s19  ;;  %v1405_v14 = vstv %s5203_s10  ;;  %s6566_s10 = sld [smem:[#allocation3 + $0x62]] }
 0x1c0   : > { %v6310_v47 = vadd.f32 %v1070_v62, %v934_v41  ;;  %v6312_v50 = vadd.f32 %v1071_v20, %v935_v37  ;;  %v795_v20 = vadd.f32 %v6203_v46, %v6018_v49  ;;  %v1406_v31 = vmul.f32 %v1405_v14, %v6051_v2 }
 0x1c1   : > { %v6314_v3 = vpop.permute.xlu1 %929  ;;  %v946_v8 = vpop.permute.xlu0 %945  ;;  %v1079_v62 = vmul.f32 %v6306_v42, %v6083_v7  ;;  %v1408_v63 = vmul.f32 %v1405_v14, %v6070_v51  ;;  %v6337_v49 = vstv %s5185_s11  ;;  %v814_v46 = vadd.f32 %v6211_v54, %v6042_v24  ;;  %s6576_s11 = sld [smem:[#allocation3 + $0x84]] }
 0x1c2   : > { %v954_v60 = vadd.f32 %v946_v8, %v794_v45  ;;  %v815_v45 = vadd.f32 %v6213_v23, %v6044_v25  ;;  %v6352_v24 = vstv %s5186_s15  ;;  %v834_v25 = vadd.f32 %v6220_v53, %v6076_v4  ;;  %s6608_s15 = sld [smem:[#allocation3 + $0x8d]] }
 0x1c3   : > { %1392 = vrot.lane.b32.xlu1 %v1386_v17, %s5533_s19  ;;  %1394 = vrot.lane.b32.xlu0 %v1387_v6, %s5533_s19  ;;  %v835_v53 = vadd.f32 %v6227_v38, %v6096_v58  ;;  %v6387_v58 = vstv %s5187_s17  ;;  %v854_v38 = vadd.f32 %v6235_v22, %v6118_v61  ;;  %v874_v22 = vadd.f32 %v6244_v27, %v6138_v57  ;;  %s6638_s17 = sld [smem:[#allocation3 + $0x4c]] }
 0x1c4   : > { %v6325_v9 = vadd.f32 %v1078_v48, %v954_v60  ;;  %v1407_v60 = vmul.f32 %v1405_v14, %v6083_v7  ;;  %v1425_v48 = vstv %s5204_s14  ;;  %v1103_v61 = vmul.f32 %v6387_v58, %v6083_v7  ;;  %s6603_s14 = sld [smem:[#allocation3 + $0x6b]] }
 0x1c5   : > { %v948_v37 = vpop.permute.xlu1 %947  ;;  %v6327_v59 = vpop.permute.xlu0 %949  ;;  %v1428_v4 = vmul.f32 %v1425_v48, %v6070_v51  ;;  %v875_v57 = vadd.f32 %v6251_v28, %v6153_v12  ;;  %v894_v12 = vadd.f32 %v6259_v21, %v6165_v40  ;;  %v895_v28 = vadd.f32 %v6261_v0, %v6167_v44 }
 0x1c6   : > { %v955_v41 = vadd.f32 %v948_v37, %v795_v20  ;;  %v1086_v37 = vmul.f32 %v6337_v49, %v6051_v2 }
 0x1c7   : > { %1396 = vrot.lane.b32.xlu1 %v1388_v15, %s5533_s19  ;;  %1412 = vrot.lane.b32.xlu0 %v1406_v31, %s5533_s19  ;;  %v1087_v31 = vmul.f32 %v6337_v49, %v6083_v7 }
 0x1c8   : > { %v6343_v8 = vadd.f32 %v1079_v62, %v955_v41  ;;  %v1426_v62 = vmul.f32 %v1425_v48, %v6051_v2 }
 0x1c9   : > { %v966_v17 = vpop.permute.xlu1 %965  ;;  %v968_v6 = vpop.permute.xlu0 %967 }
 0x1ca   : > { %v974_v15 = vadd.f32 %v966_v17, %v814_v46  ;;  %v975_v20 = vadd.f32 %v968_v6, %v815_v45  ;;  %v1427_v46 = vmul.f32 %v1425_v48, %v6083_v7  ;;  %v6364_v45 = vld [vmem:[#allocation2 + $0x18] sm:$0xff]  ;;  %v1512_v17 = vstv %s6330_s16  ;;  %s6628_s16 = sld [smem:[#allocation3 + $0x74]] }
 0x1cb   : > { %1414 = vrot.lane.b32.xlu1 %v1407_v60, %s5533_s19  ;;  %1416 = vrot.lane.b32.xlu0 %v1408_v63, %s5533_s19  ;;  %v1094_v6 = vmul.f32 %v6352_v24, %v6051_v2  ;;  %v1095_v48 = vmul.f32 %v6352_v24, %v6083_v7 }
 0x1cc   : > { %v6356_v54 = vadd.f32 %v1086_v37, %v974_v15  ;;  %v6358_v23 = vadd.f32 %v1087_v31, %v975_v20  ;;  %v1513_v37 = vmul.f32 %v1512_v17, %v6364_v45  ;;  %v6379_v31 = vld [vmem:[#allocation2 + $0x20] sm:$0xff] }
 0x1cd   : > { %v6360_v14 = vpop.permute.xlu1 %969  ;;  %v986_v41 = vpop.permute.xlu0 %985 }
 0x1ce   : > { %v994_v63 = vadd.f32 %v986_v41, %v834_v25  ;;  %v6381_v25 = vld [vmem:[#allocation2 + $0x28] sm:$0x3] }
 0x1cf   : > { %1432 = vrot.lane.b32.xlu1 %v1426_v62, %s5533_s19  ;;  %1434 = vrot.lane.b32.xlu0 %v1427_v46, %s5533_s19  ;;  %v855_v62 = vadd.f32 %v6237_v32, %v6120_v5  ;;  %v6403_v5 = vstv %s5188_s20  ;;  %s6683_s20 = sld [smem:[#allocation3 + $0x55]] }
 0x1d0   : > { %v6374_v60 = vadd.f32 %v1094_v6, %v994_v63  ;;  %9412 = vst [vmem:[#allocation13_spill] sm:$0xff] %v6403_v5 }
 0x1d1   : > { %v988_v15 = vpop.permute.xlu1 %987  ;;  %v6376_v20 = vpop.permute.xlu0 %989 }
 0x1d2   : > { %v995_v41 = vadd.f32 %v988_v15, %v835_v53  ;;  %v1514_v53 = vmul.f32 %v1512_v17, %v6379_v31  ;;  %v1515_v15 = vmul.f32 %v1512_v17, %v6381_v25 }
 0x1d3   : > { %1436 = vrot.lane.b32.xlu1 %v1428_v4, %s5533_s19  ;;  %1519 = vrot.lane.b32.xlu0 %v1513_v37, %s5532_s8  ;;  %v1102_v37 = vmul.f32 %v6387_v58, %v6051_v2 }
 0x1d4   : > { %v6393_v46 = vadd.f32 %v1095_v48, %v995_v41 }
 0x1d5   : > { %v1006_v63 = vpop.permute.xlu1 %1005  ;;  %v1008_v6 = vpop.permute.xlu0 %1007 }
 0x1d6   : > { %v1014_v4 = vadd.f32 %v1006_v63, %v854_v38  ;;  %v1015_v35 = vadd.f32 %v1008_v6, %v855_v62  ;;  %v1533_v38 = vmul.f32 %v1532_v29, %v6364_v45  ;;  %v1534_v62 = vmul.f32 %v1532_v29, %v6379_v31 }
 0x1d7   : > { %1521 = vrot.lane.b32.xlu1 %v1514_v53, %s5532_s8  ;;  %1523 = vrot.lane.b32.xlu0 %v1515_v15, %s5532_s8  ;;  %v1552_v6 = vstv %s5215_s21  ;;  %v1110_v53 = vmul.f32 %v6403_v5, %v6051_v2  ;;  %s6694_s21 = sld [smem:[#allocation3 + $0x86]] }
 0x1d8   : > { %v6407_v32 = vadd.f32 %v1102_v37, %v1014_v4  ;;  %v6409_v17 = vadd.f32 %v1103_v61, %v1015_v35  ;;  %v1535_v4 = vmul.f32 %v1532_v29, %v6381_v25  ;;  %v1553_v37 = vmul.f32 %v1552_v6, %v6364_v45 }
 0x1d9   : > { %v6411_v41 = vpop.permute.xlu1 %1009  ;;  %v1026_v48 = vpop.permute.xlu0 %1025 }
 0x1da   : > { %9413 = vst [vmem:[#allocation14_spill] sm:$0xff] %v6409_v17  ;;  %v1034_v63 = vadd.f32 %v1026_v48, %v874_v22  ;;  %v1111_v22 = vmul.f32 %v6403_v5, %v6083_v7  ;;  %v6431_v48 = vstv %s5189_s22  ;;  %v1692_v5 = vstv %s5222_s29  ;;  %s6708_s22 = sld [smem:[#allocation3 + $0x5e]] }
 0x1db   : > { %1539 = vrot.lane.b32.xlu1 %v1533_v38, %s5532_s8  ;;  %1541 = vrot.lane.b32.xlu0 %v1534_v62, %s5532_s8  ;;  %9416 = vst [vmem:[#allocation17_spill] sm:$0xff] %v6431_v48  ;;  %v1119_v40 = vmul.f32 %v6431_v48, %v6083_v7  ;;  %s5245_s29 = sld [smem:[#allocation3 + $0x4b]] }
 0x1dc   : > { %v6421_v35 = vadd.f32 %v1110_v53, %v1034_v63  ;;  %v1554_v63 = vmul.f32 %v1552_v6, %v6379_v31  ;;  %v1555_v53 = vmul.f32 %v1552_v6, %v6381_v25 }
 0x1dd   : > { %v1028_v27 = vpop.permute.xlu1 %1027  ;;  %v6423_v15 = vpop.permute.xlu0 %1029 }
 0x1de   : > { %9414 = vst [vmem:[#allocation15_spill] sm:$0xff] %v6421_v35  ;;  %9415 = vst [vmem:[#allocation16_spill] sm:$0xff] %v6423_v15  ;;  %v1035_v61 = vadd.f32 %v1028_v27, %v875_v57  ;;  %v1572_v57 = vstv %s5216_s23  ;;  %s6735_s23 = sld [smem:[#allocation3 + $0x8f]] }
 0x1df   : > { %1543 = vrot.lane.b32.xlu1 %v1535_v4, %s5532_s8  ;;  %1559 = vrot.lane.b32.xlu0 %v1553_v37, %s5532_s8  ;;  %v1118_v37 = vmul.f32 %v6431_v48, %v6051_v2  ;;  %v1592_v2 = vstv %s5217_s24  ;;  %s6751_s24 = sld [smem:[#allocation3 + $0x67]] }
 0x1e0   : > { %v6437_v29 = vadd.f32 %v1111_v22, %v1035_v61  ;;  %v1573_v61 = vmul.f32 %v1572_v57, %v6364_v45  ;;  %v1574_v22 = vmul.f32 %v1572_v57, %v6379_v31 }
 0x1e1   : > { %v1046_v38 = vpop.permute.xlu1 %1045  ;;  %v1048_v62 = vpop.permute.xlu0 %1047 }
 0x1e2   : > { %9417 = vst [vmem:[#allocation18_spill] sm:$0xff] %v6437_v29  ;;  %v1054_v27 = vadd.f32 %v1046_v38, %v894_v12  ;;  %v1055_v4 = vadd.f32 %v1048_v62, %v895_v28  ;;  %v1575_v28 = vmul.f32 %v1572_v57, %v6381_v25  ;;  %v1593_v38 = vmul.f32 %v1592_v2, %v6364_v45 }
 0x1e3   : > { %1561 = vrot.lane.b32.xlu1 %v1554_v63, %s5532_s8  ;;  %1563 = vrot.lane.b32.xlu0 %v1555_v53, %s5532_s8  ;;  %v1594_v53 = vmul.f32 %v1592_v2, %v6379_v31 }
 0x1e4   : > { %v6447_v44 = vadd.f32 %v1118_v37, %v1054_v27  ;;  %v6449_v21 = vadd.f32 %v1119_v40, %v1055_v4  ;;  %v1595_v27 = vmul.f32 %v1592_v2, %v6381_v25  ;;  %v1612_v4 = vstv %s5218_s25  ;;  %s5241_s25 = sld [smem:[#allocation3 + $0x70]] }
 0x1e5   : > { %v6451_v0 = vpop.permute.xlu1 %1049  ;;  %v6453_v6 = vpop.permute.xlu0 %1132  ;;  %v1613_v40 = vmul.f32 %v1612_v4, %v6364_v45 }
 0x1e6   : > { %9418 = vst [vmem:[#allocation19_spill] sm:$0xff] %v6447_v44  ;;  %9419 = vst [vmem:[#allocation20_spill] sm:$0xff] %v6449_v21  ;;  %v1652_v44 = vstv %s5220_s27  ;;  %s5243_s27 = sld [smem:[#allocation3 + $0x82]] }
 0x1e7   : > { %9420 = vst [vmem:[#allocation21_spill] sm:$0xff] %v6451_v0  ;;  %1579 = vrot.lane.b32.xlu1 %v1573_v61, %s5532_s8  ;;  %1581 = vrot.lane.b32.xlu0 %v1574_v22, %s5532_s8  ;;  %v1614_v61 = vmul.f32 %v1612_v4, %v6379_v31  ;;  %v1632_v22 = vstv %s5219_s26  ;;  %v1672_v0 = vstv %s5221_s28  ;;  %s5242_s26 = sld [smem:[#allocation3 + $0x79]] }
 0x1e8   : > { %s5244_s28 = sld [smem:[#allocation3 + $0x8b]] }
 0x1e9   : > { %v6459_v7 = vpop.permute.xlu1 %1134  ;;  %v6461_v12 = vpop.permute.xlu0 %1136 }
 0x1eb   : > { %1583 = vrot.lane.b32.xlu1 %v1575_v28, %s5532_s8  ;;  %1599 = vrot.lane.b32.xlu0 %v1593_v38, %s5532_s8  ;;  %v1615_v38 = vmul.f32 %v1612_v4, %v6381_v25 }
 0x1ed   : > { %v6467_v62 = vpop.permute.xlu1 %1152  ;;  %v6469_v63 = vpop.permute.xlu0 %1154 }
 0x1ef   : > { %1601 = vrot.lane.b32.xlu1 %v1594_v53, %s5532_s8  ;;  %1603 = vrot.lane.b32.xlu0 %v1595_v27, %s5532_s8  ;;  %v1633_v53 = vmul.f32 %v1632_v22, %v6364_v45 }
 0x1f1   : > { %v6475_v57 = vpop.permute.xlu1 %1156  ;;  %v6477_v37 = vpop.permute.xlu0 %1172 }
 0x1f3   : > { %1619 = vrot.lane.b32.xlu1 %v1613_v40, %s5532_s8  ;;  %1621 = vrot.lane.b32.xlu0 %v1614_v61, %s5532_s8  ;;  %v1634_v40 = vmul.f32 %v1632_v22, %v6379_v31  ;;  %v1635_v61 = vmul.f32 %v1632_v22, %v6381_v25 }
 0x1f5   : > { %v6483_v2 = vpop.permute.xlu1 %1174  ;;  %v6485_v28 = vpop.permute.xlu0 %1176 }
 0x1f7   : > { %1623 = vrot.lane.b32.xlu1 %v1615_v38, %s5532_s8  ;;  %1639 = vrot.lane.b32.xlu0 %v1633_v53, %s5532_s8  ;;  %v1653_v38 = vmul.f32 %v1652_v44, %v6364_v45  ;;  %v1654_v53 = vmul.f32 %v1652_v44, %v6379_v31 }
 0x1f9   : > { %v6491_v27 = vpop.permute.xlu1 %1192  ;;  %v6493_v21 = vpop.permute.xlu0 %1194 }
 0x1fb   : > { %1641 = vrot.lane.b32.xlu1 %v1634_v40, %s5532_s8  ;;  %1643 = vrot.lane.b32.xlu0 %v1635_v61, %s5532_s8  ;;  %v1655_v40 = vmul.f32 %v1652_v44, %v6381_v25  ;;  %v1673_v61 = vmul.f32 %v1672_v0, %v6364_v45 }
 0x1fd   : > { %v6499_v4 = vpop.permute.xlu1 %1196  ;;  %v6501_v48 = vpop.permute.xlu0 %1212 }
 0x1ff   : > { %1659 = vrot.lane.b32.xlu1 %v1653_v38, %s5532_s8  ;;  %1661 = vrot.lane.b32.xlu0 %v1654_v53, %s5532_s8  ;;  %v1674_v38 = vmul.f32 %v1672_v0, %v6379_v31  ;;  %v1675_v53 = vmul.f32 %v1672_v0, %v6381_v25 }
 0x201   : > { %v6507_v22 = vpop.permute.xlu1 %1214  ;;  %v6509_v29 = vpop.permute.xlu0 %1216 }
 0x203   : > { %1663 = vrot.lane.b32.xlu1 %v1655_v40, %s5532_s8  ;;  %1679 = vrot.lane.b32.xlu0 %v1673_v61, %s5533_s19  ;;  %v1693_v40 = vmul.f32 %v1692_v5, %v6364_v45  ;;  %v1694_v61 = vmul.f32 %v1692_v5, %v6379_v31 }
 0x205   : > { %v6515_v35 = vpop.permute.xlu1 %1232  ;;  %v6517_v15 = vpop.permute.xlu0 %1234 }
 0x206   : > { %9421 = vst [vmem:[#allocation22_spill] sm:$0xff] %v6515_v35  ;;  %9422 = vst [vmem:[#allocation23_spill] sm:$0xff] %v6517_v15  ;;  %v1712_v35 = vstv %s5223_s30  ;;  %v1732_v15 = vstv %s5224_s4  ;;  %s5246_s30 = sld [smem:[#allocation3 + $0x54]] }
 0x207   : > { %1681 = vrot.lane.b32.xlu1 %v1674_v38, %s5533_s19  ;;  %1683 = vrot.lane.b32.xlu0 %v1675_v53, %s5533_s19  ;;  %v1695_v53 = vmul.f32 %v1692_v5, %v6381_v25  ;;  %s5247_s4 = sld [smem:[#allocation3 + $0x5d]] }
 0x209   : > { %v6523_v44 = vpop.permute.xlu1 %1236  ;;  %v6525_v17 = vpop.permute.xlu0 %1252 }
 0x20a   : > { %9423 = vst [vmem:[#allocation24_spill] sm:$0xff] %v6523_v44  ;;  %9424 = vst [vmem:[#allocation25_spill] sm:$0xff] %v6525_v17  ;;  %v1713_v44 = vmul.f32 %v1712_v35, %v6364_v45  ;;  %v756_v17 = vadd.f32 %v6181_v18, %v5945_v10  ;;  %v1448_v10 = vstv %s5205_s5  ;;  %v1141_v18 = vadd.f32 %v6453_v6, %v6281_v39  ;;  %s5248_s5 = sld [smem:[#allocation3 + $0x66]] }
 0x20b   : > { %1699 = vrot.lane.b32.xlu1 %v1693_v40, %s5533_s19  ;;  %1701 = vrot.lane.b32.xlu0 %v1694_v61, %s5533_s19  ;;  %v776_v39 = vadd.f32 %v6194_v34, %v5994_v13  ;;  %v1142_v6 = vadd.f32 %v6459_v7, %v6297_v1  ;;  %v1072_v34 = vmul.f32 %v6291_v26, %v6070_v51 }
 0x20c   : > { %v916_v5 = vadd.f32 %v6283_v19, %v756_v17  ;;  %v1734_v19 = vmul.f32 %v1732_v15, %v6379_v31 }
 0x20d   : > { %v6531_v0 = vpop.permute.xlu1 %1254  ;;  %v6533_v38 = vpop.permute.xlu0 %1256  ;;  %v936_v13 = vadd.f32 %v6314_v3, %v776_v39  ;;  %v1162_v3 = vadd.f32 %v6469_v63, %v6312_v50 }
 0x20e   : > { %9425 = vst [vmem:[#allocation26_spill] sm:$0xff] %v6531_v0  ;;  %9426 = vst [vmem:[#allocation27_spill] sm:$0xff] %v6533_v38  ;;  %v1714_v0 = vmul.f32 %v1712_v35, %v6379_v31  ;;  %v1715_v38 = vmul.f32 %v1712_v35, %v6381_v25 }
 0x20f   : > { %1703 = vrot.lane.b32.xlu1 %v1695_v53, %s5533_s19  ;;  %1719 = vrot.lane.b32.xlu0 %v1713_v44, %s5533_s19  ;;  %v1064_v53 = vmul.f32 %v6266_v55, %v6070_v51  ;;  %v1075_v50 = vadd.f32 %v1072_v34, %v936_v13  ;;  %v1792_v13 = vstv %s6576_s11  ;;  %s6902_s11 = sld [smem:[#allocation3 + $0x5f]] }
 0x211   : > { %v6541_v40 = vpop.permute.xlu1 %1272  ;;  %v6543_v61 = vpop.permute.xlu0 %1274  ;;  %v1067_v17 = vadd.f32 %v1064_v53, %v916_v5 }
 0x212   : > { %9427 = vst [vmem:[#allocation28_spill] sm:$0xff] %v6541_v40  ;;  %9428 = vst [vmem:[#allocation29_spill] sm:$0xff] %v6543_v61  ;;  %v1733_v61 = vmul.f32 %v1732_v15, %v6364_v45  ;;  %v1752_v40 = vstv %s5225_s6  ;;  %s5229_s6 = sld [smem:[#allocation3 + $0x4d]] }
 0x213   : > { %1721 = vrot.lane.b32.xlu1 %v1714_v0, %s5533_s19  ;;  %1723 = vrot.lane.b32.xlu0 %v1715_v38, %s5533_s19  ;;  %v1449_v0 = vmul.f32 %v1448_v10, %v6364_v45  ;;  %v1735_v38 = vmul.f32 %v1732_v15, %v6381_v25  ;;  %v1143_v5 = vadd.f32 %v6461_v12, %v1067_v17 }
 0x214   : > { %v1450_v15 = vmul.f32 %v1448_v10, %v6379_v31  ;;  %v796_v12 = vadd.f32 %v6205_v11, %v6020_v33  ;;  %v1754_v17 = vmul.f32 %v1752_v40, %v6379_v31  ;;  %v1080_v33 = vmul.f32 %v6306_v42, %v6070_v51 }
 0x215   : > { %v6558_v44 = vpop.permute.xlu1 %1276  ;;  %v1293_v35 = vpop.permute.xlu0 %1292  ;;  %v1755_v39 = vmul.f32 %v1752_v40, %v6381_v25  ;;  %v1464_v51 = vstv %s6566_s10  ;;  %v1163_v42 = vadd.f32 %v6475_v57, %v1075_v50  ;;  %v1812_v50 = vstv %s6608_s15  ;;  %s5250_s10 = sld [smem:[#allocation3 + $0x78]] }
 0x216   : > { %9429 = vst [vmem:[#allocation30_spill] sm:$0xff] %v6558_v44  ;;  %v1301_v55 = vadd.f32 %v1293_v35, %v1141_v18  ;;  %v1456_v44 = vstv %s6547_s7  ;;  %v1465_v57 = vmul.f32 %v1464_v51, %v6364_v45  ;;  %s5249_s7 = sld [smem:[#allocation3 + $0x6f]] }
 0x217   : > { %1739 = vrot.lane.b32.xlu1 %v1733_v61, %s5533_s19  ;;  %1741 = vrot.lane.b32.xlu0 %v1734_v19, %s5533_s19  ;;  %v1753_v61 = vmul.f32 %v1752_v40, %v6364_v45  ;;  %v1451_v19 = vmul.f32 %v1448_v10, %v6381_v25  ;;  %v1161_v10 = vadd.f32 %v6467_v62, %v6310_v47  ;;  %s6933_s15 = sld [smem:[#allocation3 + $0x68]] }
 0x218   : > { %v6573_v53 = vadd.f32 %v1449_v0, %v1301_v55  ;;  %v1772_v55 = vstv %s6554_s9  ;;  %v956_v47 = vadd.f32 %v6327_v59, %v796_v12  ;;  %v1181_v40 = vadd.f32 %v6477_v37, %v6325_v9  ;;  %s5230_s9 = sld [smem:[#allocation3 + $0x56]] }
 0x219   : > { %v1295_v18 = vpop.permute.xlu1 %1294  ;;  %v1297_v35 = vpop.permute.xlu0 %1296  ;;  %v1459_v34 = vmul.f32 %v1456_v44, %v6381_v25  ;;  %v816_v9 = vadd.f32 %v6218_v43, %v6074_v52  ;;  %v1775_v37 = vmul.f32 %v1772_v55, %v6381_v25  ;;  %v1793_v43 = vmul.f32 %v1792_v13, %v6364_v45 }
 0x21a   : > { %v1302_v1 = vadd.f32 %v1295_v18, %v1142_v6  ;;  %v1303_v7 = vadd.f32 %v1297_v35, %v1143_v5  ;;  %v1457_v6 = vmul.f32 %v1456_v44, %v6364_v45  ;;  %v1458_v5 = vmul.f32 %v1456_v44, %v6379_v31 }
 0x21b   : > { %1743 = vrot.lane.b32.xlu1 %v1735_v38, %s5533_s19  ;;  %1759 = vrot.lane.b32.xlu0 %v1753_v61, %s5533_s19  ;;  %v1182_v44 = vadd.f32 %v6483_v2, %v6343_v8  ;;  %v976_v8 = vadd.f32 %v6360_v14, %v816_v9  ;;  %v6644_v2 = vld [vmem:[#allocation2 + $0x12] sm:$0x3]  ;;  %v1201_v14 = vadd.f32 %v6491_v27, %v6356_v54  ;;  %v6686_v9 = vld [vmem:[#allocation2 + $0x19] sm:$0xff] }
 0x21c   : > { %v6594_v0 = vadd.f32 %v1450_v15, %v1302_v1  ;;  %v6596_v26 = vadd.f32 %v1451_v19, %v1303_v7  ;;  %v1773_v15 = vmul.f32 %v1772_v55, %v6364_v45  ;;  %v1774_v19 = vmul.f32 %v1772_v55, %v6379_v31 }
 0x21d   : > { %v1313_v11 = vpop.permute.xlu1 %1312  ;;  %v1315_v38 = vpop.permute.xlu0 %1314  ;;  %v1083_v1 = vadd.f32 %v1080_v33, %v956_v47  ;;  %v1466_v55 = vmul.f32 %v1464_v51, %v6379_v31  ;;  %v1794_v47 = vmul.f32 %v1792_v13, %v6379_v31 }
 0x21e   : > { %v1321_v62 = vadd.f32 %v1313_v11, %v1161_v10  ;;  %v1322_v63 = vadd.f32 %v1315_v38, %v1162_v3  ;;  %v1467_v11 = vmul.f32 %v1464_v51, %v6381_v25  ;;  %v1472_v38 = vstv %s6603_s14  ;;  %s6912_s14 = sld [smem:[#allocation3 + $0x81]] }
 0x21f   : > { %1761 = vrot.lane.b32.xlu1 %v1754_v17, %s5533_s19  ;;  %1763 = vrot.lane.b32.xlu0 %v1755_v39, %s5533_s19  ;;  %v1183_v17 = vadd.f32 %v6485_v28, %v1083_v1  ;;  %v1088_v28 = vmul.f32 %v6644_v2, %v6337_v49 }
 0x220   : > { %v6614_v18 = vadd.f32 %v1457_v6, %v1321_v62  ;;  %v6616_v35 = vadd.f32 %v1458_v5, %v1322_v63  ;;  %v836_v5 = vadd.f32 %v6229_v36, %v6098_v30  ;;  %v1202_v62 = vadd.f32 %v6493_v21, %v6358_v23 }
 0x221   : > { %v1317_v59 = vpop.permute.xlu1 %1316  ;;  %v1333_v61 = vpop.permute.xlu0 %1332  ;;  %v1096_v30 = vmul.f32 %v6644_v2, %v6352_v24  ;;  %v1091_v23 = vadd.f32 %v1088_v28, %v976_v8  ;;  %v1480_v24 = vstv %s6628_s16  ;;  %s6946_s16 = sld [smem:[#allocation3 + $0x8a]] }
 0x222   : > { %v1323_v7 = vadd.f32 %v1317_v59, %v1163_v42  ;;  %v1341_v12 = vadd.f32 %v1333_v61, %v1181_v40  ;;  %v1795_v42 = vmul.f32 %v1792_v13, %v6381_v25  ;;  %v1473_v40 = vmul.f32 %v1472_v38, %v6364_v45 }
 0x223   : > { %1779 = vrot.lane.b32.xlu1 %v1773_v15, %s5533_s19  ;;  %1781 = vrot.lane.b32.xlu0 %v1774_v19, %s5533_s19  ;;  %v1474_v59 = vmul.f32 %v1472_v38, %v6379_v31  ;;  %v996_v54 = vadd.f32 %v6376_v20, %v836_v5  ;;  %v1203_v61 = vadd.f32 %v6499_v4, %v1091_v23 }
 0x224   : > { %v6633_v10 = vadd.f32 %v1459_v34, %v1323_v7  ;;  %v6635_v3 = vadd.f32 %v1465_v57, %v1341_v12  ;;  %v1221_v15 = vadd.f32 %v6501_v48, %v6374_v60  ;;  %v1813_v20 = vmul.f32 %v1812_v50, %v6364_v45 }
 0x225   : > { %v1335_v33 = vpop.permute.xlu1 %1334  ;;  %v1337_v52 = vpop.permute.xlu0 %1336  ;;  %v1814_v7 = vmul.f32 %v1812_v50, %v6379_v31  ;;  %v1899_v12 = vstv %s6638_s17  ;;  %v1475_v57 = vmul.f32 %v1472_v38, %v6381_v25  ;;  %v1099_v4 = vadd.f32 %v1096_v30, %v996_v54  ;;  %v9435_v54 = vld [vmem:[#allocation13_spill] sm:$0xff]  ;;  %s6952_s17 = sld [smem:[#allocation3 + $0x71]] }
 0x226   : > { %v1342_v39 = vadd.f32 %v1335_v33, %v1182_v44  ;;  %v1343_v6 = vadd.f32 %v1337_v52, %v1183_v17  ;;  %v1481_v48 = vmul.f32 %v1480_v24, %v6364_v45  ;;  %v856_v44 = vadd.f32 %v6242_v56, %v6136_v16  ;;  %v6696_v33 = vld [vmem:[#allocation2 + $0x21] sm:$0xff]  ;;  %v6698_v52 = vld [vmem:[#allocation2 + $0x29] sm:$0x3] }
 0x227   : > { %1783 = vrot.lane.b32.xlu1 %v1775_v37, %s5533_s19  ;;  %1799 = vrot.lane.b32.xlu0 %v1793_v43, %s5533_s19  ;;  %v1815_v17 = vmul.f32 %v1812_v50, %v6381_v25  ;;  %v1222_v43 = vadd.f32 %v6507_v22, %v6393_v46  ;;  %v1900_v8 = vmul.f32 %v1899_v12, %v6686_v9  ;;  %v9431_v50 = vld [vmem:[#allocation11_spill] sm:$0xff] }
 0x228   : > { %v6658_v49 = vadd.f32 %v1466_v55, %v1342_v39  ;;  %v6660_v63 = vadd.f32 %v1467_v11, %v1343_v6  ;;  %v1223_v55 = vadd.f32 %v6509_v29, %v1099_v4  ;;  %v1482_v28 = vmul.f32 %v1480_v24, %v6379_v31 }
 0x229   : > { %v1353_v36 = vpop.permute.xlu1 %1352  ;;  %v1355_v51 = vpop.permute.xlu0 %1354  ;;  %v1483_v39 = vmul.f32 %v1480_v24, %v6381_v25  ;;  %v1488_v6 = vstv %s6667_s18  ;;  %v1016_v5 = vadd.f32 %v6411_v41, %v856_v44  ;;  %v1104_v46 = vmul.f32 %v6644_v2, %v6387_v58  ;;  %s6964_s18 = sld [smem:[#allocation3 + $0x49]] }
 0x22a   : > { %v1361_v21 = vadd.f32 %v1353_v36, %v1201_v14  ;;  %v1362_v27 = vadd.f32 %v1355_v51, %v1202_v62  ;;  %v1901_v62 = vmul.f32 %v1899_v12, %v6696_v33  ;;  %v1902_v30 = vmul.f32 %v1899_v12, %v6698_v52  ;;  %v9432_v36 = vld [vmem:[#allocation22_spill] sm:$0xff] }
 0x22b   : > { %1801 = vrot.lane.b32.xlu1 %v1794_v47, %s5533_s19  ;;  %1803 = vrot.lane.b32.xlu0 %v1795_v42, %s5533_s19  ;;  %v9430_v47 = vld [vmem:[#allocation9_spill] sm:$0xff]  ;;  %v1241_v41 = vadd.f32 %v9432_v36, %v6407_v32  ;;  %v9433_v51 = vld [vmem:[#allocation14_spill] sm:$0xff]  ;;  %v9434_v42 = vld [vmem:[#allocation23_spill] sm:$0xff]  ;;  %v1112_v23 = vmul.f32 %v6644_v2, %v9435_v54  ;;  %v1919_v24 = vstv %s6683_s20  ;;  %v1496_v12 = vstv %s6694_s21  ;;  %s6987_s20 = sld [smem:[#allocation3 + $0x7a]] }
 0x22c   : > { %v6676_v19 = vadd.f32 %v1473_v40, %v1361_v21  ;;  %v6678_v13 = vadd.f32 %v1474_v59, %v1362_v27  ;;  %v876_v14 = vadd.f32 %v9431_v50, %v9430_v47  ;;  %v1242_v40 = vadd.f32 %v9434_v42, %v9433_v51  ;;  %v9436_v32 = vld [vmem:[#allocation16_spill] sm:$0xff]  ;;  %s7000_s21 = sld [smem:[#allocation3 + $0x52]] }
 0x22d   : > { %v1357_v34 = vpop.permute.xlu1 %1356  ;;  %v1373_v1 = vpop.permute.xlu0 %1372  ;;  %v9441_v47 = vld [vmem:[#allocation12_spill] sm:$0xff] }
 0x22e   : > { %v1363_v37 = vadd.f32 %v1357_v34, %v1203_v61  ;;  %v1381_v60 = vadd.f32 %v1373_v1, %v1221_v15  ;;  %v1489_v61 = vmul.f32 %v1488_v6, %v6364_v45  ;;  %v1490_v15 = vmul.f32 %v1488_v6, %v6379_v31 }
 0x22f   : > { %1819 = vrot.lane.b32.xlu1 %v1813_v20, %s5533_s19  ;;  %1821 = vrot.lane.b32.xlu0 %v1814_v7, %s5533_s19  ;;  %v1036_v34 = vadd.f32 %v9436_v32, %v876_v14  ;;  %v1107_v1 = vadd.f32 %v1104_v46, %v1016_v5  ;;  %v1922_v14 = vmul.f32 %v1919_v24, %v6698_v52  ;;  %v9446_v32 = vld [vmem:[#allocation17_spill] sm:$0xff] }
 0x230   : > { %v6703_v11 = vadd.f32 %v1475_v57, %v1363_v37  ;;  %v6705_v16 = vadd.f32 %v1481_v48, %v1381_v60  ;;  %v9437_v57 = vld [vmem:[#allocation24_spill] sm:$0xff]  ;;  %v9438_v37 = vld [vmem:[#allocation15_spill] sm:$0xff]  ;;  %v9439_v60 = vld [vmem:[#allocation25_spill] sm:$0xff] }
 0x231   : > { %v1375_v56 = vpop.permute.xlu1 %1374  ;;  %v1377_v38 = vpop.permute.xlu0 %1376  ;;  %v1243_v4 = vadd.f32 %v9437_v57, %v1107_v1  ;;  %v1261_v48 = vadd.f32 %v9439_v60, %v9438_v37  ;;  %v9448_v57 = vld [vmem:[#allocation28_spill] sm:$0xff]  ;;  %v9450_v60 = vld [vmem:[#allocation29_spill] sm:$0xff] }
 0x232   : > { %v1382_v29 = vadd.f32 %v1375_v56, %v1222_v43  ;;  %v1383_v22 = vadd.f32 %v1377_v38, %v1223_v55  ;;  %v1920_v56 = vmul.f32 %v1919_v24, %v6686_v9  ;;  %v1921_v38 = vmul.f32 %v1919_v24, %v6696_v33  ;;  %v9449_v37 = vld [vmem:[#allocation20_spill] sm:$0xff] }
 0x233   : > { %1823 = vrot.lane.b32.xlu1 %v1815_v17, %s5533_s19  ;;  %1906 = vrot.lane.b32.xlu0 %v1900_v8, %s5532_s8  ;;  %v1939_v8 = vstv %s6708_s22  ;;  %s7008_s22 = sld [smem:[#allocation3 + $0x83]] }
 0x234   : > { %v6726_v58 = vadd.f32 %v1482_v28, %v1382_v29  ;;  %v6728_v59 = vadd.f32 %v1483_v39, %v1383_v22  ;;  %v1491_v28 = vmul.f32 %v1488_v6, %v6381_v25  ;;  %v1115_v39 = vadd.f32 %v1112_v23, %v1036_v34  ;;  %v9440_v22 = vld [vmem:[#allocation10_spill] sm:$0xff] }
 0x235   : > { %v1393_v21 = vpop.permute.xlu1 %1392  ;;  %v1395_v27 = vpop.permute.xlu0 %1394  ;;  %v1497_v29 = vmul.f32 %v1496_v12, %v6364_v45  ;;  %v896_v50 = vadd.f32 %v9441_v47, %v9440_v22  ;;  %v1940_v23 = vmul.f32 %v1939_v8, %v6686_v9  ;;  %v1120_v34 = vmul.f32 %v6644_v2, %v9446_v32  ;;  %v9451_v47 = vld [vmem:[#allocation30_spill] sm:$0xff] }
 0x236   : > { %v1401_v20 = vadd.f32 %v1393_v21, %v1241_v41  ;;  %v1402_v7 = vadd.f32 %v1395_v27, %v1242_v40  ;;  %v9444_v41 = vld [vmem:[#allocation27_spill] sm:$0xff]  ;;  %v1498_v21 = vmul.f32 %v1496_v12, %v6379_v31  ;;  %v1499_v27 = vmul.f32 %v1496_v12, %v6381_v25 }
 0x237   : > { %1908 = vrot.lane.b32.xlu1 %v1901_v62, %s5532_s8  ;;  %1910 = vrot.lane.b32.xlu0 %v1902_v30, %s5532_s8  ;;  %v9442_v62 = vld [vmem:[#allocation18_spill] sm:$0xff]  ;;  %v1263_v6 = vadd.f32 %v9444_v41, %v1115_v39  ;;  %v1282_v12 = vadd.f32 %v9450_v60, %v9449_v37  ;;  %v1941_v2 = vmul.f32 %v1939_v8, %v6696_v33  ;;  %v1999_v32 = vstv %s5242_s26  ;;  %s5265_s26 = sld [smem:[#allocation3 + $0x6d]] }
 0x238   : > { %v6744_v44 = vadd.f32 %v1489_v61, %v1401_v20  ;;  %v6746_v17 = vadd.f32 %v1490_v15, %v1402_v7  ;;  %v9443_v30 = vld [vmem:[#allocation26_spill] sm:$0xff]  ;;  %v1504_v61 = vstv %s6735_s23  ;;  %v9445_v15 = vld [vmem:[#allocation21_spill] sm:$0xff]  ;;  %v9447_v7 = vld [vmem:[#allocation19_spill] sm:$0xff]  ;;  %v2002_v60 = vmul.f32 %v1999_v32, %v6698_v52  ;;  %s7022_s23 = sld [smem:[#allocation3 + $0x5b]] }
 0x239   : > { %v1397_v43 = vpop.permute.xlu1 %1396  ;;  %v1413_v55 = vpop.permute.xlu0 %1412  ;;  %v1262_v36 = vadd.f32 %v9443_v30, %v9442_v62  ;;  %v1056_v24 = vadd.f32 %v9445_v15, %v896_v50  ;;  %v1505_v39 = vmul.f32 %v1504_v61, %v6364_v45  ;;  %v1506_v22 = vmul.f32 %v1504_v61, %v6379_v31 }
 0x23a   : > { %v1403_v5 = vadd.f32 %v1397_v43, %v1243_v4  ;;  %v1421_v46 = vadd.f32 %v1413_v55, %v1261_v48  ;;  %v1281_v4 = vadd.f32 %v9448_v57, %v9447_v7  ;;  %v1507_v31 = vmul.f32 %v1504_v61, %v6381_v25 }
 0x23b   : > { %1926 = vrot.lane.b32.xlu1 %v1920_v56, %s5532_s8  ;;  %1928 = vrot.lane.b32.xlu0 %v1921_v38, %s5532_s8  ;;  %v1942_v38 = vmul.f32 %v1939_v8, %v6698_v52  ;;  %v2001_v7 = vmul.f32 %v1999_v32, %v6696_v33  ;;  %v2019_v57 = vstv %s5243_s27  ;;  %s5266_s27 = sld [smem:[#allocation3 + $0x76]] }
 0x23c   : > { %v6763_v51 = vadd.f32 %v1491_v28, %v1403_v5  ;;  %v6765_v42 = vadd.f32 %v1497_v29, %v1421_v46  ;;  %v1959_v28 = vstv %s6751_s24  ;;  %v1123_v5 = vadd.f32 %v1120_v34, %v1056_v24  ;;  %s7047_s24 = sld [smem:[#allocation3 + $0x8c]] }
 0x23d   : > { %v1415_v40 = vpop.permute.xlu1 %1414  ;;  %v1417_v54 = vpop.permute.xlu0 %1416  ;;  %v1960_v45 = vmul.f32 %v1959_v28, %v6686_v9 }
 0x23e   : > { %v1422_v1 = vadd.f32 %v1415_v40, %v1262_v36  ;;  %v1423_v20 = vadd.f32 %v1417_v54, %v1263_v6  ;;  %v1283_v50 = vadd.f32 %v9451_v47, %v1123_v5  ;;  %v1961_v36 = vmul.f32 %v1959_v28, %v6696_v33 }
 0x23f   : > { %1930 = vrot.lane.b32.xlu1 %v1922_v14, %s5532_s8  ;;  %1946 = vrot.lane.b32.xlu0 %v1940_v23, %s5532_s8  ;;  %v1979_v6 = vstv %s5241_s25  ;;  %s7060_s25 = sld [smem:[#allocation3 + $0x64]] }
 0x240   : > { %v6780_v48 = vadd.f32 %v1498_v21, %v1422_v1  ;;  %v6782_v43 = vadd.f32 %v1499_v27, %v1423_v20  ;;  %v1962_v21 = vmul.f32 %v1959_v28, %v6698_v52  ;;  %v1980_v27 = vmul.f32 %v1979_v6, %v6686_v9 }
 0x241   : > { %v1433_v55 = vpop.permute.xlu1 %1432  ;;  %v1435_v56 = vpop.permute.xlu0 %1434  ;;  %v1981_v15 = vmul.f32 %v1979_v6, %v6696_v33  ;;  %v1982_v24 = vmul.f32 %v1979_v6, %v6698_v52  ;;  %v2000_v20 = vmul.f32 %v1999_v32, %v6686_v9  ;;  %v2039_v28 = vstv %s5244_s28  ;;  %s5267_s28 = sld [smem:[#allocation3 + $0x7f]] }
 0x242   : > { %v1441_v46 = vadd.f32 %v1433_v55, %v1281_v4  ;;  %v1442_v29 = vadd.f32 %v1435_v56, %v1282_v12  ;;  %v2020_v12 = vmul.f32 %v2019_v57, %v6686_v9 }
 0x243   : > { %1948 = vrot.lane.b32.xlu1 %v1941_v2, %s5532_s8  ;;  %1950 = vrot.lane.b32.xlu0 %v1942_v38, %s5532_s8  ;;  %v2021_v2 = vmul.f32 %v2019_v57, %v6696_v33  ;;  %v2022_v38 = vmul.f32 %v2019_v57, %v6698_v52 }
 0x244   : > { %v6792_v14 = vadd.f32 %v1505_v39, %v1441_v46  ;;  %v6794_v62 = vadd.f32 %v1506_v22, %v1442_v29  ;;  %v2040_v46 = vmul.f32 %v2039_v28, %v6686_v9  ;;  %v2041_v29 = vmul.f32 %v2039_v28, %v6696_v33 }
 0x245   : > { %v1437_v30 = vpop.permute.xlu1 %1436  ;;  %v6796_v8 = vpop.permute.xlu0 %1519  ;;  %v2059_v22 = vstv %s5245_s29  ;;  %s5268_s29 = sld [smem:[#allocation3 + $0x88]] }
 0x246   : > { %v1443_v41 = vadd.f32 %v1437_v30, %v1283_v50  ;;  %v2042_v30 = vmul.f32 %v2039_v28, %v6698_v52  ;;  %v2061_v6 = vmul.f32 %v2059_v22, %v6696_v33 }
 0x247   : > { %1966 = vrot.lane.b32.xlu1 %v1960_v45, %s5532_s8  ;;  %1968 = vrot.lane.b32.xlu0 %v1961_v36, %s5532_s8  ;;  %v2060_v45 = vmul.f32 %v2059_v22, %v6686_v9 }
 0x248   : > { %v6803_v40 = vadd.f32 %v1507_v31, %v1443_v41  ;;  %v2062_v31 = vmul.f32 %v2059_v22, %v6698_v52  ;;  %v1835_v22 = vstv %s5229_s6  ;;  %s5272_s6 = sld [smem:[#allocation3 + $0x63]] }
 0x249   : > { %v6805_v54 = vpop.permute.xlu1 %1521  ;;  %v6807_v23 = vpop.permute.xlu0 %1523 }
 0x24b   : > { %1970 = vrot.lane.b32.xlu1 %v1962_v21, %s5532_s8  ;;  %1986 = vrot.lane.b32.xlu0 %v1980_v27, %s5532_s8  ;;  %v2079_v21 = vstv %s5246_s30  ;;  %s5269_s30 = sld [smem:[#allocation3 + $0x48]] }
 0x24c   : > { %v2081_v32 = vmul.f32 %v2079_v21, %v6696_v33 }
 0x24d   : > { %v6813_v25 = vpop.permute.xlu1 %1539  ;;  %v6815_v61 = vpop.permute.xlu0 %1541 }
 0x24f   : > { %1988 = vrot.lane.b32.xlu1 %v1981_v15, %s5532_s8  ;;  %1990 = vrot.lane.b32.xlu0 %v1982_v24, %s5532_s8  ;;  %v2080_v24 = vmul.f32 %v2079_v21, %v6686_v9 }
 0x251   : > { %v6821_v34 = vpop.permute.xlu1 %1543  ;;  %v6823_v1 = vpop.permute.xlu0 %1559 }
 0x253   : > { %2006 = vrot.lane.b32.xlu1 %v2000_v20, %s5532_s8  ;;  %2008 = vrot.lane.b32.xlu0 %v2001_v7, %s5532_s8  ;;  %v2099_v20 = vstv %s5247_s4  ;;  %s5270_s4 = sld [smem:[#allocation3 + $0x51]] }
 0x254   : > { %v2101_v28 = vmul.f32 %v2099_v20, %v6696_v33 }
 0x255   : > { %v6829_v4 = vpop.permute.xlu1 %1561  ;;  %v6831_v37 = vpop.permute.xlu0 %1563 }
 0x257   : > { %2010 = vrot.lane.b32.xlu1 %v2002_v60, %s5532_s8  ;;  %2026 = vrot.lane.b32.xlu0 %v2020_v12, %s5532_s8  ;;  %v2082_v60 = vmul.f32 %v2079_v21, %v6698_v52  ;;  %v2100_v12 = vmul.f32 %v2099_v20, %v6686_v9 }
 0x259   : > { %v6837_v55 = vpop.permute.xlu1 %1579  ;;  %v6839_v56 = vpop.permute.xlu0 %1581 }
 0x25b   : > { %2028 = vrot.lane.b32.xlu1 %v2021_v2, %s5532_s8  ;;  %2030 = vrot.lane.b32.xlu0 %v2022_v38, %s5532_s8 }
 0x25d   : > { %v6845_v39 = vpop.permute.xlu1 %1583  ;;  %v6847_v5 = vpop.permute.xlu0 %1599 }
 0x25f   : > { %2046 = vrot.lane.b32.xlu1 %v2040_v46, %s5532_s8  ;;  %2048 = vrot.lane.b32.xlu0 %v2041_v29, %s5532_s8  ;;  %v2102_v46 = vmul.f32 %v2099_v20, %v6698_v52  ;;  %v2119_v29 = vstv %s5248_s5  ;;  %v1836_v20 = vmul.f32 %v1835_v22, %v6686_v9  ;;  %s5271_s5 = sld [smem:[#allocation3 + $0x5a]] }
 0x260   : > { %v2121_v21 = vmul.f32 %v2119_v29, %v6696_v33 }
 0x261   : > { %v6853_v47 = vpop.permute.xlu1 %1601  ;;  %v6855_v50 = vpop.permute.xlu0 %1603 }
 0x263   : > { %2050 = vrot.lane.b32.xlu1 %v2042_v30, %s5532_s8  ;;  %2066 = vrot.lane.b32.xlu0 %v2060_v45, %s5533_s19  ;;  %v1528_v30 = vadd.f32 %v6796_v8, %v6573_v53  ;;  %v1529_v53 = vadd.f32 %v6805_v54, %v6594_v0  ;;  %v1530_v8 = vadd.f32 %v6807_v23, %v6596_v26  ;;  %v1843_v0 = vstv %s5230_s9  ;;  %s5273_s9 = sld [smem:[#allocation3 + $0x6c]] }
 0x264   : > { %v1548_v26 = vadd.f32 %v6813_v25, %v6614_v18  ;;  %v1549_v54 = vadd.f32 %v6815_v61, %v6616_v35  ;;  %v1845_v18 = vmul.f32 %v1843_v0, %v6696_v33  ;;  %v1851_v35 = vstv %s6902_s11  ;;  %s5274_s11 = sld [smem:[#allocation3 + $0x75]] }
 0x265   : > { %v6861_v36 = vpop.permute.xlu1 %1619  ;;  %v6863_v41 = vpop.permute.xlu0 %1621  ;;  %v1550_v25 = vadd.f32 %v6821_v34, %v6633_v10  ;;  %v1568_v61 = vadd.f32 %v6823_v1, %v6635_v3  ;;  %v1846_v10 = vmul.f32 %v1843_v0, %v6698_v52  ;;  %v1852_v34 = vmul.f32 %v1851_v35, %v6686_v9 }
 0x266   : > { %v1569_v3 = vadd.f32 %v6829_v4, %v6658_v49  ;;  %v1570_v1 = vadd.f32 %v6831_v37, %v6660_v63  ;;  %v1853_v49 = vmul.f32 %v1851_v35, %v6696_v33  ;;  %v1854_v4 = vmul.f32 %v1851_v35, %v6698_v52 }
 0x267   : > { %2068 = vrot.lane.b32.xlu1 %v2061_v6, %s5533_s19  ;;  %2070 = vrot.lane.b32.xlu0 %v2062_v31, %s5533_s19  ;;  %v2120_v31 = vmul.f32 %v2119_v29, %v6686_v9  ;;  %v1859_v63 = vstv %s6933_s15  ;;  %v1588_v37 = vadd.f32 %v6837_v55, %v6676_v19  ;;  %v1590_v55 = vadd.f32 %v6845_v39, %v6703_v11  ;;  %s5275_s15 = sld [smem:[#allocation3 + $0x7e]] }
 0x268   : > { %v1861_v19 = vmul.f32 %v1859_v63, %v6696_v33  ;;  %v1862_v39 = vmul.f32 %v1859_v63, %v6698_v52 }
 0x269   : > { %v6869_v27 = vpop.permute.xlu1 %1623  ;;  %v6871_v15 = vpop.permute.xlu0 %1639 }
 0x26b   : > { %2086 = vrot.lane.b32.xlu1 %v2080_v24, %s5533_s19  ;;  %2088 = vrot.lane.b32.xlu0 %v2081_v32, %s5533_s19  ;;  %v2139_v32 = vstv %s5249_s7  ;;  %s5253_s7 = sld [smem:[#allocation3 + $0x4a]] }
 0x26d   : > { %v6877_v7 = vpop.permute.xlu1 %1641  ;;  %v6879_v57 = vpop.permute.xlu0 %1643 }
 0x26f   : > { %2090 = vrot.lane.b32.xlu1 %v2082_v60, %s5533_s19  ;;  %2106 = vrot.lane.b32.xlu0 %v2100_v12, %s5533_s19 }
 0x271   : > { %v6885_v2 = vpop.permute.xlu1 %1659  ;;  %v6887_v38 = vpop.permute.xlu0 %1661 }
 0x273   : > { %2108 = vrot.lane.b32.xlu1 %v2101_v28, %s5533_s19  ;;  %2110 = vrot.lane.b32.xlu0 %v2102_v46, %s5533_s19  ;;  %v2122_v46 = vmul.f32 %v2119_v29, %v6698_v52 }
 0x275   : > { %v6895_v45 = vpop.permute.xlu1 %1663  ;;  %v1680_v6 = vpop.permute.xlu0 %1679 }
 0x276   : > { %9452 = vst [vmem:[#allocation9_spill] sm:$0xff] %v6895_v45  ;;  %v1688_v24 = vadd.f32 %v1680_v6, %v1528_v30  ;;  %v2140_v30 = vmul.f32 %v2139_v32, %v6686_v9  ;;  %v1838_v45 = vmul.f32 %v1835_v22, %v6698_v52 }
 0x277   : > { %2126 = vrot.lane.b32.xlu1 %v2120_v31, %s5533_s19  ;;  %2128 = vrot.lane.b32.xlu0 %v2121_v21, %s5533_s19  ;;  %v1837_v21 = vmul.f32 %v1835_v22, %v6696_v33  ;;  %v2141_v22 = vmul.f32 %v2139_v32, %v6696_v33 }
 0x278   : > { %v6908_v60 = vadd.f32 %v1836_v20, %v1688_v24 }
 0x279   : > { %v1682_v12 = vpop.permute.xlu1 %1681  ;;  %v1684_v28 = vpop.permute.xlu0 %1683 }
 0x27a   : > { %v1689_v6 = vadd.f32 %v1682_v12, %v1529_v53  ;;  %v1690_v31 = vadd.f32 %v1684_v28, %v1530_v8  ;;  %v2142_v53 = vmul.f32 %v2139_v32, %v6698_v52  ;;  %v2159_v8 = vstv %s5250_s10  ;;  %s5254_s10 = sld [smem:[#allocation3 + $0x53]] }
 0x27b   : > { %2130 = vrot.lane.b32.xlu1 %v2122_v46, %s5533_s19  ;;  %2146 = vrot.lane.b32.xlu0 %v2140_v30, %s5533_s19  ;;  %v1844_v46 = vmul.f32 %v1843_v0, %v6686_v9 }
 0x27c   : > { %v6922_v23 = vadd.f32 %v1837_v21, %v1689_v6  ;;  %v6924_v29 = vadd.f32 %v1838_v45, %v1690_v31  ;;  %v2160_v31 = vmul.f32 %v2159_v8, %v6686_v9  ;;  %v2161_v21 = vmul.f32 %v2159_v8, %v6696_v33 }
 0x27d   : > { %v1700_v24 = vpop.permute.xlu1 %1699  ;;  %v1702_v20 = vpop.permute.xlu0 %1701 }
 0x27e   : > { %v1708_v12 = vadd.f32 %v1700_v24, %v1548_v26  ;;  %v1709_v28 = vadd.f32 %v1702_v20, %v1549_v54  ;;  %v2179_v26 = vstv %s6912_s14  ;;  %s5255_s14 = sld [smem:[#allocation3 + $0x5c]] }
 0x27f   : > { %2148 = vrot.lane.b32.xlu1 %v2141_v22, %s5533_s19  ;;  %2150 = vrot.lane.b32.xlu0 %v2142_v53, %s5533_s19  ;;  %v2181_v35 = vmul.f32 %v2179_v26, %v6696_v33 }
 0x280   : > { %v6939_v45 = vadd.f32 %v1844_v46, %v1708_v12  ;;  %v6941_v32 = vadd.f32 %v1845_v18, %v1709_v28  ;;  %v2162_v12 = vmul.f32 %v2159_v8, %v6698_v52  ;;  %v2180_v28 = vmul.f32 %v2179_v26, %v6686_v9 }
 0x281   : > { %v1704_v30 = vpop.permute.xlu1 %1703  ;;  %v1720_v6 = vpop.permute.xlu0 %1719  ;;  %v1589_v8 = vadd.f32 %v6839_v56, %v6678_v13  ;;  %v1867_v13 = vstv %s6952_s17  ;;  %v1608_v56 = vadd.f32 %v6847_v5, %v6705_v16  ;;  %v7010_v5 = vld [vmem:[#allocation2 + $0x2a] sm:$0x3]  ;;  %s5276_s17 = sld [smem:[#allocation3 + $0x87]] }
 0x282   : > { %v1710_v54 = vadd.f32 %v1704_v30, %v1550_v25  ;;  %v1728_v24 = vadd.f32 %v1720_v6, %v1568_v61  ;;  %v1868_v16 = vmul.f32 %v1867_v13, %v6686_v9 }
 0x283   : > { %2166 = vrot.lane.b32.xlu1 %v2160_v31, %s5533_s19  ;;  %2168 = vrot.lane.b32.xlu0 %v2161_v21, %s5533_s19  ;;  %v2182_v31 = vmul.f32 %v2179_v26, %v6698_v52  ;;  %v2199_v21 = vstv %s6946_s16  ;;  %s5256_s16 = sld [smem:[#allocation3 + $0x65]] }
 0x284   : > { %v6958_v20 = vadd.f32 %v1846_v10, %v1710_v54  ;;  %v6960_v22 = vadd.f32 %v1852_v34, %v1728_v24  ;;  %v1860_v10 = vmul.f32 %v1859_v63, %v6686_v9 }
 0x285   : > { %v1722_v0 = vpop.permute.xlu1 %1721  ;;  %v1724_v53 = vpop.permute.xlu0 %1723 }
 0x286   : > { %v1729_v46 = vadd.f32 %v1722_v0, %v1569_v3  ;;  %v1730_v18 = vadd.f32 %v1724_v53, %v1570_v1  ;;  %v2200_v0 = vmul.f32 %v2199_v21, %v6686_v9  ;;  %v2201_v53 = vmul.f32 %v2199_v21, %v6696_v33 }
 0x287   : > { %2170 = vrot.lane.b32.xlu1 %v2162_v12, %s5533_s19  ;;  %2186 = vrot.lane.b32.xlu0 %v2180_v28, %s5533_s19  ;;  %v2286_v12 = vstv %s6964_s18  ;;  %v7002_v28 = vld [vmem:[#allocation2 + $0x1a] sm:$0xff]  ;;  %s5257_s18 = sld [smem:[#allocation3 + $0x6e]] }
 0x288   : > { %v6975_v25 = vadd.f32 %v1853_v49, %v1729_v46  ;;  %v6977_v61 = vadd.f32 %v1854_v4, %v1730_v18  ;;  %v1609_v18 = vadd.f32 %v6853_v47, %v6726_v58  ;;  %v1610_v49 = vadd.f32 %v6855_v50, %v6728_v59 }
 0x289   : > { %v1740_v30 = vpop.permute.xlu1 %1739  ;;  %v1742_v6 = vpop.permute.xlu0 %1741  ;;  %v1869_v59 = vmul.f32 %v1867_v13, %v6696_v33  ;;  %v1870_v50 = vmul.f32 %v1867_v13, %v6698_v52 }
 0x28a   : > { %v1748_v54 = vadd.f32 %v1740_v30, %v1588_v37  ;;  %v1749_v24 = vadd.f32 %v1742_v6, %v1589_v8  ;;  %v2202_v30 = vmul.f32 %v2199_v21, %v6698_v52  ;;  %v2287_v6 = vmul.f32 %v2286_v12, %v7002_v28 }
 0x28b   : > { %2188 = vrot.lane.b32.xlu1 %v2181_v35, %s5533_s19  ;;  %2190 = vrot.lane.b32.xlu0 %v2182_v31, %s5533_s19  ;;  %v7024_v35 = vld [vmem:[#allocation2 + $0x22] sm:$0xff]  ;;  %v2289_v31 = vmul.f32 %v2286_v12, %v7010_v5  ;;  %v1875_v21 = vstv %s6987_s20  ;;  %s7263_s20 = sld [smem:[#allocation3 + $0x97]] }
 0x28c   : > { %v6993_v26 = vadd.f32 %v1860_v10, %v1748_v54  ;;  %v6995_v34 = vadd.f32 %v1861_v19, %v1749_v24  ;;  %v1628_v54 = vadd.f32 %v6861_v36, %v6744_v44  ;;  %v1629_v24 = vadd.f32 %v6863_v41, %v6746_v17 }
 0x28d   : > { %v1744_v3 = vpop.permute.xlu1 %1743  ;;  %v1760_v1 = vpop.permute.xlu0 %1759  ;;  %v1883_v44 = vstv %s7008_s22  ;;  %v1630_v17 = vadd.f32 %v6869_v27, %v6763_v51  ;;  %v1648_v36 = vadd.f32 %v6871_v15, %v6765_v42  ;;  %v1878_v51 = vmul.f32 %v1875_v21, %v6698_v52  ;;  %s5286_s22 = sld [smem:[#allocation3 + $0xa0]] }
 0x28e   : > { %v1750_v46 = vadd.f32 %v1744_v3, %v1590_v55  ;;  %v1768_v11 = vadd.f32 %v1760_v1, %v1608_v56  ;;  %v2288_v56 = vmul.f32 %v2286_v12, %v7024_v35  ;;  %v2306_v3 = vstv %s7000_s21  ;;  %s5258_s21 = sld [smem:[#allocation3 + $0x77]] }
 0x28f   : > { %2206 = vrot.lane.b32.xlu1 %v2200_v0, %s5533_s19  ;;  %2208 = vrot.lane.b32.xlu0 %v2201_v53, %s5533_s19  ;;  %v1876_v53 = vmul.f32 %v1875_v21, %v6686_v9  ;;  %v1884_v27 = vmul.f32 %v1883_v44, %v6686_v9  ;;  %v2309_v42 = vmul.f32 %v2306_v3, %v7010_v5 }
 0x290   : > { %v7016_v4 = vadd.f32 %v1862_v39, %v1750_v46  ;;  %v7018_v63 = vadd.f32 %v1868_v16, %v1768_v11  ;;  %v1877_v46 = vmul.f32 %v1875_v21, %v6696_v33  ;;  %v2307_v16 = vmul.f32 %v2306_v3, %v7002_v28 }
 0x291   : > { %v1762_v37 = vpop.permute.xlu1 %1761  ;;  %v1764_v8 = vpop.permute.xlu0 %1763  ;;  %v1649_v15 = vadd.f32 %v6877_v7, %v6780_v48  ;;  %v1668_v7 = vadd.f32 %v6885_v2, %v6792_v14  ;;  %v9454_v14 = vld [vmem:[#allocation9_spill] sm:$0xff] }
 0x292   : > { %v1769_v58 = vadd.f32 %v1762_v37, %v1609_v18  ;;  %v1770_v47 = vadd.f32 %v1764_v8, %v1610_v49  ;;  %v2308_v18 = vmul.f32 %v2306_v3, %v7024_v35  ;;  %v2326_v49 = vstv %s7022_s23  ;;  %s5259_s23 = sld [smem:[#allocation3 + $0x80]] }
 0x293   : > { %2210 = vrot.lane.b32.xlu1 %v2202_v30, %s5533_s19  ;;  %2293 = vrot.lane.b32.xlu0 %v2287_v6, %s5532_s8  ;;  %v1650_v30 = vadd.f32 %v6879_v57, %v6782_v43  ;;  %v2329_v48 = vmul.f32 %v2326_v49, %v7010_v5  ;;  %v1891_v43 = vstv %s7047_s24  ;;  %v1669_v57 = vadd.f32 %v6887_v38, %v6794_v62  ;;  %s5287_s24 = sld [smem:[#allocation3 + $0xa9]] }
 0x294   : > { %v7036_v10 = vadd.f32 %v1869_v59, %v1769_v58  ;;  %v7038_v19 = vadd.f32 %v1870_v50, %v1770_v47  ;;  %v2327_v50 = vmul.f32 %v2326_v49, %v7002_v28  ;;  %v1670_v62 = vadd.f32 %v9454_v14, %v6803_v40 }
 0x295   : > { %v1780_v55 = vpop.permute.xlu1 %1779  ;;  %v1782_v13 = vpop.permute.xlu0 %1781 }
 0x296   : > { %v1788_v1 = vadd.f32 %v1780_v55, %v1628_v54  ;;  %v1789_v0 = vadd.f32 %v1782_v13, %v1629_v24  ;;  %v1885_v54 = vmul.f32 %v1883_v44, %v6696_v33  ;;  %v1886_v24 = vmul.f32 %v1883_v44, %v6698_v52 }
 0x297   : > { %2295 = vrot.lane.b32.xlu1 %v2288_v56, %s5532_s8  ;;  %2297 = vrot.lane.b32.xlu0 %v2289_v31, %s5532_s8  ;;  %v1892_v44 = vmul.f32 %v1891_v43, %v6686_v9 }
 0x298   : > { %v7053_v41 = vadd.f32 %v1876_v53, %v1788_v1  ;;  %v7055_v12 = vadd.f32 %v1877_v46, %v1789_v0  ;;  %v2328_v1 = vmul.f32 %v2326_v49, %v7024_v35  ;;  %v2346_v0 = vstv %s7060_s25  ;;  %s5260_s25 = sld [smem:[#allocation3 + $0x89]] }
 0x299   : > { %v1784_v11 = vpop.permute.xlu1 %1783  ;;  %v1800_v39 = vpop.permute.xlu0 %1799  ;;  %v2348_v9 = vmul.f32 %v2346_v0, %v7024_v35  ;;  %v2349_v40 = vmul.f32 %v2346_v0, %v7010_v5 }
 0x29a   : > { %v1790_v37 = vadd.f32 %v1784_v11, %v1630_v17  ;;  %v1808_v8 = vadd.f32 %v1800_v39, %v1648_v36  ;;  %v1893_v17 = vmul.f32 %v1891_v43, %v6696_v33  ;;  %v2347_v39 = vmul.f32 %v2346_v0, %v7002_v28 }
 0x29b   : > { %2313 = vrot.lane.b32.xlu1 %v2307_v16, %s5532_s8  ;;  %2315 = vrot.lane.b32.xlu0 %v2308_v18, %s5532_s8  ;;  %v2366_v33 = vstv %s5265_s26  ;;  %v1894_v18 = vmul.f32 %v1891_v43, %v6698_v52  ;;  %s5288_s26 = sld [smem:[#allocation3 + $0xb2]] }
 0x29c   : > { %v7071_v6 = vadd.f32 %v1878_v51, %v1790_v37  ;;  %v7073_v58 = vadd.f32 %v1884_v27, %v1808_v8  ;;  %v2367_v51 = vmul.f32 %v2366_v33, %v7002_v28  ;;  %v2369_v52 = vmul.f32 %v2366_v33, %v7010_v5 }
 0x29d   : > { %v1802_v47 = vpop.permute.xlu1 %1801  ;;  %v1804_v59 = vpop.permute.xlu0 %1803 }
 0x29e   : > { %v1809_v31 = vadd.f32 %v1802_v47, %v1649_v15  ;;  %v1810_v21 = vadd.f32 %v1804_v59, %v1650_v30  ;;  %v2368_v15 = vmul.f32 %v2366_v33, %v7024_v35  ;;  %v2386_v30 = vstv %s5266_s27  ;;  %s5289_s27 = sld [smem:[#allocation3 + $0xbb]] }
 0x29f   : > { %2317 = vrot.lane.b32.xlu1 %v2309_v42, %s5532_s8  ;;  %2333 = vrot.lane.b32.xlu0 %v2327_v50, %s5532_s8  ;;  %v2387_v50 = vmul.f32 %v2386_v30, %v7002_v28 }
 0x2a0   : > { %v7086_v55 = vadd.f32 %v1885_v54, %v1809_v31  ;;  %v7088_v13 = vadd.f32 %v1886_v24, %v1810_v21  ;;  %v2388_v31 = vmul.f32 %v2386_v30, %v7024_v35  ;;  %v2406_v21 = vstv %s5267_s28  ;;  %s5290_s28 = sld [smem:[#allocation3 + $0xc4]] }
 0x2a1   : > { %v1820_v56 = vpop.permute.xlu1 %1819  ;;  %v1822_v3 = vpop.permute.xlu0 %1821  ;;  %v2389_v54 = vmul.f32 %v2386_v30, %v7010_v5  ;;  %v2407_v43 = vmul.f32 %v2406_v21, %v7002_v28 }
 0x2a2   : > { %9453 = vst [vmem:[#allocation11_spill] sm:$0xff] %v7088_v13  ;;  %v1828_v53 = vadd.f32 %v1820_v56, %v1668_v7  ;;  %v1829_v46 = vadd.f32 %v1822_v3, %v1669_v57  ;;  %v2409_v7 = vmul.f32 %v2406_v21, %v7010_v5  ;;  %v2408_v3 = vmul.f32 %v2406_v21, %v7024_v35 }
 0x2a3   : > { %2335 = vrot.lane.b32.xlu1 %v2328_v1, %s5532_s8  ;;  %2337 = vrot.lane.b32.xlu0 %v2329_v48, %s5532_s8  ;;  %v2426_v1 = vstv %s5268_s29  ;;  %s5291_s29 = sld [smem:[#allocation3 + $0xcd]] }
 0x2a4   : > { %v7098_v2 = vadd.f32 %v1892_v44, %v1828_v53  ;;  %v7100_v38 = vadd.f32 %v1893_v17, %v1829_v46  ;;  %v2427_v46 = vmul.f32 %v2426_v1, %v7002_v28  ;;  %v2428_v44 = vmul.f32 %v2426_v1, %v7024_v35 }
 0x2a5   : > { %v1824_v36 = vpop.permute.xlu1 %1823  ;;  %v7102_v11 = vpop.permute.xlu0 %1906  ;;  %v2446_v17 = vstv %s5269_s30  ;;  %v2429_v14 = vmul.f32 %v2426_v1, %v7010_v5  ;;  %s5292_s30 = sld [smem:[#allocation3 + $0xd6]] }
 0x2a6   : > { %v1830_v16 = vadd.f32 %v1824_v36, %v1670_v62 }
 0x2a7   : > { %2353 = vrot.lane.b32.xlu1 %v2347_v39, %s5532_s8  ;;  %2355 = vrot.lane.b32.xlu0 %v2348_v9, %s5532_s8  ;;  %v2447_v39 = vmul.f32 %v2446_v17, %v7002_v28  ;;  %v2449_v9 = vmul.f32 %v2446_v17, %v7010_v5 }
 0x2a8   : > { %v7110_v49 = vadd.f32 %v1894_v18, %v1830_v16  ;;  %v2448_v18 = vmul.f32 %v2446_v17, %v7024_v35  ;;  %v7199_v17 = vstv %s5253_s7  ;;  %s5296_s7 = sld [smem:[#allocation3 + $0xb1]] }
 0x2a9   : > { %v7112_v37 = vpop.permute.xlu1 %1908  ;;  %v7114_v8 = vpop.permute.xlu0 %1910 }
 0x2aa   : > { %9455 = vst [vmem:[#allocation22_spill] sm:$0xff] %v7110_v49 }
 0x2ab   : > { %2357 = vrot.lane.b32.xlu1 %v2349_v40, %s5532_s8  ;;  %2373 = vrot.lane.b32.xlu0 %v2367_v51, %s5532_s8  ;;  %v2466_v40 = vstv %s5270_s4  ;;  %s5293_s4 = sld [smem:[#allocation3 + $0x96]] }
 0x2ac   : > { %v2468_v30 = vmul.f32 %v2466_v40, %v7024_v35 }
 0x2ad   : > { %v7120_v27 = vpop.permute.xlu1 %1926  ;;  %v7122_v42 = vpop.permute.xlu0 %1928 }
 0x2af   : > { %2375 = vrot.lane.b32.xlu1 %v2368_v15, %s5532_s8  ;;  %2377 = vrot.lane.b32.xlu0 %v2369_v52, %s5532_s8  ;;  %v2467_v15 = vmul.f32 %v2466_v40, %v7002_v28 }
 0x2b1   : > { %v7127_v47 = vpop.permute.xlu1 %1930  ;;  %v7129_v59 = vpop.permute.xlu0 %1946 }
 0x2b3   : > { %2393 = vrot.lane.b32.xlu1 %v2387_v50, %s5532_s8  ;;  %2395 = vrot.lane.b32.xlu0 %v2388_v31, %s5532_s8  ;;  %v2486_v50 = vstv %s5271_s5  ;;  %v2469_v31 = vmul.f32 %v2466_v40, %v7010_v5  ;;  %s5294_s5 = sld [smem:[#allocation3 + $0x9f]] }
 0x2b5   : > { %v7136_v24 = vpop.permute.xlu1 %1948  ;;  %v7138_v48 = vpop.permute.xlu0 %1950 }
 0x2b7   : > { %2397 = vrot.lane.b32.xlu1 %v2389_v54, %s5532_s8  ;;  %2413 = vrot.lane.b32.xlu0 %v2407_v43, %s5532_s8  ;;  %v2487_v43 = vmul.f32 %v2486_v50, %v7002_v28 }
 0x2b9   : > { %v7144_v57 = vpop.permute.xlu1 %1966  ;;  %v7146_v56 = vpop.permute.xlu0 %1968 }
 0x2bb   : > { %2415 = vrot.lane.b32.xlu1 %v2408_v3, %s5532_s8  ;;  %2417 = vrot.lane.b32.xlu0 %v2409_v7, %s5532_s8  ;;  %v2489_v7 = vmul.f32 %v2486_v50, %v7010_v5 }
 0x2bd   : > { %v7151_v0 = vpop.permute.xlu1 %1970  ;;  %v7153_v53 = vpop.permute.xlu0 %1986 }
 0x2bf   : > { %2433 = vrot.lane.b32.xlu1 %v2427_v46, %s5532_s8  ;;  %2435 = vrot.lane.b32.xlu0 %v2428_v44, %s5532_s8  ;;  %v2488_v46 = vmul.f32 %v2486_v50, %v7024_v35  ;;  %v2506_v44 = vstv %s5272_s6  ;;  %v2223_v50 = vmul.f32 %v7199_v17, %v7002_v28  ;;  %s5295_s6 = sld [smem:[#allocation3 + $0xa8]] }
 0x2c0   : > { %v2508_v40 = vmul.f32 %v2506_v44, %v7024_v35 }
 0x2c1   : > { %v7160_v62 = vpop.permute.xlu1 %1988  ;;  %v7162_v36 = vpop.permute.xlu0 %1990 }
 0x2c3   : > { %2437 = vrot.lane.b32.xlu1 %v2429_v14, %s5532_s8  ;;  %2453 = vrot.lane.b32.xlu0 %v2447_v39, %s5533_s19  ;;  %v1915_v14 = vadd.f32 %v7102_v11, %v6908_v60  ;;  %v1916_v60 = vadd.f32 %v7112_v37, %v6922_v23  ;;  %v1935_v23 = vadd.f32 %v7120_v27, %v6939_v45  ;;  %v7239_v45 = vstv %s5255_s14  ;;  %s7487_s14 = sld [smem:[#allocation3 + $0xc3]] }
 0x2c4   : > { %v1936_v37 = vadd.f32 %v7122_v42, %v6941_v32  ;;  %v1955_v32 = vadd.f32 %v7129_v59, %v6960_v22 }
 0x2c5   : > { %v7168_v16 = vpop.permute.xlu1 %2006  ;;  %v7170_v33 = vpop.permute.xlu0 %2008 }
 0x2c7   : > { %2455 = vrot.lane.b32.xlu1 %v2448_v18, %s5533_s19  ;;  %2457 = vrot.lane.b32.xlu0 %v2449_v9, %s5533_s19  ;;  %v2507_v18 = vmul.f32 %v2506_v44, %v7002_v28 }
 0x2c9   : > { %v7175_v51 = vpop.permute.xlu1 %2010  ;;  %v7177_v52 = vpop.permute.xlu0 %2026 }
 0x2cb   : > { %2473 = vrot.lane.b32.xlu1 %v2467_v15, %s5533_s19  ;;  %2475 = vrot.lane.b32.xlu0 %v2468_v30, %s5533_s19  ;;  %v2526_v30 = vstv %s5273_s9  ;;  %s5277_s9 = sld [smem:[#allocation3 + $0x98]] }
 0x2cd   : > { %v7184_v21 = vpop.permute.xlu1 %2028  ;;  %v7186_v54 = vpop.permute.xlu0 %2030 }
 0x2ce   : > { %9456 = vst [vmem:[#allocation14_spill] sm:$0xff] %v7186_v54  ;;  %v2693_v54 = vstv %s5286_s22  ;;  %s7600_s22 = sld [smem:[#allocation3 + $0xc5]] }
 0x2cf   : > { %2477 = vrot.lane.b32.xlu1 %v2469_v31, %s5533_s19  ;;  %2493 = vrot.lane.b32.xlu0 %v2487_v43, %s5533_s19  ;;  %v2509_v31 = vmul.f32 %v2506_v44, %v7010_v5  ;;  %v2529_v44 = vmul.f32 %v2526_v30, %v7010_v5 }
 0x2d1   : > { %v7192_v3 = vpop.permute.xlu1 %2046  ;;  %v7194_v1 = vpop.permute.xlu0 %2048 }
 0x2d3   : > { %2495 = vrot.lane.b32.xlu1 %v2488_v46, %s5533_s19  ;;  %2497 = vrot.lane.b32.xlu0 %v2489_v7, %s5533_s19  ;;  %v2527_v46 = vmul.f32 %v2526_v30, %v7002_v28 }
 0x2d5   : > { %v7203_v39 = vpop.permute.xlu1 %2050  ;;  %v2067_v9 = vpop.permute.xlu0 %2066 }
 0x2d6   : > { %9457 = vst [vmem:[#allocation23_spill] sm:$0xff] %v7203_v39  ;;  %v2075_v15 = vadd.f32 %v2067_v9, %v1915_v14  ;;  %v2224_v9 = vmul.f32 %v7199_v17, %v7024_v35 }
 0x2d7   : > { %2513 = vrot.lane.b32.xlu1 %v2507_v18, %s5533_s19  ;;  %2515 = vrot.lane.b32.xlu0 %v2508_v40, %s5533_s19  ;;  %v7224_v18 = vstv %s5254_s10  ;;  %s5297_s10 = sld [smem:[#allocation3 + $0xba]] }
 0x2d8   : > { %v7214_v11 = vadd.f32 %v2223_v50, %v2075_v15  ;;  %v2232_v49 = vmul.f32 %v7224_v18, %v7024_v35 }
 0x2d9   : > { %v2069_v43 = vpop.permute.xlu1 %2068  ;;  %v7216_v7 = vpop.permute.xlu0 %2070 }
 0x2da   : > { %v2076_v14 = vadd.f32 %v2069_v43, %v1916_v60  ;;  %v2528_v60 = vmul.f32 %v2526_v30, %v7024_v35  ;;  %v2546_v43 = vstv %s5274_s11  ;;  %s7480_s11 = sld [smem:[#allocation3 + $0xa1]] }
 0x2db   : > { %2517 = vrot.lane.b32.xlu1 %v2509_v31, %s5533_s19  ;;  %2533 = vrot.lane.b32.xlu0 %v2527_v46, %s5533_s19  ;;  %v2231_v46 = vmul.f32 %v7224_v18, %v7002_v28  ;;  %v2549_v22 = vmul.f32 %v2546_v43, %v7010_v5 }
 0x2dc   : > { %v7230_v40 = vadd.f32 %v2224_v9, %v2076_v14  ;;  %v2547_v9 = vmul.f32 %v2546_v43, %v7002_v28 }
 0x2dd   : > { %v2087_v15 = vpop.permute.xlu1 %2086  ;;  %v2089_v50 = vpop.permute.xlu0 %2088 }
 0x2de   : > { %v2095_v31 = vadd.f32 %v2087_v15, %v1935_v23  ;;  %v2096_v39 = vadd.f32 %v2089_v50, %v1936_v37  ;;  %v2548_v23 = vmul.f32 %v2546_v43, %v7024_v35  ;;  %v2239_v15 = vmul.f32 %v7239_v45, %v7002_v28 }
 0x2df   : > { %2535 = vrot.lane.b32.xlu1 %v2528_v60, %s5533_s19  ;;  %2537 = vrot.lane.b32.xlu0 %v2529_v44, %s5533_s19  ;;  %v2566_v44 = vstv %s5275_s15  ;;  %s7499_s15 = sld [smem:[#allocation3 + $0xaa]] }
 0x2e0   : > { %v7243_v27 = vadd.f32 %v2231_v46, %v2095_v31  ;;  %v7245_v42 = vadd.f32 %v2232_v49, %v2096_v39  ;;  %v1956_v49 = vadd.f32 %v7136_v24, %v6975_v25  ;;  %v2567_v60 = vmul.f32 %v2566_v44, %v7002_v28 }
 0x2e1   : > { %v7247_v30 = vpop.permute.xlu1 %2090  ;;  %v2107_v14 = vpop.permute.xlu0 %2106  ;;  %v2240_v46 = vmul.f32 %v7239_v45, %v7024_v35  ;;  %v2569_v43 = vmul.f32 %v2566_v44, %v7010_v5  ;;  %v7270_v25 = vstv %s5256_s16  ;;  %v1975_v24 = vadd.f32 %v7144_v57, %v6993_v26  ;;  %s7509_s16 = sld [smem:[#allocation3 + $0xcc]] }
 0x2e2   : > { %v2115_v37 = vadd.f32 %v2107_v14, %v1955_v32  ;;  %v1976_v32 = vadd.f32 %v7146_v56, %v6995_v34  ;;  %v7285_v26 = vstv %s5257_s18  ;;  %v1995_v34 = vadd.f32 %v7153_v53, %v7018_v63  ;;  %s7541_s18 = sld [smem:[#allocation3 + $0xd5]] }
 0x2e3   : > { %2553 = vrot.lane.b32.xlu1 %v2547_v9, %s5533_s19  ;;  %2555 = vrot.lane.b32.xlu0 %v2548_v23, %s5533_s19  ;;  %v1996_v53 = vadd.f32 %v7160_v62, %v7036_v10  ;;  %v7320_v10 = vstv %s5258_s21  ;;  %v2015_v62 = vadd.f32 %v7168_v16, %v7053_v41  ;;  %v2035_v16 = vadd.f32 %v7177_v52, %v7073_v58  ;;  %s7571_s21 = sld [smem:[#allocation3 + $0x94]] }
 0x2e4   : > { %v7258_v59 = vadd.f32 %v2239_v15, %v2115_v37  ;;  %v2568_v37 = vmul.f32 %v2566_v44, %v7024_v35  ;;  %v2586_v15 = vstv %s5276_s17  ;;  %v2264_v41 = vmul.f32 %v7320_v10, %v7024_v35  ;;  %s7536_s17 = sld [smem:[#allocation3 + $0xb3]] }
 0x2e5   : > { %v2109_v39 = vpop.permute.xlu1 %2108  ;;  %v7260_v50 = vpop.permute.xlu0 %2110  ;;  %v2589_v63 = vmul.f32 %v2586_v15, %v7010_v5  ;;  %v2036_v58 = vadd.f32 %v7184_v21, %v7086_v55  ;;  %v2055_v55 = vadd.f32 %v7192_v3, %v7098_v2  ;;  %v2056_v21 = vadd.f32 %v7194_v1, %v7100_v38 }
 0x2e6   : > { %v2116_v31 = vadd.f32 %v2109_v39, %v1956_v49  ;;  %v2247_v39 = vmul.f32 %v7270_v25, %v7002_v28 }
 0x2e7   : > { %2557 = vrot.lane.b32.xlu1 %v2549_v22, %s5533_s19  ;;  %2573 = vrot.lane.b32.xlu0 %v2567_v60, %s5533_s19  ;;  %v2248_v60 = vmul.f32 %v7270_v25, %v7024_v35 }
 0x2e8   : > { %v7276_v14 = vadd.f32 %v2240_v46, %v2116_v31  ;;  %v2587_v46 = vmul.f32 %v2586_v15, %v7002_v28 }
 0x2e9   : > { %v2127_v9 = vpop.permute.xlu1 %2126  ;;  %v2129_v23 = vpop.permute.xlu0 %2128 }
 0x2ea   : > { %v2135_v22 = vadd.f32 %v2127_v9, %v1975_v24  ;;  %v2136_v49 = vadd.f32 %v2129_v23, %v1976_v32  ;;  %v2588_v24 = vmul.f32 %v2586_v15, %v7024_v35  ;;  %v7297_v32 = vld [vmem:[#allocation2 + $0x30] sm:$0xff]  ;;  %v2673_v9 = vstv %s7263_s20  ;;  %s7561_s20 = sld [smem:[#allocation3 + $0xbc]] }
 0x2eb   : > { %2575 = vrot.lane.b32.xlu1 %v2568_v37, %s5533_s19  ;;  %2577 = vrot.lane.b32.xlu0 %v2569_v43, %s5533_s19  ;;  %v2255_v23 = vmul.f32 %v7285_v26, %v7002_v28  ;;  %v2256_v15 = vmul.f32 %v7285_v26, %v7024_v35 }
 0x2ec   : > { %v7289_v57 = vadd.f32 %v2247_v39, %v2135_v22  ;;  %v7291_v56 = vadd.f32 %v2248_v60, %v2136_v49  ;;  %v2674_v39 = vmul.f32 %v2673_v9, %v7297_v32  ;;  %v7312_v60 = vld [vmem:[#allocation2 + $0x38] sm:$0xff] }
 0x2ed   : > { %v7293_v44 = vpop.permute.xlu1 %2130  ;;  %v2147_v31 = vpop.permute.xlu0 %2146 }
 0x2ee   : > { %v2155_v43 = vadd.f32 %v2147_v31, %v1995_v34  ;;  %v7314_v34 = vld [vmem:[#allocation2 + $0x40] sm:$0x3] }
 0x2ef   : > { %2593 = vrot.lane.b32.xlu1 %v2587_v46, %s5533_s19  ;;  %2595 = vrot.lane.b32.xlu0 %v2588_v24, %s5533_s19  ;;  %v2016_v46 = vadd.f32 %v7170_v33, %v7055_v12  ;;  %v7336_v12 = vstv %s5259_s23  ;;  %s7605_s23 = sld [smem:[#allocation3 + $0x9d]] }
 0x2f0   : > { %v7307_v37 = vadd.f32 %v2255_v23, %v2155_v43  ;;  %9458 = vst [vmem:[#allocation13_spill] sm:$0xff] %v7336_v12 }
 0x2f1   : > { %v2149_v22 = vpop.permute.xlu1 %2148  ;;  %v7309_v49 = vpop.permute.xlu0 %2150 }
 0x2f2   : > { %v2156_v31 = vadd.f32 %v2149_v22, %v1996_v53  ;;  %v2675_v53 = vmul.f32 %v2673_v9, %v7312_v60  ;;  %v2676_v22 = vmul.f32 %v2673_v9, %v7314_v34 }
 0x2f3   : > { %2597 = vrot.lane.b32.xlu1 %v2589_v63, %s5533_s19  ;;  %2680 = vrot.lane.b32.xlu0 %v2674_v39, %s5532_s8  ;;  %v2263_v39 = vmul.f32 %v7320_v10, %v7002_v28 }
 0x2f4   : > { %v7326_v24 = vadd.f32 %v2256_v15, %v2156_v31 }
 0x2f5   : > { %v2167_v43 = vpop.permute.xlu1 %2166  ;;  %v2169_v23 = vpop.permute.xlu0 %2168 }
 0x2f6   : > { %v2175_v63 = vadd.f32 %v2167_v43, %v2015_v62  ;;  %v2176_v13 = vadd.f32 %v2169_v23, %v2016_v46  ;;  %v2694_v62 = vmul.f32 %v2693_v54, %v7297_v32  ;;  %v2695_v46 = vmul.f32 %v2693_v54, %v7312_v60 }
 0x2f7   : > { %2682 = vrot.lane.b32.xlu1 %v2675_v53, %s5532_s8  ;;  %2684 = vrot.lane.b32.xlu0 %v2676_v22, %s5532_s8  ;;  %v2713_v23 = vstv %s5287_s24  ;;  %v2271_v53 = vmul.f32 %v7336_v12, %v7002_v28  ;;  %s7627_s24 = sld [smem:[#allocation3 + $0xce]] }
 0x2f8   : > { %v7340_v33 = vadd.f32 %v2263_v39, %v2175_v63  ;;  %v7342_v9 = vadd.f32 %v2264_v41, %v2176_v13  ;;  %v2696_v63 = vmul.f32 %v2693_v54, %v7314_v34  ;;  %v2714_v39 = vmul.f32 %v2713_v23, %v7297_v32 }
 0x2f9   : > { %v7344_v31 = vpop.permute.xlu1 %2170  ;;  %v2187_v15 = vpop.permute.xlu0 %2186 }
 0x2fa   : > { %9459 = vst [vmem:[#allocation16_spill] sm:$0xff] %v7342_v9  ;;  %v2195_v43 = vadd.f32 %v2187_v15, %v2035_v16  ;;  %v2272_v16 = vmul.f32 %v7336_v12, %v7024_v35  ;;  %v7364_v15 = vstv %s5260_s25  ;;  %v2853_v12 = vstv %s5294_s5  ;;  %s7639_s25 = sld [smem:[#allocation3 + $0xa6]] }
 0x2fb   : > { %2700 = vrot.lane.b32.xlu1 %v2694_v62, %s5532_s8  ;;  %2702 = vrot.lane.b32.xlu0 %v2695_v46, %s5532_s8  ;;  %9462 = vst [vmem:[#allocation25_spill] sm:$0xff] %v7364_v15  ;;  %v2280_v2 = vmul.f32 %v7364_v15, %v7024_v35  ;;  %s5317_s5 = sld [smem:[#allocation3 + $0x93]] }
 0x2fc   : > { %v7354_v13 = vadd.f32 %v2271_v53, %v2195_v43  ;;  %v2715_v43 = vmul.f32 %v2713_v23, %v7312_v60  ;;  %v2716_v53 = vmul.f32 %v2713_v23, %v7314_v34 }
 0x2fd   : > { %v2189_v52 = vpop.permute.xlu1 %2188  ;;  %v7356_v22 = vpop.permute.xlu0 %2190 }
 0x2fe   : > { %9460 = vst [vmem:[#allocation24_spill] sm:$0xff] %v7354_v13  ;;  %9461 = vst [vmem:[#allocation15_spill] sm:$0xff] %v7356_v22  ;;  %v2196_v41 = vadd.f32 %v2189_v52, %v2036_v58  ;;  %v2733_v58 = vstv %s5288_s26  ;;  %s7668_s26 = sld [smem:[#allocation3 + $0xd7]] }
 0x2ff   : > { %2704 = vrot.lane.b32.xlu1 %v2696_v63, %s5532_s8  ;;  %2720 = vrot.lane.b32.xlu0 %v2714_v39, %s5532_s8  ;;  %v2279_v39 = vmul.f32 %v7364_v15, %v7002_v28  ;;  %v2753_v28 = vstv %s5289_s27  ;;  %s7684_s27 = sld [smem:[#allocation3 + $0xaf]] }
 0x300   : > { %v7370_v54 = vadd.f32 %v2272_v16, %v2196_v41  ;;  %v2734_v41 = vmul.f32 %v2733_v58, %v7297_v32  ;;  %v2735_v16 = vmul.f32 %v2733_v58, %v7312_v60 }
 0x301   : > { %v2207_v62 = vpop.permute.xlu1 %2206  ;;  %v2209_v46 = vpop.permute.xlu0 %2208 }
 0x302   : > { %9463 = vst [vmem:[#allocation10_spill] sm:$0xff] %v7370_v54  ;;  %v2215_v52 = vadd.f32 %v2207_v62, %v2055_v55  ;;  %v2216_v63 = vadd.f32 %v2209_v46, %v2056_v21  ;;  %v2736_v21 = vmul.f32 %v2733_v58, %v7314_v34  ;;  %v2754_v62 = vmul.f32 %v2753_v28, %v7297_v32 }
 0x303   : > { %2722 = vrot.lane.b32.xlu1 %v2715_v43, %s5532_s8  ;;  %2724 = vrot.lane.b32.xlu0 %v2716_v53, %s5532_s8  ;;  %v2755_v53 = vmul.f32 %v2753_v28, %v7312_v60 }
 0x304   : > { %v7380_v38 = vadd.f32 %v2279_v39, %v2215_v52  ;;  %v7382_v3 = vadd.f32 %v2280_v2, %v2216_v63  ;;  %v2756_v52 = vmul.f32 %v2753_v28, %v7314_v34  ;;  %v2773_v63 = vstv %s5290_s28  ;;  %s5313_s28 = sld [smem:[#allocation3 + $0xb8]] }
 0x305   : > { %v7384_v1 = vpop.permute.xlu1 %2210  ;;  %v7386_v23 = vpop.permute.xlu0 %2293  ;;  %v2774_v2 = vmul.f32 %v2773_v63, %v7297_v32 }
 0x306   : > { %9464 = vst [vmem:[#allocation12_spill] sm:$0xff] %v7380_v38  ;;  %9465 = vst [vmem:[#allocation18_spill] sm:$0xff] %v7382_v3  ;;  %v2813_v38 = vstv %s5292_s30  ;;  %s5315_s30 = sld [smem:[#allocation3 + $0xca]] }
 0x307   : > { %9466 = vst [vmem:[#allocation26_spill] sm:$0xff] %v7384_v1  ;;  %2740 = vrot.lane.b32.xlu1 %v2734_v41, %s5532_s8  ;;  %2742 = vrot.lane.b32.xlu0 %v2735_v16, %s5532_s8  ;;  %v2775_v41 = vmul.f32 %v2773_v63, %v7312_v60  ;;  %v2793_v16 = vstv %s5291_s29  ;;  %v2833_v1 = vstv %s5293_s4  ;;  %s5314_s29 = sld [smem:[#allocation3 + $0xc1]] }
 0x308   : > { %s5316_s4 = sld [smem:[#allocation3 + $0xd3]] }
 0x309   : > { %v7392_v35 = vpop.permute.xlu1 %2295  ;;  %v7394_v55 = vpop.permute.xlu0 %2297 }
 0x30b   : > { %2744 = vrot.lane.b32.xlu1 %v2736_v21, %s5532_s8  ;;  %2760 = vrot.lane.b32.xlu0 %v2754_v62, %s5532_s8  ;;  %v2776_v62 = vmul.f32 %v2773_v63, %v7314_v34 }
 0x30d   : > { %v7400_v46 = vpop.permute.xlu1 %2313  ;;  %v7402_v43 = vpop.permute.xlu0 %2315 }
 0x30f   : > { %2762 = vrot.lane.b32.xlu1 %v2755_v53, %s5532_s8  ;;  %2764 = vrot.lane.b32.xlu0 %v2756_v52, %s5532_s8  ;;  %v2794_v53 = vmul.f32 %v2793_v16, %v7297_v32 }
 0x311   : > { %v7408_v58 = vpop.permute.xlu1 %2317  ;;  %v7410_v39 = vpop.permute.xlu0 %2333 }
 0x313   : > { %2780 = vrot.lane.b32.xlu1 %v2774_v2, %s5532_s8  ;;  %2782 = vrot.lane.b32.xlu0 %v2775_v41, %s5532_s8  ;;  %v2795_v2 = vmul.f32 %v2793_v16, %v7312_v60  ;;  %v2796_v41 = vmul.f32 %v2793_v16, %v7314_v34 }
 0x315   : > { %v7416_v28 = vpop.permute.xlu1 %2335  ;;  %v7418_v21 = vpop.permute.xlu0 %2337 }
 0x317   : > { %2784 = vrot.lane.b32.xlu1 %v2776_v62, %s5532_s8  ;;  %2800 = vrot.lane.b32.xlu0 %v2794_v53, %s5532_s8  ;;  %v2814_v62 = vmul.f32 %v2813_v38, %v7297_v32  ;;  %v2815_v53 = vmul.f32 %v2813_v38, %v7312_v60 }
 0x319   : > { %v7424_v52 = vpop.permute.xlu1 %2353  ;;  %v7426_v3 = vpop.permute.xlu0 %2355 }
 0x31b   : > { %2802 = vrot.lane.b32.xlu1 %v2795_v2, %s5532_s8  ;;  %2804 = vrot.lane.b32.xlu0 %v2796_v41, %s5532_s8  ;;  %v2816_v2 = vmul.f32 %v2813_v38, %v7314_v34  ;;  %v2834_v41 = vmul.f32 %v2833_v1, %v7297_v32 }
 0x31d   : > { %v7432_v63 = vpop.permute.xlu1 %2357  ;;  %v7434_v15 = vpop.permute.xlu0 %2373 }
 0x31f   : > { %2820 = vrot.lane.b32.xlu1 %v2814_v62, %s5532_s8  ;;  %2822 = vrot.lane.b32.xlu0 %v2815_v53, %s5532_s8  ;;  %v2835_v62 = vmul.f32 %v2833_v1, %v7312_v60  ;;  %v2836_v53 = vmul.f32 %v2833_v1, %v7314_v34 }
 0x321   : > { %v7440_v16 = vpop.permute.xlu1 %2375  ;;  %v7442_v54 = vpop.permute.xlu0 %2377 }
 0x323   : > { %2824 = vrot.lane.b32.xlu1 %v2816_v2, %s5532_s8  ;;  %2840 = vrot.lane.b32.xlu0 %v2834_v41, %s5533_s19  ;;  %v2854_v2 = vmul.f32 %v2853_v12, %v7297_v32  ;;  %v2855_v41 = vmul.f32 %v2853_v12, %v7312_v60 }
 0x325   : > { %v7448_v13 = vpop.permute.xlu1 %2393  ;;  %v7450_v22 = vpop.permute.xlu0 %2395 }
 0x326   : > { %9467 = vst [vmem:[#allocation27_spill] sm:$0xff] %v7448_v13  ;;  %9468 = vst [vmem:[#allocation21_spill] sm:$0xff] %v7450_v22  ;;  %v2873_v13 = vstv %s5295_s6  ;;  %v2893_v22 = vstv %s5296_s7  ;;  %s5318_s6 = sld [smem:[#allocation3 + $0x9c]] }
 0x327   : > { %2842 = vrot.lane.b32.xlu1 %v2835_v62, %s5533_s19  ;;  %2844 = vrot.lane.b32.xlu0 %v2836_v53, %s5533_s19  ;;  %v2856_v53 = vmul.f32 %v2853_v12, %v7314_v34  ;;  %s5319_s7 = sld [smem:[#allocation3 + $0xa5]] }
 0x329   : > { %v7456_v38 = vpop.permute.xlu1 %2397  ;;  %v7458_v9 = vpop.permute.xlu0 %2413 }
 0x32a   : > { %9469 = vst [vmem:[#allocation17_spill] sm:$0xff] %v7456_v38  ;;  %9470 = vst [vmem:[#allocation19_spill] sm:$0xff] %v7458_v9  ;;  %v2874_v38 = vmul.f32 %v2873_v13, %v7297_v32  ;;  %v1917_v9 = vadd.f32 %v7114_v8, %v6924_v29  ;;  %v2609_v29 = vstv %s5277_s9  ;;  %v2302_v8 = vadd.f32 %v7386_v23, %v7214_v11  ;;  %s5320_s9 = sld [smem:[#allocation3 + $0xae]] }
 0x32b   : > { %2860 = vrot.lane.b32.xlu1 %v2854_v2, %s5533_s19  ;;  %2862 = vrot.lane.b32.xlu0 %v2855_v41, %s5533_s19  ;;  %v1937_v11 = vadd.f32 %v7127_v47, %v6958_v20  ;;  %v2303_v23 = vadd.f32 %v7392_v35, %v7230_v40  ;;  %v2233_v47 = vmul.f32 %v7224_v18, %v7010_v5 }
 0x32c   : > { %v2077_v12 = vadd.f32 %v7216_v7, %v1917_v9  ;;  %v2895_v7 = vmul.f32 %v2893_v22, %v7312_v60 }
 0x32d   : > { %v7464_v1 = vpop.permute.xlu1 %2415  ;;  %v7466_v62 = vpop.permute.xlu0 %2417  ;;  %v2097_v20 = vadd.f32 %v7247_v30, %v1937_v11  ;;  %v2323_v30 = vadd.f32 %v7402_v43, %v7245_v42 }
 0x32e   : > { %9471 = vst [vmem:[#allocation28_spill] sm:$0xff] %v7464_v1  ;;  %9472 = vst [vmem:[#allocation20_spill] sm:$0xff] %v7466_v62  ;;  %v2875_v1 = vmul.f32 %v2873_v13, %v7312_v60  ;;  %v2876_v62 = vmul.f32 %v2873_v13, %v7314_v34 }
 0x32f   : > { %2864 = vrot.lane.b32.xlu1 %v2856_v53, %s5533_s19  ;;  %2880 = vrot.lane.b32.xlu0 %v2874_v38, %s5533_s19  ;;  %v2225_v53 = vmul.f32 %v7199_v17, %v7010_v5  ;;  %v2236_v42 = vadd.f32 %v2233_v47, %v2097_v20  ;;  %v2953_v20 = vstv %s7509_s16  ;;  %s7835_s16 = sld [smem:[#allocation3 + $0xa7]] }
 0x331   : > { %v7474_v2 = vpop.permute.xlu1 %2433  ;;  %v7476_v41 = vpop.permute.xlu0 %2435  ;;  %v2228_v9 = vadd.f32 %v2225_v53, %v2077_v12 }
 0x332   : > { %9473 = vst [vmem:[#allocation29_spill] sm:$0xff] %v7474_v2  ;;  %9474 = vst [vmem:[#allocation30_spill] sm:$0xff] %v7476_v41  ;;  %v2894_v41 = vmul.f32 %v2893_v22, %v7297_v32  ;;  %v2913_v2 = vstv %s5297_s10  ;;  %s5301_s10 = sld [smem:[#allocation3 + $0x95]] }
 0x333   : > { %2882 = vrot.lane.b32.xlu1 %v2875_v1, %s5533_s19  ;;  %2884 = vrot.lane.b32.xlu0 %v2876_v62, %s5533_s19  ;;  %v2610_v1 = vmul.f32 %v2609_v29, %v7297_v32  ;;  %v2896_v62 = vmul.f32 %v2893_v22, %v7314_v34  ;;  %v2304_v12 = vadd.f32 %v7394_v55, %v2228_v9 }
 0x334   : > { %v2611_v22 = vmul.f32 %v2609_v29, %v7312_v60  ;;  %v1957_v55 = vadd.f32 %v7138_v48, %v6977_v61  ;;  %v2915_v9 = vmul.f32 %v2913_v2, %v7312_v60  ;;  %v2241_v61 = vmul.f32 %v7239_v45, %v7010_v5 }
 0x335   : > { %v7491_v38 = vpop.permute.xlu1 %2437  ;;  %v2454_v13 = vpop.permute.xlu0 %2453  ;;  %v2916_v11 = vmul.f32 %v2913_v2, %v7314_v34  ;;  %v2625_v5 = vstv %s7499_s15  ;;  %v2324_v45 = vadd.f32 %v7408_v58, %v2236_v42  ;;  %v2973_v42 = vstv %s7541_s18  ;;  %s5322_s15 = sld [smem:[#allocation3 + $0xc0]] }
 0x336   : > { %9475 = vst [vmem:[#allocation9_spill] sm:$0xff] %v7491_v38  ;;  %v2462_v17 = vadd.f32 %v2454_v13, %v2302_v8  ;;  %v2617_v38 = vstv %s7480_s11  ;;  %v2626_v58 = vmul.f32 %v2625_v5, %v7297_v32  ;;  %s5321_s11 = sld [smem:[#allocation3 + $0xb7]] }
 0x337   : > { %2900 = vrot.lane.b32.xlu1 %v2894_v41, %s5533_s19  ;;  %2902 = vrot.lane.b32.xlu0 %v2895_v7, %s5533_s19  ;;  %v2914_v41 = vmul.f32 %v2913_v2, %v7297_v32  ;;  %v2612_v7 = vmul.f32 %v2609_v29, %v7314_v34  ;;  %v2322_v29 = vadd.f32 %v7400_v46, %v7243_v27  ;;  %s7866_s18 = sld [smem:[#allocation3 + $0xb0]] }
 0x338   : > { %v7506_v53 = vadd.f32 %v2610_v1, %v2462_v17  ;;  %v2933_v17 = vstv %s7487_s14  ;;  %v2117_v27 = vadd.f32 %v7260_v50, %v1957_v55  ;;  %v2342_v2 = vadd.f32 %v7410_v39, %v7258_v59  ;;  %s5302_s14 = sld [smem:[#allocation3 + $0x9e]] }
 0x339   : > { %v2456_v8 = vpop.permute.xlu1 %2455  ;;  %v2458_v13 = vpop.permute.xlu0 %2457  ;;  %v2620_v47 = vmul.f32 %v2617_v38, %v7314_v34  ;;  %v1977_v59 = vadd.f32 %v7151_v0, %v7016_v4  ;;  %v2936_v39 = vmul.f32 %v2933_v17, %v7314_v34  ;;  %v2954_v0 = vmul.f32 %v2953_v20, %v7297_v32 }
 0x33a   : > { %v2463_v40 = vadd.f32 %v2456_v8, %v2303_v23  ;;  %v2464_v35 = vadd.f32 %v2458_v13, %v2304_v12  ;;  %v2618_v23 = vmul.f32 %v2617_v38, %v7297_v32  ;;  %v2619_v12 = vmul.f32 %v2617_v38, %v7312_v60 }
 0x33b   : > { %2904 = vrot.lane.b32.xlu1 %v2896_v62, %s5533_s19  ;;  %2920 = vrot.lane.b32.xlu0 %v2914_v41, %s5533_s19  ;;  %v2343_v38 = vadd.f32 %v7416_v28, %v7276_v14  ;;  %v2137_v14 = vadd.f32 %v7293_v44, %v1977_v59  ;;  %v7577_v28 = vld [vmem:[#allocation2 + $0x2a] sm:$0x3]  ;;  %v2362_v44 = vadd.f32 %v7424_v52, %v7289_v57  ;;  %v7619_v59 = vld [vmem:[#allocation2 + $0x31] sm:$0xff] }
 0x33c   : > { %v7527_v1 = vadd.f32 %v2611_v22, %v2463_v40  ;;  %v7529_v18 = vadd.f32 %v2612_v7, %v2464_v35  ;;  %v2934_v22 = vmul.f32 %v2933_v17, %v7297_v32  ;;  %v2935_v7 = vmul.f32 %v2933_v17, %v7312_v60 }
 0x33d   : > { %v2474_v48 = vpop.permute.xlu1 %2473  ;;  %v2476_v62 = vpop.permute.xlu0 %2475  ;;  %v2244_v40 = vadd.f32 %v2241_v61, %v2117_v27  ;;  %v2627_v17 = vmul.f32 %v2625_v5, %v7312_v60  ;;  %v2955_v27 = vmul.f32 %v2953_v20, %v7312_v60 }
 0x33e   : > { %v2482_v46 = vadd.f32 %v2474_v48, %v2322_v29  ;;  %v2483_v43 = vadd.f32 %v2476_v62, %v2323_v30  ;;  %v2628_v48 = vmul.f32 %v2625_v5, %v7314_v34  ;;  %v2633_v62 = vstv %s7536_s17  ;;  %s7845_s17 = sld [smem:[#allocation3 + $0xc9]] }
 0x33f   : > { %2922 = vrot.lane.b32.xlu1 %v2915_v9, %s5533_s19  ;;  %2924 = vrot.lane.b32.xlu0 %v2916_v11, %s5533_s19  ;;  %v2344_v9 = vadd.f32 %v7418_v21, %v2244_v40  ;;  %v2249_v21 = vmul.f32 %v7577_v28, %v7270_v25  ;;  %v2974_v40 = vmul.f32 %v2973_v42, %v7297_v32 }
 0x340   : > { %v7547_v8 = vadd.f32 %v2618_v23, %v2482_v46  ;;  %v7549_v13 = vadd.f32 %v2619_v12, %v2483_v43  ;;  %v1997_v12 = vadd.f32 %v7162_v36, %v7038_v19  ;;  %v2363_v46 = vadd.f32 %v7426_v3, %v7291_v56 }
 0x341   : > { %v2478_v50 = vpop.permute.xlu1 %2477  ;;  %v2494_v41 = vpop.permute.xlu0 %2493  ;;  %v2257_v19 = vmul.f32 %v7577_v28, %v7285_v26  ;;  %v2252_v56 = vadd.f32 %v2249_v21, %v2137_v14  ;;  %v2641_v26 = vstv %s7561_s20  ;;  %s7879_s20 = sld [smem:[#allocation3 + $0xd2]] }
 0x342   : > { %v2484_v35 = vadd.f32 %v2478_v50, %v2324_v45  ;;  %v2502_v55 = vadd.f32 %v2494_v41, %v2342_v2  ;;  %v2956_v45 = vmul.f32 %v2953_v20, %v7314_v34  ;;  %v2634_v2 = vmul.f32 %v2633_v62, %v7297_v32 }
 0x343   : > { %2940 = vrot.lane.b32.xlu1 %v2934_v22, %s5533_s19  ;;  %2942 = vrot.lane.b32.xlu0 %v2935_v7, %s5533_s19  ;;  %v2635_v50 = vmul.f32 %v2633_v62, %v7312_v60  ;;  %v2157_v57 = vadd.f32 %v7309_v49, %v1997_v12  ;;  %v2364_v41 = vadd.f32 %v7432_v63, %v2252_v56 }
 0x344   : > { %v7566_v29 = vadd.f32 %v2620_v47, %v2484_v35  ;;  %v7568_v30 = vadd.f32 %v2626_v58, %v2502_v55  ;;  %v2382_v22 = vadd.f32 %v7434_v15, %v7307_v37  ;;  %v2975_v35 = vmul.f32 %v2973_v42, %v7312_v60 }
 0x345   : > { %v2496_v61 = vpop.permute.xlu1 %2495  ;;  %v2498_v4 = vpop.permute.xlu0 %2497  ;;  %v3060_v55 = vstv %s7571_s21  ;;  %v2636_v58 = vmul.f32 %v2633_v62, %v7314_v34  ;;  %v2642_v37 = vmul.f32 %v2641_v26, %v7297_v32  ;;  %v2017_v15 = vadd.f32 %v7175_v51, %v7071_v6  ;;  %s7885_s21 = sld [smem:[#allocation3 + $0xb9]] }
 0x346   : > { %v2503_v11 = vadd.f32 %v2496_v61, %v2343_v38  ;;  %v2504_v23 = vadd.f32 %v2498_v4, %v2344_v9  ;;  %v2976_v9 = vmul.f32 %v2973_v42, %v7314_v34  ;;  %v7629_v61 = vld [vmem:[#allocation2 + $0x39] sm:$0xff]  ;;  %v2383_v4 = vadd.f32 %v7440_v16, %v7326_v24  ;;  %v9477_v42 = vld [vmem:[#allocation14_spill] sm:$0xff] }
 0x347   : > { %2944 = vrot.lane.b32.xlu1 %v2936_v39, %s5533_s19  ;;  %2960 = vrot.lane.b32.xlu0 %v2954_v0, %s5533_s19  ;;  %v2260_v39 = vadd.f32 %v2257_v19, %v2157_v57  ;;  %v3061_v62 = vmul.f32 %v3060_v55, %v7619_v59  ;;  %v2643_v14 = vmul.f32 %v2641_v26, %v7312_v60  ;;  %v3080_v19 = vstv %s7605_s23  ;;  %v9481_v57 = vld [vmem:[#allocation13_spill] sm:$0xff]  ;;  %s7920_s23 = sld [smem:[#allocation3 + $0xc2]] }
 0x348   : > { %v7591_v43 = vadd.f32 %v2627_v17, %v2503_v11  ;;  %v7593_v25 = vadd.f32 %v2628_v48, %v2504_v23  ;;  %v2644_v21 = vmul.f32 %v2641_v26, %v7314_v34  ;;  %v2649_v11 = vstv %s7600_s22  ;;  %v7644_v23 = vld [vmem:[#allocation2 + $0x41] sm:$0x3]  ;;  %s7897_s22 = sld [smem:[#allocation3 + $0x91]] }
 0x349   : > { %v2514_v36 = vpop.permute.xlu1 %2513  ;;  %v2516_v5 = vpop.permute.xlu0 %2515  ;;  %v2384_v0 = vadd.f32 %v7442_v54, %v2260_v39  ;;  %v2177_v24 = vadd.f32 %v7344_v31, %v2017_v15  ;;  %v2265_v54 = vmul.f32 %v7577_v28, %v7320_v10  ;;  %v9480_v31 = vld [vmem:[#allocation21_spill] sm:$0xff]  ;;  %v2273_v56 = vmul.f32 %v7577_v28, %v9481_v57 }
 0x34a   : > { %v2522_v3 = vadd.f32 %v2514_v36, %v2362_v44  ;;  %v2523_v52 = vadd.f32 %v2516_v5, %v2363_v46  ;;  %v3062_v46 = vmul.f32 %v3060_v55, %v7629_v61  ;;  %v9478_v36 = vld [vmem:[#allocation27_spill] sm:$0xff]  ;;  %v3063_v26 = vmul.f32 %v3060_v55, %v7644_v23  ;;  %v9483_v39 = vld [vmem:[#allocation17_spill] sm:$0xff]  ;;  %v9484_v55 = vld [vmem:[#allocation24_spill] sm:$0xff] }
 0x34b   : > { %2962 = vrot.lane.b32.xlu1 %v2955_v27, %s5533_s19  ;;  %2964 = vrot.lane.b32.xlu0 %v2956_v45, %s5533_s19  ;;  %v9476_v27 = vld [vmem:[#allocation11_spill] sm:$0xff]  ;;  %v2402_v5 = vadd.f32 %v9478_v36, %v7340_v33  ;;  %v9479_v45 = vld [vmem:[#allocation16_spill] sm:$0xff] }
 0x34c   : > { %v7611_v7 = vadd.f32 %v2634_v2, %v2522_v3  ;;  %v7613_v20 = vadd.f32 %v2635_v50, %v2523_v52  ;;  %v2037_v44 = vadd.f32 %v9477_v42, %v9476_v27  ;;  %v2403_v2 = vadd.f32 %v9480_v31, %v9479_v45  ;;  %v9482_v33 = vld [vmem:[#allocation15_spill] sm:$0xff]  ;;  %v9489_v36 = vld [vmem:[#allocation28_spill] sm:$0xff] }
 0x34d   : > { %v2518_v49 = vpop.permute.xlu1 %2517  ;;  %v2534_v47 = vpop.permute.xlu0 %2533  ;;  %v9487_v27 = vld [vmem:[#allocation23_spill] sm:$0xff]  ;;  %v9490_v45 = vld [vmem:[#allocation20_spill] sm:$0xff] }
 0x34e   : > { %v2524_v63 = vadd.f32 %v2518_v49, %v2364_v41  ;;  %v2542_v38 = vadd.f32 %v2534_v47, %v2382_v22  ;;  %v2650_v41 = vmul.f32 %v2649_v11, %v7297_v32  ;;  %v2651_v22 = vmul.f32 %v2649_v11, %v7312_v60 }
 0x34f   : > { %2980 = vrot.lane.b32.xlu1 %v2974_v40, %s5533_s19  ;;  %2982 = vrot.lane.b32.xlu0 %v2975_v35, %s5533_s19  ;;  %v2197_v49 = vadd.f32 %v9482_v33, %v2037_v44  ;;  %v2268_v47 = vadd.f32 %v2265_v54, %v2177_v24  ;;  %v3083_v44 = vmul.f32 %v3080_v19, %v7644_v23  ;;  %v9492_v33 = vld [vmem:[#allocation25_spill] sm:$0xff] }
 0x350   : > { %v7634_v17 = vadd.f32 %v2636_v58, %v2524_v63  ;;  %v7636_v48 = vadd.f32 %v2642_v37, %v2542_v38  ;;  %v2657_v58 = vstv %s7627_s24  ;;  %v9485_v38 = vld [vmem:[#allocation19_spill] sm:$0xff]  ;;  %s7933_s24 = sld [smem:[#allocation3 + $0x9a]] }
 0x351   : > { %v2536_v6 = vpop.permute.xlu1 %2535  ;;  %v2538_v51 = vpop.permute.xlu0 %2537  ;;  %v2404_v63 = vadd.f32 %v9483_v39, %v2268_v47  ;;  %v2422_v37 = vadd.f32 %v9485_v38, %v9484_v55  ;;  %v9494_v39 = vld [vmem:[#allocation29_spill] sm:$0xff]  ;;  %v9495_v55 = vld [vmem:[#allocation18_spill] sm:$0xff] }
 0x352   : > { %v2543_v16 = vadd.f32 %v2536_v6, %v2383_v4  ;;  %v2544_v12 = vadd.f32 %v2538_v51, %v2384_v0  ;;  %v3081_v6 = vmul.f32 %v3080_v19, %v7619_v59  ;;  %v3082_v51 = vmul.f32 %v3080_v19, %v7629_v61  ;;  %v9496_v38 = vld [vmem:[#allocation30_spill] sm:$0xff] }
 0x353   : > { %2984 = vrot.lane.b32.xlu1 %v2976_v9, %s5533_s19  ;;  %3067 = vrot.lane.b32.xlu0 %v3061_v62, %s5532_s8  ;;  %v3100_v62 = vstv %s7639_s25  ;;  %s7941_s25 = sld [smem:[#allocation3 + $0xcb]] }
 0x354   : > { %v7659_v10 = vadd.f32 %v2643_v14, %v2543_v16  ;;  %v7661_v50 = vadd.f32 %v2644_v21, %v2544_v12  ;;  %v2652_v14 = vmul.f32 %v2649_v11, %v7314_v34  ;;  %v2276_v21 = vadd.f32 %v2273_v56, %v2197_v49  ;;  %v9486_v12 = vld [vmem:[#allocation22_spill] sm:$0xff] }
 0x355   : > { %v2554_v3 = vpop.permute.xlu1 %2553  ;;  %v2556_v52 = vpop.permute.xlu0 %2555  ;;  %v2658_v16 = vmul.f32 %v2657_v58, %v7297_v32  ;;  %v2057_v42 = vadd.f32 %v9487_v27, %v9486_v12  ;;  %v2281_v49 = vmul.f32 %v7577_v28, %v9492_v33  ;;  %v3102_v28 = vmul.f32 %v3100_v62, %v7629_v61  ;;  %v9497_v27 = vld [vmem:[#allocation9_spill] sm:$0xff] }
 0x356   : > { %v2562_v40 = vadd.f32 %v2554_v3, %v2402_v5  ;;  %v2563_v35 = vadd.f32 %v2556_v52, %v2403_v2  ;;  %v2424_v11 = vadd.f32 %v9490_v45, %v2276_v21  ;;  %v3101_v3 = vmul.f32 %v3100_v62, %v7619_v59 }
 0x357   : > { %3069 = vrot.lane.b32.xlu1 %v3062_v46, %s5532_s8  ;;  %3071 = vrot.lane.b32.xlu0 %v3063_v26, %s5532_s8  ;;  %v9488_v46 = vld [vmem:[#allocation10_spill] sm:$0xff]  ;;  %v2659_v52 = vmul.f32 %v2657_v58, %v7312_v60  ;;  %v2660_v26 = vmul.f32 %v2657_v58, %v7314_v34  ;;  %v2443_v58 = vadd.f32 %v9496_v38, %v9495_v55  ;;  %v3160_v33 = vstv %s5314_s29  ;;  %s5337_s29 = sld [smem:[#allocation3 + $0xb5]] }
 0x358   : > { %v7677_v15 = vadd.f32 %v2650_v41, %v2562_v40  ;;  %v7679_v9 = vadd.f32 %v2651_v22, %v2563_v35  ;;  %v2423_v5 = vadd.f32 %v9489_v36, %v9488_v46  ;;  %v2665_v41 = vstv %s7668_s26  ;;  %v9491_v22 = vld [vmem:[#allocation26_spill] sm:$0xff]  ;;  %v9493_v35 = vld [vmem:[#allocation12_spill] sm:$0xff]  ;;  %s7955_s26 = sld [smem:[#allocation3 + $0xa3]] }
 0x359   : > { %v2558_v4 = vpop.permute.xlu1 %2557  ;;  %v2574_v0 = vpop.permute.xlu0 %2573  ;;  %v2217_v19 = vadd.f32 %v9491_v22, %v2057_v42  ;;  %v2666_v21 = vmul.f32 %v2665_v41, %v7297_v32  ;;  %v2667_v12 = vmul.f32 %v2665_v41, %v7312_v60  ;;  %v2668_v60 = vmul.f32 %v2665_v41, %v7314_v34 }
 0x35a   : > { %v2564_v24 = vadd.f32 %v2558_v4, %v2404_v63  ;;  %v2582_v54 = vadd.f32 %v2574_v0, %v2422_v37  ;;  %v2442_v63 = vadd.f32 %v9494_v39, %v9493_v35  ;;  %v3162_v35 = vmul.f32 %v3160_v33, %v7629_v61 }
 0x35b   : > { %3087 = vrot.lane.b32.xlu1 %v3081_v6, %s5532_s8  ;;  %3089 = vrot.lane.b32.xlu0 %v3082_v51, %s5532_s8  ;;  %v3103_v51 = vmul.f32 %v3100_v62, %v7644_v23  ;;  %v3180_v39 = vstv %s5315_s30  ;;  %v3163_v38 = vmul.f32 %v3160_v33, %v7644_v23  ;;  %s5338_s30 = sld [smem:[#allocation3 + $0xbe]] }
 0x35c   : > { %v7696_v31 = vadd.f32 %v2652_v14, %v2564_v24  ;;  %v7698_v2 = vadd.f32 %v2658_v16, %v2582_v54  ;;  %v3120_v14 = vstv %s7684_s27  ;;  %v2284_v24 = vadd.f32 %v2281_v49, %v2217_v19  ;;  %s7980_s27 = sld [smem:[#allocation3 + $0xd4]] }
 0x35d   : > { %v2576_v57 = vpop.permute.xlu1 %2575  ;;  %v2578_v56 = vpop.permute.xlu0 %2577  ;;  %v3121_v32 = vmul.f32 %v3120_v14, %v7619_v59 }
 0x35e   : > { %v2583_v47 = vadd.f32 %v2576_v57, %v2423_v5  ;;  %v2584_v40 = vadd.f32 %v2578_v56, %v2424_v11  ;;  %v2444_v42 = vadd.f32 %v9497_v27, %v2284_v24  ;;  %v3122_v5 = vmul.f32 %v3120_v14, %v7629_v61 }
 0x35f   : > { %3091 = vrot.lane.b32.xlu1 %v3083_v44, %s5532_s8  ;;  %3107 = vrot.lane.b32.xlu0 %v3101_v3, %s5532_s8  ;;  %v3140_v11 = vstv %s5313_s28  ;;  %s7993_s28 = sld [smem:[#allocation3 + $0xac]] }
 0x360   : > { %v7713_v37 = vadd.f32 %v2659_v52, %v2583_v47  ;;  %v7715_v4 = vadd.f32 %v2660_v26, %v2584_v40  ;;  %v3123_v52 = vmul.f32 %v3120_v14, %v7644_v23  ;;  %v3141_v26 = vmul.f32 %v3140_v11, %v7619_v59 }
 0x361   : > { %v2594_v0 = vpop.permute.xlu1 %2593  ;;  %v2596_v6 = vpop.permute.xlu0 %2595  ;;  %v3142_v22 = vmul.f32 %v3140_v11, %v7629_v61  ;;  %v3143_v19 = vmul.f32 %v3140_v11, %v7644_v23  ;;  %v3161_v40 = vmul.f32 %v3160_v33, %v7619_v59  ;;  %v3200_v14 = vstv %s5316_s4  ;;  %s5339_s4 = sld [smem:[#allocation3 + $0xc7]] }
 0x362   : > { %v2602_v54 = vadd.f32 %v2594_v0, %v2442_v63  ;;  %v2603_v16 = vadd.f32 %v2596_v6, %v2443_v58  ;;  %v3181_v58 = vmul.f32 %v3180_v39, %v7619_v59 }
 0x363   : > { %3109 = vrot.lane.b32.xlu1 %v3102_v28, %s5532_s8  ;;  %3111 = vrot.lane.b32.xlu0 %v3103_v51, %s5532_s8  ;;  %v3182_v28 = vmul.f32 %v3180_v39, %v7629_v61  ;;  %v3183_v51 = vmul.f32 %v3180_v39, %v7644_v23 }
 0x364   : > { %v7725_v44 = vadd.f32 %v2666_v21, %v2602_v54  ;;  %v7727_v46 = vadd.f32 %v2667_v12, %v2603_v16  ;;  %v3201_v54 = vmul.f32 %v3200_v14, %v7619_v59  ;;  %v3202_v16 = vmul.f32 %v3200_v14, %v7629_v61 }
 0x365   : > { %v2598_v36 = vpop.permute.xlu1 %2597  ;;  %v7729_v62 = vpop.permute.xlu0 %2680  ;;  %v3220_v12 = vstv %s5317_s5  ;;  %s5340_s5 = sld [smem:[#allocation3 + $0xd0]] }
 0x366   : > { %v2604_v45 = vadd.f32 %v2598_v36, %v2444_v42  ;;  %v3203_v36 = vmul.f32 %v3200_v14, %v7644_v23  ;;  %v3222_v11 = vmul.f32 %v3220_v12, %v7629_v61 }
 0x367   : > { %3127 = vrot.lane.b32.xlu1 %v3121_v32, %s5532_s8  ;;  %3129 = vrot.lane.b32.xlu0 %v3122_v5, %s5532_s8  ;;  %v3221_v32 = vmul.f32 %v3220_v12, %v7619_v59 }
 0x368   : > { %v7736_v57 = vadd.f32 %v2668_v60, %v2604_v45  ;;  %v3223_v60 = vmul.f32 %v3220_v12, %v7644_v23  ;;  %v2996_v12 = vstv %s5301_s10  ;;  %s5344_s10 = sld [smem:[#allocation3 + $0xab]] }
 0x369   : > { %v7738_v56 = vpop.permute.xlu1 %2682  ;;  %v7740_v3 = vpop.permute.xlu0 %2684 }
 0x36b   : > { %3131 = vrot.lane.b32.xlu1 %v3123_v52, %s5532_s8  ;;  %3147 = vrot.lane.b32.xlu0 %v3141_v26, %s5532_s8  ;;  %v3240_v52 = vstv %s5318_s6  ;;  %s5341_s6 = sld [smem:[#allocation3 + $0x90]] }
 0x36c   : > { %v3242_v33 = vmul.f32 %v3240_v52, %v7629_v61 }
 0x36d   : > { %v7746_v34 = vpop.permute.xlu1 %2700  ;;  %v7748_v41 = vpop.permute.xlu0 %2702 }
 0x36f   : > { %3149 = vrot.lane.b32.xlu1 %v3142_v22, %s5532_s8  ;;  %3151 = vrot.lane.b32.xlu0 %v3143_v19, %s5532_s8  ;;  %v3241_v19 = vmul.f32 %v3240_v52, %v7619_v59 }
 0x371   : > { %v7754_v49 = vpop.permute.xlu1 %2704  ;;  %v7756_v47 = vpop.permute.xlu0 %2720 }
 0x373   : > { %3167 = vrot.lane.b32.xlu1 %v3161_v40, %s5532_s8  ;;  %3169 = vrot.lane.b32.xlu0 %v3162_v35, %s5532_s8  ;;  %v3260_v40 = vstv %s5319_s7  ;;  %s5342_s7 = sld [smem:[#allocation3 + $0x99]] }
 0x374   : > { %v3262_v14 = vmul.f32 %v3260_v40, %v7629_v61 }
 0x375   : > { %v7762_v63 = vpop.permute.xlu1 %2722  ;;  %v7764_v55 = vpop.permute.xlu0 %2724 }
 0x377   : > { %3171 = vrot.lane.b32.xlu1 %v3163_v38, %s5532_s8  ;;  %3187 = vrot.lane.b32.xlu0 %v3181_v58, %s5532_s8  ;;  %v3243_v38 = vmul.f32 %v3240_v52, %v7644_v23  ;;  %v3261_v58 = vmul.f32 %v3260_v40, %v7619_v59 }
 0x379   : > { %v7770_v0 = vpop.permute.xlu1 %2740  ;;  %v7772_v6 = vpop.permute.xlu0 %2742 }
 0x37b   : > { %3189 = vrot.lane.b32.xlu1 %v3182_v28, %s5532_s8  ;;  %3191 = vrot.lane.b32.xlu0 %v3183_v51, %s5532_s8 }
 0x37d   : > { %v7778_v21 = vpop.permute.xlu1 %2744  ;;  %v7780_v24 = vpop.permute.xlu0 %2760 }
 0x37f   : > { %3207 = vrot.lane.b32.xlu1 %v3201_v54, %s5532_s8  ;;  %3209 = vrot.lane.b32.xlu0 %v3202_v16, %s5532_s8  ;;  %v3263_v54 = vmul.f32 %v3260_v40, %v7644_v23  ;;  %v3280_v16 = vstv %s5320_s9  ;;  %v2997_v40 = vmul.f32 %v2996_v12, %v7619_v59  ;;  %s5343_s9 = sld [smem:[#allocation3 + $0xa2]] }
 0x380   : > { %v3282_v52 = vmul.f32 %v3280_v16, %v7629_v61 }
 0x381   : > { %v7786_v27 = vpop.permute.xlu1 %2762  ;;  %v7788_v42 = vpop.permute.xlu0 %2764 }
 0x383   : > { %3211 = vrot.lane.b32.xlu1 %v3203_v36, %s5532_s8  ;;  %3227 = vrot.lane.b32.xlu0 %v3221_v32, %s5533_s19  ;;  %v2689_v36 = vadd.f32 %v7729_v62, %v7506_v53  ;;  %v2690_v53 = vadd.f32 %v7738_v56, %v7527_v1  ;;  %v2691_v62 = vadd.f32 %v7740_v3, %v7529_v18  ;;  %v3004_v1 = vstv %s5302_s14  ;;  %s5345_s14 = sld [smem:[#allocation3 + $0xb4]] }
 0x384   : > { %v2709_v18 = vadd.f32 %v7746_v34, %v7547_v8  ;;  %v2710_v56 = vadd.f32 %v7748_v41, %v7549_v13  ;;  %v3006_v8 = vmul.f32 %v3004_v1, %v7629_v61  ;;  %v3012_v13 = vstv %s7835_s16  ;;  %s5346_s16 = sld [smem:[#allocation3 + $0xbd]] }
 0x385   : > { %v7794_v5 = vpop.permute.xlu1 %2780  ;;  %v7796_v45 = vpop.permute.xlu0 %2782  ;;  %v2711_v34 = vadd.f32 %v7754_v49, %v7566_v29  ;;  %v2729_v41 = vadd.f32 %v7756_v47, %v7568_v30  ;;  %v3007_v29 = vmul.f32 %v3004_v1, %v7644_v23  ;;  %v3013_v49 = vmul.f32 %v3012_v13, %v7619_v59 }
 0x386   : > { %v2730_v30 = vadd.f32 %v7762_v63, %v7591_v43  ;;  %v2731_v47 = vadd.f32 %v7764_v55, %v7593_v25  ;;  %v3014_v43 = vmul.f32 %v3012_v13, %v7629_v61  ;;  %v3015_v63 = vmul.f32 %v3012_v13, %v7644_v23 }
 0x387   : > { %3229 = vrot.lane.b32.xlu1 %v3222_v11, %s5533_s19  ;;  %3231 = vrot.lane.b32.xlu0 %v3223_v60, %s5533_s19  ;;  %v3281_v60 = vmul.f32 %v3280_v16, %v7619_v59  ;;  %v3020_v25 = vstv %s7866_s18  ;;  %v2749_v55 = vadd.f32 %v7770_v0, %v7611_v7  ;;  %v2751_v0 = vadd.f32 %v7778_v21, %v7634_v17  ;;  %s5347_s18 = sld [smem:[#allocation3 + $0xc6]] }
 0x388   : > { %v3022_v7 = vmul.f32 %v3020_v25, %v7629_v61  ;;  %v3023_v21 = vmul.f32 %v3020_v25, %v7644_v23 }
 0x389   : > { %v7802_v26 = vpop.permute.xlu1 %2784  ;;  %v7804_v22 = vpop.permute.xlu0 %2800 }
 0x38b   : > { %3247 = vrot.lane.b32.xlu1 %v3241_v19, %s5533_s19  ;;  %3249 = vrot.lane.b32.xlu0 %v3242_v33, %s5533_s19  ;;  %v3300_v33 = vstv %s5321_s11  ;;  %s5325_s11 = sld [smem:[#allocation3 + $0x92]] }
 0x38d   : > { %v7810_v35 = vpop.permute.xlu1 %2802  ;;  %v7812_v39 = vpop.permute.xlu0 %2804 }
 0x38f   : > { %3251 = vrot.lane.b32.xlu1 %v3243_v38, %s5533_s19  ;;  %3267 = vrot.lane.b32.xlu0 %v3261_v58, %s5533_s19 }
 0x391   : > { %v7818_v28 = vpop.permute.xlu1 %2820  ;;  %v7820_v51 = vpop.permute.xlu0 %2822 }
 0x393   : > { %3269 = vrot.lane.b32.xlu1 %v3262_v14, %s5533_s19  ;;  %3271 = vrot.lane.b32.xlu0 %v3263_v54, %s5533_s19  ;;  %v3283_v54 = vmul.f32 %v3280_v16, %v7644_v23 }
 0x395   : > { %v7828_v32 = vpop.permute.xlu1 %2824  ;;  %v2841_v11 = vpop.permute.xlu0 %2840 }
 0x396   : > { %9498 = vst [vmem:[#allocation11_spill] sm:$0xff] %v7828_v32  ;;  %v2849_v19 = vadd.f32 %v2841_v11, %v2689_v36  ;;  %v3301_v36 = vmul.f32 %v3300_v33, %v7619_v59  ;;  %v2999_v32 = vmul.f32 %v2996_v12, %v7644_v23 }
 0x397   : > { %3287 = vrot.lane.b32.xlu1 %v3281_v60, %s5533_s19  ;;  %3289 = vrot.lane.b32.xlu0 %v3282_v52, %s5533_s19  ;;  %v2998_v52 = vmul.f32 %v2996_v12, %v7629_v61  ;;  %v3302_v12 = vmul.f32 %v3300_v33, %v7629_v61 }
 0x398   : > { %v7841_v38 = vadd.f32 %v2997_v40, %v2849_v19 }
 0x399   : > { %v2843_v58 = vpop.permute.xlu1 %2842  ;;  %v2845_v14 = vpop.permute.xlu0 %2844 }
 0x39a   : > { %v2850_v11 = vadd.f32 %v2843_v58, %v2690_v53  ;;  %v2851_v60 = vadd.f32 %v2845_v14, %v2691_v62  ;;  %v3303_v53 = vmul.f32 %v3300_v33, %v7644_v23  ;;  %v3320_v62 = vstv %s5322_s15  ;;  %s5326_s15 = sld [smem:[#allocation3 + $0x9b]] }
 0x39b   : > { %3291 = vrot.lane.b32.xlu1 %v3283_v54, %s5533_s19  ;;  %3307 = vrot.lane.b32.xlu0 %v3301_v36, %s5533_s19  ;;  %v3005_v54 = vmul.f32 %v3004_v1, %v7619_v59 }
 0x39c   : > { %v7855_v3 = vadd.f32 %v2998_v52, %v2850_v11  ;;  %v7857_v16 = vadd.f32 %v2999_v32, %v2851_v60  ;;  %v3321_v60 = vmul.f32 %v3320_v62, %v7619_v59  ;;  %v3322_v52 = vmul.f32 %v3320_v62, %v7629_v61 }
 0x39d   : > { %v2861_v19 = vpop.permute.xlu1 %2860  ;;  %v2863_v40 = vpop.permute.xlu0 %2862 }
 0x39e   : > { %v2869_v58 = vadd.f32 %v2861_v19, %v2709_v18  ;;  %v2870_v14 = vadd.f32 %v2863_v40, %v2710_v56  ;;  %v3340_v18 = vstv %s7845_s17  ;;  %s5327_s17 = sld [smem:[#allocation3 + $0xa4]] }
 0x39f   : > { %3309 = vrot.lane.b32.xlu1 %v3302_v12, %s5533_s19  ;;  %3311 = vrot.lane.b32.xlu0 %v3303_v53, %s5533_s19  ;;  %v3342_v13 = vmul.f32 %v3340_v18, %v7629_v61 }
 0x3a0   : > { %v7872_v32 = vadd.f32 %v3005_v54, %v2869_v58  ;;  %v7874_v33 = vadd.f32 %v3006_v8, %v2870_v14  ;;  %v3323_v58 = vmul.f32 %v3320_v62, %v7644_v23  ;;  %v3341_v14 = vmul.f32 %v3340_v18, %v7619_v59 }
 0x3a1   : > { %v2865_v36 = vpop.permute.xlu1 %2864  ;;  %v2881_v11 = vpop.permute.xlu0 %2880  ;;  %v2750_v62 = vadd.f32 %v7772_v6, %v7613_v20  ;;  %v3028_v20 = vstv %s7885_s21  ;;  %v2769_v6 = vadd.f32 %v7780_v24, %v7636_v48  ;;  %v7943_v24 = vld [vmem:[#allocation2 + $0x42] sm:$0x3]  ;;  %s5348_s21 = sld [smem:[#allocation3 + $0xcf]] }
 0x3a2   : > { %v2871_v56 = vadd.f32 %v2865_v36, %v2711_v34  ;;  %v2889_v19 = vadd.f32 %v2881_v11, %v2729_v41  ;;  %v3029_v48 = vmul.f32 %v3028_v20, %v7619_v59 }
 0x3a3   : > { %3327 = vrot.lane.b32.xlu1 %v3321_v60, %s5533_s19  ;;  %3329 = vrot.lane.b32.xlu0 %v3322_v52, %s5533_s19  ;;  %v3343_v60 = vmul.f32 %v3340_v18, %v7644_v23  ;;  %v3360_v52 = vstv %s7879_s20  ;;  %s5328_s20 = sld [smem:[#allocation3 + $0xad]] }
 0x3a4   : > { %v7891_v40 = vadd.f32 %v3007_v29, %v2871_v56  ;;  %v7893_v12 = vadd.f32 %v3013_v49, %v2889_v19  ;;  %v3021_v29 = vmul.f32 %v3020_v25, %v7619_v59 }
 0x3a5   : > { %v2883_v1 = vpop.permute.xlu1 %2882  ;;  %v2885_v53 = vpop.permute.xlu0 %2884 }
 0x3a6   : > { %v2890_v54 = vadd.f32 %v2883_v1, %v2730_v30  ;;  %v2891_v8 = vadd.f32 %v2885_v53, %v2731_v47  ;;  %v3361_v1 = vmul.f32 %v3360_v52, %v7619_v59  ;;  %v3362_v53 = vmul.f32 %v3360_v52, %v7629_v61 }
 0x3a7   : > { %3331 = vrot.lane.b32.xlu1 %v3323_v58, %s5533_s19  ;;  %3347 = vrot.lane.b32.xlu0 %v3341_v14, %s5533_s19  ;;  %v3447_v58 = vstv %s7897_s22  ;;  %v7935_v14 = vld [vmem:[#allocation2 + $0x32] sm:$0xff]  ;;  %s5329_s22 = sld [smem:[#allocation3 + $0xb6]] }
 0x3a8   : > { %v7908_v34 = vadd.f32 %v3014_v43, %v2890_v54  ;;  %v7910_v41 = vadd.f32 %v3015_v63, %v2891_v8  ;;  %v2770_v8 = vadd.f32 %v7786_v27, %v7659_v10  ;;  %v2771_v43 = vadd.f32 %v7788_v42, %v7661_v50 }
 0x3a9   : > { %v2901_v36 = vpop.permute.xlu1 %2900  ;;  %v2903_v11 = vpop.permute.xlu0 %2902  ;;  %v3030_v50 = vmul.f32 %v3028_v20, %v7629_v61  ;;  %v3031_v42 = vmul.f32 %v3028_v20, %v7644_v23 }
 0x3aa   : > { %v2909_v56 = vadd.f32 %v2901_v36, %v2749_v55  ;;  %v2910_v19 = vadd.f32 %v2903_v11, %v2750_v62  ;;  %v3363_v36 = vmul.f32 %v3360_v52, %v7644_v23  ;;  %v3448_v11 = vmul.f32 %v3447_v58, %v7935_v14 }
 0x3ab   : > { %3349 = vrot.lane.b32.xlu1 %v3342_v13, %s5533_s19  ;;  %3351 = vrot.lane.b32.xlu0 %v3343_v60, %s5533_s19  ;;  %v7957_v13 = vld [vmem:[#allocation2 + $0x3a] sm:$0xff]  ;;  %v3450_v60 = vmul.f32 %v3447_v58, %v7943_v24  ;;  %v3036_v52 = vstv %s7920_s23  ;;  %s8196_s23 = sld [smem:[#allocation3 + $0xdf]] }
 0x3ac   : > { %v7926_v18 = vadd.f32 %v3021_v29, %v2909_v56  ;;  %v7928_v49 = vadd.f32 %v3022_v7, %v2910_v19  ;;  %v2789_v56 = vadd.f32 %v7794_v5, %v7677_v15  ;;  %v2790_v19 = vadd.f32 %v7796_v45, %v7679_v9 }
 0x3ad   : > { %v2905_v30 = vpop.permute.xlu1 %2904  ;;  %v2921_v47 = vpop.permute.xlu0 %2920  ;;  %v3044_v15 = vstv %s7941_s25  ;;  %v2791_v9 = vadd.f32 %v7802_v26, %v7696_v31  ;;  %v2809_v5 = vadd.f32 %v7804_v22, %v7698_v2  ;;  %v3039_v31 = vmul.f32 %v3036_v52, %v7644_v23  ;;  %s5358_s25 = sld [smem:[#allocation3 + $0xe8]] }
 0x3ae   : > { %v2911_v54 = vadd.f32 %v2905_v30, %v2751_v0  ;;  %v2929_v17 = vadd.f32 %v2921_v47, %v2769_v6  ;;  %v3449_v6 = vmul.f32 %v3447_v58, %v7957_v13  ;;  %v3467_v30 = vstv %s7933_s24  ;;  %s5330_s24 = sld [smem:[#allocation3 + $0xbf]] }
 0x3af   : > { %3367 = vrot.lane.b32.xlu1 %v3361_v1, %s5533_s19  ;;  %3369 = vrot.lane.b32.xlu0 %v3362_v53, %s5533_s19  ;;  %v3037_v53 = vmul.f32 %v3036_v52, %v7619_v59  ;;  %v3045_v26 = vmul.f32 %v3044_v15, %v7619_v59  ;;  %v3470_v2 = vmul.f32 %v3467_v30, %v7943_v24 }
 0x3b0   : > { %v7949_v63 = vadd.f32 %v3023_v21, %v2911_v54  ;;  %v7951_v25 = vadd.f32 %v3029_v48, %v2929_v17  ;;  %v3038_v54 = vmul.f32 %v3036_v52, %v7629_v61  ;;  %v3468_v48 = vmul.f32 %v3467_v30, %v7935_v14 }
 0x3b1   : > { %v2923_v55 = vpop.permute.xlu1 %2922  ;;  %v2925_v62 = vpop.permute.xlu0 %2924  ;;  %v2810_v22 = vadd.f32 %v7810_v35, %v7713_v37  ;;  %v2829_v35 = vadd.f32 %v7818_v28, %v7725_v44  ;;  %v9500_v44 = vld [vmem:[#allocation11_spill] sm:$0xff] }
 0x3b2   : > { %v2930_v10 = vadd.f32 %v2923_v55, %v2770_v8  ;;  %v2931_v27 = vadd.f32 %v2925_v62, %v2771_v43  ;;  %v3469_v8 = vmul.f32 %v3467_v30, %v7957_v13  ;;  %v3487_v43 = vstv %s7955_s26  ;;  %s5331_s26 = sld [smem:[#allocation3 + $0xc8]] }
 0x3b3   : > { %3371 = vrot.lane.b32.xlu1 %v3363_v36, %s5533_s19  ;;  %3454 = vrot.lane.b32.xlu0 %v3448_v11, %s5532_s8  ;;  %v2811_v36 = vadd.f32 %v7812_v39, %v7715_v4  ;;  %v3490_v37 = vmul.f32 %v3487_v43, %v7943_v24  ;;  %v3052_v4 = vstv %s7980_s27  ;;  %v2830_v39 = vadd.f32 %v7820_v51, %v7727_v46  ;;  %s5359_s27 = sld [smem:[#allocation3 + $0xf1]] }
 0x3b4   : > { %v7969_v29 = vadd.f32 %v3030_v50, %v2930_v10  ;;  %v7971_v7 = vadd.f32 %v3031_v42, %v2931_v27  ;;  %v3488_v42 = vmul.f32 %v3487_v43, %v7935_v14  ;;  %v2831_v46 = vadd.f32 %v9500_v44, %v7736_v57 }
 0x3b5   : > { %v2941_v0 = vpop.permute.xlu1 %2940  ;;  %v2943_v20 = vpop.permute.xlu0 %2942 }
 0x3b6   : > { %v2949_v47 = vadd.f32 %v2941_v0, %v2789_v56  ;;  %v2950_v1 = vadd.f32 %v2943_v20, %v2790_v19  ;;  %v3046_v56 = vmul.f32 %v3044_v15, %v7629_v61  ;;  %v3047_v19 = vmul.f32 %v3044_v15, %v7644_v23 }
 0x3b7   : > { %3456 = vrot.lane.b32.xlu1 %v3449_v6, %s5532_s8  ;;  %3458 = vrot.lane.b32.xlu0 %v3450_v60, %s5532_s8  ;;  %v3053_v15 = vmul.f32 %v3052_v4, %v7619_v59 }
 0x3b8   : > { %v7986_v45 = vadd.f32 %v3037_v53, %v2949_v47  ;;  %v7988_v58 = vadd.f32 %v3038_v54, %v2950_v1  ;;  %v3489_v47 = vmul.f32 %v3487_v43, %v7957_v13  ;;  %v3507_v1 = vstv %s7993_s28  ;;  %s5332_s28 = sld [smem:[#allocation3 + $0xd1]] }
 0x3b9   : > { %v2945_v17 = vpop.permute.xlu1 %2944  ;;  %v2961_v21 = vpop.permute.xlu0 %2960  ;;  %v3509_v59 = vmul.f32 %v3507_v1, %v7957_v13  ;;  %v3510_v57 = vmul.f32 %v3507_v1, %v7943_v24 }
 0x3ba   : > { %v2951_v55 = vadd.f32 %v2945_v17, %v2791_v9  ;;  %v2969_v62 = vadd.f32 %v2961_v21, %v2809_v5  ;;  %v3054_v9 = vmul.f32 %v3052_v4, %v7629_v61  ;;  %v3508_v21 = vmul.f32 %v3507_v1, %v7935_v14 }
 0x3bb   : > { %3474 = vrot.lane.b32.xlu1 %v3468_v48, %s5532_s8  ;;  %3476 = vrot.lane.b32.xlu0 %v3469_v8, %s5532_s8  ;;  %v3527_v61 = vstv %s5337_s29  ;;  %v3055_v8 = vmul.f32 %v3052_v4, %v7644_v23  ;;  %s5360_s29 = sld [smem:[#allocation3 + $0xfa]] }
 0x3bc   : > { %v8004_v11 = vadd.f32 %v3039_v31, %v2951_v55  ;;  %v8006_v10 = vadd.f32 %v3045_v26, %v2969_v62  ;;  %v3528_v31 = vmul.f32 %v3527_v61, %v7935_v14  ;;  %v3530_v23 = vmul.f32 %v3527_v61, %v7943_v24 }
 0x3bd   : > { %v2963_v27 = vpop.permute.xlu1 %2962  ;;  %v2965_v50 = vpop.permute.xlu0 %2964 }
 0x3be   : > { %v2970_v60 = vadd.f32 %v2963_v27, %v2810_v22  ;;  %v2971_v52 = vadd.f32 %v2965_v50, %v2811_v36  ;;  %v3529_v22 = vmul.f32 %v3527_v61, %v7957_v13  ;;  %v3547_v36 = vstv %s5338_s30  ;;  %s5361_s30 = sld [smem:[#allocation3 + $0x103]] }
 0x3bf   : > { %3478 = vrot.lane.b32.xlu1 %v3470_v2, %s5532_s8  ;;  %3494 = vrot.lane.b32.xlu0 %v3488_v42, %s5532_s8  ;;  %v3548_v42 = vmul.f32 %v3547_v36, %v7935_v14 }
 0x3c0   : > { %v8019_v0 = vadd.f32 %v3046_v56, %v2970_v60  ;;  %v8021_v20 = vadd.f32 %v3047_v19, %v2971_v52  ;;  %v3549_v60 = vmul.f32 %v3547_v36, %v7957_v13  ;;  %v3567_v52 = vstv %s5339_s4  ;;  %s5362_s4 = sld [smem:[#allocation3 + $0x10c]] }
 0x3c1   : > { %v2981_v6 = vpop.permute.xlu1 %2980  ;;  %v2983_v30 = vpop.permute.xlu0 %2982  ;;  %v3550_v56 = vmul.f32 %v3547_v36, %v7943_v24  ;;  %v3568_v4 = vmul.f32 %v3567_v52, %v7935_v14 }
 0x3c2   : > { %9499 = vst [vmem:[#allocation14_spill] sm:$0xff] %v8021_v20  ;;  %v2989_v53 = vadd.f32 %v2981_v6, %v2829_v35  ;;  %v2990_v54 = vadd.f32 %v2983_v30, %v2830_v39  ;;  %v3570_v35 = vmul.f32 %v3567_v52, %v7943_v24  ;;  %v3569_v30 = vmul.f32 %v3567_v52, %v7957_v13 }
 0x3c3   : > { %3496 = vrot.lane.b32.xlu1 %v3489_v47, %s5532_s8  ;;  %3498 = vrot.lane.b32.xlu0 %v3490_v37, %s5532_s8  ;;  %v3587_v47 = vstv %s5340_s5  ;;  %s5363_s5 = sld [smem:[#allocation3 + $0x115]] }
 0x3c4   : > { %v8031_v28 = vadd.f32 %v3053_v15, %v2989_v53  ;;  %v8033_v51 = vadd.f32 %v3054_v9, %v2990_v54  ;;  %v3588_v54 = vmul.f32 %v3587_v47, %v7935_v14  ;;  %v3589_v15 = vmul.f32 %v3587_v47, %v7957_v13 }
 0x3c5   : > { %v2985_v5 = vpop.permute.xlu1 %2984  ;;  %v8035_v17 = vpop.permute.xlu0 %3067  ;;  %v3607_v9 = vstv %s5341_s6  ;;  %v3590_v44 = vmul.f32 %v3587_v47, %v7943_v24  ;;  %s5364_s6 = sld [smem:[#allocation3 + $0x11e]] }
 0x3c6   : > { %v2991_v48 = vadd.f32 %v2985_v5, %v2831_v46 }
 0x3c7   : > { %3514 = vrot.lane.b32.xlu1 %v3508_v21, %s5532_s8  ;;  %3516 = vrot.lane.b32.xlu0 %v3509_v59, %s5532_s8  ;;  %v3608_v21 = vmul.f32 %v3607_v9, %v7935_v14  ;;  %v3610_v59 = vmul.f32 %v3607_v9, %v7943_v24 }
 0x3c8   : > { %v8043_v43 = vadd.f32 %v3055_v8, %v2991_v48  ;;  %v3609_v8 = vmul.f32 %v3607_v9, %v7957_v13  ;;  %v8132_v9 = vstv %s5325_s11  ;;  %s5368_s11 = sld [smem:[#allocation3 + $0xf9]] }
 0x3c9   : > { %v8045_v55 = vpop.permute.xlu1 %3069  ;;  %v8047_v62 = vpop.permute.xlu0 %3071 }
 0x3ca   : > { %9501 = vst [vmem:[#allocation27_spill] sm:$0xff] %v8043_v43 }
 0x3cb   : > { %3518 = vrot.lane.b32.xlu1 %v3510_v57, %s5532_s8  ;;  %3534 = vrot.lane.b32.xlu0 %v3528_v31, %s5532_s8  ;;  %v3627_v57 = vstv %s5342_s7  ;;  %s5365_s7 = sld [smem:[#allocation3 + $0xde]] }
 0x3cc   : > { %v3629_v36 = vmul.f32 %v3627_v57, %v7957_v13 }
 0x3cd   : > { %v8053_v26 = vpop.permute.xlu1 %3087  ;;  %v8055_v2 = vpop.permute.xlu0 %3089 }
 0x3cf   : > { %3536 = vrot.lane.b32.xlu1 %v3529_v22, %s5532_s8  ;;  %3538 = vrot.lane.b32.xlu0 %v3530_v23, %s5532_s8  ;;  %v3628_v22 = vmul.f32 %v3627_v57, %v7935_v14 }
 0x3d1   : > { %v8060_v27 = vpop.permute.xlu1 %3091  ;;  %v8062_v50 = vpop.permute.xlu0 %3107 }
 0x3d3   : > { %3554 = vrot.lane.b32.xlu1 %v3548_v42, %s5532_s8  ;;  %3556 = vrot.lane.b32.xlu0 %v3549_v60, %s5532_s8  ;;  %v3647_v42 = vstv %s5343_s9  ;;  %v3630_v60 = vmul.f32 %v3627_v57, %v7943_v24  ;;  %s5366_s9 = sld [smem:[#allocation3 + $0xe7]] }
 0x3d5   : > { %v8069_v19 = vpop.permute.xlu1 %3109  ;;  %v8071_v37 = vpop.permute.xlu0 %3111 }
 0x3d7   : > { %3558 = vrot.lane.b32.xlu1 %v3550_v56, %s5532_s8  ;;  %3574 = vrot.lane.b32.xlu0 %v3568_v4, %s5532_s8  ;;  %v3648_v4 = vmul.f32 %v3647_v42, %v7935_v14 }
 0x3d9   : > { %v8077_v39 = vpop.permute.xlu1 %3127  ;;  %v8079_v6 = vpop.permute.xlu0 %3129 }
 0x3db   : > { %3576 = vrot.lane.b32.xlu1 %v3569_v30, %s5532_s8  ;;  %3578 = vrot.lane.b32.xlu0 %v3570_v35, %s5532_s8  ;;  %v3650_v35 = vmul.f32 %v3647_v42, %v7943_v24 }
 0x3dd   : > { %v8084_v1 = vpop.permute.xlu1 %3131  ;;  %v8086_v53 = vpop.permute.xlu0 %3147 }
 0x3df   : > { %3594 = vrot.lane.b32.xlu1 %v3588_v54, %s5532_s8  ;;  %3596 = vrot.lane.b32.xlu0 %v3589_v15, %s5532_s8  ;;  %v3649_v54 = vmul.f32 %v3647_v42, %v7957_v13  ;;  %v3667_v15 = vstv %s5344_s10  ;;  %v3384_v42 = vmul.f32 %v8132_v9, %v7935_v14  ;;  %s5367_s10 = sld [smem:[#allocation3 + $0xf0]] }
 0x3e0   : > { %v3669_v57 = vmul.f32 %v3667_v15, %v7957_v13 }
 0x3e1   : > { %v8093_v46 = vpop.permute.xlu1 %3149  ;;  %v8095_v5 = vpop.permute.xlu0 %3151 }
 0x3e3   : > { %3598 = vrot.lane.b32.xlu1 %v3590_v44, %s5532_s8  ;;  %3614 = vrot.lane.b32.xlu0 %v3608_v21, %s5533_s19  ;;  %v3076_v44 = vadd.f32 %v8035_v17, %v7841_v38  ;;  %v3077_v38 = vadd.f32 %v8045_v55, %v7855_v3  ;;  %v3096_v3 = vadd.f32 %v8053_v26, %v7872_v32  ;;  %v8172_v32 = vstv %s5327_s17  ;;  %s8420_s17 = sld [smem:[#allocation3 + $0x10b]] }
 0x3e4   : > { %v3097_v55 = vadd.f32 %v8055_v2, %v7874_v33  ;;  %v3116_v33 = vadd.f32 %v8062_v50, %v7893_v12 }
 0x3e5   : > { %v8101_v48 = vpop.permute.xlu1 %3167  ;;  %v8103_v61 = vpop.permute.xlu0 %3169 }
 0x3e7   : > { %3616 = vrot.lane.b32.xlu1 %v3609_v8, %s5533_s19  ;;  %3618 = vrot.lane.b32.xlu0 %v3610_v59, %s5533_s19  ;;  %v3668_v8 = vmul.f32 %v3667_v15, %v7935_v14 }
 0x3e9   : > { %v8108_v31 = vpop.permute.xlu1 %3171  ;;  %v8110_v23 = vpop.permute.xlu0 %3187 }
 0x3eb   : > { %3634 = vrot.lane.b32.xlu1 %v3628_v22, %s5533_s19  ;;  %3636 = vrot.lane.b32.xlu0 %v3629_v36, %s5533_s19  ;;  %v3687_v36 = vstv %s5345_s14  ;;  %s5349_s14 = sld [smem:[#allocation3 + $0xe0]] }
 0x3ed   : > { %v8117_v52 = vpop.permute.xlu1 %3189  ;;  %v8119_v56 = vpop.permute.xlu0 %3191 }
 0x3ee   : > { %9502 = vst [vmem:[#allocation16_spill] sm:$0xff] %v8119_v56  ;;  %v3854_v56 = vstv %s5358_s25  ;;  %s8533_s25 = sld [smem:[#allocation3 + $0x10d]] }
 0x3ef   : > { %3638 = vrot.lane.b32.xlu1 %v3630_v60, %s5533_s19  ;;  %3654 = vrot.lane.b32.xlu0 %v3648_v4, %s5533_s19  ;;  %v3670_v60 = vmul.f32 %v3667_v15, %v7943_v24  ;;  %v3690_v15 = vmul.f32 %v3687_v36, %v7943_v24 }
 0x3f1   : > { %v8125_v30 = vpop.permute.xlu1 %3207  ;;  %v8127_v47 = vpop.permute.xlu0 %3209 }
 0x3f3   : > { %3656 = vrot.lane.b32.xlu1 %v3649_v54, %s5533_s19  ;;  %3658 = vrot.lane.b32.xlu0 %v3650_v35, %s5533_s19  ;;  %v3688_v54 = vmul.f32 %v3687_v36, %v7935_v14 }
 0x3f5   : > { %v8136_v21 = vpop.permute.xlu1 %3211  ;;  %v3228_v59 = vpop.permute.xlu0 %3227 }
 0x3f6   : > { %9503 = vst [vmem:[#allocation21_spill] sm:$0xff] %v8136_v21  ;;  %v3236_v22 = vadd.f32 %v3228_v59, %v3076_v44  ;;  %v3385_v59 = vmul.f32 %v8132_v9, %v7957_v13 }
 0x3f7   : > { %3674 = vrot.lane.b32.xlu1 %v3668_v8, %s5533_s19  ;;  %3676 = vrot.lane.b32.xlu0 %v3669_v57, %s5533_s19  ;;  %v8157_v8 = vstv %s5326_s15  ;;  %s5369_s15 = sld [smem:[#allocation3 + $0x102]] }
 0x3f8   : > { %v8147_v17 = vadd.f32 %v3384_v42, %v3236_v22  ;;  %v3393_v43 = vmul.f32 %v8157_v8, %v7957_v13 }
 0x3f9   : > { %v3230_v4 = vpop.permute.xlu1 %3229  ;;  %v8149_v35 = vpop.permute.xlu0 %3231 }
 0x3fa   : > { %v3237_v44 = vadd.f32 %v3230_v4, %v3077_v38  ;;  %v3689_v38 = vmul.f32 %v3687_v36, %v7957_v13  ;;  %v3707_v4 = vstv %s5346_s16  ;;  %s8413_s16 = sld [smem:[#allocation3 + $0xe9]] }
 0x3fb   : > { %3678 = vrot.lane.b32.xlu1 %v3670_v60, %s5533_s19  ;;  %3694 = vrot.lane.b32.xlu0 %v3688_v54, %s5533_s19  ;;  %v3392_v54 = vmul.f32 %v8157_v8, %v7935_v14  ;;  %v3710_v12 = vmul.f32 %v3707_v4, %v7943_v24 }
 0x3fc   : > { %v8163_v57 = vadd.f32 %v3385_v59, %v3237_v44  ;;  %v3708_v59 = vmul.f32 %v3707_v4, %v7935_v14 }
 0x3fd   : > { %v3248_v22 = vpop.permute.xlu1 %3247  ;;  %v3250_v42 = vpop.permute.xlu0 %3249 }
 0x3fe   : > { %v3256_v60 = vadd.f32 %v3248_v22, %v3096_v3  ;;  %v3257_v21 = vadd.f32 %v3250_v42, %v3097_v55  ;;  %v3709_v3 = vmul.f32 %v3707_v4, %v7957_v13  ;;  %v3400_v22 = vmul.f32 %v8172_v32, %v7935_v14 }
 0x3ff   : > { %3696 = vrot.lane.b32.xlu1 %v3689_v38, %s5533_s19  ;;  %3698 = vrot.lane.b32.xlu0 %v3690_v15, %s5533_s19  ;;  %v3727_v15 = vstv %s5347_s18  ;;  %s8432_s18 = sld [smem:[#allocation3 + $0xf2]] }
 0x400   : > { %v8176_v26 = vadd.f32 %v3392_v54, %v3256_v60  ;;  %v8178_v2 = vadd.f32 %v3393_v43, %v3257_v21  ;;  %v3117_v43 = vadd.f32 %v8069_v19, %v7908_v34  ;;  %v3728_v38 = vmul.f32 %v3727_v15, %v7935_v14 }
 0x401   : > { %v8180_v36 = vpop.permute.xlu1 %3251  ;;  %v3268_v44 = vpop.permute.xlu0 %3267  ;;  %v3401_v54 = vmul.f32 %v8172_v32, %v7957_v13  ;;  %v3730_v4 = vmul.f32 %v3727_v15, %v7943_v24  ;;  %v8203_v34 = vstv %s5328_s20  ;;  %v3136_v19 = vadd.f32 %v8077_v39, %v7926_v18  ;;  %s8442_s20 = sld [smem:[#allocation3 + $0x114]] }
 0x402   : > { %v3276_v55 = vadd.f32 %v3268_v44, %v3116_v33  ;;  %v3137_v33 = vadd.f32 %v8079_v6, %v7928_v49  ;;  %v8218_v18 = vstv %s5329_s22  ;;  %v3156_v49 = vadd.f32 %v8086_v53, %v7951_v25  ;;  %s8474_s22 = sld [smem:[#allocation3 + $0x11d]] }
 0x403   : > { %3714 = vrot.lane.b32.xlu1 %v3708_v59, %s5533_s19  ;;  %3716 = vrot.lane.b32.xlu0 %v3709_v3, %s5533_s19  ;;  %v3157_v53 = vadd.f32 %v8093_v46, %v7969_v29  ;;  %v8253_v29 = vstv %s5330_s24  ;;  %v3176_v46 = vadd.f32 %v8101_v48, %v7986_v45  ;;  %v3196_v48 = vadd.f32 %v8110_v23, %v8006_v10  ;;  %s8504_s24 = sld [smem:[#allocation3 + $0xdc]] }
 0x404   : > { %v8191_v50 = vadd.f32 %v3400_v22, %v3276_v55  ;;  %v3729_v55 = vmul.f32 %v3727_v15, %v7957_v13  ;;  %v3747_v22 = vstv %s5348_s21  ;;  %v3425_v45 = vmul.f32 %v8253_v29, %v7957_v13  ;;  %s8469_s21 = sld [smem:[#allocation3 + $0xfb]] }
 0x405   : > { %v3270_v21 = vpop.permute.xlu1 %3269  ;;  %v8193_v42 = vpop.permute.xlu0 %3271  ;;  %v3750_v25 = vmul.f32 %v3747_v22, %v7943_v24  ;;  %v3197_v10 = vadd.f32 %v8117_v52, %v8019_v0  ;;  %v3216_v0 = vadd.f32 %v8125_v30, %v8031_v28  ;;  %v3217_v52 = vadd.f32 %v8127_v47, %v8033_v51 }
 0x406   : > { %v3277_v60 = vadd.f32 %v3270_v21, %v3117_v43  ;;  %v3408_v21 = vmul.f32 %v8203_v34, %v7935_v14 }
 0x407   : > { %3718 = vrot.lane.b32.xlu1 %v3710_v12, %s5533_s19  ;;  %3734 = vrot.lane.b32.xlu0 %v3728_v38, %s5533_s19  ;;  %v3409_v38 = vmul.f32 %v8203_v34, %v7957_v13 }
 0x408   : > { %v8209_v44 = vadd.f32 %v3401_v54, %v3277_v60  ;;  %v3748_v54 = vmul.f32 %v3747_v22, %v7935_v14 }
 0x409   : > { %v3288_v59 = vpop.permute.xlu1 %3287  ;;  %v3290_v3 = vpop.permute.xlu0 %3289 }
 0x40a   : > { %v3296_v12 = vadd.f32 %v3288_v59, %v3136_v19  ;;  %v3297_v43 = vadd.f32 %v3290_v3, %v3137_v33  ;;  %v3749_v19 = vmul.f32 %v3747_v22, %v7957_v13  ;;  %v8230_v33 = vld [vmem:[#allocation2 + $0x48] sm:$0xff]  ;;  %v3834_v59 = vstv %s8196_s23  ;;  %s8494_s23 = sld [smem:[#allocation3 + $0x104]] }
 0x40b   : > { %3736 = vrot.lane.b32.xlu1 %v3729_v55, %s5533_s19  ;;  %3738 = vrot.lane.b32.xlu0 %v3730_v4, %s5533_s19  ;;  %v3416_v3 = vmul.f32 %v8218_v18, %v7935_v14  ;;  %v3417_v22 = vmul.f32 %v8218_v18, %v7957_v13 }
 0x40c   : > { %v8222_v39 = vadd.f32 %v3408_v21, %v3296_v12  ;;  %v8224_v6 = vadd.f32 %v3409_v38, %v3297_v43  ;;  %v3835_v21 = vmul.f32 %v3834_v59, %v8230_v33  ;;  %v8245_v38 = vld [vmem:[#allocation2 + $0x50] sm:$0xff] }
 0x40d   : > { %v8226_v15 = vpop.permute.xlu1 %3291  ;;  %v3308_v60 = vpop.permute.xlu0 %3307 }
 0x40e   : > { %v3316_v4 = vadd.f32 %v3308_v60, %v3156_v49  ;;  %v8247_v49 = vld [vmem:[#allocation2 + $0x58] sm:$0x3] }
 0x40f   : > { %3754 = vrot.lane.b32.xlu1 %v3748_v54, %s5533_s19  ;;  %3756 = vrot.lane.b32.xlu0 %v3749_v19, %s5533_s19  ;;  %v3177_v54 = vadd.f32 %v8103_v61, %v7988_v58  ;;  %v8269_v58 = vstv %s5331_s26  ;;  %s8549_s26 = sld [smem:[#allocation3 + $0xe5]] }
 0x410   : > { %v8240_v55 = vadd.f32 %v3416_v3, %v3316_v4  ;;  %9504 = vst [vmem:[#allocation13_spill] sm:$0xff] %v8269_v58 }
 0x411   : > { %v3310_v12 = vpop.permute.xlu1 %3309  ;;  %v8242_v43 = vpop.permute.xlu0 %3311 }
 0x412   : > { %v3317_v60 = vadd.f32 %v3310_v12, %v3157_v53  ;;  %v3836_v53 = vmul.f32 %v3834_v59, %v8245_v38  ;;  %v3837_v12 = vmul.f32 %v3834_v59, %v8247_v49 }
 0x413   : > { %3758 = vrot.lane.b32.xlu1 %v3750_v25, %s5533_s19  ;;  %3841 = vrot.lane.b32.xlu0 %v3835_v21, %s5532_s8  ;;  %v3424_v21 = vmul.f32 %v8253_v29, %v7935_v14 }
 0x414   : > { %v8259_v19 = vadd.f32 %v3417_v22, %v3317_v60 }
 0x415   : > { %v3328_v4 = vpop.permute.xlu1 %3327  ;;  %v3330_v3 = vpop.permute.xlu0 %3329 }
 0x416   : > { %v3336_v25 = vadd.f32 %v3328_v4, %v3176_v46  ;;  %v3337_v20 = vadd.f32 %v3330_v3, %v3177_v54  ;;  %v3855_v46 = vmul.f32 %v3854_v56, %v8230_v33  ;;  %v3856_v54 = vmul.f32 %v3854_v56, %v8245_v38 }
 0x417   : > { %3843 = vrot.lane.b32.xlu1 %v3836_v53, %s5532_s8  ;;  %3845 = vrot.lane.b32.xlu0 %v3837_v12, %s5532_s8  ;;  %v3874_v3 = vstv %s5359_s27  ;;  %v3432_v53 = vmul.f32 %v8269_v58, %v7935_v14  ;;  %s8560_s27 = sld [smem:[#allocation3 + $0x116]] }
 0x418   : > { %v8273_v61 = vadd.f32 %v3424_v21, %v3336_v25  ;;  %v8275_v59 = vadd.f32 %v3425_v45, %v3337_v20  ;;  %v3857_v25 = vmul.f32 %v3854_v56, %v8247_v49  ;;  %v3875_v21 = vmul.f32 %v3874_v3, %v8230_v33 }
 0x419   : > { %v8277_v60 = vpop.permute.xlu1 %3331  ;;  %v3348_v22 = vpop.permute.xlu0 %3347 }
 0x41a   : > { %9505 = vst [vmem:[#allocation15_spill] sm:$0xff] %v8275_v59  ;;  %v3356_v4 = vadd.f32 %v3348_v22, %v3196_v48  ;;  %v3433_v48 = vmul.f32 %v8269_v58, %v7957_v13  ;;  %v8297_v22 = vstv %s5332_s28  ;;  %v4014_v58 = vstv %s5366_s9  ;;  %s8574_s28 = sld [smem:[#allocation3 + $0xee]] }
 0x41b   : > { %3861 = vrot.lane.b32.xlu1 %v3855_v46, %s5532_s8  ;;  %3863 = vrot.lane.b32.xlu0 %v3856_v54, %s5532_s8  ;;  %9508 = vst [vmem:[#allocation19_spill] sm:$0xff] %v8297_v22  ;;  %v3441_v28 = vmul.f32 %v8297_v22, %v7957_v13  ;;  %s5389_s9 = sld [smem:[#allocation3 + $0xdb]] }
 0x41c   : > { %v8287_v20 = vadd.f32 %v3432_v53, %v3356_v4  ;;  %v3876_v4 = vmul.f32 %v3874_v3, %v8245_v38  ;;  %v3877_v53 = vmul.f32 %v3874_v3, %v8247_v49 }
 0x41d   : > { %v3350_v23 = vpop.permute.xlu1 %3349  ;;  %v8289_v12 = vpop.permute.xlu0 %3351 }
 0x41e   : > { %9506 = vst [vmem:[#allocation17_spill] sm:$0xff] %v8287_v20  ;;  %9507 = vst [vmem:[#allocation24_spill] sm:$0xff] %v8289_v12  ;;  %v3357_v45 = vadd.f32 %v3350_v23, %v3197_v10  ;;  %v3894_v10 = vstv %s5360_s29  ;;  %s8601_s29 = sld [smem:[#allocation3 + $0x11f]] }
 0x41f   : > { %3865 = vrot.lane.b32.xlu1 %v3857_v25, %s5532_s8  ;;  %3881 = vrot.lane.b32.xlu0 %v3875_v21, %s5532_s8  ;;  %v3440_v21 = vmul.f32 %v8297_v22, %v7935_v14  ;;  %v3914_v14 = vstv %s5361_s30  ;;  %s8617_s30 = sld [smem:[#allocation3 + $0xf7]] }
 0x420   : > { %v8303_v56 = vadd.f32 %v3433_v48, %v3357_v45  ;;  %v3895_v45 = vmul.f32 %v3894_v10, %v8230_v33  ;;  %v3896_v48 = vmul.f32 %v3894_v10, %v8245_v38 }
 0x421   : > { %v3368_v46 = vpop.permute.xlu1 %3367  ;;  %v3370_v54 = vpop.permute.xlu0 %3369 }
 0x422   : > { %9509 = vst [vmem:[#allocation22_spill] sm:$0xff] %v8303_v56  ;;  %v3376_v23 = vadd.f32 %v3368_v46, %v3216_v0  ;;  %v3377_v25 = vadd.f32 %v3370_v54, %v3217_v52  ;;  %v3897_v52 = vmul.f32 %v3894_v10, %v8247_v49  ;;  %v3915_v46 = vmul.f32 %v3914_v14, %v8230_v33 }
 0x423   : > { %3883 = vrot.lane.b32.xlu1 %v3876_v4, %s5532_s8  ;;  %3885 = vrot.lane.b32.xlu0 %v3877_v53, %s5532_s8  ;;  %v3916_v53 = vmul.f32 %v3914_v14, %v8245_v38 }
 0x424   : > { %v8313_v51 = vadd.f32 %v3440_v21, %v3376_v23  ;;  %v8315_v30 = vadd.f32 %v3441_v28, %v3377_v25  ;;  %v3917_v23 = vmul.f32 %v3914_v14, %v8247_v49  ;;  %v3934_v25 = vstv %s5362_s4  ;;  %s5385_s4 = sld [smem:[#allocation3 + $0x100]] }
 0x425   : > { %v8317_v47 = vpop.permute.xlu1 %3371  ;;  %v8319_v3 = vpop.permute.xlu0 %3454  ;;  %v3935_v28 = vmul.f32 %v3934_v25, %v8230_v33 }
 0x426   : > { %9510 = vst [vmem:[#allocation23_spill] sm:$0xff] %v8313_v51  ;;  %9511 = vst [vmem:[#allocation10_spill] sm:$0xff] %v8315_v30  ;;  %v3974_v51 = vstv %s5364_s6  ;;  %s5387_s6 = sld [smem:[#allocation3 + $0x112]] }
 0x427   : > { %9512 = vst [vmem:[#allocation28_spill] sm:$0xff] %v8317_v47  ;;  %3901 = vrot.lane.b32.xlu1 %v3895_v45, %s5532_s8  ;;  %3903 = vrot.lane.b32.xlu0 %v3896_v48, %s5532_s8  ;;  %v3936_v45 = vmul.f32 %v3934_v25, %v8245_v38  ;;  %v3954_v48 = vstv %s5363_s5  ;;  %v3994_v47 = vstv %s5365_s7  ;;  %s5386_s5 = sld [smem:[#allocation3 + $0x109]] }
 0x428   : > { %s5388_s7 = sld [smem:[#allocation3 + $0x11b]] }
 0x429   : > { %v8325_v13 = vpop.permute.xlu1 %3456  ;;  %v8327_v0 = vpop.permute.xlu0 %3458 }
 0x42b   : > { %3905 = vrot.lane.b32.xlu1 %v3897_v52, %s5532_s8  ;;  %3921 = vrot.lane.b32.xlu0 %v3915_v46, %s5532_s8  ;;  %v3937_v46 = vmul.f32 %v3934_v25, %v8247_v49 }
 0x42d   : > { %v8333_v54 = vpop.permute.xlu1 %3474  ;;  %v8335_v4 = vpop.permute.xlu0 %3476 }
 0x42f   : > { %3923 = vrot.lane.b32.xlu1 %v3916_v53, %s5532_s8  ;;  %3925 = vrot.lane.b32.xlu0 %v3917_v23, %s5532_s8  ;;  %v3955_v53 = vmul.f32 %v3954_v48, %v8230_v33 }
 0x431   : > { %v8341_v10 = vpop.permute.xlu1 %3478  ;;  %v8343_v21 = vpop.permute.xlu0 %3494 }
 0x433   : > { %3941 = vrot.lane.b32.xlu1 %v3935_v28, %s5532_s8  ;;  %3943 = vrot.lane.b32.xlu0 %v3936_v45, %s5532_s8  ;;  %v3956_v28 = vmul.f32 %v3954_v48, %v8245_v38  ;;  %v3957_v45 = vmul.f32 %v3954_v48, %v8247_v49 }
 0x435   : > { %v8349_v14 = vpop.permute.xlu1 %3496  ;;  %v8351_v52 = vpop.permute.xlu0 %3498 }
 0x437   : > { %3945 = vrot.lane.b32.xlu1 %v3937_v46, %s5532_s8  ;;  %3961 = vrot.lane.b32.xlu0 %v3955_v53, %s5532_s8  ;;  %v3975_v46 = vmul.f32 %v3974_v51, %v8230_v33  ;;  %v3976_v53 = vmul.f32 %v3974_v51, %v8245_v38 }
 0x439   : > { %v8357_v23 = vpop.permute.xlu1 %3514  ;;  %v8359_v30 = vpop.permute.xlu0 %3516 }
 0x43b   : > { %3963 = vrot.lane.b32.xlu1 %v3956_v28, %s5532_s8  ;;  %3965 = vrot.lane.b32.xlu0 %v3957_v45, %s5532_s8  ;;  %v3977_v28 = vmul.f32 %v3974_v51, %v8247_v49  ;;  %v3995_v45 = vmul.f32 %v3994_v47, %v8230_v33 }
 0x43d   : > { %v8365_v25 = vpop.permute.xlu1 %3518  ;;  %v8367_v22 = vpop.permute.xlu0 %3534 }
 0x43f   : > { %3981 = vrot.lane.b32.xlu1 %v3975_v46, %s5532_s8  ;;  %3983 = vrot.lane.b32.xlu0 %v3976_v53, %s5532_s8  ;;  %v3996_v46 = vmul.f32 %v3994_v47, %v8245_v38  ;;  %v3997_v53 = vmul.f32 %v3994_v47, %v8247_v49 }
 0x441   : > { %v8373_v48 = vpop.permute.xlu1 %3536  ;;  %v8375_v56 = vpop.permute.xlu0 %3538 }
 0x443   : > { %3985 = vrot.lane.b32.xlu1 %v3977_v28, %s5532_s8  ;;  %4001 = vrot.lane.b32.xlu0 %v3995_v45, %s5533_s19  ;;  %v4015_v28 = vmul.f32 %v4014_v58, %v8230_v33  ;;  %v4016_v45 = vmul.f32 %v4014_v58, %v8245_v38 }
 0x445   : > { %v8381_v20 = vpop.permute.xlu1 %3554  ;;  %v8383_v12 = vpop.permute.xlu0 %3556 }
 0x446   : > { %9513 = vst [vmem:[#allocation20_spill] sm:$0xff] %v8381_v20  ;;  %9514 = vst [vmem:[#allocation26_spill] sm:$0xff] %v8383_v12  ;;  %v4034_v20 = vstv %s5367_s10  ;;  %v4054_v12 = vstv %s5368_s11  ;;  %s5390_s10 = sld [smem:[#allocation3 + $0xe4]] }
 0x447   : > { %4003 = vrot.lane.b32.xlu1 %v3996_v46, %s5533_s19  ;;  %4005 = vrot.lane.b32.xlu0 %v3997_v53, %s5533_s19  ;;  %v4017_v53 = vmul.f32 %v4014_v58, %v8247_v49  ;;  %s5391_s11 = sld [smem:[#allocation3 + $0xed]] }
 0x449   : > { %v8389_v51 = vpop.permute.xlu1 %3558  ;;  %v8391_v59 = vpop.permute.xlu0 %3574 }
 0x44a   : > { %9515 = vst [vmem:[#allocation25_spill] sm:$0xff] %v8389_v51  ;;  %9516 = vst [vmem:[#allocation12_spill] sm:$0xff] %v8391_v59  ;;  %v4035_v51 = vmul.f32 %v4034_v20, %v8230_v33  ;;  %v3078_v59 = vadd.f32 %v8047_v62, %v7857_v16  ;;  %v3770_v16 = vstv %s5349_s14  ;;  %v3463_v62 = vadd.f32 %v8319_v3, %v8147_v17  ;;  %s5392_s14 = sld [smem:[#allocation3 + $0xf6]] }
 0x44b   : > { %4021 = vrot.lane.b32.xlu1 %v4015_v28, %s5533_s19  ;;  %4023 = vrot.lane.b32.xlu0 %v4016_v45, %s5533_s19  ;;  %v3098_v17 = vadd.f32 %v8060_v27, %v7891_v40  ;;  %v3464_v3 = vadd.f32 %v8325_v13, %v8163_v57  ;;  %v3394_v27 = vmul.f32 %v8157_v8, %v7943_v24 }
 0x44c   : > { %v3238_v58 = vadd.f32 %v8149_v35, %v3078_v59  ;;  %v4056_v35 = vmul.f32 %v4054_v12, %v8245_v38 }
 0x44d   : > { %v8397_v47 = vpop.permute.xlu1 %3576  ;;  %v8399_v46 = vpop.permute.xlu0 %3578  ;;  %v3258_v40 = vadd.f32 %v8180_v36, %v3098_v17  ;;  %v3484_v36 = vadd.f32 %v8335_v4, %v8178_v2 }
 0x44e   : > { %9517 = vst [vmem:[#allocation29_spill] sm:$0xff] %v8397_v47  ;;  %9518 = vst [vmem:[#allocation18_spill] sm:$0xff] %v8399_v46  ;;  %v4036_v47 = vmul.f32 %v4034_v20, %v8245_v38  ;;  %v4037_v46 = vmul.f32 %v4034_v20, %v8247_v49 }
 0x44f   : > { %4025 = vrot.lane.b32.xlu1 %v4017_v53, %s5533_s19  ;;  %4041 = vrot.lane.b32.xlu0 %v4035_v51, %s5533_s19  ;;  %v3386_v53 = vmul.f32 %v8132_v9, %v7943_v24  ;;  %v3397_v2 = vadd.f32 %v3394_v27, %v3258_v40  ;;  %v4114_v40 = vstv %s8442_s20  ;;  %s8768_s20 = sld [smem:[#allocation3 + $0xef]] }
 0x451   : > { %v8407_v28 = vpop.permute.xlu1 %3594  ;;  %v8409_v45 = vpop.permute.xlu0 %3596  ;;  %v3389_v59 = vadd.f32 %v3386_v53, %v3238_v58 }
 0x452   : > { %9519 = vst [vmem:[#allocation30_spill] sm:$0xff] %v8407_v28  ;;  %9520 = vst [vmem:[#allocation9_spill] sm:$0xff] %v8409_v45  ;;  %v4055_v45 = vmul.f32 %v4054_v12, %v8230_v33  ;;  %v4074_v28 = vstv %s5369_s15  ;;  %s5373_s15 = sld [smem:[#allocation3 + $0xdd]] }
 0x453   : > { %4043 = vrot.lane.b32.xlu1 %v4036_v47, %s5533_s19  ;;  %4045 = vrot.lane.b32.xlu0 %v4037_v46, %s5533_s19  ;;  %v3771_v47 = vmul.f32 %v3770_v16, %v8230_v33  ;;  %v4057_v46 = vmul.f32 %v4054_v12, %v8247_v49  ;;  %v3465_v58 = vadd.f32 %v8327_v0, %v3389_v59 }
 0x454   : > { %v3772_v12 = vmul.f32 %v3770_v16, %v8245_v38  ;;  %v3118_v0 = vadd.f32 %v8071_v37, %v7910_v41  ;;  %v4076_v59 = vmul.f32 %v4074_v28, %v8245_v38  ;;  %v3402_v41 = vmul.f32 %v8172_v32, %v7943_v24 }
 0x455   : > { %v8424_v51 = vpop.permute.xlu1 %3598  ;;  %v3615_v20 = vpop.permute.xlu0 %3614  ;;  %v4077_v17 = vmul.f32 %v4074_v28, %v8247_v49  ;;  %v3786_v24 = vstv %s8432_s18  ;;  %v3485_v32 = vadd.f32 %v8341_v10, %v3397_v2  ;;  %v4134_v2 = vstv %s8474_s22  ;;  %s5394_s18 = sld [smem:[#allocation3 + $0x108]] }
 0x456   : > { %9521 = vst [vmem:[#allocation11_spill] sm:$0xff] %v8424_v51  ;;  %v3623_v9 = vadd.f32 %v3615_v20, %v3463_v62  ;;  %v3778_v51 = vstv %s8413_s16  ;;  %v3787_v10 = vmul.f32 %v3786_v24, %v8230_v33  ;;  %s5393_s16 = sld [smem:[#allocation3 + $0xff]] }
 0x457   : > { %4061 = vrot.lane.b32.xlu1 %v4055_v45, %s5533_s19  ;;  %4063 = vrot.lane.b32.xlu0 %v4056_v35, %s5533_s19  ;;  %v4075_v45 = vmul.f32 %v4074_v28, %v8230_v33  ;;  %v3773_v35 = vmul.f32 %v3770_v16, %v8247_v49  ;;  %v3483_v16 = vadd.f32 %v8333_v54, %v8176_v26  ;;  %s8799_s22 = sld [smem:[#allocation3 + $0xf8]] }
 0x458   : > { %v8439_v53 = vadd.f32 %v3771_v47, %v3623_v9  ;;  %v4094_v9 = vstv %s8420_s17  ;;  %v3278_v26 = vadd.f32 %v8193_v42, %v3118_v0  ;;  %v3503_v28 = vadd.f32 %v8343_v21, %v8191_v50  ;;  %s5374_s17 = sld [smem:[#allocation3 + $0xe6]] }
 0x459   : > { %v3617_v62 = vpop.permute.xlu1 %3616  ;;  %v3619_v20 = vpop.permute.xlu0 %3618  ;;  %v3781_v27 = vmul.f32 %v3778_v51, %v8247_v49  ;;  %v3138_v50 = vadd.f32 %v8084_v1, %v7949_v63  ;;  %v4097_v21 = vmul.f32 %v4094_v9, %v8247_v49  ;;  %v4115_v1 = vmul.f32 %v4114_v40, %v8230_v33 }
 0x45a   : > { %v3624_v57 = vadd.f32 %v3617_v62, %v3464_v3  ;;  %v3625_v13 = vadd.f32 %v3619_v20, %v3465_v58  ;;  %v3779_v3 = vmul.f32 %v3778_v51, %v8230_v33  ;;  %v3780_v58 = vmul.f32 %v3778_v51, %v8245_v38 }
 0x45b   : > { %4065 = vrot.lane.b32.xlu1 %v4057_v46, %s5533_s19  ;;  %4081 = vrot.lane.b32.xlu0 %v4075_v45, %s5533_s19  ;;  %v3504_v51 = vadd.f32 %v8349_v14, %v8209_v44  ;;  %v3298_v44 = vadd.f32 %v8226_v15, %v3138_v50  ;;  %v8510_v14 = vld [vmem:[#allocation2 + $0x42] sm:$0x3]  ;;  %v3523_v15 = vadd.f32 %v8357_v23, %v8222_v39  ;;  %v8552_v50 = vld [vmem:[#allocation2 + $0x49] sm:$0xff] }
 0x45c   : > { %v8460_v47 = vadd.f32 %v3772_v12, %v3624_v57  ;;  %v8462_v8 = vadd.f32 %v3773_v35, %v3625_v13  ;;  %v4095_v12 = vmul.f32 %v4094_v9, %v8230_v33  ;;  %v4096_v35 = vmul.f32 %v4094_v9, %v8245_v38 }
 0x45d   : > { %v3635_v37 = vpop.permute.xlu1 %3634  ;;  %v3637_v46 = vpop.permute.xlu0 %3636  ;;  %v3405_v57 = vadd.f32 %v3402_v41, %v3278_v26  ;;  %v3788_v9 = vmul.f32 %v3786_v24, %v8245_v38  ;;  %v4116_v26 = vmul.f32 %v4114_v40, %v8245_v38 }
 0x45e   : > { %v3643_v54 = vadd.f32 %v3635_v37, %v3483_v16  ;;  %v3644_v4 = vadd.f32 %v3637_v46, %v3484_v36  ;;  %v3789_v37 = vmul.f32 %v3786_v24, %v8247_v49  ;;  %v3794_v46 = vstv %s8469_s21  ;;  %s8778_s21 = sld [smem:[#allocation3 + $0x111]] }
 0x45f   : > { %4083 = vrot.lane.b32.xlu1 %v4076_v59, %s5533_s19  ;;  %4085 = vrot.lane.b32.xlu0 %v4077_v17, %s5533_s19  ;;  %v3505_v59 = vadd.f32 %v8351_v52, %v3405_v57  ;;  %v3410_v52 = vmul.f32 %v8510_v14, %v8203_v34 }
 0x460   : > { %v8480_v62 = vadd.f32 %v3779_v3, %v3643_v54  ;;  %v8482_v20 = vadd.f32 %v3780_v58, %v3644_v4  ;;  %v3158_v58 = vadd.f32 %v8095_v5, %v7971_v7  ;;  %v3524_v54 = vadd.f32 %v8359_v30, %v8224_v6 }
 0x461   : > { %v3639_v42 = vpop.permute.xlu1 %3638  ;;  %v3655_v45 = vpop.permute.xlu0 %3654  ;;  %v3418_v7 = vmul.f32 %v8510_v14, %v8218_v18  ;;  %v3413_v6 = vadd.f32 %v3410_v52, %v3298_v44  ;;  %v3802_v18 = vstv %s8494_s23  ;;  %s8812_s23 = sld [smem:[#allocation3 + $0x11a]] }
 0x462   : > { %v3645_v13 = vadd.f32 %v3639_v42, %v3485_v32  ;;  %v3663_v0 = vadd.f32 %v3655_v45, %v3503_v28  ;;  %v4117_v32 = vmul.f32 %v4114_v40, %v8247_v49  ;;  %v3795_v28 = vmul.f32 %v3794_v46, %v8230_v33 }
 0x463   : > { %4101 = vrot.lane.b32.xlu1 %v4095_v12, %s5533_s19  ;;  %4103 = vrot.lane.b32.xlu0 %v4096_v35, %s5533_s19  ;;  %v3796_v42 = vmul.f32 %v3794_v46, %v8245_v38  ;;  %v3318_v39 = vadd.f32 %v8242_v43, %v3158_v58  ;;  %v3525_v45 = vadd.f32 %v8365_v25, %v3413_v6 }
 0x464   : > { %v8499_v16 = vadd.f32 %v3781_v27, %v3645_v13  ;;  %v8501_v36 = vadd.f32 %v3787_v10, %v3663_v0  ;;  %v3543_v12 = vadd.f32 %v8367_v22, %v8240_v55  ;;  %v4135_v43 = vmul.f32 %v4134_v2, %v8230_v33 }
 0x465   : > { %v3657_v41 = vpop.permute.xlu1 %3656  ;;  %v3659_v63 = vpop.permute.xlu0 %3658  ;;  %v4136_v13 = vmul.f32 %v4134_v2, %v8245_v38  ;;  %v4221_v0 = vstv %s8504_s24  ;;  %v3797_v10 = vmul.f32 %v3794_v46, %v8247_v49  ;;  %v3421_v25 = vadd.f32 %v3418_v7, %v3318_v39  ;;  %v9527_v39 = vld [vmem:[#allocation13_spill] sm:$0xff]  ;;  %s8818_s24 = sld [smem:[#allocation3 + $0x101]] }
 0x466   : > { %v3664_v17 = vadd.f32 %v3657_v41, %v3504_v51  ;;  %v3665_v3 = vadd.f32 %v3659_v63, %v3505_v59  ;;  %v3803_v22 = vmul.f32 %v3802_v18, %v8230_v33  ;;  %v3178_v51 = vadd.f32 %v8108_v31, %v8004_v11  ;;  %v8562_v41 = vld [vmem:[#allocation2 + $0x51] sm:$0xff]  ;;  %v8564_v63 = vld [vmem:[#allocation2 + $0x59] sm:$0x3] }
 0x467   : > { %4105 = vrot.lane.b32.xlu1 %v4097_v21, %s5533_s19  ;;  %4121 = vrot.lane.b32.xlu0 %v4115_v1, %s5533_s19  ;;  %v4137_v59 = vmul.f32 %v4134_v2, %v8247_v49  ;;  %v3544_v1 = vadd.f32 %v8373_v48, %v8259_v19  ;;  %v4222_v44 = vmul.f32 %v4221_v0, %v8552_v50  ;;  %v9523_v2 = vld [vmem:[#allocation16_spill] sm:$0xff] }
 0x468   : > { %v8524_v34 = vadd.f32 %v3788_v9, %v3664_v17  ;;  %v8526_v4 = vadd.f32 %v3789_v37, %v3665_v3  ;;  %v3545_v9 = vadd.f32 %v8375_v56, %v3421_v25  ;;  %v3804_v52 = vmul.f32 %v3802_v18, %v8245_v38 }
 0x469   : > { %v3675_v5 = vpop.permute.xlu1 %3674  ;;  %v3677_v24 = vpop.permute.xlu0 %3676  ;;  %v3805_v17 = vmul.f32 %v3802_v18, %v8247_v49  ;;  %v3810_v3 = vstv %s8533_s25  ;;  %v3338_v58 = vadd.f32 %v8277_v60, %v3178_v51  ;;  %v3426_v19 = vmul.f32 %v8510_v14, %v8253_v29  ;;  %s8830_s25 = sld [smem:[#allocation3 + $0xd9]] }
 0x46a   : > { %v3683_v30 = vadd.f32 %v3675_v5, %v3523_v15  ;;  %v3684_v23 = vadd.f32 %v3677_v24, %v3524_v54  ;;  %v4223_v54 = vmul.f32 %v4221_v0, %v8562_v41  ;;  %v4224_v7 = vmul.f32 %v4221_v0, %v8564_v63  ;;  %v9524_v5 = vld [vmem:[#allocation20_spill] sm:$0xff]  ;;  %v9525_v24 = vld [vmem:[#allocation15_spill] sm:$0xff] }
 0x46b   : > { %4123 = vrot.lane.b32.xlu1 %v4116_v26, %s5533_s19  ;;  %4125 = vrot.lane.b32.xlu0 %v4117_v32, %s5533_s19  ;;  %v9522_v26 = vld [vmem:[#allocation14_spill] sm:$0xff]  ;;  %v3563_v60 = vadd.f32 %v9524_v5, %v8273_v61  ;;  %v3434_v6 = vmul.f32 %v8510_v14, %v9527_v39  ;;  %v4241_v18 = vstv %s8549_s26  ;;  %v9528_v61 = vld [vmem:[#allocation24_spill] sm:$0xff]  ;;  %v3818_v0 = vstv %s8560_s27  ;;  %s8853_s26 = sld [smem:[#allocation3 + $0x10a]] }
 0x46c   : > { %v8542_v35 = vadd.f32 %v3795_v28, %v3683_v30  ;;  %v8544_v40 = vadd.f32 %v3796_v42, %v3684_v23  ;;  %v3198_v15 = vadd.f32 %v9523_v2, %v9522_v26  ;;  %v9526_v32 = vld [vmem:[#allocation26_spill] sm:$0xff]  ;;  %v9533_v26 = vld [vmem:[#allocation21_spill] sm:$0xff]  ;;  %s8866_s27 = sld [smem:[#allocation3 + $0xe2]] }
 0x46d   : > { %v3679_v27 = vpop.permute.xlu1 %3678  ;;  %v3695_v57 = vpop.permute.xlu0 %3694  ;;  %v3564_v28 = vadd.f32 %v9526_v32, %v9525_v24 }
 0x46e   : > { %v3685_v21 = vadd.f32 %v3679_v27, %v3525_v45  ;;  %v3703_v55 = vadd.f32 %v3695_v57, %v3543_v12  ;;  %v3811_v45 = vmul.f32 %v3810_v3, %v8230_v33  ;;  %v3812_v12 = vmul.f32 %v3810_v3, %v8245_v38 }
 0x46f   : > { %4141 = vrot.lane.b32.xlu1 %v4135_v43, %s5533_s19  ;;  %4143 = vrot.lane.b32.xlu0 %v4136_v13, %s5533_s19  ;;  %v3358_v27 = vadd.f32 %v9528_v61, %v3198_v15  ;;  %v3429_v57 = vadd.f32 %v3426_v19, %v3338_v58  ;;  %v4244_v15 = vmul.f32 %v4241_v18, %v8564_v63  ;;  %v9538_v61 = vld [vmem:[#allocation19_spill] sm:$0xff] }
 0x470   : > { %v8569_v37 = vadd.f32 %v3797_v10, %v3685_v21  ;;  %v8571_v11 = vadd.f32 %v3803_v22, %v3703_v55  ;;  %v9529_v10 = vld [vmem:[#allocation25_spill] sm:$0xff]  ;;  %v9531_v55 = vld [vmem:[#allocation12_spill] sm:$0xff] }
 0x471   : > { %v3697_v31 = vpop.permute.xlu1 %3696  ;;  %v3699_v46 = vpop.permute.xlu0 %3698  ;;  %v3565_v25 = vadd.f32 %v9529_v10, %v3429_v57  ;;  %v9530_v21 = vld [vmem:[#allocation17_spill] sm:$0xff]  ;;  %v9540_v10 = vld [vmem:[#allocation30_spill] sm:$0xff] }
 0x472   : > { %v3704_v56 = vadd.f32 %v3697_v31, %v3544_v1  ;;  %v3705_v48 = vadd.f32 %v3699_v46, %v3545_v9  ;;  %v3583_v22 = vadd.f32 %v9531_v55, %v9530_v21  ;;  %v4242_v31 = vmul.f32 %v4241_v18, %v8552_v50  ;;  %v9541_v21 = vld [vmem:[#allocation10_spill] sm:$0xff]  ;;  %v9542_v55 = vld [vmem:[#allocation9_spill] sm:$0xff] }
 0x473   : > { %4145 = vrot.lane.b32.xlu1 %v4137_v59, %s5533_s19  ;;  %4228 = vrot.lane.b32.xlu0 %v4222_v44, %s5532_s8  ;;  %v4243_v46 = vmul.f32 %v4241_v18, %v8562_v41  ;;  %v4261_v44 = vstv %s8574_s28  ;;  %s8874_s28 = sld [smem:[#allocation3 + $0x113]] }
 0x474   : > { %v8592_v29 = vadd.f32 %v3804_v52, %v3704_v56  ;;  %v8594_v42 = vadd.f32 %v3805_v17, %v3705_v48  ;;  %v3813_v52 = vmul.f32 %v3810_v3, %v8247_v49  ;;  %v3437_v17 = vadd.f32 %v3434_v6, %v3358_v27  ;;  %v9532_v48 = vld [vmem:[#allocation27_spill] sm:$0xff] }
 0x475   : > { %v3715_v30 = vpop.permute.xlu1 %3714  ;;  %v3717_v23 = vpop.permute.xlu0 %3716  ;;  %v3819_v56 = vmul.f32 %v3818_v0, %v8230_v33  ;;  %v3218_v2 = vadd.f32 %v9533_v26, %v9532_v48  ;;  %v4262_v6 = vmul.f32 %v4261_v44, %v8552_v50  ;;  %v3442_v27 = vmul.f32 %v8510_v14, %v9538_v61  ;;  %v9543_v26 = vld [vmem:[#allocation11_spill] sm:$0xff] }
 0x476   : > { %v3723_v43 = vadd.f32 %v3715_v30, %v3563_v60  ;;  %v3724_v13 = vadd.f32 %v3717_v23, %v3564_v28  ;;  %v9536_v60 = vld [vmem:[#allocation18_spill] sm:$0xff]  ;;  %v3820_v30 = vmul.f32 %v3818_v0, %v8245_v38  ;;  %v3821_v23 = vmul.f32 %v3818_v0, %v8247_v49 }
 0x477   : > { %4230 = vrot.lane.b32.xlu1 %v4223_v54, %s5532_s8  ;;  %4232 = vrot.lane.b32.xlu0 %v4224_v7, %s5532_s8  ;;  %v9534_v54 = vld [vmem:[#allocation22_spill] sm:$0xff]  ;;  %v9535_v7 = vld [vmem:[#allocation29_spill] sm:$0xff]  ;;  %v3585_v3 = vadd.f32 %v9536_v60, %v3437_v17  ;;  %v3604_v0 = vadd.f32 %v9542_v55, %v9541_v21  ;;  %v4263_v14 = vmul.f32 %v4261_v44, %v8562_v41  ;;  %v4321_v61 = vstv %s5386_s5  ;;  %s5409_s5 = sld [smem:[#allocation3 + $0xfd]] }
 0x478   : > { %v8610_v51 = vadd.f32 %v3811_v45, %v3723_v43  ;;  %v8612_v59 = vadd.f32 %v3812_v12, %v3724_v13  ;;  %v3584_v5 = vadd.f32 %v9535_v7, %v9534_v54  ;;  %v3826_v45 = vstv %s8601_s29  ;;  %v9537_v12 = vld [vmem:[#allocation28_spill] sm:$0xff]  ;;  %v9539_v13 = vld [vmem:[#allocation23_spill] sm:$0xff]  ;;  %s8888_s29 = sld [smem:[#allocation3 + $0xeb]] }
 0x479   : > { %v3719_v1 = vpop.permute.xlu1 %3718  ;;  %v3735_v9 = vpop.permute.xlu0 %3734  ;;  %v3378_v18 = vadd.f32 %v9537_v12, %v3218_v2  ;;  %v3827_v17 = vmul.f32 %v3826_v45, %v8230_v33  ;;  %v3828_v48 = vmul.f32 %v3826_v45, %v8245_v38  ;;  %v3829_v38 = vmul.f32 %v3826_v45, %v8247_v49 }
 0x47a   : > { %v3725_v58 = vadd.f32 %v3719_v1, %v3565_v25  ;;  %v3743_v19 = vadd.f32 %v3735_v9, %v3583_v22  ;;  %v3603_v25 = vadd.f32 %v9540_v10, %v9539_v13  ;;  %v4323_v13 = vmul.f32 %v4321_v61, %v8562_v41 }
 0x47b   : > { %4248 = vrot.lane.b32.xlu1 %v4242_v31, %s5532_s8  ;;  %4250 = vrot.lane.b32.xlu0 %v4243_v46, %s5532_s8  ;;  %v4264_v46 = vmul.f32 %v4261_v44, %v8564_v63  ;;  %v4341_v10 = vstv %s5387_s6  ;;  %v4324_v55 = vmul.f32 %v4321_v61, %v8564_v63  ;;  %s5410_s6 = sld [smem:[#allocation3 + $0x106]] }
 0x47c   : > { %v8629_v24 = vadd.f32 %v3813_v52, %v3725_v58  ;;  %v8631_v32 = vadd.f32 %v3819_v56, %v3743_v19  ;;  %v4281_v52 = vstv %s8617_s30  ;;  %v3445_v58 = vadd.f32 %v3442_v27, %v3378_v18  ;;  %s8913_s30 = sld [smem:[#allocation3 + $0x11c]] }
 0x47d   : > { %v3737_v28 = vpop.permute.xlu1 %3736  ;;  %v3739_v39 = vpop.permute.xlu0 %3738  ;;  %v4282_v33 = vmul.f32 %v4281_v52, %v8552_v50 }
 0x47e   : > { %v3744_v57 = vadd.f32 %v3737_v28, %v3584_v5  ;;  %v3745_v43 = vadd.f32 %v3739_v39, %v3585_v3  ;;  %v3605_v2 = vadd.f32 %v9543_v26, %v3445_v58  ;;  %v4283_v5 = vmul.f32 %v4281_v52, %v8562_v41 }
 0x47f   : > { %4252 = vrot.lane.b32.xlu1 %v4244_v15, %s5532_s8  ;;  %4268 = vrot.lane.b32.xlu0 %v4262_v6, %s5532_s8  ;;  %v4301_v3 = vstv %s5385_s4  ;;  %s8926_s4 = sld [smem:[#allocation3 + $0xf4]] }
 0x480   : > { %v8646_v22 = vadd.f32 %v3820_v30, %v3744_v57  ;;  %v8648_v1 = vadd.f32 %v3821_v23, %v3745_v43  ;;  %v4284_v30 = vmul.f32 %v4281_v52, %v8564_v63  ;;  %v4302_v23 = vmul.f32 %v4301_v3, %v8552_v50 }
 0x481   : > { %v3755_v9 = vpop.permute.xlu1 %3754  ;;  %v3757_v31 = vpop.permute.xlu0 %3756  ;;  %v4303_v12 = vmul.f32 %v4301_v3, %v8562_v41  ;;  %v4304_v18 = vmul.f32 %v4301_v3, %v8564_v63  ;;  %v4322_v43 = vmul.f32 %v4321_v61, %v8552_v50  ;;  %v4361_v52 = vstv %s5388_s7  ;;  %s5411_s7 = sld [smem:[#allocation3 + $0x10f]] }
 0x482   : > { %v3763_v19 = vadd.f32 %v3755_v9, %v3603_v25  ;;  %v3764_v56 = vadd.f32 %v3757_v31, %v3604_v0  ;;  %v4342_v0 = vmul.f32 %v4341_v10, %v8552_v50 }
 0x483   : > { %4270 = vrot.lane.b32.xlu1 %v4263_v14, %s5532_s8  ;;  %4272 = vrot.lane.b32.xlu0 %v4264_v46, %s5532_s8  ;;  %v4343_v14 = vmul.f32 %v4341_v10, %v8562_v41  ;;  %v4344_v46 = vmul.f32 %v4341_v10, %v8564_v63 }
 0x484   : > { %v8658_v15 = vadd.f32 %v3827_v17, %v3763_v19  ;;  %v8660_v54 = vadd.f32 %v3828_v48, %v3764_v56  ;;  %v4362_v19 = vmul.f32 %v4361_v52, %v8552_v50  ;;  %v4363_v56 = vmul.f32 %v4361_v52, %v8562_v41 }
 0x485   : > { %v3759_v7 = vpop.permute.xlu1 %3758  ;;  %v8662_v44 = vpop.permute.xlu0 %3841  ;;  %v4381_v48 = vstv %s5389_s9  ;;  %s5412_s9 = sld [smem:[#allocation3 + $0x118]] }
 0x486   : > { %v3765_v60 = vadd.f32 %v3759_v7, %v3605_v2  ;;  %v4364_v7 = vmul.f32 %v4361_v52, %v8564_v63  ;;  %v4383_v3 = vmul.f32 %v4381_v48, %v8562_v41 }
 0x487   : > { %4288 = vrot.lane.b32.xlu1 %v4282_v33, %s5532_s8  ;;  %4290 = vrot.lane.b32.xlu0 %v4283_v5, %s5532_s8  ;;  %v4382_v33 = vmul.f32 %v4381_v48, %v8552_v50 }
 0x488   : > { %v8669_v28 = vadd.f32 %v3829_v38, %v3765_v60  ;;  %v4384_v38 = vmul.f32 %v4381_v48, %v8564_v63  ;;  %v4157_v48 = vstv %s5373_s15  ;;  %s5397_s15 = sld [smem:[#allocation3 + $0xda]] }
 0x489   : > { %v8671_v39 = vpop.permute.xlu1 %3843  ;;  %v8673_v6 = vpop.permute.xlu0 %3845 }
 0x48b   : > { %4292 = vrot.lane.b32.xlu1 %v4284_v30, %s5532_s8  ;;  %4308 = vrot.lane.b32.xlu0 %v4302_v23, %s5532_s8  ;;  %v4401_v30 = vstv %s5390_s10  ;;  %s5413_s10 = sld [smem:[#allocation3 + $0xd8]] }
 0x48c   : > { %v4403_v61 = vmul.f32 %v4401_v30, %v8562_v41 }
 0x48d   : > { %v8679_v49 = vpop.permute.xlu1 %3861  ;;  %v8681_v45 = vpop.permute.xlu0 %3863 }
 0x48f   : > { %4310 = vrot.lane.b32.xlu1 %v4303_v12, %s5532_s8  ;;  %4312 = vrot.lane.b32.xlu0 %v4304_v18, %s5532_s8  ;;  %v4402_v18 = vmul.f32 %v4401_v30, %v8552_v50 }
 0x491   : > { %v8687_v27 = vpop.permute.xlu1 %3865  ;;  %v8689_v57 = vpop.permute.xlu0 %3881 }
 0x493   : > { %4328 = vrot.lane.b32.xlu1 %v4322_v43, %s5532_s8  ;;  %4330 = vrot.lane.b32.xlu0 %v4323_v13, %s5532_s8  ;;  %v4421_v43 = vstv %s5391_s11  ;;  %s5414_s11 = sld [smem:[#allocation3 + $0xe1]] }
 0x494   : > { %v4423_v52 = vmul.f32 %v4421_v43, %v8562_v41 }
 0x495   : > { %v8695_v25 = vpop.permute.xlu1 %3883  ;;  %v8697_v21 = vpop.permute.xlu0 %3885 }
 0x497   : > { %4332 = vrot.lane.b32.xlu1 %v4324_v55, %s5532_s8  ;;  %4348 = vrot.lane.b32.xlu0 %v4342_v0, %s5532_s8  ;;  %v4404_v55 = vmul.f32 %v4401_v30, %v8564_v63  ;;  %v4422_v0 = vmul.f32 %v4421_v43, %v8552_v50 }
 0x499   : > { %v8703_v9 = vpop.permute.xlu1 %3901  ;;  %v8705_v31 = vpop.permute.xlu0 %3903 }
 0x49b   : > { %4350 = vrot.lane.b32.xlu1 %v4343_v14, %s5532_s8  ;;  %4352 = vrot.lane.b32.xlu0 %v4344_v46, %s5532_s8 }
 0x49d   : > { %v8711_v17 = vpop.permute.xlu1 %3905  ;;  %v8713_v58 = vpop.permute.xlu0 %3921 }
 0x49f   : > { %4368 = vrot.lane.b32.xlu1 %v4362_v19, %s5532_s8  ;;  %4370 = vrot.lane.b32.xlu0 %v4363_v56, %s5532_s8  ;;  %v4424_v19 = vmul.f32 %v4421_v43, %v8564_v63  ;;  %v4441_v56 = vstv %s5392_s14  ;;  %v4158_v43 = vmul.f32 %v4157_v48, %v8552_v50  ;;  %s5415_s14 = sld [smem:[#allocation3 + $0xea]] }
 0x4a0   : > { %v4443_v30 = vmul.f32 %v4441_v56, %v8562_v41 }
 0x4a1   : > { %v8719_v26 = vpop.permute.xlu1 %3923  ;;  %v8721_v2 = vpop.permute.xlu0 %3925 }
 0x4a3   : > { %4372 = vrot.lane.b32.xlu1 %v4364_v7, %s5532_s8  ;;  %4388 = vrot.lane.b32.xlu0 %v4382_v33, %s5533_s19  ;;  %v3850_v7 = vadd.f32 %v8662_v44, %v8439_v53  ;;  %v3851_v53 = vadd.f32 %v8671_v39, %v8460_v47  ;;  %v3852_v44 = vadd.f32 %v8673_v6, %v8462_v8  ;;  %v4165_v47 = vstv %s5374_s17  ;;  %s5398_s17 = sld [smem:[#allocation3 + $0xe3]] }
 0x4a4   : > { %v3870_v8 = vadd.f32 %v8679_v49, %v8480_v62  ;;  %v3871_v39 = vadd.f32 %v8681_v45, %v8482_v20  ;;  %v4167_v62 = vmul.f32 %v4165_v47, %v8562_v41  ;;  %v4173_v20 = vstv %s8768_s20  ;;  %s5399_s20 = sld [smem:[#allocation3 + $0xec]] }
 0x4a5   : > { %v8727_v5 = vpop.permute.xlu1 %3941  ;;  %v8729_v60 = vpop.permute.xlu0 %3943  ;;  %v3872_v49 = vadd.f32 %v8687_v27, %v8499_v16  ;;  %v3890_v45 = vadd.f32 %v8689_v57, %v8501_v36  ;;  %v4168_v16 = vmul.f32 %v4165_v47, %v8564_v63  ;;  %v4174_v27 = vmul.f32 %v4173_v20, %v8552_v50 }
 0x4a6   : > { %v3891_v36 = vadd.f32 %v8695_v25, %v8524_v34  ;;  %v3892_v57 = vadd.f32 %v8697_v21, %v8526_v4  ;;  %v4175_v34 = vmul.f32 %v4173_v20, %v8562_v41  ;;  %v4176_v25 = vmul.f32 %v4173_v20, %v8564_v63 }
 0x4a7   : > { %4390 = vrot.lane.b32.xlu1 %v4383_v3, %s5533_s19  ;;  %4392 = vrot.lane.b32.xlu0 %v4384_v38, %s5533_s19  ;;  %v4442_v38 = vmul.f32 %v4441_v56, %v8552_v50  ;;  %v4181_v4 = vstv %s8799_s22  ;;  %v3910_v21 = vadd.f32 %v8703_v9, %v8542_v35  ;;  %v3912_v9 = vadd.f32 %v8711_v17, %v8569_v37  ;;  %s5400_s22 = sld [smem:[#allocation3 + $0xf5]] }
 0x4a8   : > { %v4183_v35 = vmul.f32 %v4181_v4, %v8562_v41  ;;  %v4184_v17 = vmul.f32 %v4181_v4, %v8564_v63 }
 0x4a9   : > { %v8735_v23 = vpop.permute.xlu1 %3945  ;;  %v8737_v12 = vpop.permute.xlu0 %3961 }
 0x4ab   : > { %4408 = vrot.lane.b32.xlu1 %v4402_v18, %s5533_s19  ;;  %4410 = vrot.lane.b32.xlu0 %v4403_v61, %s5533_s19  ;;  %v4461_v61 = vstv %s5393_s16  ;;  %s5417_s16 = sld [smem:[#allocation3 + $0xfc]] }
 0x4ad   : > { %v8743_v13 = vpop.permute.xlu1 %3963  ;;  %v8745_v10 = vpop.permute.xlu0 %3965 }
 0x4af   : > { %4412 = vrot.lane.b32.xlu1 %v4404_v55, %s5533_s19  ;;  %4428 = vrot.lane.b32.xlu0 %v4422_v0, %s5533_s19 }
 0x4b1   : > { %v8751_v14 = vpop.permute.xlu1 %3981  ;;  %v8753_v46 = vpop.permute.xlu0 %3983 }
 0x4b3   : > { %4430 = vrot.lane.b32.xlu1 %v4423_v52, %s5533_s19  ;;  %4432 = vrot.lane.b32.xlu0 %v4424_v19, %s5533_s19  ;;  %v4444_v19 = vmul.f32 %v4441_v56, %v8564_v63 }
 0x4b5   : > { %v8761_v33 = vpop.permute.xlu1 %3985  ;;  %v4002_v3 = vpop.permute.xlu0 %4001 }
 0x4b6   : > { %9544 = vst [vmem:[#allocation14_spill] sm:$0xff] %v8761_v33  ;;  %v4010_v18 = vadd.f32 %v4002_v3, %v3850_v7  ;;  %v4462_v7 = vmul.f32 %v4461_v61, %v8552_v50  ;;  %v4160_v33 = vmul.f32 %v4157_v48, %v8564_v63 }
 0x4b7   : > { %4448 = vrot.lane.b32.xlu1 %v4442_v38, %s5533_s19  ;;  %4450 = vrot.lane.b32.xlu0 %v4443_v30, %s5533_s19  ;;  %v4159_v30 = vmul.f32 %v4157_v48, %v8562_v41  ;;  %v4463_v48 = vmul.f32 %v4461_v61, %v8562_v41 }
 0x4b8   : > { %v8774_v55 = vadd.f32 %v4158_v43, %v4010_v18 }
 0x4b9   : > { %v4004_v0 = vpop.permute.xlu1 %4003  ;;  %v4006_v52 = vpop.permute.xlu0 %4005 }
 0x4ba   : > { %v4011_v3 = vadd.f32 %v4004_v0, %v3851_v53  ;;  %v4012_v38 = vadd.f32 %v4006_v52, %v3852_v44  ;;  %v4464_v53 = vmul.f32 %v4461_v61, %v8564_v63  ;;  %v4481_v44 = vstv %s5394_s18  ;;  %s5418_s18 = sld [smem:[#allocation3 + $0x105]] }
 0x4bb   : > { %4452 = vrot.lane.b32.xlu1 %v4444_v19, %s5533_s19  ;;  %4468 = vrot.lane.b32.xlu0 %v4462_v7, %s5533_s19  ;;  %v4166_v19 = vmul.f32 %v4165_v47, %v8552_v50 }
 0x4bc   : > { %v8788_v6 = vadd.f32 %v4159_v30, %v4011_v3  ;;  %v8790_v56 = vadd.f32 %v4160_v33, %v4012_v38  ;;  %v4482_v38 = vmul.f32 %v4481_v44, %v8552_v50  ;;  %v4483_v30 = vmul.f32 %v4481_v44, %v8562_v41 }
 0x4bd   : > { %v4022_v18 = vpop.permute.xlu1 %4021  ;;  %v4024_v43 = vpop.permute.xlu0 %4023 }
 0x4be   : > { %v4030_v0 = vadd.f32 %v4022_v18, %v3870_v8  ;;  %v4031_v52 = vadd.f32 %v4024_v43, %v3871_v39  ;;  %v4501_v8 = vstv %s8778_s21  ;;  %s5419_s21 = sld [smem:[#allocation3 + $0x10e]] }
 0x4bf   : > { %4470 = vrot.lane.b32.xlu1 %v4463_v48, %s5533_s19  ;;  %4472 = vrot.lane.b32.xlu0 %v4464_v53, %s5533_s19  ;;  %v4503_v20 = vmul.f32 %v4501_v8, %v8562_v41 }
 0x4c0   : > { %v8805_v33 = vadd.f32 %v4166_v19, %v4030_v0  ;;  %v8807_v61 = vadd.f32 %v4167_v62, %v4031_v52  ;;  %v4484_v0 = vmul.f32 %v4481_v44, %v8564_v63  ;;  %v4502_v52 = vmul.f32 %v4501_v8, %v8552_v50 }
 0x4c1   : > { %v4026_v7 = vpop.permute.xlu1 %4025  ;;  %v4042_v3 = vpop.permute.xlu0 %4041  ;;  %v3911_v44 = vadd.f32 %v8705_v31, %v8544_v40  ;;  %v4189_v40 = vstv %s8818_s24  ;;  %v3930_v31 = vadd.f32 %v8713_v58, %v8571_v11  ;;  %v8876_v58 = vld [vmem:[#allocation2 + $0x5a] sm:$0x3]  ;;  %s5401_s24 = sld [smem:[#allocation3 + $0xfe]] }
 0x4c2   : > { %v4032_v39 = vadd.f32 %v4026_v7, %v3872_v49  ;;  %v4050_v18 = vadd.f32 %v4042_v3, %v3890_v45  ;;  %v4190_v11 = vmul.f32 %v4189_v40, %v8552_v50 }
 0x4c3   : > { %4488 = vrot.lane.b32.xlu1 %v4482_v38, %s5533_s19  ;;  %4490 = vrot.lane.b32.xlu0 %v4483_v30, %s5533_s19  ;;  %v4504_v38 = vmul.f32 %v4501_v8, %v8564_v63  ;;  %v4521_v30 = vstv %s8812_s23  ;;  %s5420_s23 = sld [smem:[#allocation3 + $0x117]] }
 0x4c4   : > { %v8824_v43 = vadd.f32 %v4168_v16, %v4032_v39  ;;  %v8826_v48 = vadd.f32 %v4174_v27, %v4050_v18  ;;  %v4182_v16 = vmul.f32 %v4181_v4, %v8552_v50 }
 0x4c5   : > { %v4044_v47 = vpop.permute.xlu1 %4043  ;;  %v4046_v53 = vpop.permute.xlu0 %4045 }
 0x4c6   : > { %v4051_v19 = vadd.f32 %v4044_v47, %v3891_v36  ;;  %v4052_v62 = vadd.f32 %v4046_v53, %v3892_v57  ;;  %v4522_v47 = vmul.f32 %v4521_v30, %v8552_v50  ;;  %v4523_v53 = vmul.f32 %v4521_v30, %v8562_v41 }
 0x4c7   : > { %4492 = vrot.lane.b32.xlu1 %v4484_v0, %s5533_s19  ;;  %4508 = vrot.lane.b32.xlu0 %v4502_v52, %s5533_s19  ;;  %v4608_v0 = vstv %s8830_s25  ;;  %v8868_v52 = vld [vmem:[#allocation2 + $0x4a] sm:$0xff]  ;;  %s5402_s25 = sld [smem:[#allocation3 + $0x107]] }
 0x4c8   : > { %v8841_v49 = vadd.f32 %v4175_v34, %v4051_v19  ;;  %v8843_v45 = vadd.f32 %v4176_v25, %v4052_v62  ;;  %v3931_v62 = vadd.f32 %v8719_v26, %v8592_v29  ;;  %v3932_v34 = vadd.f32 %v8721_v2, %v8594_v42 }
 0x4c9   : > { %v4062_v7 = vpop.permute.xlu1 %4061  ;;  %v4064_v3 = vpop.permute.xlu0 %4063  ;;  %v4191_v42 = vmul.f32 %v4189_v40, %v8562_v41  ;;  %v4192_v2 = vmul.f32 %v4189_v40, %v8564_v63 }
 0x4ca   : > { %v4070_v39 = vadd.f32 %v4062_v7, %v3910_v21  ;;  %v4071_v18 = vadd.f32 %v4064_v3, %v3911_v44  ;;  %v4524_v7 = vmul.f32 %v4521_v30, %v8564_v63  ;;  %v4609_v3 = vmul.f32 %v4608_v0, %v8868_v52 }
 0x4cb   : > { %4510 = vrot.lane.b32.xlu1 %v4503_v20, %s5533_s19  ;;  %4512 = vrot.lane.b32.xlu0 %v4504_v38, %s5533_s19  ;;  %v8890_v20 = vld [vmem:[#allocation2 + $0x52] sm:$0xff]  ;;  %v4611_v38 = vmul.f32 %v4608_v0, %v8876_v58  ;;  %v4197_v30 = vstv %s8853_s26  ;;  %s5403_s26 = sld [smem:[#allocation3 + $0x110]] }
 0x4cc   : > { %v8859_v8 = vadd.f32 %v4182_v16, %v4070_v39  ;;  %v8861_v27 = vadd.f32 %v4183_v35, %v4071_v18  ;;  %v3950_v39 = vadd.f32 %v8727_v5, %v8610_v51  ;;  %v3951_v18 = vadd.f32 %v8729_v60, %v8612_v59 }
 0x4cd   : > { %v4066_v36 = vpop.permute.xlu1 %4065  ;;  %v4082_v57 = vpop.permute.xlu0 %4081  ;;  %v4205_v51 = vstv %s8874_s28  ;;  %v3952_v59 = vadd.f32 %v8735_v23, %v8629_v24  ;;  %v3970_v5 = vadd.f32 %v8737_v12, %v8631_v32  ;;  %v4200_v24 = vmul.f32 %v4197_v30, %v8564_v63 }
 0x4ce   : > { %v4072_v19 = vadd.f32 %v4066_v36, %v3912_v9  ;;  %v4090_v37 = vadd.f32 %v4082_v57, %v3930_v31  ;;  %v4610_v31 = vmul.f32 %v4608_v0, %v8890_v20  ;;  %v4628_v36 = vstv %s8866_s27  ;;  %s5404_s27 = sld [smem:[#allocation3 + $0x119]] }
 0x4cf   : > { %4528 = vrot.lane.b32.xlu1 %v4522_v47, %s5533_s19  ;;  %4530 = vrot.lane.b32.xlu0 %v4523_v53, %s5533_s19  ;;  %v4198_v53 = vmul.f32 %v4197_v30, %v8552_v50  ;;  %v4206_v23 = vmul.f32 %v4205_v51, %v8552_v50  ;;  %v4631_v32 = vmul.f32 %v4628_v36, %v8876_v58 }
 0x4d0   : > { %v8882_v25 = vadd.f32 %v4184_v17, %v4072_v19  ;;  %v8884_v4 = vadd.f32 %v4190_v11, %v4090_v37  ;;  %v4199_v19 = vmul.f32 %v4197_v30, %v8562_v41  ;;  %v4629_v11 = vmul.f32 %v4628_v36, %v8868_v52 }
 0x4d1   : > { %v4084_v21 = vpop.permute.xlu1 %4083  ;;  %v4086_v44 = vpop.permute.xlu0 %4085  ;;  %v3971_v12 = vadd.f32 %v8743_v13, %v8646_v22  ;;  %v3990_v13 = vadd.f32 %v8751_v14, %v8658_v15  ;;  %v9545_v15 = vld [vmem:[#allocation14_spill] sm:$0xff] }
 0x4d2   : > { %v4091_v29 = vadd.f32 %v4084_v21, %v3931_v62  ;;  %v4092_v26 = vadd.f32 %v4086_v44, %v3932_v34  ;;  %v4630_v62 = vmul.f32 %v4628_v36, %v8890_v20  ;;  %v4648_v34 = vstv %s8888_s29 }
 0x4d3   : > { %4532 = vrot.lane.b32.xlu1 %v4524_v7, %s5533_s19  ;;  %4615 = vrot.lane.b32.xlu0 %v4609_v3, %s5532_s8  ;;  %v3972_v7 = vadd.f32 %v8745_v10, %v8648_v1  ;;  %v4651_v22 = vmul.f32 %v4648_v34, %v8876_v58  ;;  %v4213_v1 = vstv %s8913_s30  ;;  %v3991_v10 = vadd.f32 %v8753_v46, %v8660_v54 }
 0x4d4   : > { %v8902_v16 = vadd.f32 %v4191_v42, %v4091_v29  ;;  %v8904_v35 = vadd.f32 %v4192_v2, %v4092_v26  ;;  %v4649_v2 = vmul.f32 %v4648_v34, %v8868_v52  ;;  %v3992_v54 = vadd.f32 %v9545_v15, %v8669_v28 }
 0x4d5   : > { %v4102_v9 = vpop.permute.xlu1 %4101  ;;  %v4104_v40 = vpop.permute.xlu0 %4103 }
 0x4d6   : > { %v4110_v57 = vadd.f32 %v4102_v9, %v3950_v39  ;;  %v4111_v47 = vadd.f32 %v4104_v40, %v3951_v18  ;;  %v4207_v39 = vmul.f32 %v4205_v51, %v8562_v41  ;;  %v4208_v18 = vmul.f32 %v4205_v51, %v8564_v63 }
 0x4d7   : > { %4617 = vrot.lane.b32.xlu1 %v4610_v31, %s5532_s8  ;;  %4619 = vrot.lane.b32.xlu0 %v4611_v38, %s5532_s8  ;;  %v4214_v51 = vmul.f32 %v4213_v1, %v8552_v50 }
 0x4d8   : > { %v8919_v60 = vadd.f32 %v4198_v53, %v4110_v57  ;;  %v8921_v0 = vadd.f32 %v4199_v19, %v4111_v47  ;;  %v4650_v57 = vmul.f32 %v4648_v34, %v8890_v20  ;;  %v4668_v47 = vstv %s8926_s4 }
 0x4d9   : > { %v4106_v37 = vpop.permute.xlu1 %4105  ;;  %v4122_v17 = vpop.permute.xlu0 %4121  ;;  %v4216_v34 = vmul.f32 %v4213_v1, %v8564_v63  ;;  %v4671_v28 = vmul.f32 %v4668_v47, %v8876_v58 }
 0x4da   : > { %v4112_v21 = vadd.f32 %v4106_v37, %v3952_v59  ;;  %v4130_v44 = vadd.f32 %v4122_v17, %v3970_v5  ;;  %v4215_v59 = vmul.f32 %v4213_v1, %v8562_v41  ;;  %v4669_v17 = vmul.f32 %v4668_v47, %v8868_v52 }
 0x4db   : > { %4635 = vrot.lane.b32.xlu1 %v4629_v11, %s5532_s8  ;;  %4637 = vrot.lane.b32.xlu0 %v4630_v62, %s5532_s8  ;;  %v4670_v11 = vmul.f32 %v4668_v47, %v8890_v20  ;;  %v4688_v62 = vstv %s5409_s5 }
 0x4dc   : > { %v8937_v3 = vadd.f32 %v4200_v24, %v4112_v21  ;;  %v8939_v29 = vadd.f32 %v4206_v23, %v4130_v44  ;;  %v4689_v23 = vmul.f32 %v4688_v62, %v8868_v52  ;;  %v4691_v63 = vmul.f32 %v4688_v62, %v8876_v58 }
 0x4dd   : > { %v4124_v26 = vpop.permute.xlu1 %4123  ;;  %v4126_v42 = vpop.permute.xlu0 %4125 }
 0x4de   : > { %v4131_v38 = vadd.f32 %v4124_v26, %v3971_v12  ;;  %v4132_v30 = vadd.f32 %v4126_v42, %v3972_v7  ;;  %v4690_v26 = vmul.f32 %v4688_v62, %v8890_v20 }
 0x4df   : > { %4639 = vrot.lane.b32.xlu1 %v4631_v32, %s5532_s8  ;;  %4655 = vrot.lane.b32.xlu0 %v4649_v2, %s5532_s8  ;;  %v4708_v2 = vstv %s5410_s6 }
 0x4e0   : > { %v8952_v9 = vadd.f32 %v4207_v39, %v4131_v38  ;;  %v8954_v40 = vadd.f32 %v4208_v18, %v4132_v30  ;;  %v4709_v30 = vmul.f32 %v4708_v2, %v8868_v52  ;;  %v4710_v39 = vmul.f32 %v4708_v2, %v8890_v20 }
 0x4e1   : > { %v4142_v31 = vpop.permute.xlu1 %4141  ;;  %v4144_v36 = vpop.permute.xlu0 %4143 }
 0x4e2   : > { %v4150_v53 = vadd.f32 %v4142_v31, %v3990_v13  ;;  %v4151_v19 = vadd.f32 %v4144_v36, %v3991_v10 }
 0x4e3   : > { %4657 = vrot.lane.b32.xlu1 %v4650_v57, %s5532_s8  ;;  %4659 = vrot.lane.b32.xlu0 %v4651_v22, %s5532_s8  ;;  %v4728_v22 = vstv %s5411_s7 }
 0x4e4   : > { %v8964_v14 = vadd.f32 %v4214_v51, %v4150_v53  ;;  %v8966_v46 = vadd.f32 %v4215_v59, %v4151_v19  ;;  %v4729_v10 = vmul.f32 %v4728_v22, %v8868_v52  ;;  %v4730_v47 = vmul.f32 %v4728_v22, %v8890_v20 }
 0x4e5   : > { %v4146_v5 = vpop.permute.xlu1 %4145  ;;  %v4229_v37 = vpop.permute.xlu0 %4228  ;;  %v4748_v19 = vstv %s5412_s9 }
 0x4e6   : > { %v4152_v50 = vadd.f32 %v4146_v5, %v3992_v54  ;;  %v8971_v41 = vadd.f32 %v4229_v37, %v8774_v55  ;;  %v4749_v59 = vmul.f32 %v4748_v19, %v8868_v52  ;;  %v4750_v15 = vmul.f32 %v4748_v19, %v8890_v20 }
 0x4e7   : > { %4675 = vrot.lane.b32.xlu1 %v4669_v17, %s5532_s8  ;;  %4677 = vrot.lane.b32.xlu0 %v4670_v11, %s5532_s8  ;;  %v4768_v5 = vstv %s5413_s10 }
 0x4e8   : > { %v8977_v21 = vadd.f32 %v4216_v34, %v4152_v50  ;;  %v4769_v11 = vmul.f32 %v4768_v5, %v8868_v52 }
 0x4e9   : > { %v4231_v44 = vpop.permute.xlu1 %4230  ;;  %v4233_v24 = vpop.permute.xlu0 %4232 }
 0x4ea   : > { %v8981_v32 = vadd.f32 %v4231_v44, %v8788_v6  ;;  %v8984_v55 = vadd.f32 %v4233_v24, %v8790_v56  ;;  %v4788_v24 = vstv %s5414_s11 }
 0x4eb   : > { %4679 = vrot.lane.b32.xlu1 %v4671_v28, %s5532_s8  ;;  %4695 = vrot.lane.b32.xlu0 %v4689_v23, %s5532_s8  ;;  %v4770_v28 = vmul.f32 %v4768_v5, %v8890_v20 }
 0x4ed   : > { %v4249_v12 = vpop.permute.xlu1 %4248  ;;  %v4251_v7 = vpop.permute.xlu0 %4250 }
 0x4ee   : > { %v8991_v42 = vadd.f32 %v4249_v12, %v8805_v33  ;;  %v8994_v6 = vadd.f32 %v4251_v7, %v8807_v61  ;;  %v4711_v61 = vmul.f32 %v4708_v2, %v8876_v58  ;;  %v4790_v12 = vmul.f32 %v4788_v24, %v8890_v20 }
 0x4ef   : > { %4697 = vrot.lane.b32.xlu1 %v4690_v26, %s5532_s8  ;;  %4699 = vrot.lane.b32.xlu0 %v4691_v63, %s5532_s8  ;;  %v4789_v63 = vmul.f32 %v4788_v24, %v8868_v52  ;;  %v4808_v26 = vstv %s5415_s14 }
 0x4f1   : > { %v4253_v56 = vpop.permute.xlu1 %4252  ;;  %v4269_v38 = vpop.permute.xlu0 %4268 }
 0x4f2   : > { %v9001_v18 = vadd.f32 %v4253_v56, %v8824_v43  ;;  %v9004_v33 = vadd.f32 %v4269_v38, %v8826_v48  ;;  %v4731_v48 = vmul.f32 %v4728_v22, %v8876_v58  ;;  %v4809_v38 = vmul.f32 %v4808_v26, %v8868_v52 }
 0x4f3   : > { %4715 = vrot.lane.b32.xlu1 %v4709_v30, %s5532_s8  ;;  %4717 = vrot.lane.b32.xlu0 %v4710_v39, %s5532_s8 }
 0x4f5   : > { %v4271_v1 = vpop.permute.xlu1 %4270  ;;  %v4273_v13 = vpop.permute.xlu0 %4272 }
 0x4f6   : > { %v9011_v31 = vadd.f32 %v4271_v1, %v8841_v49  ;;  %v9014_v43 = vadd.f32 %v4273_v13, %v8843_v45 }
 0x4f7   : > { %4719 = vrot.lane.b32.xlu1 %v4711_v61, %s5532_s8  ;;  %4735 = vrot.lane.b32.xlu0 %v4729_v10, %s5532_s8  ;;  %v4810_v61 = vmul.f32 %v4808_v26, %v8890_v20 }
 0x4f9   : > { %v4289_v36 = vpop.permute.xlu1 %4288  ;;  %v4291_v57 = vpop.permute.xlu0 %4290 }
 0x4fa   : > { %v9021_v53 = vadd.f32 %v4289_v36, %v8859_v8  ;;  %v9024_v49 = vadd.f32 %v4291_v57, %v8861_v27  ;;  %v4751_v27 = vmul.f32 %v4748_v19, %v8876_v58 }
 0x4fb   : > { %4737 = vrot.lane.b32.xlu1 %v4730_v47, %s5532_s8  ;;  %4739 = vrot.lane.b32.xlu0 %v4731_v48, %s5532_s8  ;;  %v4848_v47 = vstv %s5417_s16 }
 0x4fd   : > { %v4293_v45 = vpop.permute.xlu1 %4292  ;;  %v4309_v51 = vpop.permute.xlu0 %4308 }
 0x4fe   : > { %v9031_v54 = vadd.f32 %v4293_v45, %v8882_v25  ;;  %v9034_v8 = vadd.f32 %v4309_v51, %v8884_v4  ;;  %v4771_v4 = vmul.f32 %v4768_v5, %v8876_v58 }
 0x4ff   : > { %4755 = vrot.lane.b32.xlu1 %v4749_v59, %s5532_s8  ;;  %4757 = vrot.lane.b32.xlu0 %v4750_v15, %s5532_s8 }
 0x501   : > { %v4311_v37 = vpop.permute.xlu1 %4310  ;;  %v4313_v17 = vpop.permute.xlu0 %4312 }
 0x502   : > { %v9041_v50 = vadd.f32 %v4311_v37, %v8902_v16  ;;  %v9044_v25 = vadd.f32 %v4313_v17, %v8904_v35  ;;  %v4851_v37 = vmul.f32 %v4848_v47, %v8876_v58  ;;  %v9113_v17 = vstv %s5398_s17 }
 0x503   : > { %4759 = vrot.lane.b32.xlu1 %v4751_v27, %s5532_s8  ;;  %4775 = vrot.lane.b32.xlu0 %v4769_v11, %s5533_s19  ;;  %s5416_s8 = sld [smem:[#allocation3 + $0xf3]] }
 0x505   : > { %v4329_v62 = vpop.permute.xlu1 %4328  ;;  %v4331_v34 = vpop.permute.xlu0 %4330 }
 0x506   : > { %v9051_v44 = vadd.f32 %v4329_v62, %v8919_v60  ;;  %v9054_v16 = vadd.f32 %v4331_v34, %v8921_v0  ;;  %v4791_v0 = vmul.f32 %v4788_v24, %v8876_v58  ;;  %v4553_v24 = vmul.f32 %v9113_v17, %v8868_v52 }
 0x507   : > { %4777 = vrot.lane.b32.xlu1 %v4770_v28, %s5533_s19  ;;  %4779 = vrot.lane.b32.xlu0 %v4771_v4, %s5533_s19 }
 0x509   : > { %v4333_v35 = vpop.permute.xlu1 %4332  ;;  %v4349_v23 = vpop.permute.xlu0 %4348  ;;  %v4828_v13 = vstv %s5416_s8 }
 0x50a   : > { %v9061_v7 = vadd.f32 %v4333_v35, %v8937_v3  ;;  %v9064_v60 = vadd.f32 %v4349_v23, %v8939_v29  ;;  %v4811_v29 = vmul.f32 %v4808_v26, %v8876_v58  ;;  %v4829_v36 = vmul.f32 %v4828_v13, %v8868_v52 }
 0x50b   : > { %4795 = vrot.lane.b32.xlu1 %v4789_v63, %s5533_s19  ;;  %4797 = vrot.lane.b32.xlu0 %v4790_v12, %s5533_s19  ;;  %v4830_v57 = vmul.f32 %v4828_v13, %v8890_v20  ;;  %v4831_v45 = vmul.f32 %v4828_v13, %v8876_v58  ;;  %v4554_v35 = vmul.f32 %v9113_v17, %v8890_v20  ;;  %v9126_v23 = vstv %s5399_s20 }
 0x50d   : > { %v4351_v2 = vpop.permute.xlu1 %4350  ;;  %v4353_v56 = vpop.permute.xlu0 %4352 }
 0x50e   : > { %v9071_v30 = vadd.f32 %v4351_v2, %v8952_v9  ;;  %v9074_v3 = vadd.f32 %v4353_v56, %v8954_v40  ;;  %v9088_v40 = vstv %s5397_s15 }
 0x50f   : > { %4799 = vrot.lane.b32.xlu1 %v4791_v0, %s5533_s19  ;;  %4815 = vrot.lane.b32.xlu0 %v4809_v38, %s5533_s19  ;;  %v4545_v19 = vmul.f32 %v9088_v40, %v8868_v52  ;;  %v4546_v27 = vmul.f32 %v9088_v40, %v8890_v20  ;;  %v4888_v38 = vstv %s5419_s21 }
 0x511   : > { %v4369_v39 = vpop.permute.xlu1 %4368  ;;  %v4371_v22 = vpop.permute.xlu0 %4370 }
 0x512   : > { %v9081_v1 = vadd.f32 %v4369_v39, %v8964_v14  ;;  %v9084_v9 = vadd.f32 %v4371_v22, %v8966_v46 }
 0x513   : > { %4817 = vrot.lane.b32.xlu1 %v4810_v61, %s5533_s19  ;;  %4819 = vrot.lane.b32.xlu0 %v4811_v29, %s5533_s19  ;;  %v4561_v29 = vmul.f32 %v9126_v23, %v8868_v52 }
 0x515   : > { %v4373_v10 = vpop.permute.xlu1 %4372  ;;  %v4389_v48 = vpop.permute.xlu0 %4388 }
 0x516   : > { %v9093_v14 = vadd.f32 %v4373_v10, %v8977_v21  ;;  %v4397_v46 = vadd.f32 %v4389_v48, %v8971_v41  ;;  %v4849_v21 = vmul.f32 %v4848_v47, %v8868_v52  ;;  %v4562_v48 = vmul.f32 %v9126_v23, %v8890_v20 }
 0x517   : > { %4835 = vrot.lane.b32.xlu1 %v4829_v36, %s5533_s19  ;;  %4837 = vrot.lane.b32.xlu0 %v4830_v57, %s5533_s19  ;;  %v4891_v36 = vmul.f32 %v4888_v38, %v8876_v58  ;;  %v9155_v57 = vstv %s5400_s22 }
 0x518   : > { %v9101_v51 = vadd.f32 %v4545_v19, %v4397_v46 }
 0x519   : > { %v4391_v59 = vpop.permute.xlu1 %4390  ;;  %v4393_v15 = vpop.permute.xlu0 %4392 }
 0x51a   : > { %v4398_v5 = vadd.f32 %v4391_v59, %v8981_v32  ;;  %v9106_v41 = vadd.f32 %v4393_v15, %v8984_v55  ;;  %v4850_v32 = vmul.f32 %v4848_v47, %v8890_v20  ;;  %v4868_v55 = vstv %s5418_s18 }
 0x51b   : > { %4839 = vrot.lane.b32.xlu1 %v4831_v45, %s5533_s19  ;;  %4855 = vrot.lane.b32.xlu0 %v4849_v21, %s5533_s19  ;;  %v4870_v0 = vmul.f32 %v4868_v55, %v8890_v20  ;;  %v4871_v39 = vmul.f32 %v4868_v55, %v8876_v58  ;;  %v4908_v45 = vstv %s5420_s23  ;;  %v4569_v15 = vmul.f32 %v9155_v57, %v8868_v52 }
 0x51c   : > { %v9115_v11 = vadd.f32 %v4546_v27, %v4398_v5  ;;  %v4570_v21 = vmul.f32 %v9155_v57, %v8890_v20  ;;  %v9168_v5 = vstv %s5401_s24 }
 0x51d   : > { %v4409_v4 = vpop.permute.xlu1 %4408  ;;  %v4411_v62 = vpop.permute.xlu0 %4410 }
 0x51e   : > { %v4417_v34 = vadd.f32 %v4409_v4, %v8991_v42  ;;  %v4418_v28 = vadd.f32 %v4411_v62, %v8994_v6  ;;  %v4869_v6 = vmul.f32 %v4868_v55, %v8868_v52  ;;  %v4910_v62 = vmul.f32 %v4908_v45, %v8890_v20 }
 0x51f   : > { %4857 = vrot.lane.b32.xlu1 %v4850_v32, %s5533_s19  ;;  %4859 = vrot.lane.b32.xlu0 %v4851_v37, %s5533_s19 }
 0x520   : > { %v9128_v63 = vadd.f32 %v4553_v24, %v4417_v34  ;;  %v9130_v12 = vadd.f32 %v4554_v35, %v4418_v28  ;;  %v4577_v34 = vmul.f32 %v9168_v5, %v8868_v52  ;;  %v4911_v28 = vmul.f32 %v4908_v45, %v8876_v58 }
 0x521   : > { %v4413_v42 = vpop.permute.xlu1 %4412  ;;  %v4429_v26 = vpop.permute.xlu0 %4428 }
 0x522   : > { %v9135_v2 = vadd.f32 %v4413_v42, %v9001_v18  ;;  %v4437_v56 = vadd.f32 %v4429_v26, %v9004_v33  ;;  %v4889_v18 = vmul.f32 %v4888_v38, %v8868_v52 }
 0x523   : > { %4875 = vrot.lane.b32.xlu1 %v4869_v6, %s5533_s19  ;;  %4877 = vrot.lane.b32.xlu0 %v4870_v0, %s5533_s19  ;;  %v9194_v6 = vstv %s5402_s25 }
 0x524   : > { %v9143_v22 = vadd.f32 %v4561_v29, %v4437_v56 }
 0x525   : > { %v4431_v61 = vpop.permute.xlu1 %4430  ;;  %v4433_v13 = vpop.permute.xlu0 %4432 }
 0x526   : > { %v4438_v10 = vadd.f32 %v4431_v61, %v9011_v31  ;;  %v9148_v33 = vadd.f32 %v4433_v13, %v9014_v43  ;;  %v4890_v31 = vmul.f32 %v4888_v38, %v8890_v20  ;;  %v9204_v61 = vstv %s5403_s26 }
 0x527   : > { %4879 = vrot.lane.b32.xlu1 %v4871_v39, %s5533_s19  ;;  %4895 = vrot.lane.b32.xlu0 %v4889_v18, %s5533_s19 }
 0x528   : > { %v9157_v46 = vadd.f32 %v4562_v48, %v4438_v10 }
 0x529   : > { %v4449_v47 = vpop.permute.xlu1 %4448  ;;  %v4451_v19 = vpop.permute.xlu0 %4450 }
 0x52a   : > { %v4457_v43 = vadd.f32 %v4449_v47, %v9021_v53  ;;  %v4458_v59 = vadd.f32 %v4451_v19, %v9024_v49  ;;  %v4909_v49 = vmul.f32 %v4908_v45, %v8868_v52 }
 0x52b   : > { %4897 = vrot.lane.b32.xlu1 %v4890_v31, %s5533_s19  ;;  %4899 = vrot.lane.b32.xlu0 %v4891_v36, %s5533_s19 }
 0x52c   : > { %v9170_v27 = vadd.f32 %v4569_v15, %v4457_v43  ;;  %v9172_v37 = vadd.f32 %v4570_v21, %v4458_v59  ;;  %v4594_v59 = vmul.f32 %v9204_v61, %v8890_v20  ;;  %v9224_v15 = vstv %s5404_s27 }
 0x52d   : > { %v4453_v53 = vpop.permute.xlu1 %4452  ;;  %v4469_v4 = vpop.permute.xlu0 %4468 }
 0x52e   : > { %v9177_v32 = vadd.f32 %v4453_v53, %v9031_v54  ;;  %v4477_v55 = vadd.f32 %v4469_v4, %v9034_v8  ;;  %v4578_v8 = vmul.f32 %v9168_v5, %v8890_v20 }
 0x52f   : > { %4915 = vrot.lane.b32.xlu1 %v4909_v49, %s5533_s19  ;;  %4917 = vrot.lane.b32.xlu0 %v4910_v62, %s5533_s19  ;;  %v4601_v49 = vmul.f32 %v9224_v15, %v8868_v52 }
 0x530   : > { %v9185_v24 = vadd.f32 %v4577_v34, %v4477_v55 }
 0x531   : > { %v4471_v35 = vpop.permute.xlu1 %4470  ;;  %v4473_v42 = vpop.permute.xlu0 %4472 }
 0x532   : > { %v4478_v26 = vadd.f32 %v4471_v35, %v9041_v50  ;;  %v9189_v54 = vadd.f32 %v4473_v42, %v9044_v25  ;;  %v4585_v50 = vmul.f32 %v9194_v6, %v8868_v52  ;;  %v4586_v25 = vmul.f32 %v9194_v6, %v8890_v20 }
 0x533   : > { %4919 = vrot.lane.b32.xlu1 %v4911_v28, %s5533_s19  ;;  %s5445_s19 = smul.u32 192, %s9551_s13 }
 0x534   : > { %v9196_v0 = vadd.f32 %v4578_v8, %v4478_v26 }
 0x535   : > { %v4489_v56 = vpop.permute.xlu1 %4488  ;;  %v4491_v38 = vpop.permute.xlu0 %4490  ;;  %s9283_s30 = scalar_lea.vmem %s9392_s3, %s5445_s19 }
 0x536   : > { %v4497_v29 = vadd.f32 %v4489_v56, %v9051_v44  ;;  %v4498_v39 = vadd.f32 %v4491_v38, %v9054_v16  ;;  %v4593_v16 = vmul.f32 %v9204_v61, %v8868_v52 }
 0x538   : > { %v9206_v13 = vadd.f32 %v4585_v50, %v4497_v29  ;;  %v9208_v18 = vadd.f32 %v4586_v25, %v4498_v39 }
 0x539   : > { %v4493_v10 = vpop.permute.xlu1 %4492  ;;  %v4509_v48 = vpop.permute.xlu0 %4508 }
 0x53a   : > { %v9211_v36 = vadd.f32 %v4493_v10, %v9061_v7  ;;  %v4517_v44 = vadd.f32 %v4509_v48, %v9064_v60 }
 0x53c   : > { %v9216_v47 = vadd.f32 %v4593_v16, %v4517_v44 }
 0x53d   : > { %v4511_v19 = vpop.permute.xlu1 %4510  ;;  %v4513_v31 = vpop.permute.xlu0 %4512 }
 0x53e   : > { %v4518_v45 = vadd.f32 %v4511_v19, %v9071_v30  ;;  %v9220_v43 = vadd.f32 %v4513_v31, %v9074_v3  ;;  %v4602_v30 = vmul.f32 %v9224_v15, %v8890_v20 }
 0x540   : > { %v9226_v7 = vadd.f32 %v4594_v59, %v4518_v45  ;;  %v4547_v59 = vmul.f32 %v9088_v40, %v8876_v58 }
 0x541   : > { %v4529_v60 = vpop.permute.xlu1 %4528  ;;  %v4531_v21 = vpop.permute.xlu0 %4530 }
 0x542   : > { %v4537_v53 = vadd.f32 %v4529_v60, %v9081_v1  ;;  %v4538_v4 = vadd.f32 %v4531_v21, %v9084_v9 }
 0x544   : > { %v9234_v3 = vadd.f32 %v4601_v49, %v4537_v53  ;;  %v9236_v62 = vadd.f32 %v4602_v30, %v4538_v4  ;;  %v4550_v4 = vadd.f32 %v4547_v59, %v9106_v41 }
 0x545   : > { %v4533_v55 = vpop.permute.xlu1 %4532  ;;  %v4616_v34 = vpop.permute.xlu0 %4615 }
 0x546   : > { %v9239_v28 = vadd.f32 %v4533_v55, %v9093_v14  ;;  %v4624_v60 = vadd.f32 %v4616_v34, %v9101_v51  ;;  %v4555_v51 = vmul.f32 %v9113_v17, %v8876_v58 }
 0x548   : > { %9546 = vst [vmem:[#allocation16_spill] sm:$0xff] %v9239_v28  ;;  %v4558_v17 = vadd.f32 %v4555_v51, %v9135_v2 }
 0x549   : > { %v4618_v35 = vpop.permute.xlu1 %4617  ;;  %v4620_v42 = vpop.permute.xlu0 %4619 }
 0x54a   : > { %v4625_v30 = vadd.f32 %v4618_v35, %v9115_v11  ;;  %v4626_v55 = vadd.f32 %v4620_v42, %v4550_v4  ;;  %v4563_v42 = vmul.f32 %v9126_v23, %v8876_v58 }
 0x54c   : > { %v4566_v23 = vadd.f32 %v4563_v42, %v9148_v33 }
 0x54d   : > { %v4636_v1 = vpop.permute.xlu1 %4635  ;;  %v4638_v26 = vpop.permute.xlu0 %4637 }
 0x551   : > { %v4640_v9 = vpop.permute.xlu1 %4639  ;;  %v4656_v8 = vpop.permute.xlu0 %4655 }
 0x555   : > { %v9241_v56 = vpop.permute.xlu1 %4657  ;;  %v9243_v52 = vpop.permute.xlu0 %4659 }
 0x559   : > { %v9245_v20 = vpop.permute.xlu1 %4675  ;;  %v9247_v38 = vpop.permute.xlu0 %4677 }
 0x55a   : > { %v4685_v42 = vadd.f32 %v9247_v38, %v9172_v37 }
 0x55d   : > { %v9249_v29 = vpop.permute.xlu1 %4679  ;;  %v9251_v39 = vpop.permute.xlu0 %4695 }
 0x561   : > { %v9253_v14 = vpop.permute.xlu1 %4697  ;;  %v9255_v50 = vpop.permute.xlu0 %4699 }
 0x565   : > { %v9257_v25 = vpop.permute.xlu1 %4715  ;;  %v9259_v10 = vpop.permute.xlu0 %4717 }
 0x569   : > { %v9261_v48 = vpop.permute.xlu1 %4719  ;;  %v9263_v44 = vpop.permute.xlu0 %4735 }
 0x56d   : > { %v9265_v16 = vpop.permute.xlu1 %4737  ;;  %v9267_v19 = vpop.permute.xlu0 %4739 }
 0x571   : > { %v9269_v31 = vpop.permute.xlu1 %4755  ;;  %v9271_v45 = vpop.permute.xlu0 %4757 }
 0x575   : > { %v9277_v21 = vpop.permute.xlu1 %4759  ;;  %v4776_v53 = vpop.permute.xlu0 %4775 }
 0x576   : > { %9547 = vst [vmem:[#allocation20_spill] sm:$0xff] %v9277_v21  ;;  %v4784_v49 = vadd.f32 %v4776_v53, %v4624_v60  ;;  %v4644_v60 = vadd.f32 %v4636_v1, %v9128_v63  ;;  %v4645_v53 = vadd.f32 %v4638_v26, %v9130_v12  ;;  %v4646_v26 = vadd.f32 %v4640_v9, %v4558_v17 }
 0x578   : > { %vm4927_vm4 = vcmp.gt.f32.partialorder %v4784_v49, 0.0  ;;  %v4930_v40 = vmul.f32 0.01, %v4784_v49 }
 0x579   : > { %v4778_v34 = vpop.permute.xlu1 %4777  ;;  %v4780_v21 = vpop.permute.xlu0 %4779 }
 0x57a   : > { %v4933_v28 = vsel %vm4927_vm4, %v4784_v49, %v4930_v40  ;;  %v4785_v41 = vadd.f32 %v4778_v34, %v4625_v30  ;;  %v4786_v59 = vadd.f32 %v4780_v21, %v4626_v55 }
 0x57b   : > { %4937 = vst.msk [vmem:[%s9283_s30] sm:$0xff] %vm4936_vm3, %v4933_v28  ;;  %v4664_v28 = vadd.f32 %v4656_v8, %v9143_v22  ;;  %v4665_v22 = vadd.f32 %v9241_v56, %v9157_v46  ;;  %v4666_v8 = vadd.f32 %v9243_v52, %v4566_v23  ;;  %v4684_v52 = vadd.f32 %v9245_v20, %v9170_v27 }
 0x57c   : > { %vm4928_vm6 = vcmp.gt.f32.partialorder %v4785_v41, 0.0  ;;  %v4931_v11 = vmul.f32 0.01, %v4785_v41  ;;  %vm4929_vm7 = vcmp.gt.f32.partialorder %v4786_v59, 0.0  ;;  %v4932_v35 = vmul.f32 0.01, %v4786_v59 }
 0x57d   : > { %v4796_v4 = vpop.permute.xlu1 %4795  ;;  %v4798_v21 = vpop.permute.xlu0 %4797 }
 0x57e   : > { %v4934_v49 = vsel %vm4928_vm6, %v4785_v41, %v4931_v11  ;;  %v4935_v63 = vsel %vm4929_vm7, %v4786_v59, %v4932_v35  ;;  %v4804_v1 = vadd.f32 %v4796_v4, %v4644_v60  ;;  %v4805_v12 = vadd.f32 %v4798_v21, %v4645_v53 }
 0x57f   : > { %4938 = vst.msk [vmem:[%s9283_s30 + $0x8] sm:$0xff] %vm4936_vm3, %v4934_v49  ;;  %v4571_v60 = vmul.f32 %v9155_v57, %v8876_v58  ;;  %v4579_v49 = vmul.f32 %v9168_v5, %v8876_v58 }
 0x580   : > { %4940 = vst.msk [vmem:[%s9283_s30 + $0x10] sm:$0x3] %vm4939_vm5, %v4935_v63  ;;  %vm4941_vm8 = vcmp.gt.f32.partialorder %v4804_v1, 0.0  ;;  %v4944_v2 = vmul.f32 0.01, %v4804_v1  ;;  %vm4942_vm9 = vcmp.gt.f32.partialorder %v4805_v12, 0.0 }
 0x581   : > { %v4945_v30 = vmul.f32 0.01, %v4805_v12  ;;  %v4800_v55 = vpop.permute.xlu1 %4799  ;;  %v4816_v40 = vpop.permute.xlu0 %4815  ;;  %v4574_v21 = vadd.f32 %v4571_v60, %v9177_v32 }
 0x582   : > { %v4947_v51 = vsel %vm4941_vm8, %v4804_v1, %v4944_v2  ;;  %v4806_v41 = vadd.f32 %v4800_v55, %v4646_v26  ;;  %v4824_v9 = vadd.f32 %v4816_v40, %v4664_v28  ;;  %v4704_v26 = vadd.f32 %v9251_v39, %v9185_v24 }
 0x583   : > { %v4948_v34 = vsel %vm4942_vm9, %v4805_v12, %v4945_v30  ;;  %5421 = vst.msk [vmem:[%s9283_s30 + $0x18] sm:$0xff] %vm4936_vm3, %v4947_v51  ;;  %v4686_v12 = vadd.f32 %v9249_v29, %v4574_v21  ;;  %v4582_v28 = vadd.f32 %v4579_v49, %v9189_v54  ;;  %v4705_v24 = vadd.f32 %v9253_v14, %v9196_v0 }
 0x584   : > { %5422 = vst.msk [vmem:[%s9283_s30 + $0x20] sm:$0xff] %vm4936_vm3, %v4948_v34  ;;  %vm4943_vm10 = vcmp.gt.f32.partialorder %v4806_v41, 0.0  ;;  %v4946_v59 = vmul.f32 0.01, %v4806_v41  ;;  %vm4954_vm11 = vcmp.gt.f32.partialorder %v4824_v9, 0.0  ;;  %v4587_v34 = vmul.f32 %v9194_v6, %v8876_v58 }
 0x585   : > { %v4957_v33 = vmul.f32 0.01, %v4824_v9  ;;  %v4818_v53 = vpop.permute.xlu1 %4817  ;;  %v4820_v11 = vpop.permute.xlu0 %4819  ;;  %v4706_v39 = vadd.f32 %v9255_v50, %v4582_v28  ;;  %v4724_v50 = vadd.f32 %v9257_v25, %v9206_v13 }
 0x586   : > { %v4949_v35 = vsel %vm4943_vm10, %v4806_v41, %v4946_v59  ;;  %v4825_v46 = vadd.f32 %v4818_v53, %v4665_v22  ;;  %v4826_v56 = vadd.f32 %v4820_v11, %v4666_v8  ;;  %v4725_v59 = vadd.f32 %v9259_v10, %v9208_v18 }
 0x587   : > { %v4960_v17 = vsel %vm4954_vm11, %v4824_v9, %v4957_v33  ;;  %5423 = vst.msk [vmem:[%s9283_s30 + $0x28] sm:$0x3] %vm4939_vm5, %v4949_v35  ;;  %v4590_v60 = vadd.f32 %v4587_v34, %v9211_v36  ;;  %v4595_v53 = vmul.f32 %v9204_v61, %v8876_v58 }
 0x588   : > { %5424 = vst.msk [vmem:[%s9283_s30 + $0x30] sm:$0xff] %vm4936_vm3, %v4960_v17  ;;  %vm4955_vm12 = vcmp.gt.f32.partialorder %v4825_v46, 0.0  ;;  %v4958_v57 = vmul.f32 0.01, %v4825_v46  ;;  %vm4956_vm13 = vcmp.gt.f32.partialorder %v4826_v56, 0.0 }
 0x589   : > { %v4959_v4 = vmul.f32 0.01, %v4826_v56  ;;  %v4836_v63 = vpop.permute.xlu1 %4835  ;;  %v4838_v27 = vpop.permute.xlu0 %4837  ;;  %v4726_v17 = vadd.f32 %v9261_v48, %v4590_v60 }
 0x58a   : > { %v4961_v20 = vsel %vm4955_vm12, %v4825_v46, %v4958_v57  ;;  %v4844_v37 = vadd.f32 %v4836_v63, %v4684_v52  ;;  %v4845_v38 = vadd.f32 %v4838_v27, %v4685_v42  ;;  %v4744_v46 = vadd.f32 %v9263_v44, %v9216_v47 }
 0x58b   : > { %v4962_v1 = vsel %vm4956_vm13, %v4826_v56, %v4959_v4  ;;  %5425 = vst.msk [vmem:[%s9283_s30 + $0x38] sm:$0xff] %vm4936_vm3, %v4961_v20  ;;  %v4598_v56 = vadd.f32 %v4595_v53, %v9220_v43  ;;  %v4745_v47 = vadd.f32 %v9265_v16, %v9226_v7  ;;  %v4603_v63 = vmul.f32 %v9224_v15, %v8876_v58 }
 0x58c   : > { %5426 = vst.msk [vmem:[%s9283_s30 + $0x40] sm:$0x3] %vm4939_vm5, %v4962_v1  ;;  %vm4967_vm14 = vcmp.gt.f32.partialorder %v4844_v37, 0.0  ;;  %v4970_v32 = vmul.f32 0.01, %v4844_v37  ;;  %vm4968_vm15 = vcmp.gt.f32.partialorder %v4845_v38, 0.0 }
 0x58d   : > { %v4971_v5 = vmul.f32 0.01, %v4845_v38  ;;  %v4840_v2 = vpop.permute.xlu1 %4839  ;;  %v4856_v30 = vpop.permute.xlu0 %4855  ;;  %v4746_v44 = vadd.f32 %v9267_v19, %v4598_v56  ;;  %v4764_v19 = vadd.f32 %v9269_v31, %v9234_v3 }
 0x58e   : > { %v4973_v23 = vsel %vm4967_vm14, %v4844_v37, %v4970_v32  ;;  %v4846_v29 = vadd.f32 %v4840_v2, %v4686_v12  ;;  %v4864_v40 = vadd.f32 %v4856_v30, %v4704_v26  ;;  %v9548_v12 = vld [vmem:[#allocation16_spill] sm:$0xff] }
 0x58f   : > { %v4974_v55 = vsel %vm4968_vm15, %v4845_v38, %v4971_v5  ;;  %5427 = vst.msk [vmem:[%s9283_s30 + $0x48] sm:$0xff] %vm4936_vm3, %v4973_v23  ;;  %v4765_v38 = vadd.f32 %v9271_v45, %v9236_v62  ;;  %v4606_v26 = vadd.f32 %v4603_v63, %v9548_v12  ;;  %v9549_v62 = vld [vmem:[#allocation20_spill] sm:$0xff] }
 0x590   : > { %5428 = vst.msk [vmem:[%s9283_s30 + $0x50] sm:$0xff] %vm4936_vm3, %v4974_v55  ;;  %vm4969_vm0 = vcmp.gt.f32.partialorder %v4846_v29, 0.0  ;;  %v4972_v51 = vmul.f32 0.01, %v4846_v29  ;;  %vm4980_vm1 = vcmp.gt.f32.partialorder %v4864_v40, 0.0 }
 0x591   : > { %v4983_v54 = vmul.f32 0.01, %v4864_v40  ;;  %v4858_v41 = vpop.permute.xlu1 %4857  ;;  %v4860_v9 = vpop.permute.xlu0 %4859  ;;  %v4766_v45 = vadd.f32 %v9549_v62, %v4606_v26 }
 0x592   : > { %v4975_v22 = vsel %vm4969_vm0, %v4846_v29, %v4972_v51  ;;  %v4865_v0 = vadd.f32 %v4858_v41, %v4705_v24  ;;  %v4866_v14 = vadd.f32 %v4860_v9, %v4706_v39 }
 0x593   : > { %v4986_v8 = vsel %vm4980_vm1, %v4864_v40, %v4983_v54  ;;  %5429 = vst.msk [vmem:[%s9283_s30 + $0x58] sm:$0x3] %vm4939_vm5, %v4975_v22 }
 0x594   : > { %5430 = vst.msk [vmem:[%s9283_s30 + $0x60] sm:$0xff] %vm4936_vm3, %v4986_v8  ;;  %vm4981_vm2 = vcmp.gt.f32.partialorder %v4865_v0, 0.0  ;;  %v4984_v6 = vmul.f32 0.01, %v4865_v0  ;;  %vm4982_vm4 = vcmp.gt.f32.partialorder %v4866_v14, 0.0 }
 0x595   : > { %v4985_v33 = vmul.f32 0.01, %v4866_v14  ;;  %v4876_v11 = vpop.permute.xlu1 %4875  ;;  %v4878_v13 = vpop.permute.xlu0 %4877 }
 0x596   : > { %v4987_v25 = vsel %vm4981_vm2, %v4865_v0, %v4984_v6  ;;  %v4884_v18 = vadd.f32 %v4876_v11, %v4724_v50  ;;  %v4885_v10 = vadd.f32 %v4878_v13, %v4725_v59 }
 0x597   : > { %v4988_v35 = vsel %vm4982_vm4, %v4866_v14, %v4985_v33  ;;  %5431 = vst.msk [vmem:[%s9283_s30 + $0x68] sm:$0xff] %vm4936_vm3, %v4987_v25 }
 0x598   : > { %5432 = vst.msk [vmem:[%s9283_s30 + $0x70] sm:$0x3] %vm4939_vm5, %v4988_v35  ;;  %vm4993_vm6 = vcmp.gt.f32.partialorder %v4884_v18, 0.0  ;;  %v4996_v36 = vmul.f32 0.01, %v4884_v18  ;;  %vm4994_vm7 = vcmp.gt.f32.partialorder %v4885_v10, 0.0 }
 0x599   : > { %v4997_v61 = vmul.f32 0.01, %v4885_v10  ;;  %v4880_v52 = vpop.permute.xlu1 %4879  ;;  %v4896_v42 = vpop.permute.xlu0 %4895 }
 0x59a   : > { %v4999_v57 = vsel %vm4993_vm6, %v4884_v18, %v4996_v36  ;;  %v4886_v48 = vadd.f32 %v4880_v52, %v4726_v17  ;;  %v4904_v21 = vadd.f32 %v4896_v42, %v4744_v46 }
 0x59b   : > { %v5000_v4 = vsel %vm4994_vm7, %v4885_v10, %v4997_v61  ;;  %5433 = vst.msk [vmem:[%s9283_s30 + $0x78] sm:$0xff] %vm4936_vm3, %v4999_v57 }
 0x59c   : > { %5434 = vst.msk [vmem:[%s9283_s30 + $0x80] sm:$0xff] %vm4936_vm3, %v5000_v4  ;;  %vm4995_vm8 = vcmp.gt.f32.partialorder %v4886_v48, 0.0  ;;  %v4998_v49 = vmul.f32 0.01, %v4886_v48  ;;  %vm5006_vm9 = vcmp.gt.f32.partialorder %v4904_v21, 0.0 }
 0x59d   : > { %v5009_v43 = vmul.f32 0.01, %v4904_v21  ;;  %v4898_v27 = vpop.permute.xlu1 %4897  ;;  %v4900_v20 = vpop.permute.xlu0 %4899 }
 0x59e   : > { %v5001_v1 = vsel %vm4995_vm8, %v4886_v48, %v4998_v49  ;;  %v4905_v7 = vadd.f32 %v4898_v27, %v4745_v47  ;;  %v4906_v16 = vadd.f32 %v4900_v20, %v4746_v44 }
 0x59f   : > { %v5012_v37 = vsel %vm5006_vm9, %v4904_v21, %v5009_v43  ;;  %5435 = vst.msk [vmem:[%s9283_s30 + $0x88] sm:$0x3] %vm4939_vm5, %v5001_v1 }
 0x5a0   : > { %5436 = vst.msk [vmem:[%s9283_s30 + $0x90] sm:$0xff] %vm4936_vm3, %v5012_v37  ;;  %vm5007_vm10 = vcmp.gt.f32.partialorder %v4905_v7, 0.0  ;;  %v5010_v58 = vmul.f32 0.01, %v4905_v7  ;;  %vm5008_vm11 = vcmp.gt.f32.partialorder %v4906_v16, 0.0 }
 0x5a1   : > { %v5011_v15 = vmul.f32 0.01, %v4906_v16  ;;  %v4916_v32 = vpop.permute.xlu1 %4915  ;;  %v4918_v5 = vpop.permute.xlu0 %4917 }
 0x5a2   : > { %v5013_v28 = vsel %vm5007_vm10, %v4905_v7, %v5010_v58  ;;  %v4924_v31 = vadd.f32 %v4916_v32, %v4764_v19  ;;  %v4925_v2 = vadd.f32 %v4918_v5, %v4765_v38 }
 0x5a3   : > { %v5014_v3 = vsel %vm5008_vm11, %v4906_v16, %v5011_v15  ;;  %5437 = vst.msk [vmem:[%s9283_s30 + $0x98] sm:$0xff] %vm4936_vm3, %v5013_v28 }
 0x5a4   : > { %5438 = vst.msk [vmem:[%s9283_s30 + $0xa0] sm:$0x3] %vm4939_vm5, %v5014_v3  ;;  %vm5019_vm12 = vcmp.gt.f32.partialorder %v4924_v31, 0.0  ;;  %v5022_v30 = vmul.f32 0.01, %v4924_v31  ;;  %vm5020_vm13 = vcmp.gt.f32.partialorder %v4925_v2, 0.0 }
 0x5a5   : > { %v5023_v23 = vmul.f32 0.01, %v4925_v2  ;;  %v4920_v55 = vpop.permute.xlu1 %4919 }
 0x5a6   : > { %v5025_v29 = vsel %vm5019_vm12, %v4924_v31, %v5022_v30  ;;  %v4926_v24 = vadd.f32 %v4920_v55, %v4766_v45 }
 0x5a7   : > { %v5026_v40 = vsel %vm5020_vm13, %v4925_v2, %v5023_v23  ;;  %5439 = vst.msk [vmem:[%s9283_s30 + $0xa8] sm:$0xff] %vm4936_vm3, %v5025_v29 }
 0x5a8   : > { %5440 = vst.msk [vmem:[%s9283_s30 + $0xb0] sm:$0xff] %vm4936_vm3, %v5026_v40  ;;  %vm5021_vm14 = vcmp.gt.f32.partialorder %v4926_v24, 0.0  ;;  %v5024_v39 = vmul.f32 0.01, %v4926_v24 }
 0x5aa   : > { %v5027_v51 = vsel %vm5021_vm14, %v4926_v24, %v5024_v39 }
 0x5ab   : > { %5441 = vst.msk [vmem:[%s9283_s30 + $0xb8] sm:$0x3] %vm4939_vm5, %v5027_v51 }
 0x5ac PF: > { %s15_s12 = sadd.s32 1, %s5526_s12  }
 0x5ad   : > { %p12_p5 = scmp.ge.s32.totalorder %s15_s12, 4  }
 0x5af   :  { %14 = sbr.rel (!%p12_p5) target bundleno = 2 (0x2), region = 84 }
 0x5b4   :  { %5053 = vsyncpa [#allocation4], 1 }
 0x5b5   :  { %5055 = vsyncpa [#allocation4 + $0x1], 1 }
 0x5b6   :  { %5056 = vsyncpa [#allocation6], 1 }

</bundles_post_ra>
